<compile_context>
chip_gen: v5e
topology: v5e:2x2
jax: 0.10.0
libtpu: 0.0.40
codegen_flags: <defaults>
</compile_context>

<pallas_src>
import numpy as np
import jax
import jax.numpy as jnp
from jax.experimental import pallas as pl
from jax.experimental.pallas import tpu as pltpu

NUM_CLASSES = 10
EPS = 1e-5

TB = 32                       # images per grid step (batch tile)
H0, W0 = 32, 32               # input spatial size
K = 5                         # conv kernel size
C1, H1, W1 = 6, 28, 28        # conv1 output
P1H, P1W = 14, 14             # pool1 output
C2, H2, W2 = 16, 10, 10       # conv2 output
P2H, P2W = 5, 5               # pool2 output
F1, F2, F3 = 120, 84, NUM_CLASSES
LANE = 128

S1_ROWS = TB * H0             # pool1 staging rows (full 32-row/image layout)
S1_PAD = 16                   # sublane padding so strided conv2 gathers stay in-bounds
S2_ROWS = TB * (H0 // 2)      # pool2 staging rows (16 rows/image layout)


# ----------------------------------------------------------------------------
# Static 0/1 bases used only on the wrapper side to build banded conv weights.
# ----------------------------------------------------------------------------
def _toeplitz_bases():
    # b[kw, w, p, j] = 1  iff  w == 2*j + p + kw  (width correlation with the
    # 2x max-pool width pairing ow = 2j+p folded into the output lane layout)
    b1 = np.zeros((K, W0, 2, P1W), np.float32)
    for kw in range(K):
        for p in range(2):
            for j in range(P1W):
                b1[kw, 2 * j + p + kw, p, j] = 1.0
    b2 = np.zeros((K, P1W, 2, P2W), np.float32)
    for kw in range(K):
        for p in range(2):
            for j in range(P2W):
                b2[kw, 2 * j + p + kw, p, j] = 1.0
    return b1, b2


_B1, _B2 = _toeplitz_bases()


# ----------------------------------------------------------------------------
# Fused LeNet-5 kernel: one batch tile (TB images) per grid step
# ----------------------------------------------------------------------------
def lenet5_kernel(x_ref, t1_ref, sh1_ref, t2_ref, sh2_ref,
                  w1_ref, b1_ref, w2_ref, b2_ref, w3_ref, b3_ref,
                  out_ref, s1, s2):
    def dot(a, b):
        return jnp.dot(a, b, preferred_element_type=jnp.float32)

    # ---- conv1 (BN folded) as ONE bf16 MXU matmul over the merged kh band ---
    # x_ref rows: b*32 + oh ; x_ref lanes: kh*32 + w (shifted views from wrapper)
    a1 = dot(x_ref[...], t1_ref[...]) + sh1_ref[...]        # (TB*32, 256) f32
    a1 = jnp.maximum(a1, 0.0)
    # maxpool1, width direction: output lanes are [parity*128 + c*14 + j]
    wp1 = jnp.maximum(a1[:, :LANE], a1[:, LANE:])           # (TB*32, 128)

    # Stage in VMEM so height pooling / conv2 row gather are strided sublane
    # reads instead of 0/1 selection matmuls.  Pad rows are zeroed so the
    # (discarded) out-of-range gathers stay deterministic.
    s1[pl.ds(0, S1_ROWS), :] = wp1
    s1[pl.ds(S1_ROWS, S1_PAD), :] = jnp.zeros((S1_PAD, LANE), jnp.float32)

    # ---- conv2 (BN folded), merged over kh ---------------------------------
    # Group kh needs pool1 height index oh+kh; the stride-2 read pair below
    # fuses maxpool1's height max into the gather (rows b*32 + 2*(oh+kh) +{0,1}).
    groups = []
    for kh in range(K):
        ev = s1[pl.ds(2 * kh, S2_ROWS, 2), :]
        od = s1[pl.ds(2 * kh + 1, S2_ROWS, 2), :]
        groups.append(jnp.maximum(ev, od).astype(jnp.bfloat16))
    p1cat = jnp.concatenate(groups, axis=1)                  # (TB*16, 640) bf16
    a2 = dot(p1cat, t2_ref[...]) + sh2_ref[...]              # (TB*16, 256) f32
    a2 = jnp.maximum(a2, 0.0)
    # maxpool2, width direction (lanes laid out [parity*128 + c*5 + j])
    wp2 = jnp.maximum(a2[:, :LANE], a2[:, LANE:])            # (TB*16, 128)
    s2[...] = wp2

    # ---- flatten (NCHW order folded into fc1 weights) + 3-layer MLP --------
    # maxpool2's height max is fused into the stride-16 per-height row picks.
    slabs = []
    for i in range(P2H):
        ev = s2[pl.ds(2 * i, TB, 16), :]
        od = s2[pl.ds(2 * i + 1, TB, 16), :]
        slabs.append(jnp.maximum(ev, od).astype(jnp.bfloat16))
    fcin = jnp.concatenate(slabs, axis=1)                    # (TB, 640) bf16
    h1 = jnp.maximum(dot(fcin, w1_ref[...]) + b1_ref[...], 0.0)
    h2 = jnp.maximum(dot(h1.astype(jnp.bfloat16), w2_ref[...]) + b2_ref[...], 0.0)
    out_ref[...] = dot(h2.astype(jnp.bfloat16), w3_ref[...]) + b3_ref[...]


# ----------------------------------------------------------------------------
# Wrapper-side weight preparation (tiny; depends only on params)
# ----------------------------------------------------------------------------
def _prepare_weights(p):
    bf = jnp.bfloat16

    # Fold eval-mode BatchNorm into conv weights / per-channel shift.
    g1 = p["bn1_gamma"] * jax.lax.rsqrt(p["bn1_var"] + EPS)
    w1f = p["conv1_w"][:, 0] * g1[:, None, None]                     # (6,5,5)
    shift1 = (p["conv1_b"] - p["bn1_mean"]) * g1 + p["bn1_beta"]
    g2 = p["bn2_gamma"] * jax.lax.rsqrt(p["bn2_var"] + EPS)
    w2f = p["conv2_w"] * g2[:, None, None, None]                     # (16,6,5,5)
    shift2 = (p["conv2_b"] - p["bn2_mean"]) * g2 + p["bn2_beta"]

    # conv1: block-banded Toeplitz merged over kh, pool1 width parity in lanes.
    t1 = jnp.einsum("ckq,qwpj->kwpcj", w1f, _B1)                     # (5,32,2,6,14)
    t1 = t1.reshape(K, W0, 2, C1 * P1W)
    t1 = jnp.pad(t1, ((0, 0), (0, 0), (0, 0), (0, LANE - C1 * P1W)))
    t1 = t1.reshape(K * W0, 2 * LANE).astype(bf)                     # (160,256)
    sh1 = jnp.pad(jnp.repeat(shift1, P1W), (0, LANE - C1 * P1W))
    sh1 = jnp.tile(sh1, 2)[None, :]                                  # (1,256) f32

    # conv2: merged over kh (each kh group 128-lane aligned), pool2 parity lanes.
    t2 = jnp.einsum("cdkq,qwpj->kdwpcj", w2f, _B2)                   # (5,6,14,2,16,5)
    t2 = t2.reshape(K, C1 * P1W, 2, C2 * P2W)
    t2 = jnp.pad(t2, ((0, 0), (0, LANE - C1 * P1W), (0, 0), (0, LANE - C2 * P2W)))
    t2 = t2.reshape(K * LANE, 2 * LANE).astype(bf)                   # (640,256)
    sh2 = jnp.pad(jnp.repeat(shift2, P2W), (0, LANE - C2 * P2W))
    sh2 = jnp.tile(sh2, 2)[None, :]                                  # (1,256) f32

    # fc1 with the PyTorch NCHW flatten folded in (rows: i*128 + co*5 + j).
    w1 = jnp.transpose(p["fc1_w"].reshape(F1, C2, P2H, P2W), (2, 1, 3, 0))
    w1 = w1.reshape(P2H, C2 * P2W, F1)
    w1 = jnp.pad(w1, ((0, 0), (0, LANE - C2 * P2W), (0, LANE - F1)))
    w1 = w1.reshape(P2H * LANE, LANE).astype(bf)                     # (640,128)
    b1 = jnp.pad(p["fc1_b"], (0, LANE - F1))[None, :]
    w2 = jnp.pad(p["fc2_w"].T, ((0, LANE - F1), (0, LANE - F2))).astype(bf)
    b2 = jnp.pad(p["fc2_b"], (0, LANE - F2))[None, :]
    w3 = jnp.pad(p["fc3_w"].T, ((0, LANE - F2), (0, LANE - F3))).astype(bf)
    b3 = jnp.pad(p["fc3_b"], (0, LANE - F3))[None, :]

    return t1, sh1, t2, sh2, w1, b1, w2, b2, w3, b3


# ----------------------------------------------------------------------------
# Full forward pass: one fused pallas_call, gridded over batch tiles
# ----------------------------------------------------------------------------
def lenet5_forward(params, x):
    # x: (N, 1, 32, 32) NCHW float32
    n = x.shape[0]
    n_pad = ((n + TB - 1) // TB) * TB
    xp = x[:, 0].astype(jnp.float32)
    if n_pad != n:
        xp = jnp.pad(xp, ((0, n_pad - n), (0, 0), (0, 0)))
    # Lane-concatenate the K row-shifted input views (layout plumbing only) so
    # conv1 is a single merged MXU matmul: xcat[b*32+r, kh*32+w] = x[b, r+kh, w]
    # (zero where r+kh >= 32; those conv rows are never consumed downstream).
    views = [jnp.pad(xp[:, kh:, :], ((0, 0), (0, kh), (0, 0))) for kh in range(K)]
    xcat = jnp.stack(views, axis=2).reshape(n_pad * H0, K * W0).astype(jnp.bfloat16)

    consts = _prepare_weights(params)

    def const_spec(a):
        # Whole array, same block every grid step -> resident in VMEM.
        return pl.BlockSpec(a.shape, lambda i, nd=a.ndim: (0,) * nd)

    out = pl.pallas_call(
        lenet5_kernel,
        out_shape=jax.ShapeDtypeStruct((n_pad, LANE), jnp.float32),
        grid=(n_pad // TB,),
        in_specs=[pl.BlockSpec((TB * H0, K * W0), lambda i: (i, 0))]
        + [const_spec(a) for a in consts],
        out_specs=pl.BlockSpec((TB, LANE), lambda i: (i, 0)),
        scratch_shapes=[
            pltpu.VMEM((S1_ROWS + S1_PAD, LANE), jnp.float32),
            pltpu.VMEM((S2_ROWS, LANE), jnp.float32),
        ],
        compiler_params=pltpu.CompilerParams(
            dimension_semantics=("parallel",)),
    )(xcat, *consts)

    return out[:n, :NUM_CLASSES]


# ----------------------------------------------------------------------------
# Pure-JAX reference (eval-mode BN), used only for a tolerance check in main
# ----------------------------------------------------------------------------
def lenet5_reference(p, x):
    def bn(y, g, b, m, v):
        s = (g * jax.lax.rsqrt(v + EPS))[None, :, None, None]
        return (y - m[None, :, None, None]) * s + b[None, :, None, None]

    y = jax.lax.conv_general_dilated(
        x, p["conv1_w"], (1, 1), "VALID",
        dimension_numbers=("NCHW", "OIHW", "NCHW"))
    y = bn(y + p["conv1_b"][None, :, None, None],
           p["bn1_gamma"], p["bn1_beta"], p["bn1_mean"], p["bn1_var"])
    y = jnp.maximum(y, 0.0)
    y = y.reshape(y.shape[0], C1, P1H, 2, P1W, 2).max(axis=(3, 5))
    y = jax.lax.conv_general_dilated(
        y, p["conv2_w"], (1, 1), "VALID",
        dimension_numbers=("NCHW", "OIHW", "NCHW"))
    y = bn(y + p["conv2_b"][None, :, None, None],
           p["bn2_gamma"], p["bn2_beta"], p["bn2_mean"], p["bn2_var"])
    y = jnp.maximum(y, 0.0)
    y = y.reshape(y.shape[0], C2, P2H, 2, P2W, 2).max(axis=(3, 5))
    y = y.reshape(y.shape[0], -1)
    y = jnp.maximum(y @ p["fc1_w"].T + p["fc1_b"], 0.0)
    y = jnp.maximum(y @ p["fc2_w"].T + p["fc2_b"], 0.0)
    return y @ p["fc3_w"].T + p["fc3_b"]


# ----------------------------------------------------------------------------
# Deterministic parameter init (PyTorch-like uniform(-1/sqrt(fan_in), +))
# ----------------------------------------------------------------------------
def _uniform(key, shape, fan_in):
    bound = 1.0 / jnp.sqrt(float(fan_in))
    return jax.random.uniform(key, shape, jnp.float32, -bound, bound)


def init_params(key):
    ks = jax.random.split(key, 10)
    p = {}
    p["conv1_w"] = _uniform(ks[0], (6, 1, 5, 5), 1 * 5 * 5)
    p["conv1_b"] = _uniform(ks[1], (6,), 1 * 5 * 5)
    p["conv2_w"] = _uniform(ks[2], (16, 6, 5, 5), 6 * 5 * 5)
    p["conv2_b"] = _uniform(ks[3], (16,), 6 * 5 * 5)
    p["bn1_gamma"] = jnp.ones((6,), jnp.float32)
    p["bn1_beta"] = jnp.zeros((6,), jnp.float32)
    p["bn1_mean"] = jnp.zeros((6,), jnp.float32)
    p["bn1_var"] = jnp.ones((6,), jnp.float32)
    p["bn2_gamma"] = jnp.ones((16,), jnp.float32)
    p["bn2_beta"] = jnp.zeros((16,), jnp.float32)
    p["bn2_mean"] = jnp.zeros((16,), jnp.float32)
    p["bn2_var"] = jnp.ones((16,), jnp.float32)
    p["fc1_w"] = _uniform(ks[4], (120, 400), 400)
    p["fc1_b"] = _uniform(ks[5], (120,), 400)
    p["fc2_w"] = _uniform(ks[6], (84, 120), 120)
    p["fc2_b"] = _uniform(ks[7], (84,), 120)
    p["fc3_w"] = _uniform(ks[8], (NUM_CLASSES, 84), 84)
    p["fc3_b"] = _uniform(ks[9], (NUM_CLASSES,), 84)
    return p


if __name__ == "__main__":
    # LeNet-5 requires 32x32 single-channel input so the flatten is 400 wide.
    x = jax.random.normal(jax.random.PRNGKey(0), (2, 1, 32, 32), jnp.float32)
    params = init_params(jax.random.PRNGKey(1))

    fwd = jax.jit(lenet5_forward)
    out = jax.block_until_ready(fwd(params, x))

    assert out.shape == (2, NUM_CLASSES), out.shape
    assert bool(jnp.all(jnp.isfinite(out)))
    ref = lenet5_reference(params, x)
    assert bool(jnp.all(jnp.abs(out - ref) <= 5e-2 + 5e-2 * jnp.abs(ref))), (
        float(jnp.max(jnp.abs(out - ref))))
    print("KERNEL_OK")
</pallas_src>

<mosaic_0001>
module attributes {stable_mosaic.version = 11 : i64} {
  func.func @lenet5_kernel(%arg0: i32, %arg1: memref<1024x160xbf16, #tpu.memory_space<vmem>>, %arg2: memref<160x256xbf16, #tpu.memory_space<vmem>>, %arg3: memref<1x256xf32, #tpu.memory_space<vmem>>, %arg4: memref<640x256xbf16, #tpu.memory_space<vmem>>, %arg5: memref<1x256xf32, #tpu.memory_space<vmem>>, %arg6: memref<640x128xbf16, #tpu.memory_space<vmem>>, %arg7: memref<1x128xf32, #tpu.memory_space<vmem>>, %arg8: memref<128x128xbf16, #tpu.memory_space<vmem>>, %arg9: memref<1x128xf32, #tpu.memory_space<vmem>>, %arg10: memref<128x128xbf16, #tpu.memory_space<vmem>>, %arg11: memref<1x128xf32, #tpu.memory_space<vmem>>, %arg12: memref<32x128xf32, #tpu.memory_space<vmem>>, %arg13: memref<1040x128xf32, #tpu.memory_space<vmem>>, %arg14: memref<512x128xf32, #tpu.memory_space<vmem>>) attributes {dimension_semantics = [#tpu.dimension_semantics<parallel>], iteration_bounds = array<i64: 1>, scalar_prefetch = 0 : i64, scratch_operands = 2 : i64, tpu.core_type = #tpu.core_type<tc>, window_params = [{transform_indices = @transform_0, window_bounds = array<i64: 1024, 160>}, {pipeline_mode = #tpu.pipeline_mode<synchronous>, transform_indices = @transform_1, window_bounds = array<i64: 160, 256>}, {pipeline_mode = #tpu.pipeline_mode<synchronous>, transform_indices = @transform_2, window_bounds = array<i64: 1, 256>}, {pipeline_mode = #tpu.pipeline_mode<synchronous>, transform_indices = @transform_3, window_bounds = array<i64: 640, 256>}, {pipeline_mode = #tpu.pipeline_mode<synchronous>, transform_indices = @transform_4, window_bounds = array<i64: 1, 256>}, {pipeline_mode = #tpu.pipeline_mode<synchronous>, transform_indices = @transform_5, window_bounds = array<i64: 640, 128>}, {pipeline_mode = #tpu.pipeline_mode<synchronous>, transform_indices = @transform_6, window_bounds = array<i64: 1, 128>}, {pipeline_mode = #tpu.pipeline_mode<synchronous>, transform_indices = @transform_7, window_bounds = array<i64: 128, 128>}, {pipeline_mode = #tpu.pipeline_mode<synchronous>, transform_indices = @transform_8, window_bounds = array<i64: 1, 128>}, {pipeline_mode = #tpu.pipeline_mode<synchronous>, transform_indices = @transform_9, window_bounds = array<i64: 128, 128>}, {pipeline_mode = #tpu.pipeline_mode<synchronous>, transform_indices = @transform_10, window_bounds = array<i64: 1, 128>}, {transform_indices = @transform_11, window_bounds = array<i64: 32, 128>}]} {
    %c0 = arith.constant 0 : index
    %c0_0 = arith.constant 0 : index
    %0 = vector.load %arg1[%c0, %c0_0] : memref<1024x160xbf16, #tpu.memory_space<vmem>>, vector<1024x160xbf16>
    %c0_1 = arith.constant 0 : index
    %c0_2 = arith.constant 0 : index
    %1 = vector.load %arg2[%c0_1, %c0_2] : memref<160x256xbf16, #tpu.memory_space<vmem>>, vector<160x256xbf16>
    %cst = arith.constant dense<0.000000e+00> : vector<1024x256xf32>
    %2 = tpu.matmul %0, %1, %cst {dimension_numbers = #tpu.dot_dimension_numbers<[1], [0], [0], [1], [0, 0, 1, 1], [], []>} : vector<1024x160xbf16>, vector<160x256xbf16>, vector<1024x256xf32> -> vector<1024x256xf32>
    %c0_3 = arith.constant 0 : index
    %c0_4 = arith.constant 0 : index
    %3 = vector.load %arg3[%c0_3, %c0_4] : memref<1x256xf32, #tpu.memory_space<vmem>>, vector<1x256xf32>
    %4 = vector.broadcast %3 : vector<1x256xf32> to vector<1024x256xf32>
    %5 = arith.addf %2, %4 : vector<1024x256xf32>
    %cst_5 = arith.constant 0.000000e+00 : f32
    %6 = vector.broadcast %cst_5 : f32 to vector<1024x256xf32>
    %7 = arith.maximumf %5, %6 : vector<1024x256xf32>
    %8 = vector.extract_strided_slice %7 {offsets = [0, 0], sizes = [1024, 128], strides = [1, 1]} : vector<1024x256xf32> to vector<1024x128xf32>
    %9 = vector.extract_strided_slice %7 {offsets = [0, 128], sizes = [1024, 128], strides = [1, 1]} : vector<1024x256xf32> to vector<1024x128xf32>
    %10 = arith.maximumf %8, %9 : vector<1024x128xf32>
    %c0_6 = arith.constant 0 : index
    %c0_7 = arith.constant 0 : index
    %11 = vector.load %arg13[%c0_6, %c0_7] : memref<1040x128xf32, #tpu.memory_space<vmem>>, vector<1024x128xf32>
    tpu.vector_store %arg13[%c0_6, %c0_7], %10 {strides = array<i32>} : memref<1040x128xf32, #tpu.memory_space<vmem>>, vector<1024x128xf32>,
    %cst_8 = arith.constant 0.000000e+00 : f32
    %12 = vector.broadcast %cst_8 : f32 to vector<16x128xf32>
    %c1024 = arith.constant 1024 : index
    %c0_9 = arith.constant 0 : index
    %13 = vector.load %arg13[%c1024, %c0_9] : memref<1040x128xf32, #tpu.memory_space<vmem>>, vector<16x128xf32>
    tpu.vector_store %arg13[%c1024, %c0_9], %12 {strides = array<i32>} : memref<1040x128xf32, #tpu.memory_space<vmem>>, vector<16x128xf32>,
    %c0_10 = arith.constant 0 : index
    %c0_11 = arith.constant 0 : index
    %14 = tpu.strided_load %arg13[%c0_10, %c0_11] {strides = array<i32: 2, 1>} : memref<1040x128xf32, #tpu.memory_space<vmem>>, vector<512x128xf32>
    %c1 = arith.constant 1 : index
    %c0_12 = arith.constant 0 : index
    %15 = tpu.strided_load %arg13[%c1, %c0_12] {strides = array<i32: 2, 1>} : memref<1040x128xf32, #tpu.memory_space<vmem>>, vector<512x128xf32>
    %16 = arith.maximumf %14, %15 : vector<512x128xf32>
    %17 = arith.truncf %16 : vector<512x128xf32> to vector<512x128xbf16>
    %c2 = arith.constant 2 : index
    %c0_13 = arith.constant 0 : index
    %18 = tpu.strided_load %arg13[%c2, %c0_13] {strides = array<i32: 2, 1>} : memref<1040x128xf32, #tpu.memory_space<vmem>>, vector<512x128xf32>
    %c3 = arith.constant 3 : index
    %c0_14 = arith.constant 0 : index
    %19 = tpu.strided_load %arg13[%c3, %c0_14] {strides = array<i32: 2, 1>} : memref<1040x128xf32, #tpu.memory_space<vmem>>, vector<512x128xf32>
    %20 = arith.maximumf %18, %19 : vector<512x128xf32>
    %21 = arith.truncf %20 : vector<512x128xf32> to vector<512x128xbf16>
    %c4 = arith.constant 4 : index
    %c0_15 = arith.constant 0 : index
    %22 = tpu.strided_load %arg13[%c4, %c0_15] {strides = array<i32: 2, 1>} : memref<1040x128xf32, #tpu.memory_space<vmem>>, vector<512x128xf32>
    %c5 = arith.constant 5 : index
    %c0_16 = arith.constant 0 : index
    %23 = tpu.strided_load %arg13[%c5, %c0_16] {strides = array<i32: 2, 1>} : memref<1040x128xf32, #tpu.memory_space<vmem>>, vector<512x128xf32>
    %24 = arith.maximumf %22, %23 : vector<512x128xf32>
    %25 = arith.truncf %24 : vector<512x128xf32> to vector<512x128xbf16>
    %c6 = arith.constant 6 : index
    %c0_17 = arith.constant 0 : index
    %26 = tpu.strided_load %arg13[%c6, %c0_17] {strides = array<i32: 2, 1>} : memref<1040x128xf32, #tpu.memory_space<vmem>>, vector<512x128xf32>
    %c7 = arith.constant 7 : index
    %c0_18 = arith.constant 0 : index
    %27 = tpu.strided_load %arg13[%c7, %c0_18] {strides = array<i32: 2, 1>} : memref<1040x128xf32, #tpu.memory_space<vmem>>, vector<512x128xf32>
    %28 = arith.maximumf %26, %27 : vector<512x128xf32>
    %29 = arith.truncf %28 : vector<512x128xf32> to vector<512x128xbf16>
    %c8 = arith.constant 8 : index
    %c0_19 = arith.constant 0 : index
    %30 = tpu.strided_load %arg13[%c8, %c0_19] {strides = array<i32: 2, 1>} : memref<1040x128xf32, #tpu.memory_space<vmem>>, vector<512x128xf32>
    %c9 = arith.constant 9 : index
    %c0_20 = arith.constant 0 : index
    %31 = tpu.strided_load %arg13[%c9, %c0_20] {strides = array<i32: 2, 1>} : memref<1040x128xf32, #tpu.memory_space<vmem>>, vector<512x128xf32>
    %32 = arith.maximumf %30, %31 : vector<512x128xf32>
    %33 = arith.truncf %32 : vector<512x128xf32> to vector<512x128xbf16>
    %34 = tpu.concatenate %17, %21, %25, %29, %33 in 1 : vector<512x128xbf16>, vector<512x128xbf16>, vector<512x128xbf16>, vector<512x128xbf16>, vector<512x128xbf16> -> vector<512x640xbf16>
    %c0_21 = arith.constant 0 : index
    %c0_22 = arith.constant 0 : index
    %35 = vector.load %arg4[%c0_21, %c0_22] : memref<640x256xbf16, #tpu.memory_space<vmem>>, vector<640x256xbf16>
    %cst_23 = arith.constant dense<0.000000e+00> : vector<512x256xf32>
    %36 = tpu.matmul %34, %35, %cst_23 {dimension_numbers = #tpu.dot_dimension_numbers<[1], [0], [0], [1], [0, 0, 1, 1], [], []>} : vector<512x640xbf16>, vector<640x256xbf16>, vector<512x256xf32> -> vector<512x256xf32>
    %c0_24 = arith.constant 0 : index
    %c0_25 = arith.constant 0 : index
    %37 = vector.load %arg5[%c0_24, %c0_25] : memref<1x256xf32, #tpu.memory_space<vmem>>, vector<1x256xf32>
    %38 = vector.broadcast %37 : vector<1x256xf32> to vector<512x256xf32>
    %39 = arith.addf %36, %38 : vector<512x256xf32>
    %cst_26 = arith.constant 0.000000e+00 : f32
    %40 = vector.broadcast %cst_26 : f32 to vector<512x256xf32>
    %41 = arith.maximumf %39, %40 : vector<512x256xf32>
    %42 = vector.extract_strided_slice %41 {offsets = [0, 0], sizes = [512, 128], strides = [1, 1]} : vector<512x256xf32> to vector<512x128xf32>
    %43 = vector.extract_strided_slice %41 {offsets = [0, 128], sizes = [512, 128], strides = [1, 1]} : vector<512x256xf32> to vector<512x128xf32>
    %44 = arith.maximumf %42, %43 : vector<512x128xf32>
    %c0_27 = arith.constant 0 : index
    %c0_28 = arith.constant 0 : index
    %45 = vector.load %arg14[%c0_27, %c0_28] : memref<512x128xf32, #tpu.memory_space<vmem>>, vector<512x128xf32>
    tpu.vector_store %arg14[%c0_27, %c0_28], %44 {strides = array<i32>} : memref<512x128xf32, #tpu.memory_space<vmem>>, vector<512x128xf32>,
    %c0_29 = arith.constant 0 : index
    %c0_30 = arith.constant 0 : index
    %46 = tpu.strided_load %arg14[%c0_29, %c0_30] {strides = array<i32: 16, 1>} : memref<512x128xf32, #tpu.memory_space<vmem>>, vector<32x128xf32>
    %c1_31 = arith.constant 1 : index
    %c0_32 = arith.constant 0 : index
    %47 = tpu.strided_load %arg14[%c1_31, %c0_32] {strides = array<i32: 16, 1>} : memref<512x128xf32, #tpu.memory_space<vmem>>, vector<32x128xf32>
    %48 = arith.maximumf %46, %47 : vector<32x128xf32>
    %49 = arith.truncf %48 : vector<32x128xf32> to vector<32x128xbf16>
    %c2_33 = arith.constant 2 : index
    %c0_34 = arith.constant 0 : index
    %50 = tpu.strided_load %arg14[%c2_33, %c0_34] {strides = array<i32: 16, 1>} : memref<512x128xf32, #tpu.memory_space<vmem>>, vector<32x128xf32>
    %c3_35 = arith.constant 3 : index
    %c0_36 = arith.constant 0 : index
    %51 = tpu.strided_load %arg14[%c3_35, %c0_36] {strides = array<i32: 16, 1>} : memref<512x128xf32, #tpu.memory_space<vmem>>, vector<32x128xf32>
    %52 = arith.maximumf %50, %51 : vector<32x128xf32>
    %53 = arith.truncf %52 : vector<32x128xf32> to vector<32x128xbf16>
    %c4_37 = arith.constant 4 : index
    %c0_38 = arith.constant 0 : index
    %54 = tpu.strided_load %arg14[%c4_37, %c0_38] {strides = array<i32: 16, 1>} : memref<512x128xf32, #tpu.memory_space<vmem>>, vector<32x128xf32>
    %c5_39 = arith.constant 5 : index
    %c0_40 = arith.constant 0 : index
    %55 = tpu.strided_load %arg14[%c5_39, %c0_40] {strides = array<i32: 16, 1>} : memref<512x128xf32, #tpu.memory_space<vmem>>, vector<32x128xf32>
    %56 = arith.maximumf %54, %55 : vector<32x128xf32>
    %57 = arith.truncf %56 : vector<32x128xf32> to vector<32x128xbf16>
    %c6_41 = arith.constant 6 : index
    %c0_42 = arith.constant 0 : index
    %58 = tpu.strided_load %arg14[%c6_41, %c0_42] {strides = array<i32: 16, 1>} : memref<512x128xf32, #tpu.memory_space<vmem>>, vector<32x128xf32>
    %c7_43 = arith.constant 7 : index
    %c0_44 = arith.constant 0 : index
    %59 = tpu.strided_load %arg14[%c7_43, %c0_44] {strides = array<i32: 16, 1>} : memref<512x128xf32, #tpu.memory_space<vmem>>, vector<32x128xf32>
    %60 = arith.maximumf %58, %59 : vector<32x128xf32>
    %61 = arith.truncf %60 : vector<32x128xf32> to vector<32x128xbf16>
    %c8_45 = arith.constant 8 : index
    %c0_46 = arith.constant 0 : index
    %62 = tpu.strided_load %arg14[%c8_45, %c0_46] {strides = array<i32: 16, 1>} : memref<512x128xf32, #tpu.memory_space<vmem>>, vector<32x128xf32>
    %c9_47 = arith.constant 9 : index
    %c0_48 = arith.constant 0 : index
    %63 = tpu.strided_load %arg14[%c9_47, %c0_48] {strides = array<i32: 16, 1>} : memref<512x128xf32, #tpu.memory_space<vmem>>, vector<32x128xf32>
    %64 = arith.maximumf %62, %63 : vector<32x128xf32>
    %65 = arith.truncf %64 : vector<32x128xf32> to vector<32x128xbf16>
    %66 = tpu.concatenate %49, %53, %57, %61, %65 in 1 : vector<32x128xbf16>, vector<32x128xbf16>, vector<32x128xbf16>, vector<32x128xbf16>, vector<32x128xbf16> -> vector<32x640xbf16>
    %c0_49 = arith.constant 0 : index
    %c0_50 = arith.constant 0 : index
    %67 = vector.load %arg6[%c0_49, %c0_50] : memref<640x128xbf16, #tpu.memory_space<vmem>>, vector<640x128xbf16>
    %cst_51 = arith.constant dense<0.000000e+00> : vector<32x128xf32>
    %68 = tpu.matmul %66, %67, %cst_51 {dimension_numbers = #tpu.dot_dimension_numbers<[1], [0], [0], [1], [0, 0, 1, 1], [], []>} : vector<32x640xbf16>, vector<640x128xbf16>, vector<32x128xf32> -> vector<32x128xf32>
    %c0_52 = arith.constant 0 : index
    %c0_53 = arith.constant 0 : index
    %69 = vector.load %arg7[%c0_52, %c0_53] : memref<1x128xf32, #tpu.memory_space<vmem>>, vector<1x128xf32>
    %70 = vector.broadcast %69 : vector<1x128xf32> to vector<32x128xf32>
    %71 = arith.addf %68, %70 : vector<32x128xf32>
    %cst_54 = arith.constant 0.000000e+00 : f32
    %72 = vector.broadcast %cst_54 : f32 to vector<32x128xf32>
    %73 = arith.maximumf %71, %72 : vector<32x128xf32>
    %74 = arith.truncf %73 : vector<32x128xf32> to vector<32x128xbf16>
    %c0_55 = arith.constant 0 : index
    %c0_56 = arith.constant 0 : index
    %75 = vector.load %arg8[%c0_55, %c0_56] : memref<128x128xbf16, #tpu.memory_space<vmem>>, vector<128x128xbf16>
    %cst_57 = arith.constant dense<0.000000e+00> : vector<32x128xf32>
    %76 = tpu.matmul %74, %75, %cst_57 {dimension_numbers = #tpu.dot_dimension_numbers<[1], [0], [0], [1], [0, 0, 1, 1], [], []>} : vector<32x128xbf16>, vector<128x128xbf16>, vector<32x128xf32> -> vector<32x128xf32>
    %c0_58 = arith.constant 0 : index
    %c0_59 = arith.constant 0 : index
    %77 = vector.load %arg9[%c0_58, %c0_59] : memref<1x128xf32, #tpu.memory_space<vmem>>, vector<1x128xf32>
    %78 = vector.broadcast %77 : vector<1x128xf32> to vector<32x128xf32>
    %79 = arith.addf %76, %78 : vector<32x128xf32>
    %cst_60 = arith.constant 0.000000e+00 : f32
    %80 = vector.broadcast %cst_60 : f32 to vector<32x128xf32>
    %81 = arith.maximumf %79, %80 : vector<32x128xf32>
    %82 = arith.truncf %81 : vector<32x128xf32> to vector<32x128xbf16>
    %c0_61 = arith.constant 0 : index
    %c0_62 = arith.constant 0 : index
    %83 = vector.load %arg10[%c0_61, %c0_62] : memref<128x128xbf16, #tpu.memory_space<vmem>>, vector<128x128xbf16>
    %cst_63 = arith.constant dense<0.000000e+00> : vector<32x128xf32>
    %84 = tpu.matmul %82, %83, %cst_63 {dimension_numbers = #tpu.dot_dimension_numbers<[1], [0], [0], [1], [0, 0, 1, 1], [], []>} : vector<32x128xbf16>, vector<128x128xbf16>, vector<32x128xf32> -> vector<32x128xf32>
    %c0_64 = arith.constant 0 : index
    %c0_65 = arith.constant 0 : index
    %85 = vector.load %arg11[%c0_64, %c0_65] : memref<1x128xf32, #tpu.memory_space<vmem>>, vector<1x128xf32>
    %86 = vector.broadcast %85 : vector<1x128xf32> to vector<32x128xf32>
    %87 = arith.addf %84, %86 : vector<32x128xf32>
    %c0_66 = arith.constant 0 : index
    %c0_67 = arith.constant 0 : index
    %88 = vector.load %arg12[%c0_66, %c0_67] : memref<32x128xf32, #tpu.memory_space<vmem>>, vector<32x128xf32>
    tpu.vector_store %arg12[%c0_66, %c0_67], %87 {strides = array<i32>} : memref<32x128xf32, #tpu.memory_space<vmem>>, vector<32x128xf32>,
    return
  }
  func.func @transform_0(%arg0: i32) -> (i32, i32) {
    %c0_i32 = arith.constant 0 : i32
    %c0_i32_0 = arith.constant 0 : i32
    return %arg0, %c0_i32 : i32, i32
  }
  func.func @transform_1(%arg0: i32) -> (i32, i32) {
    %c0_i32 = arith.constant 0 : i32
    %c0_i32_0 = arith.constant 0 : i32
    %c0_i32_1 = arith.constant 0 : i32
    return %c0_i32, %c0_i32_0 : i32, i32
  }
  func.func @transform_2(%arg0: i32) -> (i32, i32) {
    %c0_i32 = arith.constant 0 : i32
    %c0_i32_0 = arith.constant 0 : i32
    %c0_i32_1 = arith.constant 0 : i32
    return %c0_i32, %c0_i32_0 : i32, i32
  }
  func.func @transform_3(%arg0: i32) -> (i32, i32) {
    %c0_i32 = arith.constant 0 : i32
    %c0_i32_0 = arith.constant 0 : i32
    %c0_i32_1 = arith.constant 0 : i32
    return %c0_i32, %c0_i32_0 : i32, i32
  }
  func.func @transform_4(%arg0: i32) -> (i32, i32) {
    %c0_i32 = arith.constant 0 : i32
    %c0_i32_0 = arith.constant 0 : i32
    %c0_i32_1 = arith.constant 0 : i32
    return %c0_i32, %c0_i32_0 : i32, i32
  }
  func.func @transform_5(%arg0: i32) -> (i32, i32) {
    %c0_i32 = arith.constant 0 : i32
    %c0_i32_0 = arith.constant 0 : i32
    %c0_i32_1 = arith.constant 0 : i32
    return %c0_i32, %c0_i32_0 : i32, i32
  }
  func.func @transform_6(%arg0: i32) -> (i32, i32) {
    %c0_i32 = arith.constant 0 : i32
    %c0_i32_0 = arith.constant 0 : i32
    %c0_i32_1 = arith.constant 0 : i32
    return %c0_i32, %c0_i32_0 : i32, i32
  }
  func.func @transform_7(%arg0: i32) -> (i32, i32) {
    %c0_i32 = arith.constant 0 : i32
    %c0_i32_0 = arith.constant 0 : i32
    %c0_i32_1 = arith.constant 0 : i32
    return %c0_i32, %c0_i32_0 : i32, i32
  }
  func.func @transform_8(%arg0: i32) -> (i32, i32) {
    %c0_i32 = arith.constant 0 : i32
    %c0_i32_0 = arith.constant 0 : i32
    %c0_i32_1 = arith.constant 0 : i32
    return %c0_i32, %c0_i32_0 : i32, i32
  }
  func.func @transform_9(%arg0: i32) -> (i32, i32) {
    %c0_i32 = arith.constant 0 : i32
    %c0_i32_0 = arith.constant 0 : i32
    %c0_i32_1 = arith.constant 0 : i32
    return %c0_i32, %c0_i32_0 : i32, i32
  }
  func.func @transform_10(%arg0: i32) -> (i32, i32) {
    %c0_i32 = arith.constant 0 : i32
    %c0_i32_0 = arith.constant 0 : i32
    %c0_i32_1 = arith.constant 0 : i32
    return %c0_i32, %c0_i32_0 : i32, i32
  }
  func.func @transform_11(%arg0: i32) -> (i32, i32) {
    %c0_i32 = arith.constant 0 : i32
    %c0_i32_0 = arith.constant 0 : i32
    return %arg0, %c0_i32 : i32, i32
  }
}

</mosaic_0001>

<bundles_post_ra>
// kernel: tile.18
= control target key start
LH: loop header
LB: loop body
LE: loop exit
PB: predicated region body
PF: predicated region fallthrough
CT: control target
= control target key end

     0   :  { %s22_s0 = inlined_call_operand.vmem [shape: f32[128], index: 0, kind: input, shape index: {}]   ;;  %s23_s1 = inlined_call_operand.vmem [shape: f32[2,128], index: 1, kind: output, shape index: {}]  }
   0x1   :  { %v4_v0 = vld [vmem:[%s22_s0] ss:$0 sm:$0xff] }
   0x2   :  { %5 = vst [vmem:[%s23_s1] sm:$0x3] %v4_v0 }

// kernel: lenet5_forward.1
= control target key start
LH: loop header
LB: loop body
LE: loop exit
PB: predicated region body
PF: predicated region fallthrough
CT: control target
= control target key end

     0   :  { %vm869_vm0 = vcmask 261120   ;;  %s15476_s1 = inlined_call_operand.vmem [shape: bf16[160,256], index: 1, kind: input, shape index: {}]   ;;  %s15477_s0 = inlined_call_operand.vmem [shape: bf16[1024,160], index: 0, kind: input, shape index: {}]   ;;  %s15478_s2 = inlined_call_operand.vmem [shape: f32[1,256], index: 2, kind: input, shape index: {}]   ;;  %s15479_s3 = inlined_call_operand.vmem [shape: bf16[640,256], index: 3, kind: input, shape index: {}]   ;;  %s15480_s4 = inlined_call_operand.vmem [shape: f32[1,256], index: 4, kind: input, shape index: {}]   ;;  %s15481_s5 = inlined_call_operand.vmem [shape: bf16[640,128], index: 5, kind: input, shape index: {}]   ;;  %s15482_s6 = inlined_call_operand.vmem [shape: f32[1,128], index: 6, kind: input, shape index: {}]   ;;  %s15483_s8 = inlined_call_operand.vmem [shape: f32[1,128], index: 8, kind: input, shape index: {}]   ;;  %s15484_s7 = inlined_call_operand.vmem [shape: bf16[128,128], index: 7, kind: input, shape index: {}]   ;;  %s15485_s9 = inlined_call_operand.vmem [shape: bf16[128,128], index: 9, kind: input, shape index: {}]   ;;  %s15486_s10 = inlined_call_operand.vmem [shape: f32[1,128], index: 10, kind: input, shape index: {}]   ;;  %s15487_s11 = inlined_call_operand.vmem [shape: f32[32,128], index: 11, kind: output, shape index: {}]  }
   0x1   :  { %v9805_v0 = vld [vmem:[%s15476_s1 + $0x70] sm:$0xf]  ;;  %v10642_v1 = vld [vmem:[%s15476_s1 + $0x74] sm:$0xf0]  ;;  %v9797_v5 = vld [vmem:[%s15476_s1 + $0x60] sm:$0xf] }
   0x2   :  { %v9821_v2 = vld [vmem:[%s15476_s1 + $0x90] sm:$0xf]  ;;  %v9806_v3 = vor.u32 %v10642_v1, %v9805_v0  ;;  %v10646_v4 = vld [vmem:[%s15476_s1 + $0x94] sm:$0xf0]  ;;  %v10640_v6 = vld [vmem:[%s15476_s1 + $0x64] sm:$0xf0] }
   0x3   :  { %v9822_v7 = vor.u32 %v10646_v4, %v9821_v2  ;;  %v9813_v8 = vld [vmem:[%s15476_s1 + $0x80] sm:$0xf]  ;;  %v10644_v9 = vld [vmem:[%s15476_s1 + $0x84] sm:$0xf0]  ;;  %v9798_v10 = vor.u32 %v10640_v6, %v9797_v5  ;;  %v10603_v11 = vld [vmem:[%s15477_s0 + $0x344] sm:$0xf] }
   0x4   :  { %1062 = vmatpush.bf16.msra.mxu0 %v9806_v3  ;;  %v9814_v12 = vor.u32 %v10644_v9, %v9813_v8  ;;  %v9655_v13 = vld [vmem:[%s15477_s0 + $0x348] sm:$0xf0]  ;;  %v9789_v14 = vld [vmem:[%s15476_s1 + $0x50] sm:$0xf]  ;;  %v10638_v15 = vld [vmem:[%s15476_s1 + $0x54] sm:$0xf0] }
   0x5   :  { %10783 = vmatpush.bf16.msra.mxu2 %v9822_v7  ;;  %1397 = vmatpush.bf16.msra.mxu1 %v9822_v7  ;;  %v10889_v16 = vor.u32 %v10603_v11, %v9655_v13  ;;  %v9790_v17 = vor.u32 %v10638_v15, %v9789_v14  ;;  %v9781_v18 = vld [vmem:[%s15476_s1 + $0x40] sm:$0xf]  ;;  %v10636_v19 = vld [vmem:[%s15476_s1 + $0x44] sm:$0xf0]  ;;  %v10645_v20 = vld [vmem:[%s15476_s1 + $0x94] sm:$0xf] }
   0x6   :  { %v9823_v21 = vld [vmem:[%s15476_s1 + $0x98] sm:$0xf0]  ;;  %v10499_v22 = vld [vmem:[%s15477_s0 + $0x4] sm:$0xf]  ;;  %v9239_v23 = vld [vmem:[%s15477_s0 + $0x8] sm:$0xf0]  ;;  %v9782_v26 = vor.u32 %v10636_v19, %v9781_v18 }
   0x7   :  { %15632 = vst [vmem:[#allocation4_spill] sm:$0xff] %v10889_v16  ;;  %v9826_v24 = vor.u32 %v10645_v20, %v9823_v21  ;;  %v10909_v25 = vor.u32 %v10499_v22, %v9239_v23  ;;  %v9773_v27 = vld [vmem:[%s15476_s1 + $0x30] sm:$0xf]  ;;  %v10634_v28 = vld [vmem:[%s15476_s1 + $0x34] sm:$0xf0] }
   0x8   :  { %1063 = vmatpush.bf16.msra.mxu0 %v9798_v10  ;;  %v9774_v29 = vor.u32 %v10634_v28, %v9773_v27  ;;  %v9765_v30 = vld [vmem:[%s15476_s1 + $0x20] sm:$0xf]  ;;  %v10632_v31 = vld [vmem:[%s15476_s1 + $0x24] sm:$0xf0]  ;;  %v10605_v33 = vld [vmem:[%s15477_s0 + $0x354] sm:$0xf] }
   0x9   :  { %10784 = vmatpush.bf16.msra.mxu2 %v9814_v12  ;;  %1398 = vmatpush.bf16.msra.mxu1 %v9814_v12  ;;  %15633 = vst [vmem:[#allocation5_spill] sm:$0xff] %v10909_v25  ;;  %v9766_v32 = vor.u32 %v10632_v31, %v9765_v30  ;;  %v9663_v34 = vld [vmem:[%s15477_s0 + $0x358] sm:$0xf0]  ;;  %v9757_v35 = vld [vmem:[%s15476_s1 + $0x10] sm:$0xf] }
   0xa   :  { %10785 = vmatpush.bf16.msra.mxu3 %v9826_v24  ;;  %v10630_v36 = vld [vmem:[%s15476_s1 + $0x14] sm:$0xf0]  ;;  %v10501_v37 = vld [vmem:[%s15477_s0 + $0x14] sm:$0xf]  ;;  %v9247_v38 = vld [vmem:[%s15477_s0 + $0x18] sm:$0xf0]  ;;  %v10945_v39 = vor.u32 %v10605_v33, %v9663_v34 }
   0xb   :  { %v9758_v40 = vor.u32 %v10630_v36, %v9757_v35  ;;  %v9749_v41 = vld [vmem:[%s15476_s1] sm:$0xf]  ;;  %v10628_v42 = vld [vmem:[%s15476_s1 + $0x4] sm:$0xf0]  ;;  %v10953_v43 = vor.u32 %v10501_v37, %v9247_v38  ;;  %v10607_v48 = vld [vmem:[%s15477_s0 + $0x364] sm:$0xf] }
   0xc   :  { %9879 = vmatmul.msk.bf16.vlgmr.msra.gmra.mxu2 %vm869_vm0, %v10889_v16  ;;  %1064 = vmatpush.bf16.msra.mxu0 %v9790_v17  ;;  %15634 = vst [vmem:[#allocation6_spill] sm:$0xff] %v10945_v39  ;;  %v9750_v44 = vor.u32 %v10628_v42, %v9749_v41  ;;  %v9237_v45 = vld [vmem:[%s15477_s0] sm:$0xf]  ;;  %v10500_v46 = vld [vmem:[%s15477_s0 + $0x4] sm:$0xf0] }
   0xd   :  { %9827 = vmatmul.msk.bf16.vlgmr.msra.gmra.mxu1 %vm869_vm0, %v10909_v25  ;;  %15635 = vst [vmem:[#allocation7_spill] sm:$0xff] %v10953_v43  ;;  %v10965_v47 = vor.u32 %v10500_v46, %v9237_v45  ;;  %v9671_v49 = vld [vmem:[%s15477_s0 + $0x368] sm:$0xf0]  ;;  %v10503_v50 = vld [vmem:[%s15477_s0 + $0x24] sm:$0xf] }
   0xe   :  { %v9255_v51 = vld [vmem:[%s15477_s0 + $0x28] sm:$0xf0]  ;;  %v10980_v52 = vor.u32 %v10607_v48, %v9671_v49  ;;  %v9245_v54 = vld [vmem:[%s15477_s0 + $0x10] sm:$0xf]  ;;  %v10502_v55 = vld [vmem:[%s15477_s0 + $0x14] sm:$0xf0] }
   0xf   :  { %v10982_v53 = vor.u32 %v10503_v50, %v9255_v51  ;;  %v10994_v56 = vor.u32 %v10502_v55, %v9245_v54  ;;  %v10609_v57 = vld [vmem:[%s15477_s0 + $0x374] sm:$0xf]  ;;  %v9679_v58 = vld [vmem:[%s15477_s0 + $0x378] sm:$0xf0]  ;;  %v9253_v63 = vld [vmem:[%s15477_s0 + $0x20] sm:$0xf] }
  0x10   :  { %1065 = vmatpush.bf16.msra.mxu0 %v9782_v26  ;;  %15636 = vst [vmem:[#allocation8_spill] sm:$0xff] %v10980_v52  ;;  %v10505_v59 = vld [vmem:[%s15477_s0 + $0x34] sm:$0xf]  ;;  %v9263_v60 = vld [vmem:[%s15477_s0 + $0x38] sm:$0xf0]  ;;  %v11009_v61 = vor.u32 %v10609_v57, %v9679_v58 }
  0x11   :  { %15637 = vst [vmem:[#allocation9_spill] sm:$0xff] %v10982_v53  ;;  %v11011_v62 = vor.u32 %v10505_v59, %v9263_v60  ;;  %v10504_v0 = vld [vmem:[%s15477_s0 + $0x24] sm:$0xf0]  ;;  %v10611_v2 = vld [vmem:[%s15477_s0 + $0x384] sm:$0xf] }
  0x12   :  { %15638 = vst [vmem:[#allocation10_spill] sm:$0xff] %v11009_v61  ;;  %v11023_v1 = vor.u32 %v10504_v0, %v9253_v63  ;;  %v9687_v3 = vld [vmem:[%s15477_s0 + $0x388] sm:$0xf0]  ;;  %v10507_v4 = vld [vmem:[%s15477_s0 + $0x44] sm:$0xf] }
  0x13   :  { %15639 = vst [vmem:[#allocation11_spill] sm:$0xff] %v11011_v62  ;;  %v9271_v5 = vld [vmem:[%s15477_s0 + $0x48] sm:$0xf0]  ;;  %v11038_v6 = vor.u32 %v10611_v2, %v9687_v3  ;;  %v9261_v8 = vld [vmem:[%s15477_s0 + $0x30] sm:$0xf] }
  0x14   :  { %1066 = vmatpush.bf16.msra.mxu0 %v9774_v29  ;;  %v11040_v7 = vor.u32 %v10507_v4, %v9271_v5  ;;  %v10506_v9 = vld [vmem:[%s15477_s0 + $0x34] sm:$0xf0]  ;;  %v10613_v11 = vld [vmem:[%s15477_s0 + $0x394] sm:$0xf]  ;;  %v9695_v12 = vld [vmem:[%s15477_s0 + $0x398] sm:$0xf0] }
  0x15   :  { %15640 = vst [vmem:[#allocation12_spill] sm:$0xff] %v11038_v6  ;;  %v11052_v10 = vor.u32 %v10506_v9, %v9261_v8  ;;  %v10509_v13 = vld [vmem:[%s15477_s0 + $0x54] sm:$0xf]  ;;  %v9279_v14 = vld [vmem:[%s15477_s0 + $0x58] sm:$0xf0]  ;;  %v11067_v15 = vor.u32 %v10613_v11, %v9695_v12 }
  0x16   :  { %15641 = vst [vmem:[#allocation13_spill] sm:$0xff] %v11040_v7  ;;  %v11069_v17 = vor.u32 %v10509_v13, %v9279_v14  ;;  %v9269_v18 = vld [vmem:[%s15477_s0 + $0x40] sm:$0xf]  ;;  %v10508_v19 = vld [vmem:[%s15477_s0 + $0x44] sm:$0xf0] }
  0x17   :  { %15642 = vst [vmem:[#allocation14_spill] sm:$0xff] %v11067_v15  ;;  %v11081_v20 = vor.u32 %v10508_v19, %v9269_v18  ;;  %v10615_v21 = vld [vmem:[%s15477_s0 + $0x3a4] sm:$0xf]  ;;  %v9703_v22 = vld [vmem:[%s15477_s0 + $0x3a8] sm:$0xf0] }
  0x18   :  { %1067 = vmatpush.bf16.msra.mxu0 %v9766_v32  ;;  %15643 = vst [vmem:[#allocation15_spill] sm:$0xff] %v11069_v17  ;;  %v10511_v23 = vld [vmem:[%s15477_s0 + $0x64] sm:$0xf]  ;;  %v11096_v26 = vor.u32 %v10615_v21, %v9703_v22  ;;  %v9277_v28 = vld [vmem:[%s15477_s0 + $0x50] sm:$0xf] }
  0x19   :  { %v10510_v29 = vld [vmem:[%s15477_s0 + $0x54] sm:$0xf0]  ;;  %v10617_v31 = vld [vmem:[%s15477_s0 + $0x3b4] sm:$0xf]  ;;  %v9711_v32 = vld [vmem:[%s15477_s0 + $0x3b8] sm:$0xf0] }
  0x1a   :  { %15644 = vst [vmem:[#allocation16_spill] sm:$0xff] %v11096_v26  ;;  %v11110_v30 = vor.u32 %v10510_v29, %v9277_v28  ;;  %v10513_v33 = vld [vmem:[%s15477_s0 + $0x74] sm:$0xf]  ;;  %v9295_v34 = vld [vmem:[%s15477_s0 + $0x78] sm:$0xf0]  ;;  %v11125_v35 = vor.u32 %v10617_v31, %v9711_v32 }
  0x1b   :  { %v11127_v36 = vor.u32 %v10513_v33, %v9295_v34  ;;  %v9285_v37 = vld [vmem:[%s15477_s0 + $0x60] sm:$0xf]  ;;  %v10512_v38 = vld [vmem:[%s15477_s0 + $0x64] sm:$0xf0]  ;;  %v10619_v41 = vld [vmem:[%s15477_s0 + $0x3c4] sm:$0xf] }
  0x1c   :  { %9880 = vmatmul.msk.bf16.gmra.mxu2 %vm869_vm0, %v10945_v39  ;;  %1068 = vmatpush.bf16.msra.mxu0 %v9758_v40  ;;  %15646 = vst [vmem:[#allocation18_spill] sm:$0xff] %v11125_v35  ;;  %v11139_v40 = vor.u32 %v10512_v38, %v9285_v37  ;;  %v9719_v42 = vld [vmem:[%s15477_s0 + $0x3c8] sm:$0xf0]  ;;  %v10641_v50 = vld [vmem:[%s15476_s1 + $0x74] sm:$0xf] }
  0x1d   :  { %9828 = vmatmul.msk.bf16.gmra.mxu1 %vm869_vm0, %v10953_v43  ;;  %15647 = vst [vmem:[#allocation19_spill] sm:$0xff] %v11127_v36  ;;  %v9303_v45 = vld [vmem:[%s15477_s0 + $0x88] sm:$0xf0]  ;;  %v11154_v46 = vor.u32 %v10619_v41, %v9719_v42  ;;  %v9807_v51 = vld [vmem:[%s15476_s1 + $0x78] sm:$0xf0] }
  0x1e   :  { %v9810_v54 = vor.u32 %v10641_v50, %v9807_v51  ;;  %v9293_v55 = vld [vmem:[%s15477_s0 + $0x70] sm:$0xf]  ;;  %v10514_v57 = vld [vmem:[%s15477_s0 + $0x74] sm:$0xf0]  ;;  %v10639_v58 = vld [vmem:[%s15476_s1 + $0x64] sm:$0xf] }
  0x1f   :  { %15648 = vst [vmem:[#allocation20_spill] sm:$0xff] %v11154_v46  ;;  %v9799_v59 = vld [vmem:[%s15476_s1 + $0x68] sm:$0xf0]  ;;  %v11182_v63 = vor.u32 %v10514_v57, %v9293_v55  ;;  %v10637_v3 = vld [vmem:[%s15476_s1 + $0x54] sm:$0xf] }
  0x20   :  { %1069 = vmatpush.bf16.msra.mxu0 %v9750_v44  ;;  %v10515_v44 = vld [vmem:[%s15477_s0 + $0x84] sm:$0xf]  ;;  %1720 = vmatpush.bf16.msrb.mxu2 %v9810_v54  ;;  %v9802_v0 = vor.u32 %v10639_v58, %v9799_v59  ;;  %v9791_v4 = vld [vmem:[%s15476_s1 + $0x58] sm:$0xf0]  ;;  %v10621_v8 = vld [vmem:[%s15477_s0 + $0x3d4] sm:$0xf] }
  0x21   :  { %v11156_v48 = vor.u32 %v10515_v44, %v9303_v45  ;;  %v9794_v5 = vor.u32 %v10637_v3, %v9791_v4  ;;  %v9727_v9 = vld [vmem:[%s15477_s0 + $0x3d8] sm:$0xf0]  ;;  %v10517_v11 = vld [vmem:[%s15477_s0 + $0x94] sm:$0xf]  ;;  %v10635_v13 = vld [vmem:[%s15476_s1 + $0x44] sm:$0xf] }
  0x22   :  { %v9311_v12 = vld [vmem:[%s15477_s0 + $0x98] sm:$0xf0]  ;;  %v9783_v14 = vld [vmem:[%s15476_s1 + $0x48] sm:$0xf0]  ;;  %v11211_v21 = vor.u32 %v10621_v8, %v9727_v9  ;;  %v10633_v28 = vld [vmem:[%s15476_s1 + $0x34] sm:$0xf] }
  0x23   :  { %1070 = vmatmul.bf16.vlgmr.msra.gmra.mxu0 %v10965_v47  ;;  %15649 = vst [vmem:[#allocation21_spill] sm:$0xff] %v11156_v48  ;;  %v9786_v19 = vor.u32 %v10635_v13, %v9783_v14  ;;  %v11213_v22 = vor.u32 %v10517_v11, %v9311_v12  ;;  %v9775_v29 = vld [vmem:[%s15476_s1 + $0x38] sm:$0xf0]  ;;  %v9301_v32 = vld [vmem:[%s15477_s0 + $0x80] sm:$0xf] }
  0x24   :  { %2055 = vmatpush.bf16.msrb.mxu0 %v9826_v24  ;;  %v9287_v24 = vld [vmem:[%s15477_s0 + $0x68] sm:$0xf0]  ;;  %1721 = vmatpush.bf16.msrb.mxu2 %v9802_v0  ;;  %15652 = vst [vmem:[#allocation24_spill] sm:$0xff] %v11211_v21  ;;  %v9778_v31 = vor.u32 %v10633_v28, %v9775_v29  ;;  %v10516_v33 = vld [vmem:[%s15477_s0 + $0x84] sm:$0xf0] }
  0x25   :  { %v11098_v27 = vor.u32 %v10511_v23, %v9287_v24  ;;  %15653 = vst [vmem:[#allocation25_spill] sm:$0xff] %v11213_v22  ;;  %v11218_v23 = vld [vmem:[%s15478_s2] sm:$0x3]  ;;  %v10631_v37 = vld [vmem:[%s15476_s1 + $0x24] sm:$0xf]  ;;  %v11247_v42 = vor.u32 %v10516_v33, %v9301_v32 }
  0x26   :  { %v11235_v34 = vperm.slane %v11218_v23, 0  ;;  %v9767_v38 = vld [vmem:[%s15476_s1 + $0x28] sm:$0xf0]  ;;  %v10629_v54 = vld [vmem:[%s15476_s1 + $0x14] sm:$0xf]  ;;  %v11997_v25 = vperm.slane %v11218_v23, 1 }
  0x27   :  { %15645 = vst [vmem:[#allocation17_spill] sm:$0xff] %v11098_v27  ;;  %v9770_v44 = vor.u32 %v10631_v37, %v9767_v38  ;;  %v9759_v55 = vld [vmem:[%s15476_s1 + $0x18] sm:$0xf0]  ;;  %v10623_v59 = vld [vmem:[%s15477_s0 + $0x3e4] sm:$0xf] }
  0x28   :  { %1722 = vmatpush.bf16.msrb.mxu2 %v9794_v5  ;;  %v9762_v58 = vor.u32 %v10629_v54, %v9759_v55  ;;  %v9735_v0 = vld [vmem:[%s15477_s0 + $0x3e8] sm:$0xf0]  ;;  %v10519_v3 = vld [vmem:[%s15477_s0 + $0xa4] sm:$0xf]  ;;  %v9309_v29 = vld [vmem:[%s15477_s0 + $0x90] sm:$0xf] }
  0x29   :  { %v10627_v4 = vld [vmem:[%s15476_s1 + $0x4] sm:$0xf]  ;;  %v9751_v5 = vld [vmem:[%s15476_s1 + $0x8] sm:$0xf0]  ;;  %v11279_v12 = vor.u32 %v10623_v59, %v9735_v0  ;;  %v10521_v54 = vld [vmem:[%s15477_s0 + $0xb4] sm:$0xf] }
  0x2a   :  { %v9754_v9 = vor.u32 %v10627_v4, %v9751_v5  ;;  %v9327_v55 = vld [vmem:[%s15477_s0 + $0xb8] sm:$0xf0]  ;;  %v9317_v5 = vld [vmem:[%s15477_s0 + $0xa0] sm:$0xf]  ;;  %v10563_v43 = vld [vmem:[%s15477_s0 + $0x204] sm:$0xf] }
  0x2b   :  { %15657 = vst [vmem:[#allocation29_spill] sm:$0xff] %v11279_v12 }
  0x2c   :  { %9881 = vmatmul.msk.bf16.gmra.mxu2 %vm869_vm0, %v10980_v52 }
  0x2d   :  { %9829 = vmatmul.msk.bf16.gmra.mxu1 %vm869_vm0, %v10982_v53  ;;  %1723 = vmatpush.bf16.msrb.mxu2 %v9786_v19  ;;  %v9477_v53 = vld [vmem:[%s15477_s0 + $0x1e0] sm:$0xf] }
  0x31   :  { %1724 = vmatpush.bf16.msrb.mxu2 %v9778_v31  ;;  %v10518_v31 = vld [vmem:[%s15477_s0 + $0x94] sm:$0xf0] }
  0x32   :  { %v11298_v33 = vor.u32 %v10518_v31, %v9309_v29 }
  0x33   :  { %1075 = vmatmul.bf16.gmra.mxu0 %v10994_v56 }
  0x35   :  { %1725 = vmatpush.bf16.msrb.mxu2 %v9770_v44 }
  0x39   :  { %1726 = vmatpush.bf16.msrb.mxu2 %v9762_v58 }
  0x3c   :  { %9882 = vmatmul.msk.bf16.gmra.mxu2 %vm869_vm0, %v11009_v61  ;;  %v9485_v61 = vld [vmem:[%s15477_s0 + $0x1f0] sm:$0xf] }
  0x3d   :  { %9830 = vmatmul.msk.bf16.gmra.mxu1 %vm869_vm0, %v11011_v62  ;;  %1727 = vmatpush.bf16.msrb.mxu2 %v9754_v9  ;;  %v10520_v9 = vld [vmem:[%s15477_s0 + $0xa4] sm:$0xf0]  ;;  %v10561_v62 = vld [vmem:[%s15477_s0 + $0x1f4] sm:$0xf] }
  0x43   :  { %1080 = vmatmul.bf16.gmra.mxu0 %v11023_v1 }
  0x4c   :  { %9883 = vmatmul.msk.bf16.gmra.mxu2 %vm869_vm0, %v11038_v6 }
  0x4d   :  { %9831 = vmatmul.msk.bf16.gmra.mxu1 %vm869_vm0, %v11040_v7 }
  0x53   :  { %1085 = vmatmul.bf16.gmra.mxu0 %v11052_v10 }
  0x5c   :  { %9884 = vmatmul.msk.bf16.gmra.mxu2 %vm869_vm0, %v11067_v15  ;;  %v10560_v15 = vld [vmem:[%s15477_s0 + $0x1e4] sm:$0xf0] }
  0x5d   :  { %9832 = vmatmul.msk.bf16.gmra.mxu1 %vm869_vm0, %v11069_v17 }
  0x63   :  { %1090 = vmatmul.bf16.gmra.mxu0 %v11081_v20 }
  0x6c   :  { %9885 = vmatmul.msk.bf16.gmra.mxu2 %vm869_vm0, %v11096_v26 }
  0x6d   :  { %9833 = vmatmul.msk.bf16.gmra.mxu1 %vm869_vm0, %v11098_v27 }
  0x73   :  { %1095 = vmatmul.bf16.gmra.mxu0 %v11110_v30 }
  0x7c   :  { %9886 = vmatmul.msk.bf16.gmra.mxu2 %vm869_vm0, %v11125_v35  ;;  %v10558_v35 = vld [vmem:[%s15477_s0 + $0x1d4] sm:$0xf0] }
  0x7d   :  { %9834 = vmatmul.msk.bf16.gmra.mxu1 %vm869_vm0, %v11127_v36  ;;  %v10550_v36 = vld [vmem:[%s15477_s0 + $0x194] sm:$0xf0] }
  0x83   :  { %1100 = vmatmul.bf16.gmra.mxu0 %v11139_v40 }
  0x8a   :  { %v1400_v49 = vpop.f32.mrf.mxu1 }
  0x8c   :  { %9887 = vmatmul.msk.bf16.gmra.mxu2 %vm869_vm0, %v11154_v46  ;;  %v10556_v46 = vld [vmem:[%s15477_s0 + $0x1c4] sm:$0xf0] }
  0x8d   :  { %9835 = vmatmul.msk.bf16.gmra.mxu1 %vm869_vm0, %v11156_v48  ;;  %v10542_v48 = vld [vmem:[%s15477_s0 + $0x154] sm:$0xf0] }
  0x8f   :  { %v11180_v60 = vpop.f32.mrf.mxu2 }
  0x90   :  { %15650 = vst [vmem:[#allocation22_spill] sm:$0xff] %v11180_v60 }
  0x92   :  { %v1402_v2 = vpop.f32.mrf.mxu1 }
  0x93   :  { %1105 = vmatmul.bf16.gmra.mxu0 %v11182_v63 }
  0x97   :  { %v11209_v18 = vpop.f32.mrf.mxu2 }
  0x98   :  { %15651 = vst [vmem:[#allocation23_spill] sm:$0xff] %v11209_v18 }
  0x9a   :  { %v1405_v24 = vpop.f32.mrf.mxu1 }
  0x9c   :  { %9888 = vmatmul.msk.bf16.gmra.mxu2 %vm869_vm0, %v11211_v21 }
  0x9d   :  { %9836 = vmatmul.msk.bf16.gmra.mxu1 %vm869_vm0, %v11213_v22 }
  0x9f   :  { %v11245_v41 = vpop.f32.mrf.mxu2 }
  0xa0   :  { %15654 = vst [vmem:[#allocation26_spill] sm:$0xff] %v11245_v41  ;;  %v1071_v45 = vpop.f32.mrf.mxu0  ;;  %v10546_v41 = vld [vmem:[%s15477_s0 + $0x174] sm:$0xf0] }
  0xa1   :  { %v1072_v50 = vadd.f32 %v1071_v45, %v11235_v34  ;;  %v10625_v45 = vld [vmem:[%s15477_s0 + $0x3f4] sm:$0xf] }
  0xa2   :  { %v1407_v51 = vpop.f32.mrf.mxu1 }
  0xa3   :  { %v11256_v57 = vadd.f32 %v1400_v49, %v1072_v50  ;;  %1110 = vmatmul.bf16.gmra.mxu0 %v11247_v42  ;;  %v9319_v49 = vld [vmem:[%s15477_s0 + $0xa8] sm:$0xf0]  ;;  %v9743_v50 = vld [vmem:[%s15477_s0 + $0x3f8] sm:$0xf0] }
  0xa4   :  { %v11282_v14 = vor.u32 %v10519_v3, %v9319_v49  ;;  %v11318_v59 = vor.u32 %v10625_v45, %v9743_v50  ;;  %v11321_v3 = vor.u32 %v10521_v54, %v9327_v55  ;;  %v9335_v45 = vld [vmem:[%s15477_s0 + $0xc8] sm:$0xf0] }
  0xa5   :  { %15655 = vst [vmem:[#allocation27_spill] sm:$0xff] %v11256_v57 }
  0xa6   :  { %15658 = vst [vmem:[#allocation30_spill] sm:$0xff] %v11282_v14 }
  0xa7   :  { %v11277_v8 = vpop.f32.mrf.mxu2  ;;  %15663 = vst [vmem:[#allocation35_spill] sm:$0xff] %v11318_v59 }
  0xa8   :  { %15656 = vst [vmem:[#allocation28_spill] sm:$0xff] %v11277_v8  ;;  %v1073_v11 = vpop.f32.mrf.mxu0 }
  0xa9   :  { %v1074_v13 = vadd.f32 %v1073_v11, %v11235_v34  ;;  %15664 = vst [vmem:[#allocation36_spill] sm:$0xff] %v11321_v3 }
  0xaa   :  { %v1410_v19 = vpop.f32.mrf.mxu1 }
  0xab   :  { %v11284_v28 = vadd.f32 %v1402_v2, %v1074_v13  ;;  %v11337_v13 = vor.u32 %v10520_v9, %v9317_v5  ;;  %v9325_v5 = vld [vmem:[%s15477_s0 + $0xb0] sm:$0xf]  ;;  %v10522_v9 = vld [vmem:[%s15477_s0 + $0xb4] sm:$0xf0] }
  0xac   :  { %9889 = vmatmul.msk.bf16.gmra.mxu2 %vm869_vm0, %v11279_v12  ;;  %v10552_v12 = vld [vmem:[%s15477_s0 + $0x1a4] sm:$0xf0] }
  0xad   :  { %15659 = vst [vmem:[#allocation31_spill] sm:$0xff] %v11284_v28  ;;  %9837 = vmatmul.msk.bf16.gmra.mxu1 %vm869_vm0, %v11282_v14 }
  0xaf   :  { %v11296_v32 = vpop.f32.mrf.mxu2 }
  0xb0   :  { %15660 = vst [vmem:[#allocation32_spill] sm:$0xff] %v11296_v32  ;;  %v1076_v2 = vpop.f32.mrf.mxu0 }
  0xb1   :  { %v1077_v37 = vadd.f32 %v1076_v2, %v11235_v34 }
  0xb2   :  { %v1412_v38 = vpop.f32.mrf.mxu1 }
  0xb3   :  { %v11301_v44 = vadd.f32 %v1405_v24, %v1077_v37  ;;  %1115 = vmatmul.bf16.gmra.mxu0 %v11298_v33  ;;  %v10523_v37 = vld [vmem:[%s15477_s0 + $0xc4] sm:$0xf] }
  0xb5   :  { %15661 = vst [vmem:[#allocation33_spill] sm:$0xff] %v11301_v44 }
  0xb7   :  { %v11316_v24 = vpop.f32.mrf.mxu2 }
  0xb8   :  { %15662 = vst [vmem:[#allocation34_spill] sm:$0xff] %v11316_v24  ;;  %v1078_v58 = vpop.f32.mrf.mxu0 }
  0xb9   :  { %v1079_v0 = vadd.f32 %v1078_v58, %v11235_v34  ;;  %v11352_v58 = vor.u32 %v10523_v37, %v9335_v45 }
  0xba   :  { %v1415_v49 = vpop.f32.mrf.mxu1 }
  0xbb   :  { %v11323_v4 = vadd.f32 %v1407_v51, %v1079_v0 }
  0xbc   :  { %9890 = vmatmul.msk.bf16.gmra.mxu2 %vm869_vm0, %v11318_v59  ;;  %v10548_v59 = vld [vmem:[%s15477_s0 + $0x184] sm:$0xf0] }
  0xbd   :  { %15665 = vst [vmem:[#allocation37_spill] sm:$0xff] %v11323_v4  ;;  %9838 = vmatmul.msk.bf16.gmra.mxu1 %vm869_vm0, %v11321_v3 }
  0xbf   :  { %v11335_v11 = vpop.f32.mrf.mxu2 }
  0xc0   :  { %15666 = vst [vmem:[#allocation38_spill] sm:$0xff] %v11335_v11  ;;  %v1081_v51 = vpop.f32.mrf.mxu0 }
  0xc1   :  { %v1082_v29 = vadd.f32 %v1081_v51, %v11235_v34 }
  0xc2   :  { %v1417_v31 = vpop.f32.mrf.mxu1 }
  0xc3   :  { %v11340_v2 = vadd.f32 %v1410_v19, %v1082_v29  ;;  %1120 = vmatmul.bf16.gmra.mxu0 %v11337_v13  ;;  %v11367_v29 = vor.u32 %v10522_v9, %v9325_v5 }
  0xc5   :  { %15667 = vst [vmem:[#allocation39_spill] sm:$0xff] %v11340_v2 }
  0xc7   :  { %v11349_v50 = vpop.f32.mrf.mxu2 }
  0xc8   :  { %15668 = vst [vmem:[#allocation40_spill] sm:$0xff] %v11349_v50  ;;  %v1083_v54 = vpop.f32.mrf.mxu0 }
  0xc9   :  { %v1084_v55 = vadd.f32 %v1083_v54, %v11235_v34  ;;  %v10525_v54 = vld [vmem:[%s15477_s0 + $0xd4] sm:$0xf] }
  0xca   :  { %v1420_v0 = vpop.f32.mrf.mxu1 }
  0xcb   :  { %v11354_v19 = vadd.f32 %v1412_v38, %v1084_v55  ;;  %v9343_v55 = vld [vmem:[%s15477_s0 + $0xd8] sm:$0xf0] }
  0xcc   :  { %1728 = vmatmul.bf16.vlgmr.msrb.gmra.mxu2 %v10965_v47 }
  0xcd   :  { %15669 = vst [vmem:[#allocation41_spill] sm:$0xff] %v11354_v19  ;;  %9839 = vmatmul.msk.bf16.gmra.mxu1 %vm869_vm0, %v11352_v58 }
  0xcf   :  { %v11365_v51 = vpop.f32.mrf.mxu2 }
  0xd0   :  { %15670 = vst [vmem:[#allocation42_spill] sm:$0xff] %v11365_v51  ;;  %v1086_v37 = vpop.f32.mrf.mxu0  ;;  %v11382_v51 = vor.u32 %v10525_v54, %v9343_v55 }
  0xd1   :  { %v1087_v38 = vadd.f32 %v1086_v37, %v11235_v34 }
  0xd2   :  { %v1422_v45 = vpop.f32.mrf.mxu1 }
  0xd3   :  { %v11370_v47 = vadd.f32 %v1415_v49, %v1087_v38  ;;  %1125 = vmatmul.bf16.gmra.mxu0 %v11367_v29  ;;  %v9333_v38 = vld [vmem:[%s15477_s0 + $0xc0] sm:$0xf] }
  0xd5   :  { %15671 = vst [vmem:[#allocation43_spill] sm:$0xff] %v11370_v47  ;;  %v10524_v47 = vld [vmem:[%s15477_s0 + $0xc4] sm:$0xf0] }
  0xd6   :  { %v11397_v54 = vor.u32 %v10524_v47, %v9333_v38 }
  0xd7   :  { %v11379_v3 = vpop.f32.mrf.mxu2 }
  0xd8   :  { %15672 = vst [vmem:[#allocation44_spill] sm:$0xff] %v11379_v3  ;;  %v1088_v5 = vpop.f32.mrf.mxu0 }
  0xd9   :  { %v1089_v9 = vadd.f32 %v1088_v5, %v11235_v34 }
  0xda   :  { %v1425_v37 = vpop.f32.mrf.mxu1 }
  0xdb   :  { %v11384_v49 = vadd.f32 %v1417_v31, %v1089_v9  ;;  %v10527_v9 = vld [vmem:[%s15477_s0 + $0xe4] sm:$0xf] }
  0xdc   :  { %1733 = vmatmul.bf16.gmra.mxu2 %v10994_v56 }
  0xdd   :  { %15673 = vst [vmem:[#allocation45_spill] sm:$0xff] %v11384_v49  ;;  %9840 = vmatmul.msk.bf16.gmra.mxu1 %vm869_vm0, %v11382_v51  ;;  %v9351_v49 = vld [vmem:[%s15477_s0 + $0xe8] sm:$0xf0] }
  0xdf   :  { %v11395_v3 = vpop.f32.mrf.mxu2 }
  0xe0   :  { %15674 = vst [vmem:[#allocation46_spill] sm:$0xff] %v11395_v3  ;;  %v1091_v55 = vpop.f32.mrf.mxu0  ;;  %v11412_v3 = vor.u32 %v10527_v9, %v9351_v49 }
  0xe1   :  { %v1092_v31 = vadd.f32 %v1091_v55, %v11235_v34 }
  0xe2   :  { %v1427_v5 = vpop.f32.mrf.mxu1 }
  0xe3   :  { %v11400_v56 = vadd.f32 %v1420_v0, %v1092_v31  ;;  %1130 = vmatmul.bf16.gmra.mxu0 %v11397_v54  ;;  %v9341_v31 = vld [vmem:[%s15477_s0 + $0xd0] sm:$0xf] }
  0xe5   :  { %15675 = vst [vmem:[#allocation47_spill] sm:$0xff] %v11400_v56  ;;  %v10526_v56 = vld [vmem:[%s15477_s0 + $0xd4] sm:$0xf0] }
  0xe6   :  { %v11427_v49 = vor.u32 %v10526_v56, %v9341_v31 }
  0xe7   :  { %v11409_v19 = vpop.f32.mrf.mxu2 }
  0xe8   :  { %15676 = vst [vmem:[#allocation48_spill] sm:$0xff] %v11409_v19  ;;  %v1093_v47 = vpop.f32.mrf.mxu0 }
  0xe9   :  { %v1094_v38 = vadd.f32 %v1093_v47, %v11235_v34 }
  0xea   :  { %v1430_v55 = vpop.f32.mrf.mxu1 }
  0xeb   :  { %v11414_v0 = vadd.f32 %v1422_v45, %v1094_v38  ;;  %v10529_v38 = vld [vmem:[%s15477_s0 + $0xf4] sm:$0xf] }
  0xec   :  { %1738 = vmatmul.bf16.gmra.mxu2 %v11023_v1 }
  0xed   :  { %15677 = vst [vmem:[#allocation49_spill] sm:$0xff] %v11414_v0  ;;  %9841 = vmatmul.msk.bf16.gmra.mxu1 %vm869_vm0, %v11412_v3  ;;  %v9359_v0 = vld [vmem:[%s15477_s0 + $0xf8] sm:$0xf0] }
  0xef   :  { %v11425_v19 = vpop.f32.mrf.mxu2 }
  0xf0   :  { %15678 = vst [vmem:[#allocation50_spill] sm:$0xff] %v11425_v19  ;;  %v1096_v9 = vpop.f32.mrf.mxu0  ;;  %v11442_v19 = vor.u32 %v10529_v38, %v9359_v0 }
  0xf1   :  { %v1097_v45 = vadd.f32 %v1096_v9, %v11235_v34 }
  0xf2   :  { %v1432_v47 = vpop.f32.mrf.mxu1 }
  0xf3   :  { %v11430_v1 = vadd.f32 %v1425_v37, %v1097_v45  ;;  %1135 = vmatmul.bf16.gmra.mxu0 %v11427_v49  ;;  %v9349_v45 = vld [vmem:[%s15477_s0 + $0xe0] sm:$0xf] }
  0xf5   :  { %15679 = vst [vmem:[#allocation51_spill] sm:$0xff] %v11430_v1  ;;  %v10528_v1 = vld [vmem:[%s15477_s0 + $0xe4] sm:$0xf0] }
  0xf6   :  { %v11457_v0 = vor.u32 %v10528_v1, %v9349_v45 }
  0xf7   :  { %v11439_v50 = vpop.f32.mrf.mxu2 }
  0xf8   :  { %15680 = vst [vmem:[#allocation52_spill] sm:$0xff] %v11439_v50  ;;  %v1098_v56 = vpop.f32.mrf.mxu0 }
  0xf9   :  { %v1099_v31 = vadd.f32 %v1098_v56, %v11235_v34 }
  0xfa   :  { %v1435_v9 = vpop.f32.mrf.mxu1 }
  0xfb   :  { %v11444_v37 = vadd.f32 %v1427_v5, %v1099_v31  ;;  %v10531_v31 = vld [vmem:[%s15477_s0 + $0x104] sm:$0xf] }
  0xfc   :  { %1743 = vmatmul.bf16.gmra.mxu2 %v11052_v10 }
  0xfd   :  { %15681 = vst [vmem:[#allocation53_spill] sm:$0xff] %v11444_v37  ;;  %9842 = vmatmul.msk.bf16.gmra.mxu1 %vm869_vm0, %v11442_v19  ;;  %v9367_v37 = vld [vmem:[%s15477_s0 + $0x108] sm:$0xf0] }
  0xff   :  { %v11455_v50 = vpop.f32.mrf.mxu2 }
 0x100   :  { %15682 = vst [vmem:[#allocation54_spill] sm:$0xff] %v11455_v50  ;;  %v1101_v38 = vpop.f32.mrf.mxu0  ;;  %v11472_v50 = vor.u32 %v10531_v31, %v9367_v37 }
 0x101   :  { %v1102_v5 = vadd.f32 %v1101_v38, %v11235_v34 }
 0x102   :  { %v1437_v56 = vpop.f32.mrf.mxu1 }
 0x103   :  { %v11460_v10 = vadd.f32 %v1430_v55, %v1102_v5  ;;  %1140 = vmatmul.bf16.gmra.mxu0 %v11457_v0  ;;  %v9357_v5 = vld [vmem:[%s15477_s0 + $0xf0] sm:$0xf] }
 0x105   :  { %15683 = vst [vmem:[#allocation55_spill] sm:$0xff] %v11460_v10  ;;  %v10530_v10 = vld [vmem:[%s15477_s0 + $0xf4] sm:$0xf0] }
 0x106   :  { %v11487_v37 = vor.u32 %v10530_v10, %v9357_v5 }
 0x107   :  { %v11469_v14 = vpop.f32.mrf.mxu2 }
 0x108   :  { %15684 = vst [vmem:[#allocation56_spill] sm:$0xff] %v11469_v14  ;;  %v1103_v1 = vpop.f32.mrf.mxu0 }
 0x109   :  { %v1104_v45 = vadd.f32 %v1103_v1, %v11235_v34 }
 0x10a   :  { %v1440_v38 = vpop.f32.mrf.mxu1 }
 0x10b   :  { %v11474_v55 = vadd.f32 %v1432_v47, %v1104_v45  ;;  %v10533_v45 = vld [vmem:[%s15477_s0 + $0x114] sm:$0xf] }
 0x10c   :  { %1748 = vmatmul.bf16.gmra.mxu2 %v11081_v20 }
 0x10d   :  { %15685 = vst [vmem:[#allocation57_spill] sm:$0xff] %v11474_v55  ;;  %9843 = vmatmul.msk.bf16.gmra.mxu1 %vm869_vm0, %v11472_v50  ;;  %v9375_v55 = vld [vmem:[%s15477_s0 + $0x118] sm:$0xf0] }
 0x10f   :  { %v11485_v14 = vpop.f32.mrf.mxu2 }
 0x110   :  { %15686 = vst [vmem:[#allocation58_spill] sm:$0xff] %v11485_v14  ;;  %v1106_v31 = vpop.f32.mrf.mxu0  ;;  %v11502_v14 = vor.u32 %v10533_v45, %v9375_v55 }
 0x111   :  { %v1107_v47 = vadd.f32 %v1106_v31, %v11235_v34 }
 0x112   :  { %v1442_v1 = vpop.f32.mrf.mxu1 }
 0x113   :  { %v11490_v20 = vadd.f32 %v1435_v9, %v1107_v47  ;;  %1145 = vmatmul.bf16.gmra.mxu0 %v11487_v37  ;;  %v9365_v47 = vld [vmem:[%s15477_s0 + $0x100] sm:$0xf] }
 0x115   :  { %15687 = vst [vmem:[#allocation59_spill] sm:$0xff] %v11490_v20  ;;  %v10532_v20 = vld [vmem:[%s15477_s0 + $0x104] sm:$0xf0] }
 0x116   :  { %v11517_v55 = vor.u32 %v10532_v20, %v9365_v47 }
 0x117   :  { %v11499_v2 = vpop.f32.mrf.mxu2 }
 0x118   :  { %15688 = vst [vmem:[#allocation60_spill] sm:$0xff] %v11499_v2  ;;  %v1108_v10 = vpop.f32.mrf.mxu0 }
 0x119   :  { %v1109_v5 = vadd.f32 %v1108_v10, %v11235_v34 }
 0x11a   :  { %v1445_v31 = vpop.f32.mrf.mxu1 }
 0x11b   :  { %v11504_v9 = vadd.f32 %v1437_v56, %v1109_v5  ;;  %v10535_v5 = vld [vmem:[%s15477_s0 + $0x124] sm:$0xf] }
 0x11c   :  { %1753 = vmatmul.bf16.gmra.mxu2 %v11110_v30 }
 0x11d   :  { %15689 = vst [vmem:[#allocation61_spill] sm:$0xff] %v11504_v9  ;;  %9844 = vmatmul.msk.bf16.gmra.mxu1 %vm869_vm0, %v11502_v14  ;;  %v9383_v9 = vld [vmem:[%s15477_s0 + $0x128] sm:$0xf0] }
 0x11f   :  { %v11515_v2 = vpop.f32.mrf.mxu2 }
 0x120   :  { %15690 = vst [vmem:[#allocation62_spill] sm:$0xff] %v11515_v2  ;;  %v1111_v45 = vpop.f32.mrf.mxu0  ;;  %v11532_v2 = vor.u32 %v10535_v5, %v9383_v9 }
 0x121   :  { %v1112_v56 = vadd.f32 %v1111_v45, %v11235_v34 }
 0x122   :  { %v1447_v10 = vpop.f32.mrf.mxu1 }
 0x123   :  { %v11520_v30 = vadd.f32 %v1440_v38, %v1112_v56  ;;  %1150 = vmatmul.bf16.gmra.mxu0 %v11517_v55  ;;  %v9373_v56 = vld [vmem:[%s15477_s0 + $0x110] sm:$0xf] }
 0x125   :  { %15691 = vst [vmem:[#allocation63_spill] sm:$0xff] %v11520_v30  ;;  %v10534_v30 = vld [vmem:[%s15477_s0 + $0x114] sm:$0xf0] }
 0x126   :  { %v11547_v9 = vor.u32 %v10534_v30, %v9373_v56 }
 0x127   :  { %v11529_v11 = vpop.f32.mrf.mxu2 }
 0x128   :  { %15692 = vst [vmem:[#allocation64_spill] sm:$0xff] %v11529_v11  ;;  %v1113_v20 = vpop.f32.mrf.mxu0 }
 0x129   :  { %v1114_v47 = vadd.f32 %v1113_v20, %v11235_v34 }
 0x12a   :  { %v1450_v45 = vpop.f32.mrf.mxu1 }
 0x12b   :  { %v11534_v38 = vadd.f32 %v1442_v1, %v1114_v47  ;;  %v10537_v47 = vld [vmem:[%s15477_s0 + $0x134] sm:$0xf] }
 0x12c   :  { %1758 = vmatmul.bf16.gmra.mxu2 %v11139_v40 }
 0x12d   :  { %15693 = vst [vmem:[#allocation65_spill] sm:$0xff] %v11534_v38  ;;  %9845 = vmatmul.msk.bf16.gmra.mxu1 %vm869_vm0, %v11532_v2  ;;  %v9391_v38 = vld [vmem:[%s15477_s0 + $0x138] sm:$0xf0] }
 0x12f   :  { %v11545_v11 = vpop.f32.mrf.mxu2 }
 0x130   :  { %15694 = vst [vmem:[#allocation66_spill] sm:$0xff] %v11545_v11  ;;  %v1116_v5 = vpop.f32.mrf.mxu0  ;;  %v11562_v11 = vor.u32 %v10537_v47, %v9391_v38 }
 0x131   :  { %v1117_v1 = vadd.f32 %v1116_v5, %v11235_v34 }
 0x132   :  { %v1452_v20 = vpop.f32.mrf.mxu1 }
 0x133   :  { %v11550_v40 = vadd.f32 %v1445_v31, %v1117_v1  ;;  %1155 = vmatmul.bf16.gmra.mxu0 %v11547_v9  ;;  %v9381_v1 = vld [vmem:[%s15477_s0 + $0x120] sm:$0xf] }
 0x135   :  { %15695 = vst [vmem:[#allocation67_spill] sm:$0xff] %v11550_v40  ;;  %v10536_v40 = vld [vmem:[%s15477_s0 + $0x124] sm:$0xf0] }
 0x136   :  { %v11577_v38 = vor.u32 %v10536_v40, %v9381_v1 }
 0x137   :  { %v11559_v4 = vpop.f32.mrf.mxu2 }
 0x138   :  { %15696 = vst [vmem:[#allocation68_spill] sm:$0xff] %v11559_v4  ;;  %v1118_v30 = vpop.f32.mrf.mxu0 }
 0x139   :  { %v1119_v56 = vadd.f32 %v1118_v30, %v11235_v34 }
 0x13a   :  { %v1455_v5 = vpop.f32.mrf.mxu1 }
 0x13b   :  { %v11564_v31 = vadd.f32 %v1447_v10, %v1119_v56  ;;  %v10539_v56 = vld [vmem:[%s15477_s0 + $0x144] sm:$0xf] }
 0x13c   :  { %1763 = vmatmul.bf16.gmra.mxu2 %v11182_v63 }
 0x13d   :  { %15697 = vst [vmem:[#allocation69_spill] sm:$0xff] %v11564_v31  ;;  %9846 = vmatmul.msk.bf16.gmra.mxu1 %vm869_vm0, %v11562_v11  ;;  %v9399_v31 = vld [vmem:[%s15477_s0 + $0x148] sm:$0xf0] }
 0x13f   :  { %v11575_v4 = vpop.f32.mrf.mxu2 }
 0x140   :  { %15698 = vst [vmem:[#allocation70_spill] sm:$0xff] %v11575_v4  ;;  %v1121_v47 = vpop.f32.mrf.mxu0  ;;  %v11592_v4 = vor.u32 %v10539_v56, %v9399_v31 }
 0x141   :  { %v1122_v10 = vadd.f32 %v1121_v47, %v11235_v34 }
 0x142   :  { %v1457_v30 = vpop.f32.mrf.mxu1 }
 0x143   :  { %v11580_v63 = vadd.f32 %v1450_v45, %v1122_v10  ;;  %1160 = vmatmul.bf16.gmra.mxu0 %v11577_v38  ;;  %v9389_v10 = vld [vmem:[%s15477_s0 + $0x130] sm:$0xf] }
 0x145   :  { %15699 = vst [vmem:[#allocation71_spill] sm:$0xff] %v11580_v63  ;;  %v10538_v63 = vld [vmem:[%s15477_s0 + $0x134] sm:$0xf0] }
 0x146   :  { %v11607_v31 = vor.u32 %v10538_v63, %v9389_v10 }
 0x147   :  { %v11589_v24 = vpop.f32.mrf.mxu2 }
 0x148   :  { %15700 = vst [vmem:[#allocation72_spill] sm:$0xff] %v11589_v24  ;;  %v1123_v40 = vpop.f32.mrf.mxu0 }
 0x149   :  { %v1124_v1 = vadd.f32 %v1123_v40, %v11235_v34 }
 0x14a   :  { %v1460_v47 = vpop.f32.mrf.mxu1 }
 0x14b   :  { %v11594_v45 = vadd.f32 %v1452_v20, %v1124_v1  ;;  %v10541_v1 = vld [vmem:[%s15477_s0 + $0x154] sm:$0xf] }
 0x14c   :  { %1768 = vmatmul.bf16.gmra.mxu2 %v11247_v42 }
 0x14d   :  { %15701 = vst [vmem:[#allocation73_spill] sm:$0xff] %v11594_v45  ;;  %9847 = vmatmul.msk.bf16.gmra.mxu1 %vm869_vm0, %v11592_v4  ;;  %v9407_v45 = vld [vmem:[%s15477_s0 + $0x158] sm:$0xf0] }
 0x14e   :  { %v11622_v44 = vor.u32 %v10541_v1, %v9407_v45 }
 0x14f   :  { %v11605_v24 = vpop.f32.mrf.mxu2 }
 0x150   :  { %15702 = vst [vmem:[#allocation74_spill] sm:$0xff] %v11605_v24  ;;  %v1126_v56 = vpop.f32.mrf.mxu0 }
 0x151   :  { %v1127_v20 = vadd.f32 %v1126_v56, %v11235_v34 }
 0x152   :  { %v1462_v40 = vpop.f32.mrf.mxu1 }
 0x153   :  { %v11610_v42 = vadd.f32 %v1455_v5, %v1127_v20  ;;  %1165 = vmatmul.bf16.gmra.mxu0 %v11607_v31  ;;  %v9397_v20 = vld [vmem:[%s15477_s0 + $0x140] sm:$0xf] }
 0x155   :  { %15703 = vst [vmem:[#allocation75_spill] sm:$0xff] %v11610_v42  ;;  %v10540_v42 = vld [vmem:[%s15477_s0 + $0x144] sm:$0xf0] }
 0x156   :  { %v11637_v45 = vor.u32 %v10540_v42, %v9397_v20  ;;  %v10643_v20 = vld [vmem:[%s15476_s1 + $0x84] sm:$0xf] }
 0x157   :  { %v11619_v22 = vpop.f32.mrf.mxu2 }
 0x158   :  { %15704 = vst [vmem:[#allocation76_spill] sm:$0xff] %v11619_v22  ;;  %v1128_v63 = vpop.f32.mrf.mxu0 }
 0x159   :  { %v1129_v10 = vadd.f32 %v1128_v63, %v11235_v34 }
 0x15a   :  { %v1465_v56 = vpop.f32.mrf.mxu1 }
 0x15b   :  { %v11624_v5 = vadd.f32 %v1457_v30, %v1129_v10  ;;  %v10543_v10 = vld [vmem:[%s15477_s0 + $0x164] sm:$0xf] }
 0x15c   :  { %1773 = vmatmul.bf16.gmra.mxu2 %v11298_v33 }
 0x15d   :  { %15705 = vst [vmem:[#allocation77_spill] sm:$0xff] %v11624_v5  ;;  %9848 = vmatmul.msk.bf16.gmra.mxu1 %vm869_vm0, %v11622_v44  ;;  %v9415_v5 = vld [vmem:[%s15477_s0 + $0x168] sm:$0xf0] }
 0x15f   :  { %v11635_v32 = vpop.f32.mrf.mxu2 }
 0x160   :  { %15706 = vst [vmem:[#allocation78_spill] sm:$0xff] %v11635_v32  ;;  %v1131_v1 = vpop.f32.mrf.mxu0 }
 0x161   :  { %v1132_v30 = vadd.f32 %v1131_v1, %v11235_v34 }
 0x162   :  { %v1467_v63 = vpop.f32.mrf.mxu1 }
 0x163   :  { %v11640_v33 = vadd.f32 %v1460_v47, %v1132_v30  ;;  %1170 = vmatmul.bf16.gmra.mxu0 %v11637_v45  ;;  %v9815_v47 = vld [vmem:[%s15476_s1 + $0x88] sm:$0xf0]  ;;  %v11658_v30 = vor.u32 %v10543_v10, %v9415_v5 }
 0x164   :  { %v9818_v32 = vor.u32 %v10643_v20, %v9815_v47  ;;  %v10545_v20 = vld [vmem:[%s15477_s0 + $0x174] sm:$0xf] }
 0x165   :  { %v2426_v16 = vmax.f32 %v11640_v33, 0.0 }
 0x166   :  { %10786 = vmatpush.bf16.msra.mxu3 %v9818_v32  ;;  %2056 = vmatpush.bf16.msrb.mxu0 %v9818_v32 }
 0x167   :  { %v11649_v28 = vpop.f32.mrf.mxu2 }
 0x168   :  { %15707 = vst [vmem:[#allocation79_spill] sm:$0xff] %v11649_v28  ;;  %v1133_v42 = vpop.f32.mrf.mxu0  ;;  %v9405_v28 = vld [vmem:[%s15477_s0 + $0x150] sm:$0xf] }
 0x169   :  { %v1134_v1 = vadd.f32 %v1133_v42, %v11235_v34  ;;  %9903 = vmatmul.msk.bf16.vlgmr.msra.gmra.mxu3 %vm869_vm0, %v11352_v58  ;;  %v11675_v5 = vor.u32 %v10542_v48, %v9405_v28  ;;  %v9423_v58 = vld [vmem:[%s15477_s0 + $0x178] sm:$0xf0] }
 0x16a   :  { %v1470_v8 = vpop.f32.mrf.mxu1 }
 0x16b   :  { %v11660_v22 = vadd.f32 %v1462_v40, %v1134_v1  ;;  %v11690_v1 = vor.u32 %v10545_v20, %v9423_v58 }
 0x16c   :  { %1778 = vmatmul.bf16.gmra.mxu2 %v11337_v13 }
 0x16d   :  { %9849 = vmatmul.msk.bf16.gmra.mxu1 %vm869_vm0, %v11658_v30 }
 0x16f   :  { %v11673_v40 = vpop.f32.mrf.mxu2 }
 0x170   :  { %15708 = vst [vmem:[#allocation80_spill] sm:$0xff] %v11673_v40  ;;  %v1136_v32 = vpop.f32.mrf.mxu0  ;;  %v10544_v40 = vld [vmem:[%s15477_s0 + $0x164] sm:$0xf0] }
 0x171   :  { %v1137_v13 = vadd.f32 %v1136_v32, %v11235_v34 }
 0x172   :  { %v1472_v10 = vpop.f32.mrf.mxu1 }
 0x173   :  { %v11678_v42 = vadd.f32 %v1465_v56, %v1137_v13  ;;  %1175 = vmatmul.bf16.gmra.mxu0 %v11675_v5  ;;  %v9413_v13 = vld [vmem:[%s15477_s0 + $0x160] sm:$0xf] }
 0x177   :  { %v11687_v47 = vpop.f32.mrf.mxu2 }
 0x178   :  { %15709 = vst [vmem:[#allocation81_spill] sm:$0xff] %v11687_v47  ;;  %v1138_v48 = vpop.f32.mrf.mxu0  ;;  %v10547_v47 = vld [vmem:[%s15477_s0 + $0x184] sm:$0xf] }
 0x179   :  { %v1139_v28 = vadd.f32 %v1138_v48, %v11235_v34  ;;  %9904 = vmatmul.msk.bf16.gmra.mxu3 %vm869_vm0, %v11382_v51  ;;  %v9431_v51 = vld [vmem:[%s15477_s0 + $0x188] sm:$0xf0] }
 0x17a   :  { %v1475_v32 = vpop.f32.mrf.mxu1 }
 0x17b   :  { %v11692_v56 = vadd.f32 %v1467_v63, %v1139_v28  ;;  %v11707_v63 = vor.u32 %v10544_v40, %v9413_v13 }
 0x17c   :  { %1783 = vmatmul.bf16.gmra.mxu2 %v11367_v29 }
 0x17d   :  { %9850 = vmatmul.msk.bf16.gmra.mxu1 %vm869_vm0, %v11690_v1 }
 0x17f   :  { %v11705_v20 = vpop.f32.mrf.mxu2 }
 0x180   :  { %15710 = vst [vmem:[#allocation82_spill] sm:$0xff] %v11705_v20  ;;  %v1141_v58 = vpop.f32.mrf.mxu0  ;;  %v11722_v20 = vor.u32 %v10547_v47, %v9431_v51 }
 0x181   :  { %v1142_v29 = vadd.f32 %v1141_v58, %v11235_v34 }
 0x182   :  { %v1477_v48 = vpop.f32.mrf.mxu1 }
 0x183   :  { %v11710_v28 = vadd.f32 %v1470_v8, %v1142_v29  ;;  %1180 = vmatmul.bf16.gmra.mxu0 %v11707_v63  ;;  %v9421_v29 = vld [vmem:[%s15477_s0 + $0x170] sm:$0xf] }
 0x187   :  { %v11719_v57 = vpop.f32.mrf.mxu2 }
 0x188   :  { %15711 = vst [vmem:[#allocation83_spill] sm:$0xff] %v11719_v57  ;;  %v1143_v40 = vpop.f32.mrf.mxu0  ;;  %v10549_v57 = vld [vmem:[%s15477_s0 + $0x194] sm:$0xf] }
 0x189   :  { %v1144_v13 = vadd.f32 %v1143_v40, %v11235_v34  ;;  %9905 = vmatmul.msk.bf16.gmra.mxu3 %vm869_vm0, %v11412_v3  ;;  %v9439_v3 = vld [vmem:[%s15477_s0 + $0x198] sm:$0xf0] }
 0x18a   :  { %v1480_v58 = vpop.f32.mrf.mxu1 }
 0x18b   :  { %v11724_v8 = vadd.f32 %v1472_v10, %v1144_v13  ;;  %v11739_v10 = vor.u32 %v10546_v41, %v9421_v29 }
 0x18c   :  { %1788 = vmatmul.bf16.gmra.mxu2 %v11397_v54 }
 0x18d   :  { %9851 = vmatmul.msk.bf16.gmra.mxu1 %vm869_vm0, %v11722_v20 }
 0x18f   :  { %v11737_v47 = vpop.f32.mrf.mxu2 }
 0x190   :  { %15712 = vst [vmem:[#allocation84_spill] sm:$0xff] %v11737_v47  ;;  %v1146_v51 = vpop.f32.mrf.mxu0  ;;  %v11754_v47 = vor.u32 %v10549_v57, %v9439_v3 }
 0x191   :  { %v1147_v54 = vadd.f32 %v1146_v51, %v11235_v34 }
 0x192   :  { %v1482_v40 = vpop.f32.mrf.mxu1 }
 0x193   :  { %v11742_v13 = vadd.f32 %v1475_v32, %v1147_v54  ;;  %1185 = vmatmul.bf16.gmra.mxu0 %v11739_v10  ;;  %v9429_v54 = vld [vmem:[%s15477_s0 + $0x180] sm:$0xf] }
 0x197   :  { %v11751_v24 = vpop.f32.mrf.mxu2 }
 0x198   :  { %15713 = vst [vmem:[#allocation85_spill] sm:$0xff] %v11751_v24  ;;  %v1148_v41 = vpop.f32.mrf.mxu0  ;;  %v10551_v24 = vld [vmem:[%s15477_s0 + $0x1a4] sm:$0xf] }
 0x199   :  { %v1149_v29 = vadd.f32 %v1148_v41, %v11235_v34  ;;  %9906 = vmatmul.msk.bf16.gmra.mxu3 %vm869_vm0, %v11442_v19  ;;  %v9447_v19 = vld [vmem:[%s15477_s0 + $0x1a8] sm:$0xf0] }
 0x19a   :  { %v1485_v51 = vpop.f32.mrf.mxu1 }
 0x19b   :  { %v11756_v32 = vadd.f32 %v1477_v48, %v1149_v29  ;;  %v11771_v48 = vor.u32 %v10548_v59, %v9429_v54 }
 0x19c   :  { %1793 = vmatmul.bf16.gmra.mxu2 %v11427_v49 }
 0x19d   :  { %9852 = vmatmul.msk.bf16.gmra.mxu1 %vm869_vm0, %v11754_v47 }
 0x19f   :  { %v11769_v57 = vpop.f32.mrf.mxu2 }
 0x1a0   :  { %15714 = vst [vmem:[#allocation86_spill] sm:$0xff] %v11769_v57  ;;  %v1151_v3 = vpop.f32.mrf.mxu0  ;;  %v11786_v57 = vor.u32 %v10551_v24, %v9447_v19 }
 0x1a1   :  { %v1152_v49 = vadd.f32 %v1151_v3, %v11235_v34 }
 0x1a2   :  { %v1487_v41 = vpop.f32.mrf.mxu1 }
 0x1a3   :  { %v11774_v29 = vadd.f32 %v1480_v58, %v1152_v49  ;;  %1190 = vmatmul.bf16.gmra.mxu0 %v11771_v48  ;;  %v9437_v49 = vld [vmem:[%s15477_s0 + $0x190] sm:$0xf] }
 0x1a7   :  { %v11783_v18 = vpop.f32.mrf.mxu2 }
 0x1a8   :  { %15715 = vst [vmem:[#allocation87_spill] sm:$0xff] %v11783_v18  ;;  %v1153_v59 = vpop.f32.mrf.mxu0  ;;  %v10553_v18 = vld [vmem:[%s15477_s0 + $0x1b4] sm:$0xf] }
 0x1a9   :  { %v1154_v54 = vadd.f32 %v1153_v59, %v11235_v34  ;;  %9907 = vmatmul.msk.bf16.gmra.mxu3 %vm869_vm0, %v11472_v50  ;;  %v9455_v50 = vld [vmem:[%s15477_s0 + $0x1b8] sm:$0xf0] }
 0x1aa   :  { %v1490_v3 = vpop.f32.mrf.mxu1 }
 0x1ab   :  { %v11788_v58 = vadd.f32 %v1482_v40, %v1154_v54  ;;  %v11803_v40 = vor.u32 %v10550_v36, %v9437_v49 }
 0x1ac   :  { %1798 = vmatmul.bf16.gmra.mxu2 %v11457_v0 }
 0x1ad   :  { %9853 = vmatmul.msk.bf16.gmra.mxu1 %vm869_vm0, %v11786_v57 }
 0x1af   :  { %v11801_v24 = vpop.f32.mrf.mxu2 }
 0x1b0   :  { %15716 = vst [vmem:[#allocation88_spill] sm:$0xff] %v11801_v24  ;;  %v1156_v19 = vpop.f32.mrf.mxu0  ;;  %v11818_v24 = vor.u32 %v10553_v18, %v9455_v50 }
 0x1b1   :  { %v1157_v0 = vadd.f32 %v1156_v19, %v11235_v34 }
 0x1b2   :  { %v1492_v59 = vpop.f32.mrf.mxu1 }
 0x1b3   :  { %v11806_v54 = vadd.f32 %v1485_v51, %v1157_v0  ;;  %1195 = vmatmul.bf16.gmra.mxu0 %v11803_v40  ;;  %v9445_v0 = vld [vmem:[%s15477_s0 + $0x1a0] sm:$0xf] }
 0x1b7   :  { %v11815_v60 = vpop.f32.mrf.mxu2 }
 0x1b8   :  { %15717 = vst [vmem:[#allocation89_spill] sm:$0xff] %v11815_v60  ;;  %v1158_v36 = vpop.f32.mrf.mxu0 }
 0x1b9   :  { %v1159_v49 = vadd.f32 %v1158_v36, %v11235_v34  ;;  %9908 = vmatmul.msk.bf16.gmra.mxu3 %vm869_vm0, %v11502_v14  ;;  %v10678_v36 = vld [vmem:[%s15479_s3 + $0xf4] sm:$0xf0] }
 0x1ba   :  { %v1495_v19 = vpop.f32.mrf.mxu1  ;;  %v10662_v14 = vld [vmem:[%s15479_s3 + $0x74] sm:$0xf0] }
 0x1bb   :  { %v11820_v51 = vadd.f32 %v1487_v41, %v1159_v49  ;;  %v11835_v41 = vor.u32 %v10552_v12, %v9445_v0  ;;  %v10013_v12 = vld [vmem:[%s15479_s3 + $0x70] sm:$0xf] }
 0x1bc   :  { %1803 = vmatmul.bf16.gmra.mxu2 %v11487_v37  ;;  %v10077_v37 = vld [vmem:[%s15479_s3 + $0xf0] sm:$0xf]  ;;  %v10014_v0 = vor.u32 %v10662_v14, %v10013_v12  ;;  %v10554_v14 = vld [vmem:[%s15477_s0 + $0x1b4] sm:$0xf0] }
 0x1bd   :  { %9854 = vmatmul.msk.bf16.gmra.mxu1 %vm869_vm0, %v11818_v24  ;;  %v10078_v60 = vor.u32 %v10678_v36, %v10077_v37  ;;  %v9453_v12 = vld [vmem:[%s15477_s0 + $0x1b0] sm:$0xf] }
 0x1be   :  { %6257 = vmatpush.bf16.msrb.mxu1 %v10014_v0 }
 0x1bf   :  { %v11833_v18 = vpop.f32.mrf.mxu2  ;;  %6426 = vmatpush.bf16.msrb.mxu3 %v10078_v60 }
 0x1c0   :  { %15718 = vst [vmem:[#allocation90_spill] sm:$0xff] %v11833_v18  ;;  %v1161_v50 = vpop.f32.mrf.mxu0 }
 0x1c1   :  { %v1162_v49 = vadd.f32 %v1161_v50, %v11235_v34  ;;  %v10555_v50 = vld [vmem:[%s15477_s0 + $0x1c4] sm:$0xf] }
 0x1c2   :  { %v1497_v27 = vpop.f32.mrf.mxu1 }
 0x1c3   :  { %v11844_v21 = vadd.f32 %v1490_v3, %v1162_v49  ;;  %1200 = vmatmul.bf16.gmra.mxu0 %v11835_v41  ;;  %v9463_v3 = vld [vmem:[%s15477_s0 + $0x1c8] sm:$0xf0] }
 0x1c4   :  { %v11862_v49 = vor.u32 %v10555_v50, %v9463_v3 }
 0x1c7   :  { %v11859_v37 = vpop.f32.mrf.mxu2 }
 0x1c8   :  { %15719 = vst [vmem:[#allocation91_spill] sm:$0xff] %v11859_v37  ;;  %v1163_v60 = vpop.f32.mrf.mxu0 }
 0x1c9   :  { %v1164_v36 = vadd.f32 %v1163_v60, %v11235_v34  ;;  %9909 = vmatmul.msk.bf16.gmra.mxu3 %vm869_vm0, %v11532_v2  ;;  %v9471_v2 = vld [vmem:[%s15477_s0 + $0x1d8] sm:$0xf0] }
 0x1ca   :  { %v1500_v18 = vpop.f32.mrf.mxu1 }
 0x1cb   :  { %v11864_v17 = vadd.f32 %v1492_v59, %v1164_v36  ;;  %v11879_v59 = vor.u32 %v10554_v14, %v9453_v12  ;;  %v10557_v36 = vld [vmem:[%s15477_s0 + $0x1d4] sm:$0xf] }
 0x1cc   :  { %1808 = vmatmul.bf16.gmra.mxu2 %v11517_v55 }
 0x1cd   :  { %9855 = vmatmul.msk.bf16.gmra.mxu1 %vm869_vm0, %v11862_v49 }
 0x1cf   :  { %v11877_v0 = vpop.f32.mrf.mxu2 }
 0x1d0   :  { %15720 = vst [vmem:[#allocation92_spill] sm:$0xff] %v11877_v0  ;;  %v1166_v50 = vpop.f32.mrf.mxu0  ;;  %v11894_v0 = vor.u32 %v10557_v36, %v9471_v2 }
 0x1d1   :  { %v1167_v55 = vadd.f32 %v1166_v50, %v11235_v34 }
 0x1d2   :  { %v1502_v3 = vpop.f32.mrf.mxu1 }
 0x1d3   :  { %v11882_v60 = vadd.f32 %v1495_v19, %v1167_v55  ;;  %1205 = vmatmul.bf16.gmra.mxu0 %v11879_v59  ;;  %v9461_v55 = vld [vmem:[%s15477_s0 + $0x1c0] sm:$0xf] }
 0x1d7   :  { %v11891_v37 = vpop.f32.mrf.mxu2 }
 0x1d8   :  { %15721 = vst [vmem:[#allocation93_spill] sm:$0xff] %v11891_v37  ;;  %v1168_v12 = vpop.f32.mrf.mxu0  ;;  %v10559_v37 = vld [vmem:[%s15477_s0 + $0x1e4] sm:$0xf] }
 0x1d9   :  { %v1169_v14 = vadd.f32 %v1168_v12, %v11235_v34  ;;  %9910 = vmatmul.msk.bf16.gmra.mxu3 %vm869_vm0, %v11562_v11  ;;  %v9479_v11 = vld [vmem:[%s15477_s0 + $0x1e8] sm:$0xf0] }
 0x1da   :  { %v1505_v50 = vpop.f32.mrf.mxu1 }
 0x1db   :  { %v11896_v19 = vadd.f32 %v1497_v27, %v1169_v14  ;;  %v11911_v27 = vor.u32 %v10556_v46, %v9461_v55 }
 0x1dc   :  { %1813 = vmatmul.bf16.gmra.mxu2 %v11547_v9 }
 0x1dd   :  { %9856 = vmatmul.msk.bf16.gmra.mxu1 %vm869_vm0, %v11894_v0 }
 0x1df   :  { %v11909_v36 = vpop.f32.mrf.mxu2 }
 0x1e0   :  { %15722 = vst [vmem:[#allocation94_spill] sm:$0xff] %v11909_v36  ;;  %v1171_v2 = vpop.f32.mrf.mxu0  ;;  %v11926_v36 = vor.u32 %v10559_v37, %v9479_v11 }
 0x1e1   :  { %v1172_v9 = vadd.f32 %v1171_v2, %v11235_v34 }
 0x1e2   :  { %v1507_v12 = vpop.f32.mrf.mxu1 }
 0x1e3   :  { %v11914_v14 = vadd.f32 %v1500_v18, %v1172_v9  ;;  %1210 = vmatmul.bf16.gmra.mxu0 %v11911_v27  ;;  %v9469_v9 = vld [vmem:[%s15477_s0 + $0x1d0] sm:$0xf] }
 0x1e7   :  { %v11923_v7 = vpop.f32.mrf.mxu2 }
 0x1e8   :  { %15723 = vst [vmem:[#allocation95_spill] sm:$0xff] %v11923_v7  ;;  %v1173_v46 = vpop.f32.mrf.mxu0 }
 0x1e9   :  { %v1174_v55 = vadd.f32 %v1173_v46, %v11235_v34  ;;  %9911 = vmatmul.msk.bf16.gmra.mxu3 %vm869_vm0, %v11592_v4  ;;  %v9487_v4 = vld [vmem:[%s15477_s0 + $0x1f8] sm:$0xf0] }
 0x1ea   :  { %v1510_v2 = vpop.f32.mrf.mxu1 }
 0x1eb   :  { %v11928_v18 = vadd.f32 %v1502_v3, %v1174_v55  ;;  %v11943_v3 = vor.u32 %v10558_v35, %v9469_v9 }
 0x1ec   :  { %1818 = vmatmul.bf16.gmra.mxu2 %v11577_v38  ;;  %v2118_v46 = vpop.f32.mrf.mxu3 }
 0x1ed   :  { %9857 = vmatmul.msk.bf16.gmra.mxu1 %vm869_vm0, %v11926_v36 }
 0x1ef   :  { %v11941_v37 = vpop.f32.mrf.mxu2 }
 0x1f0   :  { %15724 = vst [vmem:[#allocation96_spill] sm:$0xff] %v11941_v37  ;;  %v1176_v11 = vpop.f32.mrf.mxu0 }
 0x1f1   :  { %v1177_v38 = vadd.f32 %v1176_v11, %v11235_v34  ;;  %v11958_v11 = vor.u32 %v10561_v62, %v9487_v4 }
 0x1f2   :  { %v1512_v55 = vpop.f32.mrf.mxu1 }
 0x1f3   :  { %v11946_v7 = vadd.f32 %v1505_v50, %v1177_v38  ;;  %1215 = vmatmul.bf16.gmra.mxu0 %v11943_v3 }
 0x1f4   :  { %v2120_v26 = vpop.f32.mrf.mxu3 }
 0x1f7   :  { %v11955_v37 = vpop.f32.mrf.mxu2 }
 0x1f8   :  { %15725 = vst [vmem:[#allocation97_spill] sm:$0xff] %v11955_v37  ;;  %v1178_v35 = vpop.f32.mrf.mxu0 }
 0x1f9   :  { %v1179_v9 = vadd.f32 %v1178_v35, %v11235_v34  ;;  %9912 = vmatmul.msk.bf16.gmra.mxu3 %vm869_vm0, %v11622_v44  ;;  %v9495_v44 = vld [vmem:[%s15477_s0 + $0x208] sm:$0xf0] }
 0x1fa   :  { %v1515_v50 = vpop.f32.mrf.mxu1 }
 0x1fb   :  { %v11960_v38 = vadd.f32 %v1507_v12, %v1179_v9  ;;  %v11975_v12 = vor.u32 %v10560_v15, %v9477_v53 }
 0x1fc   :  { %1823 = vmatmul.bf16.gmra.mxu2 %v11607_v31  ;;  %v2123_v35 = vpop.f32.mrf.mxu3 }
 0x1fd   :  { %9858 = vmatmul.msk.bf16.gmra.mxu1 %vm869_vm0, %v11958_v11 }
 0x1ff   :  { %v11973_v62 = vpop.f32.mrf.mxu2 }
 0x200   :  { %15726 = vst [vmem:[#allocation98_spill] sm:$0xff] %v11973_v62  ;;  %v1181_v4 = vpop.f32.mrf.mxu0 }
 0x201   :  { %v1182_v31 = vadd.f32 %v1181_v4, %v11235_v34  ;;  %v11990_v4 = vor.u32 %v10563_v43, %v9495_v44 }
 0x202   :  { %v1517_v9 = vpop.f32.mrf.mxu1 }
 0x203   :  { %v11978_v37 = vadd.f32 %v1510_v2, %v1182_v31  ;;  %1220 = vmatmul.bf16.gmra.mxu0 %v11975_v12 }
 0x204   :  { %v11992_v6 = vpop.f32.mrf.mxu3 }
 0x207   :  { %v11987_v62 = vpop.f32.mrf.mxu2 }
 0x208   :  { %15727 = vst [vmem:[#allocation99_spill] sm:$0xff] %v11987_v62  ;;  %v1183_v53 = vpop.f32.mrf.mxu0 }
 0x209   :  { %v1184_v15 = vadd.f32 %v1183_v53, %v11235_v34  ;;  %v10562_v53 = vld [vmem:[%s15477_s0 + $0x1f4] sm:$0xf0]  ;;  %9913 = vmatmul.msk.bf16.gmra.mxu3 %vm869_vm0, %v11658_v30 }
 0x20a   :  { %v1520_v2 = vpop.f32.mrf.mxu1 }
 0x20b   :  { %v11994_v31 = vadd.f32 %v1512_v55, %v1184_v15  ;;  %v12010_v55 = vor.u32 %v10562_v53, %v9485_v61  ;;  %v10565_v61 = vld [vmem:[%s15477_s0 + $0x214] sm:$0xf]  ;;  %v9503_v53 = vld [vmem:[%s15477_s0 + $0x218] sm:$0xf0] }
 0x20c   :  { %1828 = vmatmul.bf16.gmra.mxu2 %v11637_v45  ;;  %v12014_v15 = vpop.f32.mrf.mxu3 }
 0x20d   :  { %15728 = vst [vmem:[#allocation100_spill] sm:$0xff] %v11994_v31  ;;  %9859 = vmatmul.msk.bf16.gmra.mxu1 %vm869_vm0, %v11990_v4 }
 0x20f   :  { %v1789_v43 = vpop.f32.mrf.mxu2 }
 0x210   :  { %v1790_v23 = vadd.f32 %v1789_v43, %v11997_v25  ;;  %v1186_v45 = vpop.f32.mrf.mxu0 }
 0x211   :  { %v1187_v44 = vadd.f32 %v1186_v45, %v11235_v34  ;;  %v12028_v45 = vor.u32 %v10565_v61, %v9503_v53  ;;  %v10564_v61 = vld [vmem:[%s15477_s0 + $0x204] sm:$0xf0] }
 0x212   :  { %v2119_v62 = vadd.f32 %v2118_v46, %v1790_v23  ;;  %v1522_v52 = vpop.f32.mrf.mxu1 }
 0x213   :  { %v12016_v39 = vadd.f32 %v1515_v50, %v1187_v44  ;;  %1225 = vmatmul.bf16.gmra.mxu0 %v12010_v55  ;;  %v2428_v44 = vmax.f32 %v11660_v22, 0.0 }
 0x214   :  { %v2427_v31 = vmax.f32 %v2119_v62, 0.0  ;;  %v12030_v33 = vpop.f32.mrf.mxu3 }
 0x215   :  { %15729 = vst [vmem:[#allocation101_spill] sm:$0xff] %v12016_v39 }
 0x216   :  { %v2658_v30 = vmax.f32 %v2426_v16, %v2427_v31 }
 0x217   :  { %v1791_v43 = vpop.f32.mrf.mxu2 }
 0x218   :  { %2786 = vst [vmem:[#allocation2 + $0xc0] sm:$0xff] %v2658_v30  ;;  %v1792_v46 = vadd.f32 %v1791_v43, %v11997_v25  ;;  %v1188_v50 = vpop.f32.mrf.mxu0  ;;  %v9493_v30 = vld [vmem:[%s15477_s0 + $0x200] sm:$0xf] }
 0x219   :  { %v1189_v23 = vadd.f32 %v1188_v50, %v11235_v34  ;;  %9914 = vmatmul.msk.bf16.gmra.mxu3 %vm869_vm0, %v11690_v1  ;;  %v12046_v22 = vor.u32 %v10564_v61, %v9493_v30  ;;  %v10567_v30 = vld [vmem:[%s15477_s0 + $0x224] sm:$0xf]  ;;  %v9511_v61 = vld [vmem:[%s15477_s0 + $0x228] sm:$0xf0] }
 0x21a   :  { %v2121_v16 = vadd.f32 %v2120_v26, %v1792_v46  ;;  %v1525_v62 = vpop.f32.mrf.mxu1 }
 0x21b   :  { %v12032_v31 = vadd.f32 %v1517_v9, %v1189_v23 }
 0x21c   :  { %v2429_v39 = vmax.f32 %v2121_v16, 0.0  ;;  %1833 = vmatmul.bf16.gmra.mxu2 %v11675_v5  ;;  %v12050_v46 = vpop.f32.mrf.mxu3 }
 0x21d   :  { %9860 = vmatmul.msk.bf16.gmra.mxu1 %vm869_vm0, %v12028_v45 }
 0x21e   :  { %v2659_v26 = vmax.f32 %v2428_v44, %v2429_v39  ;;  %v2430_v39 = vmax.f32 %v11678_v42, 0.0  ;;  %v10676_v42 = vld [vmem:[%s15479_s3 + $0xe4] sm:$0xf0] }
 0x21f   :  { %v1794_v9 = vpop.f32.mrf.mxu2 }
 0x220   :  { %2787 = vst [vmem:[#allocation2 + $0xc8] sm:$0xff] %v2659_v26  ;;  %v1795_v5 = vadd.f32 %v1794_v9, %v11997_v25  ;;  %v1191_v53 = vpop.f32.mrf.mxu0  ;;  %v10069_v9 = vld [vmem:[%s15479_s3 + $0xe0] sm:$0xf] }
 0x221   :  { %v1192_v43 = vadd.f32 %v1191_v53, %v11235_v34  ;;  %v12070_v53 = vor.u32 %v10567_v30, %v9511_v61  ;;  %v10566_v30 = vld [vmem:[%s15477_s0 + $0x214] sm:$0xf0] }
 0x222   :  { %v2124_v50 = vadd.f32 %v2123_v35, %v1795_v5  ;;  %v1527_v23 = vpop.f32.mrf.mxu1 }
 0x223   :  { %v12052_v16 = vadd.f32 %v1520_v2, %v1192_v43  ;;  %1230 = vmatmul.bf16.gmra.mxu0 %v12046_v22  ;;  %v10070_v43 = vor.u32 %v10676_v42, %v10069_v9  ;;  %v10660_v9 = vld [vmem:[%s15479_s3 + $0x64] sm:$0xf0] }
 0x224   :  { %v2431_v1 = vmax.f32 %v2124_v50, 0.0  ;;  %v12072_v50 = vpop.f32.mrf.mxu3 }
 0x225   :  { %15730 = vst [vmem:[#allocation102_spill] sm:$0xff] %v12052_v16  ;;  %6427 = vmatpush.bf16.msrb.mxu3 %v10070_v43 }
 0x226   :  { %v2660_v44 = vmax.f32 %v2430_v39, %v2431_v1 }
 0x227   :  { %v1796_v26 = vpop.f32.mrf.mxu2 }
 0x228   :  { %2788 = vst [vmem:[#allocation2 + $0xd0] sm:$0xff] %v2660_v44  ;;  %v1797_v35 = vadd.f32 %v1796_v26, %v11997_v25  ;;  %v1193_v2 = vpop.f32.mrf.mxu0  ;;  %v2432_v26 = vmax.f32 %v11692_v56, 0.0 }
 0x229   :  { %v1194_v5 = vadd.f32 %v1193_v2, %v11235_v34  ;;  %v9501_v2 = vld [vmem:[%s15477_s0 + $0x210] sm:$0xf]  ;;  %9915 = vmatmul.msk.bf16.gmra.mxu3 %vm869_vm0, %v11722_v20 }
 0x22a   :  { %v2126_v39 = vadd.f32 %v11992_v6, %v1797_v35  ;;  %v1530_v1 = vpop.f32.mrf.mxu1  ;;  %v12089_v56 = vor.u32 %v10566_v30, %v9501_v2  ;;  %v10005_v35 = vld [vmem:[%s15479_s3 + $0x60] sm:$0xf] }
 0x22b   :  { %v12075_v44 = vadd.f32 %v1522_v52, %v1194_v5  ;;  %v10006_v42 = vor.u32 %v10660_v9, %v10005_v35 }
 0x22c   :  { %v2433_v16 = vmax.f32 %v2126_v39, 0.0  ;;  %1838 = vmatmul.bf16.gmra.mxu2 %v11707_v63  ;;  %v12099_v5 = vpop.f32.mrf.mxu3 }
 0x22d   :  { %9861 = vmatmul.msk.bf16.gmra.mxu1 %vm869_vm0, %v12070_v53 }
 0x22e   :  { %v2661_v6 = vmax.f32 %v2432_v26, %v2433_v16  ;;  %6258 = vmatpush.bf16.msrb.mxu1 %v10006_v42  ;;  %v2434_v26 = vmax.f32 %v11710_v28, 0.0 }
 0x22f   :  { %v1799_v52 = vpop.f32.mrf.mxu2 }
 0x230   :  { %2789 = vst [vmem:[#allocation2 + $0xd8] sm:$0xff] %v2661_v6  ;;  %v1800_v63 = vadd.f32 %v1799_v52, %v11997_v25  ;;  %v1196_v61 = vpop.f32.mrf.mxu0  ;;  %v10569_v6 = vld [vmem:[%s15477_s0 + $0x234] sm:$0xf]  ;;  %v9519_v52 = vld [vmem:[%s15477_s0 + $0x238] sm:$0xf0] }
 0x231   :  { %v1197_v16 = vadd.f32 %v1196_v61, %v11235_v34  ;;  %v12114_v35 = vor.u32 %v10569_v6, %v9519_v52 }
 0x232   :  { %v2129_v20 = vadd.f32 %v12014_v15, %v1800_v63  ;;  %v1532_v43 = vpop.f32.mrf.mxu1 }
 0x233   :  { %v12102_v39 = vadd.f32 %v1525_v62, %v1197_v16  ;;  %1235 = vmatmul.bf16.gmra.mxu0 %v12089_v56 }
 0x234   :  { %v2435_v2 = vmax.f32 %v2129_v20, 0.0  ;;  %v12116_v28 = vpop.f32.mrf.mxu3  ;;  %v2436_v20 = vmax.f32 %v11724_v8, 0.0 }
 0x236   :  { %v2662_v30 = vmax.f32 %v2434_v26, %v2435_v2  ;;  %v9509_v2 = vld [vmem:[%s15477_s0 + $0x220] sm:$0xf] }
 0x237   :  { %v1801_v61 = vpop.f32.mrf.mxu2 }
 0x238   :  { %2790 = vst [vmem:[#allocation2 + $0xe0] sm:$0xff] %v2662_v30  ;;  %v1802_v15 = vadd.f32 %v1801_v61, %v11997_v25  ;;  %v1198_v62 = vpop.f32.mrf.mxu0  ;;  %v10568_v30 = vld [vmem:[%s15477_s0 + $0x224] sm:$0xf0] }
 0x239   :  { %v1199_v63 = vadd.f32 %v1198_v62, %v11235_v34  ;;  %9916 = vmatmul.msk.bf16.gmra.mxu3 %vm869_vm0, %v11754_v47  ;;  %v12133_v8 = vor.u32 %v10568_v30, %v9509_v2  ;;  %v2438_v47 = vmax.f32 %v11742_v13, 0.0  ;;  %v9527_v2 = vld [vmem:[%s15477_s0 + $0x248] sm:$0xf0] }
 0x23a   :  { %v2131_v9 = vadd.f32 %v12030_v33, %v1802_v15  ;;  %v1535_v16 = vpop.f32.mrf.mxu1 }
 0x23b   :  { %v12119_v42 = vadd.f32 %v1527_v23, %v1199_v63 }
 0x23c   :  { %v2437_v26 = vmax.f32 %v2131_v9, 0.0  ;;  %1843 = vmatmul.bf16.gmra.mxu2 %v11739_v10  ;;  %v12137_v61 = vpop.f32.mrf.mxu3 }
 0x23d   :  { %9862 = vmatmul.msk.bf16.gmra.mxu1 %vm869_vm0, %v12114_v35 }
 0x23e   :  { %v2663_v33 = vmax.f32 %v2436_v20, %v2437_v26  ;;  %v10571_v26 = vld [vmem:[%s15477_s0 + $0x244] sm:$0xf] }
 0x23f   :  { %v1804_v23 = vpop.f32.mrf.mxu2 }
 0x240   :  { %2791 = vst [vmem:[#allocation2 + $0xe8] sm:$0xff] %v2663_v33  ;;  %v1805_v10 = vadd.f32 %v1804_v23, %v11997_v25  ;;  %v1201_v6 = vpop.f32.mrf.mxu0  ;;  %v12152_v23 = vor.u32 %v10571_v26, %v9527_v2 }
 0x241   :  { %v1202_v52 = vadd.f32 %v1201_v6, %v11235_v34 }
 0x242   :  { %v2134_v15 = vadd.f32 %v12050_v46, %v1805_v10  ;;  %v1537_v62 = vpop.f32.mrf.mxu1 }
 0x243   :  { %v12140_v63 = vadd.f32 %v1530_v1, %v1202_v52  ;;  %1240 = vmatmul.bf16.gmra.mxu0 %v12133_v8 }
 0x244   :  { %v2439_v9 = vmax.f32 %v2134_v15, 0.0  ;;  %v12154_v13 = vpop.f32.mrf.mxu3  ;;  %v2440_v15 = vmax.f32 %v11756_v32, 0.0 }
 0x246   :  { %v2664_v20 = vmax.f32 %v2438_v47, %v2439_v9  ;;  %v9517_v9 = vld [vmem:[%s15477_s0 + $0x230] sm:$0xf] }
 0x247   :  { %v1806_v30 = vpop.f32.mrf.mxu2 }
 0x248   :  { %2792 = vst [vmem:[#allocation2 + $0xf0] sm:$0xff] %v2664_v20  ;;  %v1807_v46 = vadd.f32 %v1806_v30, %v11997_v25  ;;  %v1203_v1 = vpop.f32.mrf.mxu0  ;;  %v10570_v20 = vld [vmem:[%s15477_s0 + $0x234] sm:$0xf0] }
 0x249   :  { %v1204_v33 = vadd.f32 %v1203_v1, %v11235_v34  ;;  %9917 = vmatmul.msk.bf16.gmra.mxu3 %vm869_vm0, %v11786_v57  ;;  %v12171_v32 = vor.u32 %v10570_v20, %v9517_v9  ;;  %v2442_v57 = vmax.f32 %v11774_v29, 0.0  ;;  %v9535_v9 = vld [vmem:[%s15477_s0 + $0x258] sm:$0xf0] }
 0x24a   :  { %v2136_v10 = vadd.f32 %v12072_v50, %v1807_v46  ;;  %v1540_v6 = vpop.f32.mrf.mxu1 }
 0x24b   :  { %v12157_v52 = vadd.f32 %v1532_v43, %v1204_v33 }
 0x24c   :  { %v2441_v47 = vmax.f32 %v2136_v10, 0.0  ;;  %1848 = vmatmul.bf16.gmra.mxu2 %v11771_v48  ;;  %v12175_v30 = vpop.f32.mrf.mxu3 }
 0x24d   :  { %9863 = vmatmul.msk.bf16.gmra.mxu1 %vm869_vm0, %v12152_v23 }
 0x24e   :  { %v2665_v50 = vmax.f32 %v2440_v15, %v2441_v47  ;;  %v10573_v47 = vld [vmem:[%s15477_s0 + $0x254] sm:$0xf] }
 0x24f   :  { %v1809_v43 = vpop.f32.mrf.mxu2 }
 0x250   :  { %2793 = vst [vmem:[#allocation2 + $0xf8] sm:$0xff] %v2665_v50  ;;  %v1810_v48 = vadd.f32 %v1809_v43, %v11997_v25  ;;  %v1206_v26 = vpop.f32.mrf.mxu0  ;;  %v12190_v43 = vor.u32 %v10573_v47, %v9535_v9 }
 0x251   :  { %v1207_v2 = vadd.f32 %v1206_v26, %v11235_v34 }
 0x252   :  { %v2139_v46 = vadd.f32 %v12099_v5, %v1810_v48  ;;  %v1542_v1 = vpop.f32.mrf.mxu1 }
 0x253   :  { %v12178_v33 = vadd.f32 %v1535_v16, %v1207_v2  ;;  %1245 = vmatmul.bf16.gmra.mxu0 %v12171_v32 }
 0x254   :  { %v2443_v10 = vmax.f32 %v2139_v46, 0.0  ;;  %v12192_v29 = vpop.f32.mrf.mxu3  ;;  %v2444_v46 = vmax.f32 %v11788_v58, 0.0 }
 0x256   :  { %v2666_v15 = vmax.f32 %v2442_v57, %v2443_v10  ;;  %v9525_v10 = vld [vmem:[%s15477_s0 + $0x240] sm:$0xf] }
 0x257   :  { %v1811_v20 = vpop.f32.mrf.mxu2 }
 0x258   :  { %2794 = vst [vmem:[#allocation2 + $0x100] sm:$0xff] %v2666_v15  ;;  %v1812_v5 = vadd.f32 %v1811_v20, %v11997_v25  ;;  %v1208_v16 = vpop.f32.mrf.mxu0  ;;  %v10572_v15 = vld [vmem:[%s15477_s0 + $0x244] sm:$0xf0] }
 0x259   :  { %v1209_v50 = vadd.f32 %v1208_v16, %v11235_v34  ;;  %9918 = vmatmul.msk.bf16.gmra.mxu3 %vm869_vm0, %v11818_v24  ;;  %v12209_v58 = vor.u32 %v10572_v15, %v9525_v10  ;;  %v2446_v24 = vmax.f32 %v11806_v54, 0.0  ;;  %v9543_v10 = vld [vmem:[%s15477_s0 + $0x268] sm:$0xf0] }
 0x25a   :  { %v2141_v48 = vadd.f32 %v12116_v28, %v1812_v5  ;;  %v1545_v26 = vpop.f32.mrf.mxu1 }
 0x25b   :  { %v12195_v2 = vadd.f32 %v1537_v62, %v1209_v50 }
 0x25c   :  { %v2445_v57 = vmax.f32 %v2141_v48, 0.0  ;;  %1853 = vmatmul.bf16.gmra.mxu2 %v11803_v40  ;;  %v12213_v20 = vpop.f32.mrf.mxu3 }
 0x25d   :  { %9864 = vmatmul.msk.bf16.gmra.mxu1 %vm869_vm0, %v12190_v43 }
 0x25e   :  { %v2667_v28 = vmax.f32 %v2444_v46, %v2445_v57  ;;  %v10575_v57 = vld [vmem:[%s15477_s0 + $0x264] sm:$0xf] }
 0x25f   :  { %v1814_v62 = vpop.f32.mrf.mxu2 }
 0x260   :  { %2795 = vst [vmem:[#allocation2 + $0x108] sm:$0xff] %v2667_v28  ;;  %v1815_v40 = vadd.f32 %v1814_v62, %v11997_v25  ;;  %v1211_v47 = vpop.f32.mrf.mxu0  ;;  %v12228_v62 = vor.u32 %v10575_v57, %v9543_v10 }
 0x261   :  { %v1212_v9 = vadd.f32 %v1211_v47, %v11235_v34 }
 0x262   :  { %v2144_v5 = vadd.f32 %v12137_v61, %v1815_v40  ;;  %v1547_v16 = vpop.f32.mrf.mxu1 }
 0x263   :  { %v12216_v50 = vadd.f32 %v1540_v6, %v1212_v9  ;;  %1250 = vmatmul.bf16.gmra.mxu0 %v12209_v58 }
 0x264   :  { %v2447_v48 = vmax.f32 %v2144_v5, 0.0  ;;  %v12230_v54 = vpop.f32.mrf.mxu3  ;;  %v2448_v5 = vmax.f32 %v11820_v51, 0.0 }
 0x266   :  { %v2668_v46 = vmax.f32 %v2446_v24, %v2447_v48  ;;  %v9533_v48 = vld [vmem:[%s15477_s0 + $0x250] sm:$0xf] }
 0x267   :  { %v1816_v15 = vpop.f32.mrf.mxu2 }
 0x268   :  { %2796 = vst [vmem:[#allocation2 + $0x110] sm:$0xff] %v2668_v46  ;;  %v1817_v61 = vadd.f32 %v1816_v15, %v11997_v25  ;;  %v1213_v6 = vpop.f32.mrf.mxu0  ;;  %v10574_v46 = vld [vmem:[%s15477_s0 + $0x254] sm:$0xf0] }
 0x269   :  { %v1214_v28 = vadd.f32 %v1213_v6, %v11235_v34  ;;  %9919 = vmatmul.msk.bf16.gmra.mxu3 %vm869_vm0, %v11862_v49  ;;  %v12247_v51 = vor.u32 %v10574_v46, %v9533_v48  ;;  %v2450_v49 = vmax.f32 %v11844_v21, 0.0  ;;  %v9551_v48 = vld [vmem:[%s15477_s0 + $0x278] sm:$0xf0] }
 0x26a   :  { %v2146_v40 = vadd.f32 %v12154_v13, %v1817_v61  ;;  %v1550_v47 = vpop.f32.mrf.mxu1 }
 0x26b   :  { %v12233_v9 = vadd.f32 %v1542_v1, %v1214_v28 }
 0x26c   :  { %v2449_v24 = vmax.f32 %v2146_v40, 0.0  ;;  %1858 = vmatmul.bf16.gmra.mxu2 %v11835_v41  ;;  %v12251_v15 = vpop.f32.mrf.mxu3 }
 0x26d   :  { %9865 = vmatmul.msk.bf16.gmra.mxu1 %vm869_vm0, %v12228_v62 }
 0x26e   :  { %v2669_v13 = vmax.f32 %v2448_v5, %v2449_v24  ;;  %v10577_v24 = vld [vmem:[%s15477_s0 + $0x274] sm:$0xf] }
 0x26f   :  { %v1819_v1 = vpop.f32.mrf.mxu2 }
 0x270   :  { %2797 = vst [vmem:[#allocation2 + $0x118] sm:$0xff] %v2669_v13  ;;  %v1820_v41 = vadd.f32 %v1819_v1, %v11997_v25  ;;  %v1216_v57 = vpop.f32.mrf.mxu0  ;;  %v12266_v1 = vor.u32 %v10577_v24, %v9551_v48 }
 0x271   :  { %v1217_v10 = vadd.f32 %v1216_v57, %v11235_v34 }
 0x272   :  { %v2149_v61 = vadd.f32 %v12175_v30, %v1820_v41  ;;  %v1552_v6 = vpop.f32.mrf.mxu1 }
 0x273   :  { %v12254_v28 = vadd.f32 %v1545_v26, %v1217_v10  ;;  %1255 = vmatmul.bf16.gmra.mxu0 %v12247_v51 }
 0x274   :  { %v2451_v40 = vmax.f32 %v2149_v61, 0.0  ;;  %v12268_v21 = vpop.f32.mrf.mxu3  ;;  %v2452_v61 = vmax.f32 %v11864_v17, 0.0 }
 0x276   :  { %v2670_v5 = vmax.f32 %v2450_v49, %v2451_v40  ;;  %v9541_v40 = vld [vmem:[%s15477_s0 + $0x260] sm:$0xf] }
 0x277   :  { %v1821_v46 = vpop.f32.mrf.mxu2 }
 0x278   :  { %2798 = vst [vmem:[#allocation2 + $0x120] sm:$0xff] %v2670_v5  ;;  %v1822_v30 = vadd.f32 %v1821_v46, %v11997_v25  ;;  %v1218_v26 = vpop.f32.mrf.mxu0  ;;  %v10576_v5 = vld [vmem:[%s15477_s0 + $0x264] sm:$0xf0] }
 0x279   :  { %v1219_v13 = vadd.f32 %v1218_v26, %v11235_v34  ;;  %9920 = vmatmul.msk.bf16.gmra.mxu3 %vm869_vm0, %v11894_v0  ;;  %v12285_v17 = vor.u32 %v10576_v5, %v9541_v40  ;;  %v2454_v0 = vmax.f32 %v11882_v60, 0.0  ;;  %v9559_v40 = vld [vmem:[%s15477_s0 + $0x288] sm:$0xf0] }
 0x27a   :  { %v2151_v41 = vadd.f32 %v12192_v29, %v1822_v30  ;;  %v1555_v57 = vpop.f32.mrf.mxu1 }
 0x27b   :  { %v12271_v10 = vadd.f32 %v1547_v16, %v1219_v13 }
 0x27c   :  { %v2453_v49 = vmax.f32 %v2151_v41, 0.0  ;;  %1863 = vmatmul.bf16.gmra.mxu2 %v11879_v59  ;;  %v12289_v46 = vpop.f32.mrf.mxu3 }
 0x27d   :  { %9866 = vmatmul.msk.bf16.gmra.mxu1 %vm869_vm0, %v12266_v1 }
 0x27e   :  { %v2671_v29 = vmax.f32 %v2452_v61, %v2453_v49  ;;  %v10579_v49 = vld [vmem:[%s15477_s0 + $0x284] sm:$0xf] }
 0x27f   :  { %v1824_v16 = vpop.f32.mrf.mxu2 }
 0x280   :  { %2799 = vst [vmem:[#allocation2 + $0x128] sm:$0xff] %v2671_v29  ;;  %v1825_v59 = vadd.f32 %v1824_v16, %v11997_v25  ;;  %v1221_v24 = vpop.f32.mrf.mxu0  ;;  %v12304_v16 = vor.u32 %v10579_v49, %v9559_v40  ;;  %v10061_v40 = vld [vmem:[%s15479_s3 + $0xd0] sm:$0xf] }
 0x281   :  { %v1222_v48 = vadd.f32 %v1221_v24, %v11235_v34 }
 0x282   :  { %v2154_v30 = vadd.f32 %v12213_v20, %v1825_v59  ;;  %v1557_v26 = vpop.f32.mrf.mxu1 }
 0x283   :  { %v12292_v13 = vadd.f32 %v1550_v47, %v1222_v48  ;;  %1260 = vmatmul.bf16.gmra.mxu0 %v12285_v17 }
 0x284   :  { %v2455_v41 = vmax.f32 %v2154_v30, 0.0  ;;  %v12306_v60 = vpop.f32.mrf.mxu3  ;;  %v2456_v30 = vmax.f32 %v11896_v19, 0.0 }
 0x286   :  { %v2672_v61 = vmax.f32 %v2454_v0, %v2455_v41  ;;  %v9549_v41 = vld [vmem:[%s15477_s0 + $0x270] sm:$0xf] }
 0x287   :  { %v1826_v5 = vpop.f32.mrf.mxu2 }
 0x288   :  { %2800 = vst [vmem:[#allocation2 + $0x130] sm:$0xff] %v2672_v61  ;;  %v1827_v20 = vadd.f32 %v1826_v5, %v11997_v25  ;;  %v1223_v47 = vpop.f32.mrf.mxu0  ;;  %v10578_v61 = vld [vmem:[%s15477_s0 + $0x274] sm:$0xf0] }
 0x289   :  { %v1224_v29 = vadd.f32 %v1223_v47, %v11235_v34  ;;  %9921 = vmatmul.msk.bf16.gmra.mxu3 %vm869_vm0, %v11926_v36  ;;  %v12323_v19 = vor.u32 %v10578_v61, %v9549_v41  ;;  %v10674_v5 = vld [vmem:[%s15479_s3 + $0xd4] sm:$0xf0] }
 0x28a   :  { %v2156_v59 = vadd.f32 %v12230_v54, %v1827_v20  ;;  %v1560_v24 = vpop.f32.mrf.mxu1  ;;  %v10062_v47 = vor.u32 %v10674_v5, %v10061_v40 }
 0x28b   :  { %v12309_v48 = vadd.f32 %v1552_v6, %v1224_v29 }
 0x28c   :  { %v2457_v0 = vmax.f32 %v2156_v59, 0.0  ;;  %1868 = vmatmul.bf16.gmra.mxu2 %v11911_v27  ;;  %v12333_v29 = vpop.f32.mrf.mxu3  ;;  %6428 = vmatpush.bf16.msrb.mxu3 %v10062_v47 }
 0x28d   :  { %9867 = vmatmul.msk.bf16.gmra.mxu1 %vm869_vm0, %v12304_v16 }
 0x28e   :  { %v2673_v54 = vmax.f32 %v2456_v30, %v2457_v0  ;;  %v2458_v0 = vmax.f32 %v11914_v14, 0.0  ;;  %v10658_v14 = vld [vmem:[%s15479_s3 + $0x54] sm:$0xf0] }
 0x28f   :  { %v1829_v6 = vpop.f32.mrf.mxu2 }
 0x290   :  { %2801 = vst [vmem:[#allocation2 + $0x138] sm:$0xff] %v2673_v54  ;;  %v1830_v27 = vadd.f32 %v1829_v6, %v11997_v25  ;;  %v1226_v49 = vpop.f32.mrf.mxu0  ;;  %v10581_v54 = vld [vmem:[%s15477_s0 + $0x294] sm:$0xf]  ;;  %v9567_v6 = vld [vmem:[%s15477_s0 + $0x298] sm:$0xf0] }
 0x291   :  { %v1227_v20 = vadd.f32 %v1226_v49, %v11235_v34 }
 0x292   :  { %v2159_v36 = vadd.f32 %v12251_v15, %v1830_v27  ;;  %v1562_v59 = vpop.f32.mrf.mxu1  ;;  %v9997_v27 = vld [vmem:[%s15479_s3 + $0x50] sm:$0xf] }
 0x293   :  { %v12336_v30 = vadd.f32 %v1555_v57, %v1227_v20  ;;  %1265 = vmatmul.bf16.gmra.mxu0 %v12323_v19  ;;  %v9998_v5 = vor.u32 %v10658_v14, %v9997_v27  ;;  %v12354_v20 = vor.u32 %v10581_v54, %v9567_v6  ;;  %v10580_v54 = vld [vmem:[%s15477_s0 + $0x284] sm:$0xf0] }
 0x294   :  { %v2459_v41 = vmax.f32 %v2159_v36, 0.0  ;;  %v12356_v47 = vpop.f32.mrf.mxu3 }
 0x295   :  { %6259 = vmatpush.bf16.msrb.mxu1 %v9998_v5 }
 0x296   :  { %v2674_v61 = vmax.f32 %v2458_v0, %v2459_v41 }
 0x297   :  { %v1831_v49 = vpop.f32.mrf.mxu2 }
 0x298   :  { %2802 = vst [vmem:[#allocation2 + $0x140] sm:$0xff] %v2674_v61  ;;  %v1832_v15 = vadd.f32 %v1831_v49, %v11997_v25  ;;  %v1228_v57 = vpop.f32.mrf.mxu0  ;;  %v2460_v61 = vmax.f32 %v11928_v18, 0.0 }
 0x299   :  { %v1229_v40 = vadd.f32 %v1228_v57, %v11235_v34  ;;  %v9557_v57 = vld [vmem:[%s15477_s0 + $0x280] sm:$0xf]  ;;  %9922 = vmatmul.msk.bf16.gmra.mxu3 %vm869_vm0, %v11958_v11  ;;  %v2462_v11 = vmax.f32 %v11946_v7, 0.0 }
 0x29a   :  { %v2161_v36 = vadd.f32 %v12268_v21, %v1832_v15  ;;  %v1565_v0 = vpop.f32.mrf.mxu1  ;;  %v12373_v18 = vor.u32 %v10580_v54, %v9557_v57  ;;  %v9575_v57 = vld [vmem:[%s15477_s0 + $0x2a8] sm:$0xf0] }
 0x29b   :  { %v12359_v41 = vadd.f32 %v1557_v26, %v1229_v40 }
 0x29c   :  { %v2461_v49 = vmax.f32 %v2161_v36, 0.0  ;;  %1873 = vmatmul.bf16.gmra.mxu2 %v11943_v3  ;;  %v12377_v27 = vpop.f32.mrf.mxu3 }
 0x29d   :  { %9868 = vmatmul.msk.bf16.gmra.mxu1 %vm869_vm0, %v12354_v20 }
 0x29e   :  { %v2675_v21 = vmax.f32 %v2460_v61, %v2461_v49  ;;  %v10583_v49 = vld [vmem:[%s15477_s0 + $0x2a4] sm:$0xf] }
 0x29f   :  { %v1834_v26 = vpop.f32.mrf.mxu2 }
 0x2a0   :  { %2803 = vst [vmem:[#allocation2 + $0x148] sm:$0xff] %v2675_v21  ;;  %v1835_v3 = vadd.f32 %v1834_v26, %v11997_v25  ;;  %v1231_v6 = vpop.f32.mrf.mxu0  ;;  %v12392_v26 = vor.u32 %v10583_v49, %v9575_v57 }
 0x2a1   :  { %v1232_v15 = vadd.f32 %v1231_v6, %v11235_v34 }
 0x2a2   :  { %v2164_v14 = vadd.f32 %v12289_v46, %v1835_v3  ;;  %v1567_v40 = vpop.f32.mrf.mxu1 }
 0x2a3   :  { %v12380_v5 = vadd.f32 %v1560_v24, %v1232_v15  ;;  %1270 = vmatmul.bf16.gmra.mxu0 %v12373_v18 }
 0x2a4   :  { %v2463_v36 = vmax.f32 %v2164_v14, 0.0  ;;  %v12394_v7 = vpop.f32.mrf.mxu3  ;;  %v2464_v14 = vmax.f32 %v11960_v38, 0.0 }
 0x2a6   :  { %v2676_v61 = vmax.f32 %v2462_v11, %v2463_v36  ;;  %v9565_v36 = vld [vmem:[%s15477_s0 + $0x290] sm:$0xf] }
 0x2a7   :  { %v1836_v54 = vpop.f32.mrf.mxu2 }
 0x2a8   :  { %2804 = vst [vmem:[#allocation2 + $0x150] sm:$0xff] %v2676_v61  ;;  %v1837_v46 = vadd.f32 %v1836_v54, %v11997_v25  ;;  %v1233_v24 = vpop.f32.mrf.mxu0  ;;  %v10582_v61 = vld [vmem:[%s15477_s0 + $0x294] sm:$0xf0] }
 0x2a9   :  { %v1234_v21 = vadd.f32 %v1233_v24, %v11235_v34  ;;  %9923 = vmatmul.msk.bf16.gmra.mxu3 %vm869_vm0, %v11990_v4  ;;  %v12411_v38 = vor.u32 %v10582_v61, %v9565_v36  ;;  %v9583_v36 = vld [vmem:[%s15477_s0 + $0x2b8] sm:$0xf0] }
 0x2aa   :  { %v2166_v3 = vadd.f32 %v12306_v60, %v1837_v46  ;;  %v1570_v6 = vpop.f32.mrf.mxu1 }
 0x2ab   :  { %v12397_v15 = vadd.f32 %v1562_v59, %v1234_v21  ;;  %v2466_v21 = vmax.f32 %v11978_v37, 0.0 }
 0x2ac   :  { %v2465_v11 = vmax.f32 %v2166_v3, 0.0  ;;  %1878 = vmatmul.bf16.gmra.mxu2 %v11975_v12  ;;  %v12415_v54 = vpop.f32.mrf.mxu3 }
 0x2ad   :  { %9869 = vmatmul.msk.bf16.gmra.mxu1 %vm869_vm0, %v12392_v26 }
 0x2ae   :  { %v2677_v60 = vmax.f32 %v2464_v14, %v2465_v11  ;;  %v10585_v11 = vld [vmem:[%s15477_s0 + $0x2b4] sm:$0xf] }
 0x2af   :  { %v1839_v59 = vpop.f32.mrf.mxu2 }
 0x2b0   :  { %2805 = vst [vmem:[#allocation2 + $0x158] sm:$0xff] %v2677_v60  ;;  %v1840_v12 = vadd.f32 %v1839_v59, %v11997_v25  ;;  %v1236_v49 = vpop.f32.mrf.mxu0  ;;  %v12430_v59 = vor.u32 %v10585_v11, %v9583_v36 }
 0x2b1   :  { %v1237_v57 = vadd.f32 %v1236_v49, %v11235_v34 }
 0x2b2   :  { %v2169_v46 = vadd.f32 %v12333_v29, %v1840_v12  ;;  %v1572_v3 = vpop.f32.mrf.mxu1 }
 0x2b3   :  { %v12418_v24 = vadd.f32 %v1565_v0, %v1237_v57  ;;  %1275 = vmatmul.bf16.gmra.mxu0 %v12411_v38  ;;  %v15731_v57 = vld [vmem:[#allocation100_spill] sm:$0xff] }
 0x2b4   :  { %v2467_v4 = vmax.f32 %v2169_v46, 0.0  ;;  %v12432_v37 = vpop.f32.mrf.mxu3  ;;  %v2468_v46 = vmax.f32 %v15731_v57, 0.0  ;;  %v15732_v57 = vld [vmem:[#allocation101_spill] sm:$0xff] }
 0x2b6   :  { %v2678_v14 = vmax.f32 %v2466_v21, %v2467_v4  ;;  %v9573_v4 = vld [vmem:[%s15477_s0 + $0x2a0] sm:$0xf] }
 0x2b7   :  { %v1841_v61 = vpop.f32.mrf.mxu2 }
 0x2b8   :  { %2806 = vst [vmem:[#allocation2 + $0x160] sm:$0xff] %v2678_v14  ;;  %v1842_v29 = vadd.f32 %v1841_v61, %v11997_v25  ;;  %v1238_v0 = vpop.f32.mrf.mxu0  ;;  %v10584_v14 = vld [vmem:[%s15477_s0 + $0x2a4] sm:$0xf0] }
 0x2b9   :  { %v1239_v60 = vadd.f32 %v1238_v0, %v11235_v34  ;;  %9924 = vmatmul.msk.bf16.gmra.mxu3 %vm869_vm0, %v12028_v45  ;;  %v12449_v36 = vor.u32 %v10584_v14, %v9573_v4  ;;  %v10587_v4 = vld [vmem:[%s15477_s0 + $0x2c4] sm:$0xf]  ;;  %v9591_v14 = vld [vmem:[%s15477_s0 + $0x2c8] sm:$0xf0] }
 0x2ba   :  { %v2171_v12 = vadd.f32 %v12356_v47, %v1842_v29  ;;  %v1575_v47 = vpop.f32.mrf.mxu1 }
 0x2bb   :  { %v12435_v49 = vadd.f32 %v1567_v40, %v1239_v60 }
 0x2bc   :  { %v2469_v21 = vmax.f32 %v2171_v12, 0.0  ;;  %1883 = vmatmul.bf16.gmra.mxu2 %v12010_v55  ;;  %v12453_v0 = vpop.f32.mrf.mxu3 }
 0x2bd   :  { %9870 = vmatmul.msk.bf16.gmra.mxu1 %vm869_vm0, %v12430_v59 }
 0x2be   :  { %v2679_v11 = vmax.f32 %v2468_v46, %v2469_v21  ;;  %v2470_v46 = vmax.f32 %v15732_v57, 0.0 }
 0x2bf   :  { %v1844_v40 = vpop.f32.mrf.mxu2 }
 0x2c0   :  { %2807 = vst [vmem:[#allocation2 + $0x168] sm:$0xff] %v2679_v11  ;;  %v1845_v55 = vadd.f32 %v1844_v40, %v11997_v25  ;;  %v1241_v61 = vpop.f32.mrf.mxu0 }
 0x2c1   :  { %v1242_v29 = vadd.f32 %v1241_v61, %v11235_v34  ;;  %v12468_v61 = vor.u32 %v10587_v4, %v9591_v14  ;;  %v10586_v4 = vld [vmem:[%s15477_s0 + $0x2b4] sm:$0xf0] }
 0x2c2   :  { %v2174_v60 = vadd.f32 %v12377_v27, %v1845_v55  ;;  %v1577_v40 = vpop.f32.mrf.mxu1 }
 0x2c3   :  { %v12456_v12 = vadd.f32 %v1570_v6, %v1242_v29  ;;  %1280 = vmatmul.bf16.gmra.mxu0 %v12449_v36 }
 0x2c4   :  { %v2471_v45 = vmax.f32 %v2174_v60, 0.0  ;;  %v12470_v29 = vpop.f32.mrf.mxu3 }
 0x2c6   :  { %v2680_v21 = vmax.f32 %v2470_v46, %v2471_v45  ;;  %v2472_v46 = vmax.f32 %v12032_v31, 0.0 }
 0x2c7   :  { %v1846_v11 = vpop.f32.mrf.mxu2 }
 0x2c8   :  { %2808 = vst [vmem:[#allocation2 + $0x170] sm:$0xff] %v2680_v21  ;;  %v1847_v27 = vadd.f32 %v1846_v11, %v11997_v25  ;;  %v1243_v6 = vpop.f32.mrf.mxu0  ;;  %v9581_v21 = vld [vmem:[%s15477_s0 + $0x2b0] sm:$0xf] }
 0x2c9   :  { %v1244_v55 = vadd.f32 %v1243_v6, %v11235_v34  ;;  %9925 = vmatmul.msk.bf16.gmra.mxu3 %vm869_vm0, %v12070_v53  ;;  %v12487_v31 = vor.u32 %v10586_v4, %v9581_v21  ;;  %v10589_v4 = vld [vmem:[%s15477_s0 + $0x2d4] sm:$0xf] }
 0x2ca   :  { %v2176_v60 = vadd.f32 %v12394_v7, %v1847_v27 }
 0x2cb   :  { %v12473_v57 = vadd.f32 %v1572_v3, %v1244_v55  ;;  %v1580_v55 = vpop.f32.mrf.mxu1 }
 0x2cc   :  { %v2473_v45 = vmax.f32 %v2176_v60, 0.0  ;;  %1888 = vmatmul.bf16.gmra.mxu2 %v12046_v22  ;;  %v12491_v27 = vpop.f32.mrf.mxu3 }
 0x2cd   :  { %9871 = vmatmul.msk.bf16.gmra.mxu1 %vm869_vm0, %v12468_v61 }
 0x2ce   :  { %v2681_v14 = vmax.f32 %v2472_v46, %v2473_v45  ;;  %v15733_v46 = vld [vmem:[#allocation102_spill] sm:$0xff] }
 0x2cf   :  { %v1849_v7 = vpop.f32.mrf.mxu2  ;;  %v2474_v53 = vmax.f32 %v15733_v46, 0.0 }
 0x2d0   :  { %2809 = vst [vmem:[#allocation2 + $0x178] sm:$0xff] %v2681_v14  ;;  %v1850_v22 = vadd.f32 %v1849_v7, %v11997_v25  ;;  %v1246_v3 = vpop.f32.mrf.mxu0  ;;  %v9599_v14 = vld [vmem:[%s15477_s0 + $0x2d8] sm:$0xf0] }
 0x2d1   :  { %v1247_v11 = vadd.f32 %v1246_v3, %v11235_v34  ;;  %v12506_v3 = vor.u32 %v10589_v4, %v9599_v14  ;;  %v10588_v4 = vld [vmem:[%s15477_s0 + $0x2c4] sm:$0xf0] }
 0x2d2   :  { %v2179_v6 = vadd.f32 %v12415_v54, %v1850_v22 }
 0x2d3   :  { %v12494_v60 = vadd.f32 %v1575_v47, %v1247_v11  ;;  %1285 = vmatmul.bf16.gmra.mxu0 %v12487_v31  ;;  %v1582_v14 = vpop.f32.mrf.mxu1 }
 0x2d4   :  { %v2475_v45 = vmax.f32 %v2179_v6, 0.0  ;;  %v12508_v11 = vpop.f32.mrf.mxu3 }
 0x2d6   :  { %v2682_v21 = vmax.f32 %v2474_v53, %v2475_v45  ;;  %v2476_v53 = vmax.f32 %v12075_v44, 0.0 }
 0x2d7   :  { %v1851_v7 = vpop.f32.mrf.mxu2 }
 0x2d8   :  { %2810 = vst [vmem:[#allocation2 + $0x180] sm:$0xff] %v2682_v21  ;;  %v1852_v54 = vadd.f32 %v1851_v7, %v11997_v25  ;;  %v1248_v47 = vpop.f32.mrf.mxu0  ;;  %v9589_v21 = vld [vmem:[%s15477_s0 + $0x2c0] sm:$0xf] }
 0x2d9   :  { %v1249_v22 = vadd.f32 %v1248_v47, %v11235_v34  ;;  %9926 = vmatmul.msk.bf16.gmra.mxu3 %vm869_vm0, %v12114_v35 }
 0x2da   :  { %v2181_v6 = vadd.f32 %v12432_v37, %v1852_v54 }
 0x2db   :  { %v12511_v46 = vadd.f32 %v1577_v40, %v1249_v22  ;;  %v12525_v40 = vor.u32 %v10588_v4, %v9589_v21  ;;  %v1585_v21 = vpop.f32.mrf.mxu1  ;;  %v10591_v4 = vld [vmem:[%s15477_s0 + $0x2e4] sm:$0xf] }
 0x2dc   :  { %v2477_v45 = vmax.f32 %v2181_v6, 0.0  ;;  %1893 = vmatmul.bf16.gmra.mxu2 %v12089_v56  ;;  %v12529_v47 = vpop.f32.mrf.mxu3 }
 0x2dd   :  { %9872 = vmatmul.msk.bf16.gmra.mxu1 %vm869_vm0, %v12506_v3 }
 0x2de   :  { %v2683_v37 = vmax.f32 %v2476_v53, %v2477_v45  ;;  %v2478_v53 = vmax.f32 %v12102_v39, 0.0 }
 0x2df   :  { %v1854_v44 = vpop.f32.mrf.mxu2 }
 0x2e0   :  { %2811 = vst [vmem:[#allocation2 + $0x188] sm:$0xff] %v2683_v37  ;;  %v1855_v56 = vadd.f32 %v1854_v44, %v11997_v25  ;;  %v1251_v7 = vpop.f32.mrf.mxu0  ;;  %v9607_v37 = vld [vmem:[%s15477_s0 + $0x2e8] sm:$0xf0] }
 0x2e1   :  { %v1252_v54 = vadd.f32 %v1251_v7, %v11235_v34  ;;  %v12544_v7 = vor.u32 %v10591_v4, %v9607_v37  ;;  %v10590_v4 = vld [vmem:[%s15477_s0 + $0x2d4] sm:$0xf0] }
 0x2e2   :  { %v2184_v22 = vadd.f32 %v12453_v0, %v1855_v56 }
 0x2e3   :  { %v12532_v6 = vadd.f32 %v1580_v55, %v1252_v54  ;;  %1290 = vmatmul.bf16.gmra.mxu0 %v12525_v40 }
 0x2e4   :  { %v2479_v35 = vmax.f32 %v2184_v22, 0.0  ;;  %v12546_v39 = vpop.f32.mrf.mxu3 }
 0x2e6   :  { %v2684_v45 = vmax.f32 %v2478_v53, %v2479_v35  ;;  %v2480_v53 = vmax.f32 %v12119_v42, 0.0 }
 0x2e7   :  { %v1856_v44 = vpop.f32.mrf.mxu2 }
 0x2e8   :  { %2812 = vst [vmem:[#allocation2 + $0x190] sm:$0xff] %v2684_v45  ;;  %v1857_v0 = vadd.f32 %v1856_v44, %v11997_v25  ;;  %v1253_v55 = vpop.f32.mrf.mxu0  ;;  %v9597_v45 = vld [vmem:[%s15477_s0 + $0x2d0] sm:$0xf]  ;;  %v1587_v44 = vpop.f32.mrf.mxu1 }
 0x2e9   :  { %v1254_v56 = vadd.f32 %v1253_v55, %v11235_v34  ;;  %9927 = vmatmul.msk.bf16.gmra.mxu3 %vm869_vm0, %v12152_v23  ;;  %v12563_v42 = vor.u32 %v10590_v4, %v9597_v45  ;;  %v2482_v23 = vmax.f32 %v12140_v63, 0.0  ;;  %v10593_v45 = vld [vmem:[%s15477_s0 + $0x2f4] sm:$0xf]  ;;  %v9615_v4 = vld [vmem:[%s15477_s0 + $0x2f8] sm:$0xf0] }
 0x2ea   :  { %v2186_v54 = vadd.f32 %v12470_v29, %v1857_v0  ;;  %v10672_v63 = vld [vmem:[%s15479_s3 + $0xc4] sm:$0xf0] }
 0x2eb   :  { %v12549_v22 = vadd.f32 %v1582_v14, %v1254_v56 }
 0x2ec   :  { %v2481_v35 = vmax.f32 %v2186_v54, 0.0  ;;  %1898 = vmatmul.bf16.gmra.mxu2 %v12133_v8  ;;  %v12567_v55 = vpop.f32.mrf.mxu3 }
 0x2ed   :  { %9873 = vmatmul.msk.bf16.gmra.mxu1 %vm869_vm0, %v12544_v7 }
 0x2ee   :  { %v2685_v37 = vmax.f32 %v2480_v53, %v2481_v35 }
 0x2ef   :  { %v1859_v29 = vpop.f32.mrf.mxu2 }
 0x2f0   :  { %2813 = vst [vmem:[#allocation2 + $0x198] sm:$0xff] %v2685_v37  ;;  %v1860_v8 = vadd.f32 %v1859_v29, %v11997_v25  ;;  %v1256_v14 = vpop.f32.mrf.mxu0  ;;  %v10053_v29 = vld [vmem:[%s15479_s3 + $0xc0] sm:$0xf] }
 0x2f1   :  { %v1257_v0 = vadd.f32 %v1256_v14, %v11235_v34  ;;  %v12588_v14 = vor.u32 %v10593_v45, %v9615_v4  ;;  %v10592_v45 = vld [vmem:[%s15477_s0 + $0x2e4] sm:$0xf0] }
 0x2f2   :  { %v2189_v56 = vadd.f32 %v12491_v27, %v1860_v8 }
 0x2f3   :  { %v12570_v54 = vadd.f32 %v1585_v21, %v1257_v0  ;;  %1295 = vmatmul.bf16.gmra.mxu0 %v12563_v42  ;;  %v10054_v0 = vor.u32 %v10672_v63, %v10053_v29  ;;  %v10656_v29 = vld [vmem:[%s15479_s3 + $0x44] sm:$0xf0] }
 0x2f4   :  { %v2483_v53 = vmax.f32 %v2189_v56, 0.0  ;;  %v12590_v56 = vpop.f32.mrf.mxu3 }
 0x2f5   :  { %15734 = vst [vmem:[#allocation100_spill] sm:$0xff] %v12570_v54  ;;  %6429 = vmatpush.bf16.msrb.mxu3 %v10054_v0 }
 0x2f6   :  { %v2686_v35 = vmax.f32 %v2482_v23, %v2483_v53  ;;  %v1590_v53 = vpop.f32.mrf.mxu1 }
 0x2f7   :  { %v1861_v37 = vpop.f32.mrf.mxu2 }
 0x2f8   :  { %2814 = vst [vmem:[#allocation2 + $0x1a0] sm:$0xff] %v2686_v35  ;;  %v1862_v27 = vadd.f32 %v1861_v37, %v11997_v25  ;;  %v1258_v21 = vpop.f32.mrf.mxu0  ;;  %v2484_v37 = vmax.f32 %v12157_v52, 0.0 }
 0x2f9   :  { %v1259_v8 = vadd.f32 %v1258_v21, %v11235_v34  ;;  %v9605_v21 = vld [vmem:[%s15477_s0 + $0x2e0] sm:$0xf]  ;;  %9928 = vmatmul.msk.bf16.gmra.mxu3 %vm869_vm0, %v12190_v43  ;;  %v10205_v43 = vld [vmem:[%s15479_s3 + $0x1f0] sm:$0xf] }
 0x2fa   :  { %v2191_v23 = vadd.f32 %v12508_v11, %v1862_v27  ;;  %v12607_v52 = vor.u32 %v10592_v45, %v9605_v21  ;;  %v9989_v27 = vld [vmem:[%s15479_s3 + $0x40] sm:$0xf]  ;;  %v2486_v45 = vmax.f32 %v12178_v33, 0.0 }
 0x2fb   :  { %v12593_v35 = vadd.f32 %v1587_v44, %v1259_v8  ;;  %v9990_v63 = vor.u32 %v10656_v29, %v9989_v27  ;;  %v10710_v8 = vld [vmem:[%s15479_s3 + $0x1f4] sm:$0xf0]  ;;  %v10595_v27 = vld [vmem:[%s15477_s0 + $0x304] sm:$0xf] }
 0x2fc   :  { %v2485_v54 = vmax.f32 %v2191_v23, 0.0  ;;  %1903 = vmatmul.bf16.gmra.mxu2 %v12171_v32  ;;  %v12623_v0 = vpop.f32.mrf.mxu3 }
 0x2fd   :  { %9874 = vmatmul.msk.bf16.gmra.mxu1 %vm869_vm0, %v12588_v14 }
 0x2fe   :  { %v2687_v11 = vmax.f32 %v2484_v37, %v2485_v54  ;;  %v10206_v37 = vor.u32 %v10710_v8, %v10205_v43  ;;  %6260 = vmatpush.bf16.msrb.mxu1 %v9990_v63 }
 0x2ff   :  { %v1864_v44 = vpop.f32.mrf.mxu2 }
 0x300   :  { %2815 = vst [vmem:[#allocation2 + $0x1a8] sm:$0xff] %v2687_v11  ;;  %v1865_v32 = vadd.f32 %v1864_v44, %v11997_v25  ;;  %v1261_v4 = vpop.f32.mrf.mxu0  ;;  %v1592_v44 = vpop.f32.mrf.mxu1  ;;  %6764 = vmatpush.bf16.msra.mxu2 %v10206_v37 }
 0x301   :  { %v1262_v54 = vadd.f32 %v1261_v4, %v11235_v34 }
 0x302   :  { %v2194_v23 = vadd.f32 %v12529_v47, %v1865_v32  ;;  %v9623_v47 = vld [vmem:[%s15477_s0 + $0x308] sm:$0xf0] }
 0x303   :  { %v12626_v21 = vadd.f32 %v1590_v53, %v1262_v54  ;;  %1300 = vmatmul.bf16.gmra.mxu0 %v12607_v52  ;;  %v12638_v33 = vor.u32 %v10595_v27, %v9623_v47 }
 0x304   :  { %v2487_v11 = vmax.f32 %v2194_v23, 0.0  ;;  %v12640_v63 = vpop.f32.mrf.mxu3  ;;  %v2488_v23 = vmax.f32 %v12195_v2, 0.0 }
 0x306   :  { %v2688_v4 = vmax.f32 %v2486_v45, %v2487_v11  ;;  %v9613_v45 = vld [vmem:[%s15477_s0 + $0x2f0] sm:$0xf]  ;;  %v10594_v11 = vld [vmem:[%s15477_s0 + $0x2f4] sm:$0xf0] }
 0x307   :  { %v1866_v32 = vpop.f32.mrf.mxu2 }
 0x308   :  { %2816 = vst [vmem:[#allocation2 + $0x1b0] sm:$0xff] %v2688_v4  ;;  %v1867_v53 = vadd.f32 %v1866_v32, %v11997_v25  ;;  %v1263_v29 = vpop.f32.mrf.mxu0 }
 0x309   :  { %v1264_v54 = vadd.f32 %v1263_v29, %v11235_v34  ;;  %9929 = vmatmul.msk.bf16.gmra.mxu3 %vm869_vm0, %v12228_v62 }
 0x30a   :  { %v2196_v43 = vadd.f32 %v12546_v39, %v1867_v53  ;;  %v1595_v39 = vpop.f32.mrf.mxu1 }
 0x30b   :  { %v12643_v8 = vadd.f32 %v1592_v44, %v1264_v54  ;;  %v12657_v44 = vor.u32 %v10594_v11, %v9613_v45  ;;  %v2490_v54 = vmax.f32 %v12216_v50, 0.0 }
 0x30c   :  { %v2489_v37 = vmax.f32 %v2196_v43, 0.0  ;;  %1908 = vmatmul.bf16.gmra.mxu2 %v12209_v58  ;;  %v2208_v32 = vpop.f32.mrf.mxu3 }
 0x30d   :  { %9875 = vmatmul.msk.bf16.gmra.mxu1 %vm869_vm0, %v12638_v33 }
 0x30e   :  { %v2689_v4 = vmax.f32 %v2488_v23, %v2489_v37  ;;  %v10597_v23 = vld [vmem:[%s15477_s0 + $0x314] sm:$0xf]  ;;  %v9631_v37 = vld [vmem:[%s15477_s0 + $0x318] sm:$0xf0] }
 0x30f   :  { %v1869_v2 = vpop.f32.mrf.mxu2 }
 0x310   :  { %2817 = vst [vmem:[#allocation2 + $0x1b8] sm:$0xff] %v2689_v4  ;;  %v1870_v58 = vadd.f32 %v1869_v2, %v11997_v25  ;;  %v1266_v27 = vpop.f32.mrf.mxu0  ;;  %v12674_v2 = vor.u32 %v10597_v23, %v9631_v37 }
 0x311   :  { %v1267_v47 = vadd.f32 %v1266_v27, %v11235_v34 }
 0x312   :  { %v2199_v53 = vadd.f32 %v12567_v55, %v1870_v58  ;;  %v1597_v4 = vpop.f32.mrf.mxu1 }
 0x313   :  { %v12662_v29 = vadd.f32 %v1595_v39, %v1267_v47  ;;  %1305 = vmatmul.bf16.gmra.mxu0 %v12657_v44  ;;  %v2492_v47 = vmax.f32 %v12233_v9, 0.0 }
 0x314   :  { %v2491_v43 = vmax.f32 %v2199_v53, 0.0  ;;  %v2210_v50 = vpop.f32.mrf.mxu3 }
 0x316   :  { %v2690_v62 = vmax.f32 %v2490_v54, %v2491_v43  ;;  %v9621_v54 = vld [vmem:[%s15477_s0 + $0x300] sm:$0xf]  ;;  %v10596_v43 = vld [vmem:[%s15477_s0 + $0x304] sm:$0xf0] }
 0x317   :  { %v1871_v45 = vpop.f32.mrf.mxu2  ;;  %v12691_v9 = vor.u32 %v10596_v43, %v9621_v54  ;;  %v2496_v43 = vmax.f32 %v12271_v10, 0.0 }
 0x318   :  { %2818 = vst [vmem:[#allocation2 + $0x1c0] sm:$0xff] %v2690_v62  ;;  %v1872_v55 = vadd.f32 %v1871_v45, %v11997_v25  ;;  %v1268_v11 = vpop.f32.mrf.mxu0 }
 0x319   :  { %v1269_v39 = vadd.f32 %v1268_v11, %v11235_v34  ;;  %9930 = vmatmul.msk.bf16.gmra.mxu3 %vm869_vm0, %v12266_v1  ;;  %v10599_v1 = vld [vmem:[%s15477_s0 + $0x324] sm:$0xf] }
 0x31a   :  { %v2201_v58 = vadd.f32 %v12590_v56, %v1872_v55  ;;  %v2494_v55 = vmax.f32 %v12254_v28, 0.0 }
 0x31b   :  { %v12677_v27 = vadd.f32 %v1597_v4, %v1269_v39  ;;  %v9639_v39 = vld [vmem:[%s15477_s0 + $0x328] sm:$0xf0] }
 0x31c   :  { %v2493_v53 = vmax.f32 %v2201_v58, 0.0  ;;  %1913 = vmatmul.bf16.gmra.mxu2 %v12247_v51  ;;  %v2213_v37 = vpop.f32.mrf.mxu3 }
 0x31d   :  { %9876 = vmatmul.msk.bf16.gmra.mxu1 %vm869_vm0, %v12674_v2 }
 0x31e   :  { %v2691_v62 = vmax.f32 %v2492_v47, %v2493_v53 }
 0x31f   :  { %v1874_v56 = vpop.f32.mrf.mxu2 }
 0x320   :  { %2819 = vst [vmem:[#allocation2 + $0x1c8] sm:$0xff] %v2691_v62  ;;  %v1875_v51 = vadd.f32 %v1874_v56, %v11997_v25  ;;  %v12694_v23 = vpop.f32.mrf.mxu0  ;;  %v9629_v56 = vld [vmem:[%s15477_s0 + $0x310] sm:$0xf] }
 0x322   :  { %v2204_v45 = vadd.f32 %v12623_v0, %v1875_v51  ;;  %v12708_v0 = vor.u32 %v10599_v1, %v9639_v39  ;;  %v10598_v51 = vld [vmem:[%s15477_s0 + $0x314] sm:$0xf0]  ;;  %v2498_v1 = vmax.f32 %v12292_v13, 0.0 }
 0x323   :  { %1310 = vmatmul.bf16.gmra.mxu0 %v12691_v9  ;;  %v12723_v10 = vor.u32 %v10598_v51, %v9629_v56  ;;  %v2500_v51 = vmax.f32 %v12309_v48, 0.0 }
 0x324   :  { %v2495_v11 = vmax.f32 %v2204_v45, 0.0  ;;  %v2215_v54 = vpop.f32.mrf.mxu3 }
 0x326   :  { %v2692_v4 = vmax.f32 %v2494_v55, %v2495_v11 }
 0x327   :  { %v1876_v58 = vpop.f32.mrf.mxu2 }
 0x328   :  { %2820 = vst [vmem:[#allocation2 + $0x1d0] sm:$0xff] %v2692_v4  ;;  %v1877_v47 = vadd.f32 %v1876_v58, %v11997_v25  ;;  %v12706_v53 = vpop.f32.mrf.mxu0 }
 0x329   :  { %9931 = vmatmul.msk.bf16.gmra.mxu3 %vm869_vm0, %v12304_v16  ;;  %v10601_v16 = vld [vmem:[%s15477_s0 + $0x334] sm:$0xf] }
 0x32a   :  { %v2206_v28 = vadd.f32 %v12640_v63, %v1877_v47  ;;  %v9647_v47 = vld [vmem:[%s15477_s0 + $0x338] sm:$0xf0] }
 0x32c   :  { %v2497_v62 = vmax.f32 %v2206_v28, 0.0  ;;  %1918 = vmatmul.bf16.gmra.mxu2 %v12285_v17  ;;  %v2218_v11 = vpop.f32.mrf.mxu3 }
 0x32d   :  { %9877 = vmatmul.msk.bf16.gmra.mxu1 %vm869_vm0, %v12708_v0 }
 0x32e   :  { %v2693_v45 = vmax.f32 %v2496_v43, %v2497_v62 }
 0x32f   :  { %v1879_v63 = vpop.f32.mrf.mxu2 }
 0x330   :  { %2821 = vst [vmem:[#allocation2 + $0x1d8] sm:$0xff] %v2693_v45  ;;  %v1880_v17 = vadd.f32 %v1879_v63, %v11997_v25  ;;  %v12726_v55 = vpop.f32.mrf.mxu0  ;;  %v9637_v63 = vld [vmem:[%s15477_s0 + $0x320] sm:$0xf] }
 0x332   :  { %v2209_v4 = vadd.f32 %v2208_v32, %v1880_v17  ;;  %v12739_v32 = vor.u32 %v10601_v16, %v9647_v47  ;;  %v10600_v17 = vld [vmem:[%s15477_s0 + $0x324] sm:$0xf0]  ;;  %v2502_v16 = vmax.f32 %v12336_v30, 0.0  ;;  %v10602_v30 = vld [vmem:[%s15477_s0 + $0x334] sm:$0xf0] }
 0x333   :  { %1315 = vmatmul.bf16.gmra.mxu0 %v12723_v10  ;;  %v12753_v48 = vor.u32 %v10600_v17, %v9637_v63  ;;  %v2504_v63 = vmax.f32 %v12359_v41, 0.0 }
 0x334   :  { %v2499_v39 = vmax.f32 %v2209_v4, 0.0  ;;  %v2220_v56 = vpop.f32.mrf.mxu3 }
 0x336   :  { %v2694_v58 = vmax.f32 %v2498_v1, %v2499_v39 }
 0x337   :  { %v1881_v28 = vpop.f32.mrf.mxu2 }
 0x338   :  { %2822 = vst [vmem:[#allocation2 + $0x1e0] sm:$0xff] %v2694_v58  ;;  %v1882_v43 = vadd.f32 %v1881_v28, %v11997_v25  ;;  %v12737_v62 = vpop.f32.mrf.mxu0 }
 0x339   :  { %9932 = vmatmul.msk.bf16.gmra.mxu3 %vm869_vm0, %v12354_v20 }
 0x33a   :  { %v2211_v13 = vadd.f32 %v2210_v50, %v1882_v43 }
 0x33c   :  { %v2501_v45 = vmax.f32 %v2211_v13, 0.0  ;;  %1923 = vmatmul.bf16.gmra.mxu2 %v12323_v19  ;;  %v2223_v39 = vpop.f32.mrf.mxu3 }
 0x33d   :  { %9878 = vmatmul.msk.bf16.gmra.mxu1 %vm869_vm0, %v12739_v32 }
 0x33e   :  { %v2695_v4 = vmax.f32 %v2500_v51, %v2501_v45 }
 0x33f   :  { %v1884_v50 = vpop.f32.mrf.mxu2 }
 0x340   :  { %2823 = vst [vmem:[#allocation2 + $0x1e8] sm:$0xff] %v2695_v4  ;;  %v1885_v19 = vadd.f32 %v1884_v50, %v11997_v25  ;;  %v12756_v1 = vpop.f32.mrf.mxu0 }
 0x342   :  { %v2214_v58 = vadd.f32 %v2213_v37, %v1885_v19  ;;  %v9645_v37 = vld [vmem:[%s15477_s0 + $0x330] sm:$0xf] }
 0x343   :  { %1320 = vmatmul.bf16.gmra.mxu0 %v12753_v48  ;;  %v12773_v19 = vor.u32 %v10602_v30, %v9645_v37 }
 0x344   :  { %v2503_v47 = vmax.f32 %v2214_v58, 0.0  ;;  %v2225_v51 = vpop.f32.mrf.mxu3 }
 0x346   :  { %v2696_v28 = vmax.f32 %v2502_v16, %v2503_v47  ;;  %v2506_v16 = vmax.f32 %v12380_v5, 0.0  ;;  %v10604_v5 = vld [vmem:[%s15477_s0 + $0x344] sm:$0xf0] }
 0x347   :  { %v1886_v43 = vpop.f32.mrf.mxu2 }
 0x348   :  { %2824 = vst [vmem:[#allocation2 + $0x1f0] sm:$0xff] %v2696_v28  ;;  %v1887_v20 = vadd.f32 %v1886_v43, %v11997_v25  ;;  %v12761_v13 = vpop.f32.mrf.mxu0 }
 0x349   :  { %9933 = vmatmul.msk.bf16.gmra.mxu3 %vm869_vm0, %v12392_v26 }
 0x34a   :  { %v2216_v45 = vadd.f32 %v2215_v54, %v1887_v20 }
 0x34c   :  { %v2505_v17 = vmax.f32 %v2216_v45, 0.0  ;;  %1928 = vmatmul.bf16.gmra.mxu2 %v12373_v18  ;;  %v2228_v18 = vpop.f32.mrf.mxu3 }
 0x34e   :  { %v2697_v4 = vmax.f32 %v2504_v63, %v2505_v17  ;;  %v2508_v17 = vmax.f32 %v12397_v15, 0.0 }
 0x34f   :  { %v1889_v50 = vpop.f32.mrf.mxu2 }
 0x350   :  { %2825 = vst [vmem:[#allocation2 + $0x1f8] sm:$0xff] %v2697_v4  ;;  %v1890_v41 = vadd.f32 %v1889_v50, %v11997_v25  ;;  %v12776_v54 = vpop.f32.mrf.mxu0 }
 0x352   :  { %v2219_v58 = vadd.f32 %v2218_v11, %v1890_v41  ;;  %v9653_v11 = vld [vmem:[%s15477_s0 + $0x340] sm:$0xf]  ;;  %v10670_v41 = vld [vmem:[%s15479_s3 + $0xb4] sm:$0xf0] }
 0x353   :  { %1325 = vmatmul.bf16.gmra.mxu0 %v12773_v19  ;;  %v12793_v50 = vor.u32 %v10604_v5, %v9653_v11 }
 0x354   :  { %v2507_v47 = vmax.f32 %v2219_v58, 0.0  ;;  %v2230_v45 = vpop.f32.mrf.mxu3 }
 0x356   :  { %v2698_v28 = vmax.f32 %v2506_v16, %v2507_v47 }
 0x357   :  { %v1891_v43 = vpop.f32.mrf.mxu2 }
 0x358   :  { %2826 = vst [vmem:[#allocation2 + $0x200] sm:$0xff] %v2698_v28  ;;  %v1892_v26 = vadd.f32 %v1891_v43, %v11997_v25  ;;  %v12781_v20 = vpop.f32.mrf.mxu0 }
 0x359   :  { %9934 = vmatmul.msk.bf16.gmra.mxu3 %vm869_vm0, %v12430_v59  ;;  %v2510_v59 = vmax.f32 %v12418_v24, 0.0  ;;  %v2512_v24 = vmax.f32 %v12435_v49, 0.0 }
 0x35a   :  { %v2221_v63 = vadd.f32 %v2220_v56, %v1892_v26 }
 0x35c   :  { %v2509_v37 = vmax.f32 %v2221_v63, 0.0  ;;  %1933 = vmatmul.bf16.gmra.mxu2 %v12411_v38  ;;  %v10045_v38 = vld [vmem:[%s15479_s3 + $0xb0] sm:$0xf]  ;;  %v2233_v16 = vpop.f32.mrf.mxu3 }
 0x35d   :  { %v10046_v58 = vor.u32 %v10670_v41, %v10045_v38  ;;  %v10606_v38 = vld [vmem:[%s15477_s0 + $0x354] sm:$0xf0] }
 0x35e   :  { %v2699_v30 = vmax.f32 %v2508_v17, %v2509_v37  ;;  %v9981_v37 = vld [vmem:[%s15479_s3 + $0x30] sm:$0xf] }
 0x35f   :  { %v1894_v4 = vpop.f32.mrf.mxu2  ;;  %6430 = vmatpush.bf16.msrb.mxu3 %v10046_v58 }
 0x360   :  { %2827 = vst [vmem:[#allocation2 + $0x208] sm:$0xff] %v2699_v30  ;;  %v1895_v15 = vadd.f32 %v1894_v4, %v11997_v25  ;;  %v12796_v56 = vpop.f32.mrf.mxu0 }
 0x362   :  { %v2224_v47 = vadd.f32 %v2223_v39, %v1895_v15  ;;  %v10654_v39 = vld [vmem:[%s15479_s3 + $0x34] sm:$0xf0]  ;;  %v9661_v15 = vld [vmem:[%s15477_s0 + $0x350] sm:$0xf] }
 0x363   :  { %1330 = vmatmul.bf16.gmra.mxu0 %v12793_v50  ;;  %v9982_v11 = vor.u32 %v10654_v39, %v9981_v37 }
 0x364   :  { %v2511_v28 = vmax.f32 %v2224_v47, 0.0  ;;  %v2235_v5 = vpop.f32.mrf.mxu3 }
 0x365   :  { %6261 = vmatpush.bf16.msrb.mxu1 %v9982_v11 }
 0x366   :  { %v2700_v43 = vmax.f32 %v2510_v59, %v2511_v28  ;;  %v2514_v28 = vmax.f32 %v12456_v12, 0.0  ;;  %v10608_v12 = vld [vmem:[%s15477_s0 + $0x364] sm:$0xf0] }
 0x367   :  { %v1896_v26 = vpop.f32.mrf.mxu2 }
 0x368   :  { %2828 = vst [vmem:[#allocation2 + $0x210] sm:$0xff] %v2700_v43  ;;  %v1897_v63 = vadd.f32 %v1896_v26, %v11997_v25  ;;  %v12807_v17 = vpop.f32.mrf.mxu0 }
 0x369   :  { %9935 = vmatmul.msk.bf16.gmra.mxu3 %vm869_vm0, %v12468_v61 }
 0x36a   :  { %v2226_v30 = vadd.f32 %v2225_v51, %v1897_v63  ;;  %v12825_v51 = vor.u32 %v10606_v38, %v9661_v15 }
 0x36c   :  { %v2513_v4 = vmax.f32 %v2226_v30, 0.0  ;;  %1938 = vmatmul.bf16.gmra.mxu2 %v12449_v36  ;;  %v2238_v36 = vpop.f32.mrf.mxu3  ;;  %v2516_v30 = vmax.f32 %v12473_v57, 0.0 }
 0x36e   :  { %v2701_v41 = vmax.f32 %v2512_v24, %v2513_v4 }
 0x36f   :  { %v1899_v58 = vpop.f32.mrf.mxu2 }
 0x370   :  { %2829 = vst [vmem:[#allocation2 + $0x218] sm:$0xff] %v2701_v41  ;;  %v1900_v49 = vadd.f32 %v1899_v58, %v11997_v25  ;;  %v12828_v47 = vpop.f32.mrf.mxu0  ;;  %v10708_v41 = vld [vmem:[%s15479_s3 + $0x1e4] sm:$0xf0] }
 0x372   :  { %v2229_v59 = vadd.f32 %v2228_v18, %v1900_v49  ;;  %v9669_v18 = vld [vmem:[%s15477_s0 + $0x360] sm:$0xf] }
 0x373   :  { %1335 = vmatmul.bf16.gmra.mxu0 %v12825_v51  ;;  %v12845_v38 = vor.u32 %v10608_v12, %v9669_v18 }
 0x374   :  { %v2515_v43 = vmax.f32 %v2229_v59, 0.0  ;;  %v2240_v39 = vpop.f32.mrf.mxu3 }
 0x376   :  { %v2702_v26 = vmax.f32 %v2514_v28, %v2515_v43 }
 0x377   :  { %v1901_v63 = vpop.f32.mrf.mxu2 }
 0x378   :  { %2830 = vst [vmem:[#allocation2 + $0x220] sm:$0xff] %v2702_v26  ;;  %v1902_v61 = vadd.f32 %v1901_v63, %v11997_v25  ;;  %v12833_v37 = vpop.f32.mrf.mxu0 }
 0x379   :  { %9936 = vmatmul.msk.bf16.gmra.mxu3 %vm869_vm0, %v12506_v3  ;;  %v2518_v3 = vmax.f32 %v12494_v60, 0.0  ;;  %v10610_v60 = vld [vmem:[%s15477_s0 + $0x374] sm:$0xf0] }
 0x37a   :  { %v2231_v11 = vadd.f32 %v2230_v45, %v1902_v61 }
 0x37c   :  { %v2517_v24 = vmax.f32 %v2231_v11, 0.0  ;;  %1943 = vmatmul.bf16.gmra.mxu2 %v12487_v31  ;;  %v10197_v31 = vld [vmem:[%s15479_s3 + $0x1e0] sm:$0xf]  ;;  %v2243_v49 = vpop.f32.mrf.mxu3 }
 0x37d   :  { %v10198_v58 = vor.u32 %v10708_v41, %v10197_v31  ;;  %v2522_v31 = vmax.f32 %v12532_v6, 0.0  ;;  %v10612_v6 = vld [vmem:[%s15477_s0 + $0x384] sm:$0xf0] }
 0x37e   :  { %v2703_v4 = vmax.f32 %v2516_v30, %v2517_v24  ;;  %v2520_v24 = vmax.f32 %v12511_v46, 0.0 }
 0x37f   :  { %v1904_v15 = vpop.f32.mrf.mxu2  ;;  %6765 = vmatpush.bf16.msra.mxu2 %v10198_v58 }
 0x380   :  { %2831 = vst [vmem:[#allocation2 + $0x228] sm:$0xff] %v2703_v4  ;;  %v1905_v57 = vadd.f32 %v1904_v15, %v11997_v25  ;;  %v12848_v45 = vpop.f32.mrf.mxu0 }
 0x382   :  { %v2234_v59 = vadd.f32 %v2233_v16, %v1905_v57  ;;  %v9677_v16 = vld [vmem:[%s15477_s0 + $0x370] sm:$0xf] }
 0x383   :  { %1340 = vmatmul.bf16.gmra.mxu0 %v12845_v38  ;;  %v12871_v15 = vor.u32 %v10610_v60, %v9677_v16 }
 0x384   :  { %v2519_v28 = vmax.f32 %v2234_v59, 0.0  ;;  %v2245_v11 = vpop.f32.mrf.mxu3 }
 0x386   :  { %v2704_v43 = vmax.f32 %v2518_v3, %v2519_v28 }
 0x387   :  { %v1906_v26 = vpop.f32.mrf.mxu2 }
 0x388   :  { %2832 = vst [vmem:[#allocation2 + $0x230] sm:$0xff] %v2704_v43  ;;  %v1907_v63 = vadd.f32 %v1906_v26, %v11997_v25  ;;  %v12859_v61 = vpop.f32.mrf.mxu0  ;;  %v2524_v26 = vmax.f32 %v12549_v22, 0.0 }
 0x389   :  { %9937 = vmatmul.msk.bf16.gmra.mxu3 %vm869_vm0, %v12544_v7 }
 0x38a   :  { %v2236_v30 = vadd.f32 %v2235_v5, %v1907_v63 }
 0x38c   :  { %v2521_v18 = vmax.f32 %v2236_v30, 0.0  ;;  %1948 = vmatmul.bf16.gmra.mxu2 %v12525_v40  ;;  %v2248_v40 = vpop.f32.mrf.mxu3 }
 0x38e   :  { %v2705_v12 = vmax.f32 %v2520_v24, %v2521_v18  ;;  %v12891_v24 = vpop.f32.mrf.mxu1 }
 0x38f   :  { %v1909_v4 = vpop.f32.mrf.mxu2 }
 0x390   :  { %2833 = vst [vmem:[#allocation2 + $0x238] sm:$0xff] %v2705_v12  ;;  %v1910_v46 = vadd.f32 %v1909_v4, %v11997_v25  ;;  %v12874_v5 = vpop.f32.mrf.mxu0  ;;  %v15735_v12 = vld [vmem:[#allocation100_spill] sm:$0xff] }
 0x391   :  { %v2526_v4 = vmax.f32 %v15735_v12, 0.0 }
 0x392   :  { %v2239_v57 = vadd.f32 %v2238_v36, %v1910_v46  ;;  %v9685_v36 = vld [vmem:[%s15477_s0 + $0x380] sm:$0xf] }
 0x393   :  { %1345 = vmatmul.bf16.gmra.mxu0 %v12871_v15  ;;  %v12893_v18 = vor.u32 %v10612_v6, %v9685_v36 }
 0x394   :  { %v2523_v41 = vmax.f32 %v2239_v57, 0.0  ;;  %v2250_v28 = vpop.f32.mrf.mxu3 }
 0x396   :  { %v2706_v58 = vmax.f32 %v2522_v31, %v2523_v41 }
 0x397   :  { %v1911_v59 = vpop.f32.mrf.mxu2 }
 0x398   :  { %2834 = vst [vmem:[#allocation2 + $0x240] sm:$0xff] %v2706_v58  ;;  %v1912_v7 = vadd.f32 %v1911_v59, %v11997_v25  ;;  %v12879_v3 = vpop.f32.mrf.mxu0  ;;  %v12903_v58 = vpop.f32.mrf.mxu1 }
 0x399   :  { %9938 = vmatmul.msk.bf16.gmra.mxu3 %vm869_vm0, %v12588_v14 }
 0x39a   :  { %v2241_v43 = vadd.f32 %v2240_v39, %v1912_v7 }
 0x39c   :  { %v2525_v63 = vmax.f32 %v2241_v43, 0.0  ;;  %1953 = vmatmul.bf16.gmra.mxu2 %v12563_v42  ;;  %v2253_v16 = vpop.f32.mrf.mxu3  ;;  %v2528_v43 = vmax.f32 %v12593_v35, 0.0 }
 0x39e   :  { %v2707_v30 = vmax.f32 %v2524_v26, %v2525_v63  ;;  %v10614_v63 = vld [vmem:[%s15477_s0 + $0x394] sm:$0xf0] }
 0x39f   :  { %v1914_v39 = vpop.f32.mrf.mxu2 }
 0x3a0   :  { %2835 = vst [vmem:[#allocation2 + $0x248] sm:$0xff] %v2707_v30  ;;  %v1915_v22 = vadd.f32 %v1914_v39, %v11997_v25  ;;  %v12896_v42 = vpop.f32.mrf.mxu0 }
 0x3a2   :  { %v2244_v60 = vadd.f32 %v2243_v49, %v1915_v22  ;;  %v9693_v49 = vld [vmem:[%s15477_s0 + $0x390] sm:$0xf]  ;;  %v12920_v22 = vpop.f32.mrf.mxu1 }
 0x3a3   :  { %1350 = vmatmul.bf16.gmra.mxu0 %v12893_v18  ;;  %v12915_v30 = vor.u32 %v10614_v63, %v9693_v49 }
 0x3a4   :  { %v2527_v46 = vmax.f32 %v2244_v60, 0.0  ;;  %v2255_v59 = vpop.f32.mrf.mxu3  ;;  %v2530_v60 = vmax.f32 %v12626_v21, 0.0  ;;  %v9701_v21 = vld [vmem:[%s15477_s0 + $0x3a0] sm:$0xf] }
 0x3a6   :  { %v2708_v57 = vmax.f32 %v2526_v4, %v2527_v46 }
 0x3a7   :  { %v1916_v31 = vpop.f32.mrf.mxu2 }
 0x3a8   :  { %2836 = vst [vmem:[#allocation2 + $0x250] sm:$0xff] %v2708_v57  ;;  %v1917_v14 = vadd.f32 %v1916_v31, %v11997_v25  ;;  %v12901_v41 = vpop.f32.mrf.mxu0 }
 0x3a9   :  { %9939 = vmatmul.msk.bf16.gmra.mxu3 %vm869_vm0, %v12638_v33 }
 0x3aa   :  { %v2246_v7 = vadd.f32 %v2245_v11, %v1917_v14 }
 0x3ac   :  { %v2529_v26 = vmax.f32 %v2246_v7, 0.0  ;;  %1958 = vmatmul.bf16.gmra.mxu2 %v12607_v52  ;;  %v2258_v52 = vpop.f32.mrf.mxu3  ;;  %v2532_v7 = vmax.f32 %v12643_v8, 0.0 }
 0x3ae   :  { %v2709_v36 = vmax.f32 %v2528_v43, %v2529_v26  ;;  %v10616_v43 = vld [vmem:[%s15477_s0 + $0x3a4] sm:$0xf0]  ;;  %v12937_v26 = vpop.f32.mrf.mxu1 }
 0x3af   :  { %v1919_v6 = vpop.f32.mrf.mxu2  ;;  %v12941_v63 = vor.u32 %v10616_v43, %v9701_v21  ;;  %v1272_v21 = vadd.f32 %v12694_v23, %v11235_v34 }
 0x3b0   :  { %2837 = vst [vmem:[#allocation2 + $0x258] sm:$0xff] %v2709_v36  ;;  %v1920_v35 = vadd.f32 %v1919_v6, %v11997_v25  ;;  %v12918_v11 = vpop.f32.mrf.mxu0 }
 0x3b1   :  { %v1601_v23 = vadd.f32 %v12891_v24, %v1272_v21 }
 0x3b2   :  { %v2249_v39 = vadd.f32 %v2248_v40, %v1920_v35  ;;  %v2534_v35 = vmax.f32 %v12662_v29, 0.0 }
 0x3b3   :  { %1355 = vmatmul.bf16.gmra.mxu0 %v12915_v30  ;;  %v2538_v24 = vmax.f32 %v1601_v23, 0.0  ;;  %v10620_v23 = vld [vmem:[%s15477_s0 + $0x3c4] sm:$0xf0] }
 0x3b4   :  { %v2531_v12 = vmax.f32 %v2249_v39, 0.0  ;;  %v12927_v31 = vpop.f32.mrf.mxu3 }
 0x3b6   :  { %v2710_v4 = vmax.f32 %v2530_v60, %v2531_v12  ;;  %v12950_v12 = vpop.f32.mrf.mxu1 }
 0x3b7   :  { %v1921_v46 = vpop.f32.mrf.mxu2 }
 0x3b8   :  { %2838 = vst [vmem:[#allocation2 + $0x260] sm:$0xff] %v2710_v4  ;;  %v1922_v33 = vadd.f32 %v1921_v46, %v11997_v25  ;;  %v12925_v57 = vpop.f32.mrf.mxu0 }
 0x3b9   :  { %9940 = vmatmul.msk.bf16.gmra.mxu3 %vm869_vm0, %v12674_v2 }
 0x3ba   :  { %v2251_v14 = vadd.f32 %v2250_v28, %v1922_v33  ;;  %v10037_v33 = vld [vmem:[%s15479_s3 + $0xa0] sm:$0xf] }
 0x3bc   :  { %v2533_v40 = vmax.f32 %v2251_v14, 0.0  ;;  %1963 = vmatmul.bf16.gmra.mxu2 %v12657_v44  ;;  %v12946_v36 = vpop.f32.mrf.mxu3 }
 0x3be   :  { %v2711_v49 = vmax.f32 %v2532_v7, %v2533_v40  ;;  %v2536_v40 = vmax.f32 %v12677_v27, 0.0 }
 0x3bf   :  { %v1924_v28 = vpop.f32.mrf.mxu2 }
 0x3c0   :  { %2839 = vst [vmem:[#allocation2 + $0x268] sm:$0xff] %v2711_v49  ;;  %v1925_v8 = vadd.f32 %v1924_v28, %v11997_v25  ;;  %v12944_v44 = vpop.f32.mrf.mxu0  ;;  %v9709_v49 = vld [vmem:[%s15477_s0 + $0x3b0] sm:$0xf]  ;;  %v10618_v28 = vld [vmem:[%s15477_s0 + $0x3b4] sm:$0xf0] }
 0x3c1   :  { %v12975_v27 = vor.u32 %v10618_v28, %v9709_v49 }
 0x3c2   :  { %v2254_v6 = vadd.f32 %v2253_v16, %v1925_v8  ;;  %v10668_v16 = vld [vmem:[%s15479_s3 + $0xa4] sm:$0xf0] }
 0x3c3   :  { %1360 = vmatmul.bf16.gmra.mxu0 %v12941_v63  ;;  %v10038_v14 = vor.u32 %v10668_v16, %v10037_v33  ;;  %v1274_v33 = vadd.f32 %v12706_v53, %v11235_v34 }
 0x3c4   :  { %v2535_v39 = vmax.f32 %v2254_v6, 0.0  ;;  %v12961_v29 = vpop.f32.mrf.mxu3 }
 0x3c5   :  { %6431 = vmatpush.bf16.msrb.mxu3 %v10038_v14 }
 0x3c6   :  { %v2712_v60 = vmax.f32 %v2534_v35, %v2535_v39  ;;  %v9973_v35 = vld [vmem:[%s15479_s3 + $0x20] sm:$0xf]  ;;  %v10652_v39 = vld [vmem:[%s15479_s3 + $0x24] sm:$0xf0] }
 0x3c7   :  { %v1926_v2 = vpop.f32.mrf.mxu2 }
 0x3c8   :  { %2840 = vst [vmem:[#allocation2 + $0x270] sm:$0xff] %v2712_v60  ;;  %v1927_v4 = vadd.f32 %v1926_v2, %v11997_v25  ;;  %v12953_v46 = vpop.f32.mrf.mxu0  ;;  %v12987_v60 = vpop.f32.mrf.mxu1 }
 0x3c9   :  { %9941 = vmatmul.msk.bf16.gmra.mxu3 %vm869_vm0, %v12708_v0  ;;  %v9974_v0 = vor.u32 %v10652_v39, %v9973_v35 }
 0x3ca   :  { %v2256_v7 = vadd.f32 %v2255_v59, %v1927_v4 }
 0x3cb   :  { %6262 = vmatpush.bf16.msrb.mxu1 %v9974_v0 }
 0x3cc   :  { %v2537_v43 = vmax.f32 %v2256_v7, 0.0  ;;  %1968 = vmatmul.bf16.gmra.mxu2 %v12691_v9  ;;  %v2268_v2 = vpop.f32.mrf.mxu3 }
 0x3ce   :  { %v2713_v8 = vmax.f32 %v2536_v40, %v2537_v43  ;;  %v1603_v40 = vadd.f32 %v12903_v58, %v1274_v33  ;;  %v9717_v58 = vld [vmem:[%s15477_s0 + $0x3c0] sm:$0xf] }
 0x3cf   :  { %v1929_v59 = vpop.f32.mrf.mxu2  ;;  %v13010_v35 = vor.u32 %v10620_v23, %v9717_v58  ;;  %v15736_v23 = vld [vmem:[#allocation4_spill] sm:$0xff] }
 0x3d0   :  { %2841 = vst [vmem:[#allocation2 + $0x278] sm:$0xff] %v2713_v8  ;;  %v1930_v9 = vadd.f32 %v1929_v59, %v11997_v25  ;;  %v12979_v6 = vpop.f32.mrf.mxu0  ;;  %v12997_v28 = vpop.f32.mrf.mxu1  ;;  %v2540_v8 = vmax.f32 %v1603_v40, 0.0  ;;  %v1277_v59 = vadd.f32 %v12726_v55, %v11235_v34 }
 0x3d2   :  { %v2259_v4 = vadd.f32 %v2258_v52, %v1930_v9  ;;  %v1606_v55 = vadd.f32 %v12920_v22, %v1277_v59 }
 0x3d3   :  { %1365 = vmatmul.bf16.gmra.mxu0 %v12975_v27 }
 0x3d4   :  { %v2539_v16 = vmax.f32 %v2259_v4, 0.0  ;;  %v2270_v49 = vpop.f32.mrf.mxu3 }
 0x3d6   :  { %v2714_v14 = vmax.f32 %v2538_v24, %v2539_v16  ;;  %v2542_v24 = vmax.f32 %v1606_v55, 0.0 }
 0x3d7   :  { %v1931_v7 = vpop.f32.mrf.mxu2 }
 0x3d8   :  { %2842 = vst [vmem:[#allocation2 + $0x280] sm:$0xff] %v2714_v14  ;;  %v1932_v21 = vadd.f32 %v1931_v7, %v11997_v25  ;;  %v12994_v43 = vpop.f32.mrf.mxu0  ;;  %v13022_v16 = vpop.f32.mrf.mxu1 }
 0x3d9   :  { %9942 = vmatmul.msk.bf16.gmra.mxu3 %vm869_vm0, %v12739_v32  ;;  %v1279_v32 = vadd.f32 %v12737_v62, %v11235_v34  ;;  %v1282_v62 = vadd.f32 %v12756_v1, %v11235_v34 }
 0x3da   :  { %v2261_v52 = vadd.f32 %v12927_v31, %v1932_v21 }
 0x3db   :  { %v1608_v7 = vadd.f32 %v12937_v26, %v1279_v32  ;;  %v9725_v26 = vld [vmem:[%s15477_s0 + $0x3d0] sm:$0xf]  ;;  %v1611_v1 = vadd.f32 %v12950_v12, %v1282_v62  ;;  %v1284_v32 = vadd.f32 %v12761_v13, %v11235_v34  ;;  %v9733_v13 = vld [vmem:[%s15477_s0 + $0x3e0] sm:$0xf] }
 0x3dc   :  { %v2541_v53 = vmax.f32 %v2261_v52, 0.0  ;;  %1973 = vmatmul.bf16.gmra.mxu2 %v12723_v10  ;;  %v13016_v0 = vpop.f32.mrf.mxu3 }
 0x3de   :  { %v2715_v9 = vmax.f32 %v2540_v8, %v2541_v53  ;;  %v2544_v8 = vmax.f32 %v1608_v7, 0.0  ;;  %v10622_v53 = vld [vmem:[%s15477_s0 + $0x3d4] sm:$0xf0]  ;;  %v1613_v7 = vadd.f32 %v12987_v60, %v1284_v32  ;;  %v10624_v60 = vld [vmem:[%s15477_s0 + $0x3e4] sm:$0xf0] }
 0x3df   :  { %v1934_v31 = vpop.f32.mrf.mxu2 }
 0x3e0   :  { %2843 = vst [vmem:[#allocation2 + $0x288] sm:$0xff] %v2715_v9  ;;  %v1935_v10 = vadd.f32 %v1934_v31, %v11997_v25  ;;  %v13014_v39 = vpop.f32.mrf.mxu0  ;;  %v13044_v31 = vor.u32 %v10622_v53, %v9725_v26  ;;  %v2548_v62 = vmax.f32 %v1613_v7, 0.0 }
 0x3e2   :  { %v2264_v4 = vadd.f32 %v12946_v36, %v1935_v10 }
 0x3e3   :  { %1370 = vmatmul.bf16.gmra.mxu0 %v13010_v35 }
 0x3e4   :  { %v2543_v33 = vmax.f32 %v2264_v4, 0.0  ;;  %v13028_v52 = vpop.f32.mrf.mxu3 }
 0x3e6   :  { %v2716_v14 = vmax.f32 %v2542_v24, %v2543_v33  ;;  %v2546_v24 = vmax.f32 %v1611_v1, 0.0  ;;  %v10189_v1 = vld [vmem:[%s15479_s3 + $0x1d0] sm:$0xf] }
 0x3e7   :  { %v1936_v22 = vpop.f32.mrf.mxu2 }
 0x3e8   :  { %2844 = vst [vmem:[#allocation2 + $0x290] sm:$0xff] %v2716_v14  ;;  %v1937_v40 = vadd.f32 %v1936_v22, %v11997_v25  ;;  %v13026_v21 = vpop.f32.mrf.mxu0 }
 0x3e9   :  { %9943 = vmatmul.msk.bf16.gmra.mxu3 %vm869_vm0, %v15736_v23  ;;  %v13072_v23 = vor.u32 %v10624_v60, %v9733_v13  ;;  %v1292_v60 = vadd.f32 %v12796_v56, %v11235_v34 }
 0x3ea   :  { %v2266_v36 = vadd.f32 %v12961_v29, %v1937_v40  ;;  %v13042_v29 = vpop.f32.mrf.mxu1 }
 0x3eb   :  { %v1621_v56 = vadd.f32 %v13042_v29, %v1292_v60  ;;  %v1297_v60 = vadd.f32 %v12828_v47, %v11235_v34 }
 0x3ec   :  { %v2545_v59 = vmax.f32 %v2266_v36, 0.0  ;;  %1978 = vmatmul.bf16.gmra.mxu2 %v12753_v48  ;;  %v13050_v10 = vpop.f32.mrf.mxu3 }
 0x3ee   :  { %v2717_v58 = vmax.f32 %v2544_v8, %v2545_v59  ;;  %v1287_v59 = vadd.f32 %v12776_v54, %v11235_v34 }
 0x3ef   :  { %v1939_v9 = vpop.f32.mrf.mxu2 }
 0x3f0   :  { %2845 = vst [vmem:[#allocation2 + $0x298] sm:$0xff] %v2717_v58  ;;  %v1940_v48 = vadd.f32 %v1939_v9, %v11997_v25  ;;  %v13048_v55 = vpop.f32.mrf.mxu0  ;;  %v15737_v58 = vld [vmem:[#allocation6_spill] sm:$0xff]  ;;  %v1616_v54 = vadd.f32 %v12997_v28, %v1287_v59 }
 0x3f2   :  { %v2269_v4 = vadd.f32 %v2268_v2, %v1940_v48  ;;  %v1622_v36 = vpop.f32.mrf.mxu1  ;;  %v10706_v48 = vld [vmem:[%s15479_s3 + $0x1d4] sm:$0xf0]  ;;  %v2550_v28 = vmax.f32 %v1616_v54, 0.0  ;;  %v15738_v54 = vld [vmem:[#allocation8_spill] sm:$0xff] }
 0x3f3   :  { %1375 = vmatmul.bf16.gmra.mxu0 %v13044_v31 }
 0x3f4   :  { %v2547_v33 = vmax.f32 %v2269_v4, 0.0  ;;  %v13059_v8 = vpop.f32.mrf.mxu3  ;;  %v10190_v4 = vor.u32 %v10706_v48, %v10189_v1 }
 0x3f6   :  { %v2718_v14 = vmax.f32 %v2546_v24, %v2547_v33  ;;  %6766 = vmatpush.bf16.msra.mxu2 %v10190_v4 }
 0x3f7   :  { %v1941_v22 = vpop.f32.mrf.mxu2 }
 0x3f8   :  { %2846 = vst [vmem:[#allocation2 + $0x2a0] sm:$0xff] %v2718_v14  ;;  %v1942_v12 = vadd.f32 %v1941_v22, %v11997_v25  ;;  %v13057_v40 = vpop.f32.mrf.mxu0  ;;  %v1289_v14 = vadd.f32 %v12781_v20, %v11235_v34  ;;  %v9741_v20 = vld [vmem:[%s15477_s0 + $0x3f0] sm:$0xf] }
 0x3f9   :  { %9944 = vmatmul.msk.bf16.gmra.mxu3 %vm869_vm0, %v15737_v58 }
 0x3fa   :  { %v2271_v2 = vadd.f32 %v2270_v49, %v1942_v12  ;;  %v1625_v33 = vpop.f32.mrf.mxu1 }
 0x3fc   :  { %v2549_v26 = vmax.f32 %v2271_v2, 0.0  ;;  %1983 = vmatmul.bf16.gmra.mxu2 %v12773_v19  ;;  %v2283_v24 = vpop.f32.mrf.mxu3  ;;  %v1618_v2 = vadd.f32 %v13022_v16, %v1289_v14  ;;  %v10626_v16 = vld [vmem:[%s15477_s0 + $0x3f4] sm:$0xf0] }
 0x3fe   :  { %v2719_v53 = vmax.f32 %v2548_v62, %v2549_v26  ;;  %v2552_v13 = vmax.f32 %v1618_v2, 0.0 }
 0x3ff   :  { %v1944_v49 = vpop.f32.mrf.mxu2 }
 0x400   :  { %2847 = vst [vmem:[#allocation2 + $0x2a8] sm:$0xff] %v2719_v53  ;;  %v1945_v19 = vadd.f32 %v1944_v49, %v11997_v25  ;;  %v13076_v9 = vpop.f32.mrf.mxu0 }
 0x402   :  { %v2274_v32 = vadd.f32 %v13016_v0, %v1945_v19  ;;  %v1627_v58 = vpop.f32.mrf.mxu1  ;;  %v13104_v19 = vor.u32 %v10626_v16, %v9741_v20  ;;  %v15739_v20 = vld [vmem:[#allocation10_spill] sm:$0xff]  ;;  %v1626_v16 = vadd.f32 %v1625_v33, %v1297_v60  ;;  %v15741_v60 = vld [vmem:[#allocation12_spill] sm:$0xff] }
 0x403   :  { %1380 = vmatmul.bf16.gmra.mxu0 %v13072_v23 }
 0x404   :  { %v2551_v22 = vmax.f32 %v2274_v32, 0.0  ;;  %v2285_v26 = vpop.f32.mrf.mxu3  ;;  %v2554_v32 = vmax.f32 %v1621_v56, 0.0  ;;  %v2558_v47 = vmax.f32 %v1626_v16, 0.0 }
 0x406   :  { %v2720_v7 = vmax.f32 %v2550_v28, %v2551_v22  ;;  %v1294_v28 = vadd.f32 %v12807_v17, %v11235_v34 }
 0x407   :  { %v1946_v12 = vpop.f32.mrf.mxu2 }
 0x408   :  { %2848 = vst [vmem:[#allocation2 + $0x2b0] sm:$0xff] %v2720_v7  ;;  %v1947_v62 = vadd.f32 %v1946_v12, %v11997_v25  ;;  %v13090_v59 = vpop.f32.mrf.mxu0  ;;  %v1623_v2 = vadd.f32 %v1622_v36, %v1294_v28 }
 0x409   :  { %9945 = vmatmul.msk.bf16.gmra.mxu3 %vm869_vm0, %v15738_v54 }
 0x40a   :  { %v2276_v0 = vadd.f32 %v13028_v52, %v1947_v62  ;;  %v1630_v7 = vpop.f32.mrf.mxu1 }
 0x40c   :  { %v2553_v53 = vmax.f32 %v2276_v0, 0.0  ;;  %1988 = vmatmul.bf16.gmra.mxu2 %v12793_v50  ;;  %v2288_v48 = vpop.f32.mrf.mxu3 }
 0x40e   :  { %v2721_v49 = vmax.f32 %v2552_v13, %v2553_v53 }
 0x40f   :  { %v1949_v52 = vpop.f32.mrf.mxu2 }
 0x410   :  { %2849 = vst [vmem:[#allocation2 + $0x2b8] sm:$0xff] %v2721_v49  ;;  %v1950_v50 = vadd.f32 %v1949_v52, %v11997_v25  ;;  %v13108_v1 = vpop.f32.mrf.mxu0 }
 0x412   :  { %v2279_v4 = vadd.f32 %v13050_v10, %v1950_v50  ;;  %v2556_v10 = vmax.f32 %v1623_v2, 0.0  ;;  %v1632_v52 = vpop.f32.mrf.mxu1  ;;  %v15740_v50 = vld [vmem:[#allocation5_spill] sm:$0xff] }
 0x413   :  { %1385 = vmatmul.bf16.gmra.mxu0 %v13104_v19 }
 0x414   :  { %v2555_v14 = vmax.f32 %v2279_v4, 0.0  ;;  %v2290_v0 = vpop.f32.mrf.mxu3 }
 0x416   :  { %v2722_v22 = vmax.f32 %v2554_v32, %v2555_v14 }
 0x417   :  { %v1951_v12 = vpop.f32.mrf.mxu2 }
 0x418   :  { %2850 = vst [vmem:[#allocation2 + $0x2c0] sm:$0xff] %v2722_v22  ;;  %v1952_v29 = vadd.f32 %v1951_v12, %v11997_v25  ;;  %v13115_v62 = vpop.f32.mrf.mxu0 }
 0x419   :  { %9946 = vmatmul.msk.bf16.gmra.mxu3 %vm869_vm0, %v15739_v20 }
 0x41a   :  { %v2281_v13 = vadd.f32 %v13059_v8, %v1952_v29 }
 0x41c   :  { %v2557_v53 = vmax.f32 %v2281_v13, 0.0  ;;  %1993 = vmatmul.bf16.gmra.mxu2 %v12825_v51  ;;  %v2293_v8 = vpop.f32.mrf.mxu3  ;;  %v1299_v51 = vadd.f32 %v12833_v37, %v11235_v34  ;;  %v1302_v13 = vadd.f32 %v12848_v45, %v11235_v34  ;;  %v10666_v45 = vld [vmem:[%s15479_s3 + $0x94] sm:$0xf0] }
 0x41e   :  { %v2723_v17 = vmax.f32 %v2556_v10, %v2557_v53  ;;  %v1628_v14 = vadd.f32 %v1627_v58, %v1299_v51  ;;  %v1631_v53 = vadd.f32 %v1630_v7, %v1302_v13 }
 0x41f   :  { %v1954_v36 = vpop.f32.mrf.mxu2 }
 0x420   :  { %2851 = vst [vmem:[#allocation2 + $0x2c8] sm:$0xff] %v2723_v17  ;;  %v1955_v49 = vadd.f32 %v1954_v36, %v11997_v25  ;;  %v13124_v54 = vpop.f32.mrf.mxu0  ;;  %v2560_v29 = vmax.f32 %v1628_v14, 0.0  ;;  %v2562_v7 = vmax.f32 %v1631_v53, 0.0 }
 0x422   :  { %v2284_v56 = vadd.f32 %v2283_v24, %v1955_v49  ;;  %v1635_v24 = vpop.f32.mrf.mxu1  ;;  %v15742_v49 = vld [vmem:[#allocation7_spill] sm:$0xff] }
 0x423   :  { %9891 = vmatmul.msk.bf16.vlgmr.msrb.gmra.mxu0 %vm869_vm0, %v15740_v50 }
 0x424   :  { %v2559_v4 = vmax.f32 %v2284_v56, 0.0  ;;  %v13133_v12 = vpop.f32.mrf.mxu3  ;;  %v1304_v56 = vadd.f32 %v12859_v61, %v11235_v34 }
 0x426   :  { %v2724_v32 = vmax.f32 %v2558_v47, %v2559_v4 }
 0x427   :  { %v1956_v28 = vpop.f32.mrf.mxu2 }
 0x428   :  { %2852 = vst [vmem:[#allocation2 + $0x2d0] sm:$0xff] %v2724_v32  ;;  %v1957_v33 = vadd.f32 %v1956_v28, %v11997_v25  ;;  %v13131_v22 = vpop.f32.mrf.mxu0  ;;  %v1633_v32 = vadd.f32 %v1632_v52, %v1304_v56  ;;  %v1307_v52 = vadd.f32 %v12874_v5, %v11235_v34 }
 0x429   :  { %9947 = vmatmul.msk.bf16.gmra.mxu3 %vm869_vm0, %v15741_v60  ;;  %v15743_v60 = vld [vmem:[#allocation14_spill] sm:$0xff] }
 0x42a   :  { %v2286_v2 = vadd.f32 %v2285_v26, %v1957_v33  ;;  %v10029_v26 = vld [vmem:[%s15479_s3 + $0x90] sm:$0xf]  ;;  %v1637_v47 = vpop.f32.mrf.mxu1  ;;  %v10650_v33 = vld [vmem:[%s15479_s3 + $0x14] sm:$0xf0]  ;;  %v2564_v13 = vmax.f32 %v1633_v32, 0.0 }
 0x42c   :  { %v2561_v10 = vmax.f32 %v2286_v2, 0.0  ;;  %1998 = vmatmul.bf16.gmra.mxu2 %v12845_v38  ;;  %v10030_v38 = vor.u32 %v10666_v45, %v10029_v26  ;;  %v2298_v36 = vpop.f32.mrf.mxu3 }
 0x42e   :  { %v2725_v37 = vmax.f32 %v2560_v29, %v2561_v10  ;;  %6432 = vmatpush.bf16.msrb.mxu3 %v10030_v38 }
 0x42f   :  { %v1959_v58 = vpop.f32.mrf.mxu2 }
 0x430   :  { %2853 = vst [vmem:[#allocation2 + $0x2d8] sm:$0xff] %v2725_v37  ;;  %v1960_v17 = vadd.f32 %v1959_v58, %v11997_v25  ;;  %v13141_v20 = vpop.f32.mrf.mxu0 }
 0x432   :  { %v2289_v16 = vadd.f32 %v2288_v48, %v1960_v17  ;;  %v9965_v48 = vld [vmem:[%s15479_s3 + $0x10] sm:$0xf]  ;;  %v1640_v58 = vpop.f32.mrf.mxu1  ;;  %v1636_v17 = vadd.f32 %v1635_v24, %v1307_v52 }
 0x433   :  { %9892 = vmatmul.msk.bf16.gmra.mxu0 %vm869_vm0, %v15742_v49  ;;  %v9966_v2 = vor.u32 %v10650_v33, %v9965_v48  ;;  %v1312_v48 = vadd.f32 %v12896_v42, %v11235_v34 }
 0x434   :  { %v2563_v50 = vmax.f32 %v2289_v16, 0.0  ;;  %v2300_v61 = vpop.f32.mrf.mxu3  ;;  %v15744_v16 = vld [vmem:[#allocation9_spill] sm:$0xff]  ;;  %v2566_v5 = vmax.f32 %v1636_v17, 0.0 }
 0x435   :  { %6263 = vmatpush.bf16.msrb.mxu1 %v9966_v2  ;;  %v15745_v2 = vld [vmem:[#allocation16_spill] sm:$0xff] }
 0x436   :  { %v2726_v51 = vmax.f32 %v2562_v7, %v2563_v50 }
 0x437   :  { %v1961_v4 = vpop.f32.mrf.mxu2 }
 0x438   :  { %2854 = vst [vmem:[#allocation2 + $0x2e0] sm:$0xff] %v2726_v51  ;;  %v1962_v28 = vadd.f32 %v1961_v4, %v11997_v25  ;;  %v13154_v14 = vpop.f32.mrf.mxu0 }
 0x439   :  { %9948 = vmatmul.msk.bf16.gmra.mxu3 %vm869_vm0, %v15743_v60  ;;  %v15746_v60 = vld [vmem:[#allocation11_spill] sm:$0xff] }
 0x43a   :  { %v2291_v29 = vadd.f32 %v2290_v0, %v1962_v28  ;;  %v1642_v4 = vpop.f32.mrf.mxu1 }
 0x43c   :  { %v2565_v10 = vmax.f32 %v2291_v29, 0.0  ;;  %2003 = vmatmul.bf16.gmra.mxu2 %v12871_v15  ;;  %v2303_v0 = vpop.f32.mrf.mxu3  ;;  %v1309_v15 = vadd.f32 %v12879_v3, %v11235_v34  ;;  %v1641_v29 = vadd.f32 %v1640_v58, %v1312_v48 }
 0x43e   :  { %v2727_v37 = vmax.f32 %v2564_v13, %v2565_v10  ;;  %v1638_v50 = vadd.f32 %v1637_v47, %v1309_v15  ;;  %v2570_v42 = vmax.f32 %v1641_v29, 0.0 }
 0x43f   :  { %v1964_v53 = vpop.f32.mrf.mxu2 }
 0x440   :  { %2855 = vst [vmem:[#allocation2 + $0x2e8] sm:$0xff] %v2727_v37  ;;  %v1965_v26 = vadd.f32 %v1964_v53, %v11997_v25  ;;  %v13168_v45 = vpop.f32.mrf.mxu0  ;;  %v2568_v28 = vmax.f32 %v1638_v50, 0.0  ;;  %v15747_v50 = vld [vmem:[#allocation18_spill] sm:$0xff] }
 0x442   :  { %v2294_v38 = vadd.f32 %v2293_v8, %v1965_v26  ;;  %v1645_v37 = vpop.f32.mrf.mxu1 }
 0x443   :  { %9893 = vmatmul.msk.bf16.gmra.mxu0 %vm869_vm0, %v15744_v16 }
 0x444   :  { %v2567_v49 = vmax.f32 %v2294_v38, 0.0  ;;  %v2305_v32 = vpop.f32.mrf.mxu3 }
 0x446   :  { %v2728_v7 = vmax.f32 %v2566_v5, %v2567_v49  ;;  %v1317_v49 = vadd.f32 %v12918_v11, %v11235_v34 }
 0x447   :  { %v1966_v56 = vpop.f32.mrf.mxu2 }
 0x448   :  { %2856 = vst [vmem:[#allocation2 + $0x2f0] sm:$0xff] %v2728_v7  ;;  %v1967_v24 = vadd.f32 %v1966_v56, %v11997_v25  ;;  %v13175_v51 = vpop.f32.mrf.mxu0 }
 0x449   :  { %9949 = vmatmul.msk.bf16.gmra.mxu3 %vm869_vm0, %v15745_v2 }
 0x44a   :  { %v2296_v8 = vadd.f32 %v13133_v12, %v1967_v24  ;;  %v1647_v56 = vpop.f32.mrf.mxu1 }
 0x44c   :  { %v2569_v33 = vmax.f32 %v2296_v8, 0.0  ;;  %2008 = vmatmul.bf16.gmra.mxu2 %v12893_v18  ;;  %v2308_v10 = vpop.f32.mrf.mxu3  ;;  %v1314_v18 = vadd.f32 %v12901_v41, %v11235_v34 }
 0x44e   :  { %v2729_v3 = vmax.f32 %v2568_v28, %v2569_v33  ;;  %v1643_v38 = vadd.f32 %v1642_v4, %v1314_v18  ;;  %v1646_v4 = vadd.f32 %v1645_v37, %v1317_v49  ;;  %v15748_v33 = vld [vmem:[#allocation13_spill] sm:$0xff]  ;;  %v1322_v18 = vadd.f32 %v12944_v44, %v11235_v34 }
 0x44f   :  { %v1969_v47 = vpop.f32.mrf.mxu2 }
 0x450   :  { %2857 = vst [vmem:[#allocation2 + $0x2f8] sm:$0xff] %v2729_v3  ;;  %v1970_v13 = vadd.f32 %v1969_v47, %v11997_v25  ;;  %v13184_v52 = vpop.f32.mrf.mxu0  ;;  %v2574_v11 = vmax.f32 %v1646_v4, 0.0 }
 0x452   :  { %v2299_v12 = vadd.f32 %v2298_v36, %v1970_v13  ;;  %v2572_v36 = vmax.f32 %v1643_v38, 0.0  ;;  %v1650_v47 = vpop.f32.mrf.mxu1 }
 0x453   :  { %9894 = vmatmul.msk.bf16.gmra.mxu0 %vm869_vm0, %v15746_v60  ;;  %v1651_v38 = vadd.f32 %v1650_v47, %v1322_v18  ;;  %v15752_v18 = vld [vmem:[#allocation17_spill] sm:$0xff] }
 0x454   :  { %v2571_v53 = vmax.f32 %v2299_v12, 0.0  ;;  %v2310_v5 = vpop.f32.mrf.mxu3 }
 0x455   :  { %v2578_v44 = vmax.f32 %v1651_v38, 0.0 }
 0x456   :  { %v2730_v17 = vmax.f32 %v2570_v42, %v2571_v53 }
 0x457   :  { %v1971_v26 = vpop.f32.mrf.mxu2 }
 0x458   :  { %2858 = vst [vmem:[#allocation2 + $0x300] sm:$0xff] %v2730_v17  ;;  %v1972_v58 = vadd.f32 %v1971_v26, %v11997_v25  ;;  %v13191_v16 = vpop.f32.mrf.mxu0  ;;  %v15749_v17 = vld [vmem:[#allocation20_spill] sm:$0xff] }
 0x459   :  { %9950 = vmatmul.msk.bf16.gmra.mxu3 %vm869_vm0, %v15747_v50 }
 0x45a   :  { %v2301_v15 = vadd.f32 %v2300_v61, %v1972_v58 }
 0x45c   :  { %v2573_v7 = vmax.f32 %v2301_v15, 0.0  ;;  %2013 = vmatmul.bf16.gmra.mxu2 %v12915_v30  ;;  %v2313_v61 = vpop.f32.mrf.mxu3  ;;  %v1319_v30 = vadd.f32 %v12925_v57, %v11235_v34 }
 0x45e   :  { %v2731_v41 = vmax.f32 %v2572_v36, %v2573_v7  ;;  %v1648_v13 = vadd.f32 %v1647_v56, %v1319_v30  ;;  %v1652_v36 = vpop.f32.mrf.mxu1  ;;  %v15750_v7 = vld [vmem:[#allocation15_spill] sm:$0xff]  ;;  %v1327_v30 = vadd.f32 %v12979_v6, %v11235_v34 }
 0x45f   :  { %v1974_v24 = vpop.f32.mrf.mxu2  ;;  %v10704_v6 = vld [vmem:[%s15479_s3 + $0x1c4] sm:$0xf0] }
 0x460   :  { %2859 = vst [vmem:[#allocation2 + $0x308] sm:$0xff] %v2731_v41  ;;  %v1975_v8 = vadd.f32 %v1974_v24, %v11997_v25  ;;  %v13199_v28 = vpop.f32.mrf.mxu0 }
 0x462   :  { %v2304_v48 = vadd.f32 %v2303_v0, %v1975_v8  ;;  %v2576_v0 = vmax.f32 %v1648_v13, 0.0 }
 0x463   :  { %9895 = vmatmul.msk.bf16.gmra.mxu0 %vm869_vm0, %v15748_v33 }
 0x464   :  { %v2575_v3 = vmax.f32 %v2304_v48, 0.0  ;;  %v2315_v60 = vpop.f32.mrf.mxu3 }
 0x466   :  { %v2732_v2 = vmax.f32 %v2574_v11, %v2575_v3  ;;  %v1655_v11 = vpop.f32.mrf.mxu1 }
 0x467   :  { %v1976_v29 = vpop.f32.mrf.mxu2 }
 0x468   :  { %2860 = vst [vmem:[#allocation2 + $0x310] sm:$0xff] %v2732_v2  ;;  %v1977_v12 = vadd.f32 %v1976_v29, %v11997_v25  ;;  %v13206_v37 = vpop.f32.mrf.mxu0  ;;  %v15751_v2 = vld [vmem:[#allocation24_spill] sm:$0xff]  ;;  %v1656_v29 = vadd.f32 %v1655_v11, %v1327_v30 }
 0x469   :  { %9951 = vmatmul.msk.bf16.gmra.mxu3 %vm869_vm0, %v15749_v17 }
 0x46a   :  { %v2306_v42 = vadd.f32 %v2305_v32, %v1977_v12 }
 0x46c   :  { %v2577_v53 = vmax.f32 %v2306_v42, 0.0  ;;  %2018 = vmatmul.bf16.gmra.mxu2 %v12941_v63  ;;  %v2318_v32 = vpop.f32.mrf.mxu3  ;;  %v1324_v63 = vadd.f32 %v12953_v46, %v11235_v34 }
 0x46e   :  { %v2733_v57 = vmax.f32 %v2576_v0, %v2577_v53  ;;  %v1653_v24 = vadd.f32 %v1652_v36, %v1324_v63  ;;  %v2582_v53 = vmax.f32 %v1656_v29, 0.0  ;;  %v15756_v29 = vld [vmem:[#allocation23_spill] sm:$0xff] }
 0x46f   :  { %v1979_v26 = vpop.f32.mrf.mxu2 }
 0x470   :  { %2861 = vst [vmem:[#allocation2 + $0x318] sm:$0xff] %v2733_v57  ;;  %v1980_v58 = vadd.f32 %v1979_v26, %v11997_v25  ;;  %v13214_v15 = vpop.f32.mrf.mxu0  ;;  %v1329_v57 = vadd.f32 %v12994_v43, %v11235_v34  ;;  %v1657_v26 = vpop.f32.mrf.mxu1 }
 0x472   :  { %v2309_v49 = vadd.f32 %v2308_v10, %v1980_v58  ;;  %v2580_v10 = vmax.f32 %v1653_v24, 0.0  ;;  %v1658_v36 = vadd.f32 %v1657_v26, %v1329_v57  ;;  %v1337_v57 = vadd.f32 %v13048_v55, %v11235_v34  ;;  %v9957_v55 = vld [vmem:[%s15479_s3] sm:$0xf] }
 0x473   :  { %9896 = vmatmul.msk.bf16.gmra.mxu0 %vm869_vm0, %v15750_v7 }
 0x474   :  { %v2579_v56 = vmax.f32 %v2309_v49, 0.0  ;;  %v2320_v48 = vpop.f32.mrf.mxu3  ;;  %v2584_v63 = vmax.f32 %v1658_v36, 0.0 }
 0x476   :  { %v2734_v41 = vmax.f32 %v2578_v44, %v2579_v56  ;;  %v1332_v56 = vadd.f32 %v13014_v39, %v11235_v34 }
 0x477   :  { %v1981_v50 = vpop.f32.mrf.mxu2 }
 0x478   :  { %2862 = vst [vmem:[#allocation2 + $0x320] sm:$0xff] %v2734_v41  ;;  %v1982_v4 = vadd.f32 %v1981_v50, %v11997_v25  ;;  %v13221_v8 = vpop.f32.mrf.mxu0  ;;  %v15753_v50 = vld [vmem:[#allocation29_spill] sm:$0xff] }
 0x479   :  { %9952 = vmatmul.msk.bf16.gmra.mxu3 %vm869_vm0, %v15751_v2 }
 0x47a   :  { %v2311_v33 = vadd.f32 %v2310_v5, %v1982_v4  ;;  %v10181_v5 = vld [vmem:[%s15479_s3 + $0x1c0] sm:$0xf] }
 0x47b   :  { %v15754_v4 = vld [vmem:[#allocation22_spill] sm:$0xff] }
 0x47c   :  { %v2581_v3 = vmax.f32 %v2311_v33, 0.0  ;;  %2023 = vmatmul.bf16.gmra.mxu2 %v12975_v27  ;;  %v10182_v27 = vor.u32 %v10704_v6, %v10181_v5  ;;  %v2323_v42 = vpop.f32.mrf.mxu3  ;;  %v1661_v33 = vadd.f32 %v15754_v4, %v1332_v56  ;;  %v10141_v4 = vld [vmem:[%s15479_s3 + $0x170] sm:$0xf] }
 0x47e   :  { %v2735_v46 = vmax.f32 %v2580_v10, %v2581_v3  ;;  %6767 = vmatpush.bf16.msra.mxu2 %v10182_v27  ;;  %v15755_v3 = vld [vmem:[#allocation19_spill] sm:$0xff]  ;;  %v2586_v39 = vmax.f32 %v1661_v33, 0.0  ;;  %v10694_v33 = vld [vmem:[%s15479_s3 + $0x174] sm:$0xf0] }
 0x47f   :  { %v1984_v47 = vpop.f32.mrf.mxu2  ;;  %v10664_v27 = vld [vmem:[%s15479_s3 + $0x84] sm:$0xf0] }
 0x480   :  { %2863 = vst [vmem:[#allocation2 + $0x328] sm:$0xff] %v2735_v46  ;;  %v1985_v13 = vadd.f32 %v1984_v47, %v11997_v25  ;;  %v13229_v12 = vpop.f32.mrf.mxu0 }
 0x482   :  { %v2314_v0 = vadd.f32 %v2313_v61, %v1985_v13 }
 0x483   :  { %9897 = vmatmul.msk.bf16.gmra.mxu0 %vm869_vm0, %v15752_v18 }
 0x484   :  { %v2583_v17 = vmax.f32 %v2314_v0, 0.0  ;;  %v13244_v44 = vpop.f32.mrf.mxu3 }
 0x486   :  { %v2736_v38 = vmax.f32 %v2582_v53, %v2583_v17 }
 0x487   :  { %v1986_v58 = vpop.f32.mrf.mxu2 }
 0x488   :  { %2864 = vst [vmem:[#allocation2 + $0x330] sm:$0xff] %v2736_v38  ;;  %v1987_v49 = vadd.f32 %v1986_v58, %v11997_v25  ;;  %v13242_v7 = vpop.f32.mrf.mxu0  ;;  %v15757_v38 = vld [vmem:[#allocation35_spill] sm:$0xff]  ;;  %v15758_v58 = vld [vmem:[#allocation74_spill] sm:$0xff] }
 0x489   :  { %9953 = vmatmul.msk.bf16.gmra.mxu3 %vm869_vm0, %v15753_v50  ;;  %v1730_v36 = vadd.f32 %v15758_v58, %v11997_v25 }
 0x48a   :  { %v2316_v61 = vadd.f32 %v2315_v60, %v1987_v49 }
 0x48c   :  { %v2585_v41 = vmax.f32 %v2316_v61, 0.0  ;;  %2028 = vmatmul.bf16.gmra.mxu2 %v13010_v35  ;;  %v13255_v60 = vpop.f32.mrf.mxu3  ;;  %v1334_v35 = vadd.f32 %v13026_v21, %v11235_v34  ;;  %v15759_v61 = vld [vmem:[#allocation26_spill] sm:$0xff] }
 0x48e   :  { %v2737_v43 = vmax.f32 %v2584_v63, %v2585_v41  ;;  %v1663_v13 = vadd.f32 %v15756_v29, %v1334_v35  ;;  %v1666_v63 = vadd.f32 %v15759_v61, %v1337_v57  ;;  %v10142_v35 = vor.u32 %v10694_v33, %v10141_v4  ;;  %v15763_v57 = vld [vmem:[#allocation28_spill] sm:$0xff] }
 0x48f   :  { %v1989_v24 = vpop.f32.mrf.mxu2  ;;  %v1342_v4 = vadd.f32 %v13076_v9, %v11235_v34  ;;  %v10157_v9 = vld [vmem:[%s15479_s3 + $0x190] sm:$0xf] }
 0x490   :  { %2865 = vst [vmem:[#allocation2 + $0x338] sm:$0xff] %v2737_v43  ;;  %v1990_v11 = vadd.f32 %v1989_v24, %v11997_v25  ;;  %v13253_v10 = vpop.f32.mrf.mxu0  ;;  %v2588_v53 = vmax.f32 %v1663_v13, 0.0  ;;  %6595 = vmatpush.bf16.msra.mxu0 %v10142_v35  ;;  %v10133_v13 = vld [vmem:[%s15479_s3 + $0x160] sm:$0xf]  ;;  %v10688_v35 = vld [vmem:[%s15479_s3 + $0x144] sm:$0xf0] }
 0x492   :  { %v2319_v30 = vadd.f32 %v2318_v32, %v1990_v11  ;;  %v10021_v32 = vld [vmem:[%s15479_s3 + $0x80] sm:$0xf]  ;;  %v15760_v11 = vld [vmem:[#allocation27_spill] sm:$0xff] }
 0x493   :  { %9898 = vmatmul.msk.bf16.gmra.mxu0 %vm869_vm0, %v15755_v3  ;;  %v10022_v0 = vor.u32 %v10664_v27, %v10021_v32  ;;  %v10173_v32 = vld [vmem:[%s15479_s3 + $0x1b0] sm:$0xf] }
 0x494   :  { %v2587_v46 = vmax.f32 %v2319_v30, 0.0  ;;  %v13271_v21 = vpop.f32.mrf.mxu3  ;;  %v2378_v30 = vmax.f32 %v15760_v11, 0.0  ;;  %v15762_v27 = vld [vmem:[#allocation76_spill] sm:$0xff] }
 0x495   :  { %6433 = vmatpush.bf16.msrb.mxu3 %v10022_v0  ;;  %v1732_v0 = vadd.f32 %v15762_v27, %v11997_v25 }
 0x496   :  { %v2738_v2 = vmax.f32 %v2586_v39, %v2587_v46  ;;  %v15761_v39 = vld [vmem:[#allocation21_spill] sm:$0xff]  ;;  %v2590_v46 = vmax.f32 %v1666_v63, 0.0  ;;  %v10125_v63 = vld [vmem:[%s15479_s3 + $0x150] sm:$0xf] }
 0x497   :  { %v1991_v47 = vpop.f32.mrf.mxu2 }
 0x498   :  { %2866 = vst [vmem:[#allocation2 + $0x340] sm:$0xff] %v2738_v2  ;;  %v1992_v5 = vadd.f32 %v1991_v47, %v11997_v25  ;;  %v13263_v6 = vpop.f32.mrf.mxu0 }
 0x499   :  { %9954 = vmatmul.msk.bf16.gmra.mxu3 %vm869_vm0, %v15757_v38 }
 0x49a   :  { %v2321_v18 = vadd.f32 %v2320_v48, %v1992_v5  ;;  %v10692_v5 = vld [vmem:[%s15479_s3 + $0x164] sm:$0xf0] }
 0x49c   :  { %v2589_v17 = vmax.f32 %v2321_v18, 0.0  ;;  %2033 = vmatmul.bf16.gmra.mxu2 %v13044_v31  ;;  %v10648_v31 = vld [vmem:[%s15479_s3 + $0x4] sm:$0xf0]  ;;  %v13288_v50 = vpop.f32.mrf.mxu3  ;;  %v10134_v18 = vor.u32 %v10692_v5, %v10133_v13 }
 0x49d   :  { %v9958_v43 = vor.u32 %v10648_v31, %v9957_v55  ;;  %v15764_v55 = vld [vmem:[#allocation31_spill] sm:$0xff] }
 0x49e   :  { %v2739_v26 = vmax.f32 %v2588_v53, %v2589_v17  ;;  %v10702_v53 = vld [vmem:[%s15479_s3 + $0x1b4] sm:$0xf0]  ;;  %6596 = vmatpush.bf16.msra.mxu0 %v10134_v18  ;;  %v2380_v31 = vmax.f32 %v15764_v55, 0.0 }
 0x49f   :  { %v1994_v49 = vpop.f32.mrf.mxu2  ;;  %6264 = vmatpush.bf16.msrb.mxu1 %v9958_v43  ;;  %v10174_v58 = vor.u32 %v10702_v53, %v10173_v32  ;;  %v10109_v53 = vld [vmem:[%s15479_s3 + $0x130] sm:$0xf] }
 0x4a0   :  { %2867 = vst [vmem:[#allocation2 + $0x348] sm:$0xff] %v2739_v26  ;;  %v1995_v48 = vadd.f32 %v1994_v49, %v11997_v25  ;;  %v2058_v56 = vpop.f32.mrf.mxu0 }
 0x4a1   :  { %v2059_v41 = vadd.f32 %v2058_v56, %v1730_v36  ;;  %6768 = vmatpush.bf16.msra.mxu2 %v10174_v58  ;;  %v10165_v56 = vld [vmem:[%s15479_s3 + $0x1a0] sm:$0xf] }
 0x4a2   :  { %v2324_v24 = vadd.f32 %v2323_v42, %v1995_v48  ;;  %v1339_v42 = vadd.f32 %v13057_v40, %v11235_v34  ;;  %v10690_v48 = vld [vmem:[%s15479_s3 + $0x154] sm:$0xf0] }
 0x4a3   :  { %v2379_v3 = vmax.f32 %v2059_v41, 0.0  ;;  %9899 = vmatmul.msk.bf16.gmra.mxu0 %vm869_vm0, %v15761_v39  ;;  %v10126_v43 = vor.u32 %v10690_v48, %v10125_v63  ;;  %v10117_v39 = vld [vmem:[%s15479_s3 + $0x140] sm:$0xf]  ;;  %v1344_v48 = vadd.f32 %v13090_v59, %v11235_v34 }
 0x4a4   :  { %v2591_v2 = vmax.f32 %v2324_v24, 0.0  ;;  %v1668_v17 = vadd.f32 %v15763_v57, %v1339_v42  ;;  %v13317_v49 = vpop.f32.mrf.mxu3  ;;  %v10686_v57 = vld [vmem:[%s15479_s3 + $0x134] sm:$0xf0]  ;;  %v15770_v59 = vld [vmem:[#allocation34_spill] sm:$0xff] }
 0x4a5   :  { %v2634_v47 = vmax.f32 %v2378_v30, %v2379_v3  ;;  %6597 = vmatpush.bf16.msra.mxu0 %v10126_v43  ;;  %v10101_v43 = vld [vmem:[%s15479_s3 + $0x120] sm:$0xf] }
 0x4a6   :  { %v2740_v29 = vmax.f32 %v2590_v46, %v2591_v2  ;;  %v2592_v24 = vmax.f32 %v1668_v17, 0.0  ;;  %v15765_v46 = vld [vmem:[#allocation78_spill] sm:$0xff]  ;;  %v10118_v2 = vor.u32 %v10688_v35, %v10117_v39 }
 0x4a7   :  { %2762 = vst [vmem:[#allocation2] sm:$0xff] %v2634_v47  ;;  %v1996_v40 = vpop.f32.mrf.mxu2  ;;  %v10698_v47 = vld [vmem:[%s15479_s3 + $0x194] sm:$0xf0]  ;;  %v10149_v17 = vld [vmem:[%s15479_s3 + $0x180] sm:$0xf] }
 0x4a8   :  { %2868 = vst [vmem:[#allocation2 + $0x350] sm:$0xff] %v2740_v29  ;;  %v1997_v26 = vadd.f32 %v1996_v40, %v11997_v25  ;;  %v2060_v38 = vpop.f32.mrf.mxu0  ;;  %v15766_v29 = vld [vmem:[#allocation32_spill] sm:$0xff]  ;;  %v10158_v27 = vor.u32 %v10698_v47, %v10157_v9 }
 0x4a9   :  { %v2061_v36 = vadd.f32 %v2060_v38, %v1732_v0  ;;  %v1671_v13 = vadd.f32 %v15766_v29, %v1342_v4  ;;  %6598 = vmatpush.bf16.msra.mxu0 %v10118_v2 }
 0x4aa   :  { %v2326_v61 = vadd.f32 %v13244_v44, %v1997_v26  ;;  %v10700_v44 = vld [vmem:[%s15479_s3 + $0x1a4] sm:$0xf0]  ;;  %v15767_v26 = vld [vmem:[#allocation33_spill] sm:$0xff] }
 0x4ab   :  { %v2381_v41 = vmax.f32 %v2061_v36, 0.0  ;;  %v10166_v11 = vor.u32 %v10700_v44, %v10165_v56  ;;  %v2382_v38 = vmax.f32 %v15767_v26, 0.0  ;;  %v15768_v36 = vld [vmem:[#allocation25_spill] sm:$0xff]  ;;  %v2594_v63 = vmax.f32 %v1671_v13, 0.0  ;;  %v15769_v44 = vld [vmem:[#allocation79_spill] sm:$0xff] }
 0x4ac   :  { %v2593_v33 = vmax.f32 %v2326_v61, 0.0  ;;  %2038 = vmatmul.bf16.gmra.mxu2 %v13072_v23  ;;  %v1735_v23 = vadd.f32 %v15765_v46, %v11997_v25  ;;  %v13352_v40 = vpop.f32.mrf.mxu3  ;;  %v10696_v61 = vld [vmem:[%s15479_s3 + $0x184] sm:$0xf0]  ;;  %v10093_v46 = vld [vmem:[%s15479_s3 + $0x110] sm:$0xf] }
 0x4ad   :  { %v2635_v30 = vmax.f32 %v2380_v31, %v2381_v41  ;;  %6769 = vmatpush.bf16.msra.mxu2 %v10166_v11  ;;  %v10150_v55 = vor.u32 %v10696_v61, %v10149_v17  ;;  %v1673_v11 = vadd.f32 %v15770_v59, %v1344_v48  ;;  %v10085_v26 = vld [vmem:[%s15479_s3 + $0x100] sm:$0xf] }
 0x4ae   :  { %v2741_v3 = vmax.f32 %v2592_v24, %v2593_v33  ;;  %v1737_v24 = vadd.f32 %v15769_v44, %v11997_v25  ;;  %v10684_v33 = vld [vmem:[%s15479_s3 + $0x124] sm:$0xf0] }
 0x4af   :  { %2763 = vst [vmem:[#allocation2 + $0x8] sm:$0xff] %v2635_v30  ;;  %v1999_v42 = vpop.f32.mrf.mxu2  ;;  %v10102_v39 = vor.u32 %v10684_v33, %v10101_v43 }
 0x4b0   :  { %2869 = vst [vmem:[#allocation2 + $0x358] sm:$0xff] %v2741_v3  ;;  %v2000_v5 = vadd.f32 %v1999_v42, %v11997_v25  ;;  %v2063_v32 = vpop.f32.mrf.mxu0  ;;  %v15771_v42 = vld [vmem:[#allocation37_spill] sm:$0xff] }
 0x4b1   :  { %v2064_v0 = vadd.f32 %v2063_v32, %v1735_v23  ;;  %6770 = vmatpush.bf16.msra.mxu2 %v10158_v27  ;;  %v10682_v23 = vld [vmem:[%s15479_s3 + $0x114] sm:$0xf0]  ;;  %v2384_v2 = vmax.f32 %v15771_v42, 0.0  ;;  %v1347_v32 = vadd.f32 %v13108_v1, %v11235_v34 }
 0x4b2   :  { %v2329_v18 = vadd.f32 %v13255_v60, %v2000_v5  ;;  %v10110_v60 = vor.u32 %v10686_v57, %v10109_v53  ;;  %v10094_v13 = vor.u32 %v10682_v23, %v10093_v46  ;;  %v2596_v5 = vmax.f32 %v1673_v11, 0.0  ;;  %v15777_v23 = vld [vmem:[#allocation40_spill] sm:$0xff] }
 0x4b3   :  { %v2383_v58 = vmax.f32 %v2064_v0, 0.0  ;;  %9900 = vmatmul.msk.bf16.gmra.mxu0 %vm869_vm0, %v15768_v36 }
 0x4b4   :  { %v2595_v56 = vmax.f32 %v2329_v18, 0.0  ;;  %6599 = vmatpush.bf16.msra.mxu0 %v10110_v60  ;;  %v13390_v29 = vpop.f32.mrf.mxu3  ;;  %v15772_v18 = vld [vmem:[#allocation80_spill] sm:$0xff]  ;;  %v10680_v60 = vld [vmem:[%s15479_s3 + $0x104] sm:$0xf0] }
 0x4b5   :  { %v2636_v31 = vmax.f32 %v2382_v38, %v2383_v58  ;;  %6771 = vmatpush.bf16.msra.mxu2 %v10150_v55  ;;  %v1740_v53 = vadd.f32 %v15772_v18, %v11997_v25  ;;  %v15773_v38 = vld [vmem:[#allocation38_spill] sm:$0xff] }
 0x4b6   :  { %v2742_v41 = vmax.f32 %v2594_v63, %v2595_v56  ;;  %v2892_v17 = vld [vmem:[#allocation2] ss:$2 sm:$0xff]  ;;  %v1676_v58 = vadd.f32 %v15773_v38, %v1347_v32  ;;  %v10086_v63 = vor.u32 %v10680_v60, %v10085_v26 }
 0x4b7   :  { %2764 = vst [vmem:[#allocation2 + $0x10] sm:$0xff] %v2636_v31  ;;  %v2001_v4 = vpop.f32.mrf.mxu2  ;;  %v15774_v56 = vld [vmem:[#allocation39_spill] sm:$0xff] }
 0x4b8   :  { %2870 = vst [vmem:[#allocation2 + $0x360] sm:$0xff] %v2742_v41  ;;  %v2002_v30 = vadd.f32 %v2001_v4, %v11997_v25  ;;  %v2065_v3 = vpop.f32.mrf.mxu0  ;;  %6600 = vmatpush.bf16.msra.mxu0 %v10102_v39  ;;  %v2386_v55 = vmax.f32 %v15774_v56, 0.0  ;;  %v15775_v41 = vld [vmem:[#allocation30_spill] sm:$0xff]  ;;  %v2598_v44 = vmax.f32 %v1676_v58, 0.0 }
 0x4b9   :  { %v2066_v35 = vadd.f32 %v2065_v3, %v1737_v24  ;;  %v1349_v24 = vadd.f32 %v13115_v62, %v11235_v34 }
 0x4ba   :  { %v2331_v9 = vadd.f32 %v13271_v21, %v2002_v30 }
 0x4bb   :  { %v2385_v47 = vmax.f32 %v2066_v35, 0.0  ;;  %v1678_v42 = vadd.f32 %v15777_v23, %v1349_v24 }
 0x4bc   :  { %v2597_v21 = vmax.f32 %v2331_v9, 0.0  ;;  %2043 = vmatmul.bf16.gmra.mxu2 %v13104_v19  ;;  %6601 = vmatpush.bf16.msra.mxu0 %v10094_v13  ;;  %v3020_v19 = vld [vmem:[#allocation2 + $0x1] ss:$2 sm:$0xff]  ;;  %v13411_v59 = vpop.f32.mrf.mxu3 }
 0x4bd   :  { %v2637_v27 = vmax.f32 %v2384_v2, %v2385_v47  ;;  %v3147_v43 = vmax.f32 %v2892_v17, %v3020_v19 }
 0x4be   :  { %v2743_v0 = vmax.f32 %v2596_v5, %v2597_v21  ;;  %v3276_v47 = vld [vmem:[#allocation2 + $0x2] ss:$2 sm:$0xff]  ;;  %v3404_v13 = vld [vmem:[#allocation2 + $0x3] ss:$2 sm:$0xff] }
 0x4bf   :  { %2765 = vst [vmem:[#allocation2 + $0x18] sm:$0xff] %v2637_v27  ;;  %v2004_v57 = vpop.f32.mrf.mxu2  ;;  %v3211_v46 = vpack.c.bf16 %v3147_v43, %v3147_v43  ;;  %v4044_v21 = vld [vmem:[#allocation2 + $0x6] ss:$2 sm:$0xff]  ;;  %v4172_v27 = vld [vmem:[#allocation2 + $0x7] ss:$2 sm:$0xff]  ;;  %v3531_v58 = vmax.f32 %v3276_v47, %v3404_v13 }
 0x4c0   :  { %2871 = vst [vmem:[#allocation2 + $0x368] sm:$0xff] %v2743_v0  ;;  %v2005_v1 = vadd.f32 %v2004_v57, %v11997_v25  ;;  %v2068_v36 = vpop.f32.mrf.mxu0  ;;  %6602 = vmatpush.bf16.msra.mxu0 %v10086_v63  ;;  %v15778_v0 = vld [vmem:[#allocation41_spill] sm:$0xff]  ;;  %v4299_v19 = vmax.f32 %v4044_v21, %v4172_v27  ;;  %v15779_v63 = vld [vmem:[#allocation82_spill] sm:$0xff]  ;;  %v1354_v27 = vadd.f32 %v13131_v22, %v11235_v34 }
 0x4c1   :  { %v2069_v61 = vadd.f32 %v2068_v36, %v1740_v53  ;;  %v2388_v18 = vmax.f32 %v15778_v0, 0.0  ;;  %v1352_v53 = vadd.f32 %v13124_v54, %v11235_v34  ;;  %v4875_v26 = vunpack.c.l.b16 %v3211_v46  ;;  %v15780_v54 = vld [vmem:[#allocation42_spill] sm:$0xff] }
 0x4c2   :  { %v2334_v48 = vadd.f32 %v13288_v50, %v2005_v1  ;;  %v15776_v50 = vld [vmem:[#allocation81_spill] sm:$0xff]  ;;  %v2600_v1 = vmax.f32 %v1678_v42, 0.0  ;;  %v3595_v24 = vpack.c.bf16 %v3531_v58, %v3531_v58 }
 0x4c3   :  { %v2387_v31 = vmax.f32 %v2069_v61, 0.0  ;;  %9901 = vmatmul.msk.bf16.gmra.mxu0 %vm869_vm0, %v15775_v41  ;;  %v1742_v39 = vadd.f32 %v15776_v50, %v11997_v25  ;;  %v1681_v43 = vadd.f32 %v15780_v54, %v1352_v53  ;;  %v4363_v50 = vpack.c.bf16 %v4299_v19, %v4299_v19 }
 0x4c4   :  { %v2599_v4 = vmax.f32 %v2334_v48, 0.0  ;;  %v1745_v48 = vadd.f32 %v15779_v63, %v11997_v25  ;;  %v15785_v63 = vld [vmem:[#allocation44_spill] sm:$0xff] }
 0x4c5   :  { %v2638_v33 = vmax.f32 %v2386_v55, %v2387_v31  ;;  %v2602_v47 = vmax.f32 %v1681_v43, 0.0 }
 0x4c6   :  { %v2744_v11 = vmax.f32 %v2598_v44, %v2599_v4  ;;  %v2894_v30 = vld [vmem:[#allocation2 + $0x10] ss:$2 sm:$0xff]  ;;  %v3022_v3 = vld [vmem:[#allocation2 + $0x11] ss:$2 sm:$0xff] }
 0x4c7   :  { %2766 = vst [vmem:[#allocation2 + $0x20] sm:$0xff] %v2638_v33  ;;  %v2006_v35 = vpop.f32.mrf.mxu2  ;;  %v3148_v9 = vmax.f32 %v2894_v30, %v3022_v3  ;;  %v13427_v33 = vpop.f32.mrf.mxu3 }
 0x4c8   :  { %2872 = vst [vmem:[#allocation2 + $0x370] sm:$0xff] %v2744_v11  ;;  %v2007_v62 = vadd.f32 %v2006_v35, %v11997_v25  ;;  %v2070_v2 = vpop.f32.mrf.mxu0 }
 0x4c9   :  { %v2071_v5 = vadd.f32 %v2070_v2, %v1742_v39  ;;  %v3212_v32 = vpack.c.bf16 %v3148_v9, %v3148_v9  ;;  %v15781_v9 = vld [vmem:[#allocation43_spill] sm:$0xff] }
 0x4ca   :  { %v2336_v57 = vadd.f32 %v13317_v49, %v2007_v62  ;;  %v2390_v46 = vmax.f32 %v15781_v9, 0.0  ;;  %v15787_v9 = vld [vmem:[#allocation84_spill] sm:$0xff] }
 0x4cb   :  { %v2389_v17 = vmax.f32 %v2071_v5, 0.0  ;;  %v4876_v38 = vunpack.c.l.b16 %v3212_v32  ;;  %v15782_v5 = vld [vmem:[#allocation36_spill] sm:$0xff]  ;;  %v5067_v32 = vunpack.c.l.b16 %v3595_v24 }
 0x4cc   :  { %v2601_v36 = vmax.f32 %v2336_v57, 0.0  ;;  %v3660_v57 = vld [vmem:[#allocation2 + $0x4] ss:$2 sm:$0xff] }
 0x4cd   :  { %v2639_v60 = vmax.f32 %v2388_v18, %v2389_v17  ;;  %v13421_v61 = vpack.c.b16 %v4876_v38, %v4875_v26  ;;  %v5451_v18 = vunpack.c.l.b16 %v4363_v50  ;;  %v3788_v17 = vld [vmem:[#allocation2 + $0x5] ss:$2 sm:$0xff] }
 0x4ce   :  { %v2745_v56 = vmax.f32 %v2600_v1, %v2601_v36  ;;  %v3278_v55 = vld [vmem:[#allocation2 + $0x12] ss:$2 sm:$0xff]  ;;  %v3406_v31 = vld [vmem:[#allocation2 + $0x13] ss:$2 sm:$0xff]  ;;  %v15784_v36 = vld [vmem:[#allocation83_spill] sm:$0xff]  ;;  %v3915_v22 = vmax.f32 %v3660_v57, %v3788_v17 }
 0x4cf   :  { %v4046_v41 = vld [vmem:[#allocation2 + $0x16] ss:$2 sm:$0xff]  ;;  %2767 = vst [vmem:[#allocation2 + $0x28] sm:$0xff] %v2639_v60  ;;  %v2009_v49 = vpop.f32.mrf.mxu2  ;;  %6265 = vmatmul.bf16.vlgmr.msrb.gmra.mxu1 %v13421_v61  ;;  %v3532_v44 = vmax.f32 %v3278_v55, %v3406_v31  ;;  %v4174_v4 = vld [vmem:[#allocation2 + $0x17] ss:$2 sm:$0xff]  ;;  %v1747_v19 = vadd.f32 %v15784_v36, %v11997_v25  ;;  %v13446_v54 = vpop.f32.mrf.mxu3 }
 0x4d0   :  { %2873 = vst [vmem:[#allocation2 + $0x378] sm:$0xff] %v2745_v56  ;;  %v2010_v11 = vadd.f32 %v2009_v49, %v11997_v25  ;;  %v2073_v30 = vpop.f32.mrf.mxu0  ;;  %v4300_v3 = vmax.f32 %v4046_v41, %v4174_v4  ;;  %v3662_v62 = vld [vmem:[#allocation2 + $0x14] ss:$2 sm:$0xff]  ;;  %v3790_v2 = vld [vmem:[#allocation2 + $0x15] ss:$2 sm:$0xff]  ;;  %v3979_v4 = vpack.c.bf16 %v3915_v22, %v3915_v22 }
 0x4d1   :  { %v2074_v39 = vadd.f32 %v2073_v30, %v1745_v48  ;;  %v3596_v35 = vpack.c.bf16 %v3532_v44, %v3532_v44  ;;  %v3916_v38 = vmax.f32 %v3662_v62, %v3790_v2  ;;  %v1683_v48 = vadd.f32 %v15785_v63, %v1354_v27  ;;  %v15786_v49 = vld [vmem:[#allocation45_spill] sm:$0xff]  ;;  %v15788_v62 = vld [vmem:[#allocation46_spill] sm:$0xff]  ;;  %v15789_v27 = vld [vmem:[#allocation47_spill] sm:$0xff] }
 0x4d2   :  { %v2339_v23 = vadd.f32 %v13352_v40, %v2010_v11  ;;  %v4364_v42 = vpack.c.bf16 %v4300_v3, %v4300_v3  ;;  %v2392_v44 = vmax.f32 %v15786_v49, 0.0  ;;  %v1357_v30 = vadd.f32 %v13141_v20, %v11235_v34  ;;  %v15790_v22 = vld [vmem:[#allocation85_spill] sm:$0xff] }
 0x4d3   :  { %v2391_v13 = vmax.f32 %v2074_v39, 0.0  ;;  %9902 = vmatmul.msk.bf16.gmra.mxu0 %vm869_vm0, %v15782_v5  ;;  %v5068_v21 = vunpack.c.l.b16 %v3596_v35  ;;  %v3980_v41 = vpack.c.bf16 %v3916_v38, %v3916_v38  ;;  %v2604_v11 = vmax.f32 %v1683_v48, 0.0 }
 0x4d4   :  { %v2603_v0 = vmax.f32 %v2339_v23, 0.0  ;;  %v5452_v53 = vunpack.c.l.b16 %v4364_v42  ;;  %v5259_v42 = vunpack.c.l.b16 %v3979_v4 }
 0x4d5   :  { %v2640_v26 = vmax.f32 %v2390_v46, %v2391_v13  ;;  %v13436_v40 = vpack.c.b16 %v5068_v21, %v5067_v32  ;;  %v5260_v39 = vunpack.c.l.b16 %v3980_v41  ;;  %v1750_v46 = vadd.f32 %v15787_v9, %v11997_v25 }
 0x4d6   :  { %v2746_v58 = vmax.f32 %v2602_v47, %v2603_v0  ;;  %v13438_v1 = vpack.c.b16 %v5452_v53, %v5451_v18  ;;  %v2896_v13 = vld [vmem:[#allocation2 + $0x20] ss:$2 sm:$0xff]  ;;  %v3024_v5 = vld [vmem:[#allocation2 + $0x21] ss:$2 sm:$0xff]  ;;  %v2394_v0 = vmax.f32 %v15789_v27, 0.0 }
 0x4d7   :  { %2768 = vst [vmem:[#allocation2 + $0x30] sm:$0xff] %v2640_v26  ;;  %v2011_v60 = vpop.f32.mrf.mxu2  ;;  %6434 = vmatmul.bf16.vlgmr.msrb.gmra.mxu3 %v13436_v40  ;;  %v13456_v20 = vpack.c.b16 %v5260_v39, %v5259_v42  ;;  %v3149_v53 = vmax.f32 %v2896_v13, %v3024_v5  ;;  %v13461_v57 = vpop.f32.mrf.mxu3  ;;  %v1359_v26 = vadd.f32 %v13154_v14, %v11235_v34  ;;  %v15793_v27 = vld [vmem:[#allocation50_spill] sm:$0xff] }
 0x4d8   :  { %15783 = vst [vmem:[#allocation101_spill] sm:$0xff] %v13438_v1  ;;  %v2012_v56 = vadd.f32 %v2011_v60, %v11997_v25  ;;  %6772 = vmatmul.bf16.vlgmr.msra.gmra.mxu2 %v13438_v1  ;;  %v2075_v55 = vpop.f32.mrf.mxu0 }
 0x4d9   :  { %2874 = vst [vmem:[#allocation2 + $0x380] sm:$0xff] %v2746_v58  ;;  %v2076_v31 = vadd.f32 %v2075_v55, %v1747_v19  ;;  %v15791_v55 = vld [vmem:[#allocation48_spill] sm:$0xff] }
 0x4da   :  { %v2341_v43 = vadd.f32 %v13390_v29, %v2012_v56  ;;  %v1686_v29 = vadd.f32 %v15788_v62, %v1357_v30  ;;  %v3213_v56 = vpack.c.bf16 %v3149_v53, %v3149_v53  ;;  %v15792_v30 = vld [vmem:[#allocation49_spill] sm:$0xff] }
 0x4db   :  { %v2393_v24 = vmax.f32 %v2076_v31, 0.0  ;;  %v1688_v31 = vadd.f32 %v15791_v55, %v1359_v26 }
 0x4dc   :  { %v2605_v3 = vmax.f32 %v2341_v43, 0.0  ;;  %v2606_v17 = vmax.f32 %v1686_v29, 0.0 }
 0x4dd   :  { %v2641_v50 = vmax.f32 %v2392_v44, %v2393_v24  ;;  %v2608_v29 = vmax.f32 %v1688_v31, 0.0 }
 0x4de   :  { %v2747_v35 = vmax.f32 %v2604_v11, %v2605_v3  ;;  %v3280_v49 = vld [vmem:[#allocation2 + $0x22] ss:$2 sm:$0xff]  ;;  %v3408_v14 = vld [vmem:[#allocation2 + $0x23] ss:$2 sm:$0xff]  ;;  %v2396_v3 = vmax.f32 %v15792_v30, 0.0 }
 0x4df   :  { %2769 = vst [vmem:[#allocation2 + $0x38] sm:$0xff] %v2641_v50  ;;  %v2014_v23 = vpop.f32.mrf.mxu2  ;;  %v3664_v4 = vld [vmem:[#allocation2 + $0x24] ss:$2 sm:$0xff]  ;;  %v3792_v11 = vld [vmem:[#allocation2 + $0x25] ss:$2 sm:$0xff]  ;;  %v1362_v50 = vadd.f32 %v13168_v45, %v11235_v34  ;;  %v3533_v62 = vmax.f32 %v3280_v49, %v3408_v14 }
 0x4e0   :  { %2875 = vst [vmem:[#allocation2 + $0x388] sm:$0xff] %v2747_v35  ;;  %v2015_v2 = vadd.f32 %v2014_v23, %v11997_v25  ;;  %v2078_v47 = vpop.f32.mrf.mxu0  ;;  %v4048_v35 = vld [vmem:[#allocation2 + $0x26] ss:$2 sm:$0xff]  ;;  %v4176_v9 = vld [vmem:[#allocation2 + $0x27] ss:$2 sm:$0xff]  ;;  %v4877_v23 = vunpack.c.l.b16 %v3213_v56 }
 0x4e1   :  { %v2079_v32 = vadd.f32 %v2078_v47, %v1750_v46  ;;  %v3917_v47 = vmax.f32 %v3664_v4, %v3792_v11  ;;  %v15795_v49 = vld [vmem:[#allocation51_spill] sm:$0xff] }
 0x4e2   :  { %v2344_v21 = vadd.f32 %v13411_v59, %v2015_v2  ;;  %v1752_v59 = vadd.f32 %v15790_v22, %v11997_v25  ;;  %v2398_v14 = vmax.f32 %v15795_v49, 0.0 }
 0x4e3   :  { %v2395_v18 = vmax.f32 %v2079_v32, 0.0  ;;  %6603 = vmatmul.bf16.vlgmr.msra.gmra.mxu0 %v13456_v20  ;;  %v4301_v32 = vmax.f32 %v4048_v35, %v4176_v9 }
 0x4e4   :  { %v2607_v38 = vmax.f32 %v2344_v21, 0.0  ;;  %v13475_v21 = vpop.f32.mrf.mxu3 }
 0x4e5   :  { %v2642_v58 = vmax.f32 %v2394_v0, %v2395_v18  ;;  %v1691_v0 = vadd.f32 %v15793_v27, %v1362_v50 }
 0x4e6   :  { %v2748_v36 = vmax.f32 %v2606_v17, %v2607_v38  ;;  %v2898_v19 = vld [vmem:[#allocation2 + $0x30] ss:$2 sm:$0xff]  ;;  %v3026_v60 = vld [vmem:[#allocation2 + $0x31] ss:$2 sm:$0xff]  ;;  %v15794_v17 = vld [vmem:[#allocation86_spill] sm:$0xff] }
 0x4e7   :  { %2770 = vst [vmem:[#allocation2 + $0x40] sm:$0xff] %v2642_v58  ;;  %v2016_v63 = vpop.f32.mrf.mxu2  ;;  %v3150_v48 = vmax.f32 %v2898_v19, %v3026_v60  ;;  %v1755_v26 = vadd.f32 %v15794_v17, %v11997_v25 }
 0x4e8   :  { %2876 = vst [vmem:[#allocation2 + $0x390] sm:$0xff] %v2748_v36  ;;  %v2017_v41 = vadd.f32 %v2016_v63, %v11997_v25  ;;  %v2080_v43 = vpop.f32.mrf.mxu0  ;;  %v3597_v36 = vpack.c.bf16 %v3533_v62, %v3533_v62 }
 0x4e9   :  { %v2081_v44 = vadd.f32 %v2080_v43, %v1752_v59  ;;  %v3214_v24 = vpack.c.bf16 %v3150_v48, %v3150_v48  ;;  %v3981_v48 = vpack.c.bf16 %v3917_v47, %v3917_v47  ;;  %v4365_v43 = vpack.c.bf16 %v4301_v32, %v4301_v32 }
 0x4ea   :  { %v2346_v39 = vadd.f32 %v13427_v33, %v2017_v41  ;;  %v5069_v30 = vunpack.c.l.b16 %v3597_v36 }
 0x4eb   :  { %v2397_v46 = vmax.f32 %v2081_v44, 0.0  ;;  %v4878_v42 = vunpack.c.l.b16 %v3214_v24  ;;  %v2610_v44 = vmax.f32 %v1691_v0, 0.0  ;;  %v5261_v9 = vunpack.c.l.b16 %v3981_v48  ;;  %v15798_v0 = vld [vmem:[#allocation52_spill] sm:$0xff] }
 0x4ec   :  { %v2609_v2 = vmax.f32 %v2346_v39, 0.0  ;;  %v1364_v39 = vadd.f32 %v13175_v51, %v11235_v34  ;;  %v5453_v62 = vunpack.c.l.b16 %v4365_v43  ;;  %v2355_v51 = vpop.f32.mrf.mxu3 }
 0x4ed   :  { %v2643_v13 = vmax.f32 %v2396_v3, %v2397_v46  ;;  %v13473_v5 = vpack.c.b16 %v4878_v42, %v4877_v23 }
 0x4ee   :  { %v2749_v45 = vmax.f32 %v2608_v29, %v2609_v2  ;;  %v3282_v18 = vld [vmem:[#allocation2 + $0x32] ss:$2 sm:$0xff]  ;;  %v3410_v33 = vld [vmem:[#allocation2 + $0x33] ss:$2 sm:$0xff] }
 0x4ef   :  { %v3666_v53 = vld [vmem:[#allocation2 + $0x34] ss:$2 sm:$0xff]  ;;  %2771 = vst [vmem:[#allocation2 + $0x48] sm:$0xff] %v2643_v13  ;;  %v2019_v38 = vpop.f32.mrf.mxu2  ;;  %6270 = vmatmul.bf16.gmra.mxu1 %v13473_v5  ;;  %v3534_v58 = vmax.f32 %v3282_v18, %v3410_v33  ;;  %v3794_v19 = vld [vmem:[#allocation2 + $0x35] ss:$2 sm:$0xff] }
 0x4f0   :  { %v4050_v60 = vld [vmem:[#allocation2 + $0x36] ss:$2 sm:$0xff]  ;;  %2877 = vst [vmem:[#allocation2 + $0x398] sm:$0xff] %v2749_v45  ;;  %v2020_v22 = vadd.f32 %v2019_v38, %v11997_v25  ;;  %v2083_v59 = vpop.f32.mrf.mxu0  ;;  %v3918_v63 = vmax.f32 %v3666_v53, %v3794_v19  ;;  %v4178_v56 = vld [vmem:[#allocation2 + $0x37] ss:$2 sm:$0xff]  ;;  %v1693_v45 = vadd.f32 %v15798_v0, %v1364_v39  ;;  %v1367_v19 = vadd.f32 %v13184_v52, %v11235_v34 }
 0x4f1   :  { %v2084_v55 = vadd.f32 %v2083_v59, %v1755_v26  ;;  %v3598_v31 = vpack.c.bf16 %v3534_v58, %v3534_v58  ;;  %v4302_v41 = vmax.f32 %v4050_v60, %v4178_v56  ;;  %v15799_v26 = vld [vmem:[#allocation53_spill] sm:$0xff]  ;;  %v10661_v52 = vld [vmem:[%s15479_s3 + $0x74] sm:$0xf] }
 0x4f2   :  { %v2349_v24 = vadd.f32 %v13446_v54, %v2020_v22  ;;  %v3982_v4 = vpack.c.bf16 %v3918_v63, %v3918_v63  ;;  %v15796_v54 = vld [vmem:[#allocation87_spill] sm:$0xff]  ;;  %v2400_v38 = vmax.f32 %v15799_v26, 0.0  ;;  %v2612_v36 = vmax.f32 %v1693_v45, 0.0  ;;  %v15800_v63 = vld [vmem:[#allocation88_spill] sm:$0xff] }
 0x4f3   :  { %v2399_v11 = vmax.f32 %v2084_v55, 0.0  ;;  %v5070_v3 = vunpack.c.l.b16 %v3598_v31  ;;  %v4366_v50 = vpack.c.bf16 %v4302_v41, %v4302_v41  ;;  %v1757_v13 = vadd.f32 %v15796_v54, %v11997_v25  ;;  %v15801_v31 = vld [vmem:[#allocation54_spill] sm:$0xff]  ;;  %v15803_v54 = vld [vmem:[#allocation89_spill] sm:$0xff]  ;;  %v10269_v26 = vld [vmem:[%s15479_s3 + $0x270] sm:$0xf] }
 0x4f4   :  { %v2611_v35 = vmax.f32 %v2349_v24, 0.0  ;;  %v5262_v46 = vunpack.c.l.b16 %v3982_v4  ;;  %v1760_v48 = vadd.f32 %v15800_v63, %v11997_v25  ;;  %v1696_v41 = vadd.f32 %v15801_v31, %v1367_v19  ;;  %v10015_v24 = vld [vmem:[%s15479_s3 + $0x78] sm:$0xf0] }
 0x4f5   :  { %v2644_v23 = vmax.f32 %v2398_v14, %v2399_v11  ;;  %v13486_v42 = vpack.c.b16 %v5070_v3, %v5069_v30  ;;  %v5454_v29 = vunpack.c.l.b16 %v4366_v50  ;;  %v10018_v11 = vor.u32 %v10661_v52, %v10015_v24  ;;  %v15802_v30 = vld [vmem:[#allocation55_spill] sm:$0xff] }
 0x4f6   :  { %v2750_v2 = vmax.f32 %v2610_v44, %v2611_v35  ;;  %v13488_v47 = vpack.c.b16 %v5262_v46, %v5261_v9  ;;  %v2900_v55 = vld [vmem:[#allocation2 + $0x40] ss:$2 sm:$0xff]  ;;  %v3028_v49 = vld [vmem:[#allocation2 + $0x41] ss:$2 sm:$0xff]  ;;  %v13510_v44 = vpop.f32.mrf.mxu3  ;;  %v2402_v3 = vmax.f32 %v15802_v30, 0.0  ;;  %v2614_v35 = vmax.f32 %v1696_v41, 0.0 }
 0x4f7   :  { %2772 = vst [vmem:[#allocation2 + $0x50] sm:$0xff] %v2644_v23  ;;  %v2021_v32 = vpop.f32.mrf.mxu2  ;;  %6439 = vmatmul.bf16.gmra.mxu3 %v13486_v42  ;;  %v13493_v27 = vpack.c.b16 %v5454_v29, %v5453_v62  ;;  %v3151_v39 = vmax.f32 %v2900_v55, %v3028_v49  ;;  %v1369_v9 = vadd.f32 %v13191_v16, %v11235_v34 }
 0x4f8   :  { %2878 = vst [vmem:[#allocation2 + $0x3a0] sm:$0xff] %v2750_v2  ;;  %v2022_v18 = vadd.f32 %v2021_v32, %v11997_v25  ;;  %6608 = vmatmul.bf16.gmra.mxu0 %v13488_v47  ;;  %v2085_v33 = vpop.f32.mrf.mxu0  ;;  %7102 = vmatpush.bf16.msra.mxu3 %v10018_v11 }
 0x4f9   :  { %15797 = vst [vmem:[#allocation102_spill] sm:$0xff] %v13493_v27  ;;  %6777 = vmatmul.bf16.gmra.mxu2 %v13493_v27  ;;  %v2086_v53 = vadd.f32 %v2085_v33, %v1757_v13  ;;  %v1762_v13 = vadd.f32 %v15803_v54, %v11997_v25  ;;  %v3215_v0 = vpack.c.bf16 %v3151_v39, %v3151_v39  ;;  %v15804_v33 = vld [vmem:[#allocation56_spill] sm:$0xff] }
 0x4fa   :  { %v2351_v17 = vadd.f32 %v13461_v57, %v2022_v18 }
 0x4fb   :  { %v2401_v58 = vmax.f32 %v2086_v53, 0.0  ;;  %v1698_v53 = vadd.f32 %v15804_v33, %v1369_v9 }
 0x4fc   :  { %v2613_v60 = vmax.f32 %v2351_v17, 0.0 }
 0x4fd   :  { %v2645_v22 = vmax.f32 %v2400_v38, %v2401_v58  ;;  %v10726_v38 = vld [vmem:[%s15479_s3 + $0x274] sm:$0xf0] }
 0x4fe   :  { %v2751_v59 = vmax.f32 %v2612_v36, %v2613_v60  ;;  %v3284_v45 = vld [vmem:[#allocation2 + $0x42] ss:$2 sm:$0xff]  ;;  %v3412_v18 = vld [vmem:[#allocation2 + $0x43] ss:$2 sm:$0xff]  ;;  %v2360_v52 = vpop.f32.mrf.mxu3 }
 0x4ff   :  { %2773 = vst [vmem:[#allocation2 + $0x58] sm:$0xff] %v2645_v22  ;;  %v2024_v56 = vpop.f32.mrf.mxu2  ;;  %v3668_v19 = vld [vmem:[#allocation2 + $0x44] ss:$2 sm:$0xff]  ;;  %v3796_v60 = vld [vmem:[#allocation2 + $0x45] ss:$2 sm:$0xff]  ;;  %v10270_v22 = vor.u32 %v10726_v38, %v10269_v26  ;;  %v3535_v49 = vmax.f32 %v3284_v45, %v3412_v18 }
 0x500   :  { %2879 = vst [vmem:[#allocation2 + $0x3a8] sm:$0xff] %v2751_v59  ;;  %v2025_v57 = vadd.f32 %v2024_v56, %v11997_v25  ;;  %v2088_v43 = vpop.f32.mrf.mxu0  ;;  %v15805_v59 = vld [vmem:[#allocation57_spill] sm:$0xff]  ;;  %v4052_v55 = vld [vmem:[#allocation2 + $0x46] ss:$2 sm:$0xff]  ;;  %v4180_v31 = vld [vmem:[#allocation2 + $0x47] ss:$2 sm:$0xff] }
 0x501   :  { %v2089_v14 = vadd.f32 %v2088_v43, %v1760_v48  ;;  %v2404_v63 = vmax.f32 %v15805_v59, 0.0  ;;  %v1372_v48 = vadd.f32 %v13199_v28, %v11235_v34  ;;  %6933 = vmatpush.bf16.msra.mxu1 %v10270_v22  ;;  %v15808_v26 = vld [vmem:[#allocation59_spill] sm:$0xff] }
 0x502   :  { %v2354_v4 = vadd.f32 %v13475_v21, %v2025_v57  ;;  %v4879_v57 = vunpack.c.l.b16 %v3215_v0  ;;  %v2406_v38 = vmax.f32 %v15808_v26, 0.0 }
 0x503   :  { %v2403_v50 = vmax.f32 %v2089_v14, 0.0  ;;  %v2616_v14 = vmax.f32 %v1698_v53, 0.0 }
 0x504   :  { %v2615_v46 = vmax.f32 %v2354_v4, 0.0  ;;  %v3919_v4 = vmax.f32 %v3668_v19, %v3796_v60 }
 0x505   :  { %v2646_v23 = vmax.f32 %v2402_v3, %v2403_v50  ;;  %v4303_v3 = vmax.f32 %v4052_v55, %v4180_v31  ;;  %v15806_v50 = vld [vmem:[#allocation58_spill] sm:$0xff] }
 0x506   :  { %v2752_v62 = vmax.f32 %v2614_v35, %v2615_v46  ;;  %v2902_v29 = vld [vmem:[#allocation2 + $0x50] ss:$2 sm:$0xff]  ;;  %v3030_v2 = vld [vmem:[#allocation2 + $0x51] ss:$2 sm:$0xff]  ;;  %v1701_v39 = vadd.f32 %v15806_v50, %v1372_v48  ;;  %v15807_v46 = vld [vmem:[#allocation90_spill] sm:$0xff]  ;;  %v3983_v45 = vpack.c.bf16 %v3919_v4, %v3919_v4  ;;  %v1374_v48 = vadd.f32 %v13206_v37, %v11235_v34 }
 0x507   :  { %2774 = vst [vmem:[#allocation2 + $0x60] sm:$0xff] %v2646_v23  ;;  %v2026_v21 = vpop.f32.mrf.mxu2  ;;  %v3152_v32 = vmax.f32 %v2902_v29, %v3030_v2  ;;  %v1765_v23 = vadd.f32 %v15807_v46, %v11997_v25  ;;  %v3599_v2 = vpack.c.bf16 %v3535_v49, %v3535_v49  ;;  %v15811_v50 = vld [vmem:[#allocation60_spill] sm:$0xff]  ;;  %v15812_v46 = vld [vmem:[#allocation61_spill] sm:$0xff] }
 0x508   :  { %2880 = vst [vmem:[#allocation2 + $0x3b0] sm:$0xff] %v2752_v62  ;;  %v2027_v16 = vadd.f32 %v2026_v21, %v11997_v25  ;;  %v2090_v17 = vpop.f32.mrf.mxu0  ;;  %v5263_v55 = vunpack.c.l.b16 %v3983_v45 }
 0x509   :  { %v2091_v58 = vadd.f32 %v2090_v17, %v1762_v13  ;;  %v3216_v36 = vpack.c.bf16 %v3152_v32, %v3152_v32  ;;  %v4367_v17 = vpack.c.bf16 %v4303_v3, %v4303_v3  ;;  %v5071_v22 = vunpack.c.l.b16 %v3599_v2 }
 0x50a   :  { %v2356_v56 = vadd.f32 %v2355_v51, %v2027_v16  ;;  %v1377_v2 = vadd.f32 %v13214_v15, %v11235_v34  ;;  %v15815_v15 = vld [vmem:[#allocation63_spill] sm:$0xff] }
 0x50b   :  { %v2405_v41 = vmax.f32 %v2091_v58, 0.0  ;;  %v4880_v43 = vunpack.c.l.b16 %v3216_v36  ;;  %v2618_v58 = vmax.f32 %v1701_v39, 0.0  ;;  %v1703_v39 = vadd.f32 %v15811_v50, %v1374_v48 }
 0x50c   :  { %v2617_v24 = vmax.f32 %v2356_v56, 0.0 }
 0x50d   :  { %v2647_v11 = vmax.f32 %v2404_v63, %v2405_v41  ;;  %v13532_v30 = vpack.c.b16 %v4880_v43, %v4879_v57  ;;  %v5455_v43 = vunpack.c.l.b16 %v4367_v17 }
 0x50e   :  { %v2753_v35 = vmax.f32 %v2616_v14, %v2617_v24  ;;  %v3286_v28 = vld [vmem:[#allocation2 + $0x52] ss:$2 sm:$0xff]  ;;  %v3414_v51 = vld [vmem:[#allocation2 + $0x53] ss:$2 sm:$0xff]  ;;  %v2363_v14 = vpop.f32.mrf.mxu3 }
 0x50f   :  { %v3670_v9 = vld [vmem:[#allocation2 + $0x54] ss:$2 sm:$0xff]  ;;  %2775 = vst [vmem:[#allocation2 + $0x68] sm:$0xff] %v2647_v11  ;;  %v2029_v62 = vpop.f32.mrf.mxu2  ;;  %6275 = vmatmul.bf16.gmra.mxu1 %v13532_v30  ;;  %v3536_v29 = vmax.f32 %v3286_v28, %v3414_v51  ;;  %v3798_v54 = vld [vmem:[#allocation2 + $0x55] ss:$2 sm:$0xff] }
 0x510   :  { %v4054_v13 = vld [vmem:[#allocation2 + $0x56] ss:$2 sm:$0xff]  ;;  %2881 = vst [vmem:[#allocation2 + $0x3b8] sm:$0xff] %v2753_v35  ;;  %v2030_v21 = vadd.f32 %v2029_v62, %v11997_v25  ;;  %v2093_v32 = vpop.f32.mrf.mxu0  ;;  %v3920_v0 = vmax.f32 %v3670_v9, %v3798_v54  ;;  %v4182_v18 = vld [vmem:[#allocation2 + $0x57] ss:$2 sm:$0xff] }
 0x511   :  { %v2094_v33 = vadd.f32 %v2093_v32, %v1765_v23  ;;  %v3600_v53 = vpack.c.bf16 %v3536_v29, %v3536_v29  ;;  %v4304_v16 = vmax.f32 %v4054_v13, %v4182_v18  ;;  %v2408_v23 = vmax.f32 %v15812_v46, 0.0  ;;  %v15813_v32 = vld [vmem:[#allocation92_spill] sm:$0xff] }
 0x512   :  { %v2359_v36 = vadd.f32 %v13510_v44, %v2030_v21  ;;  %v3984_v19 = vpack.c.bf16 %v3920_v0, %v3920_v0  ;;  %v15809_v44 = vld [vmem:[#allocation91_spill] sm:$0xff]  ;;  %v2620_v29 = vmax.f32 %v1703_v39, 0.0  ;;  %v1770_v0 = vadd.f32 %v15813_v32, %v11997_v25 }
 0x513   :  { %v2407_v60 = vmax.f32 %v2094_v33, 0.0  ;;  %v5072_v59 = vunpack.c.l.b16 %v3600_v53  ;;  %v4368_v63 = vpack.c.bf16 %v4304_v16, %v4304_v16  ;;  %v1767_v11 = vadd.f32 %v15809_v44, %v11997_v25  ;;  %v15814_v33 = vld [vmem:[#allocation62_spill] sm:$0xff]  ;;  %v15817_v44 = vld [vmem:[#allocation64_spill] sm:$0xff] }
 0x514   :  { %v2619_v56 = vmax.f32 %v2359_v36, 0.0  ;;  %v5264_v31 = vunpack.c.l.b16 %v3984_v19  ;;  %v1706_v53 = vadd.f32 %v15814_v33, %v1377_v2  ;;  %v2410_v36 = vmax.f32 %v15815_v15, 0.0 }
 0x515   :  { %v2648_v41 = vmax.f32 %v2406_v38, %v2407_v60  ;;  %v13543_v57 = vpack.c.b16 %v5072_v59, %v5071_v22  ;;  %v5456_v49 = vunpack.c.l.b16 %v4368_v63  ;;  %v1379_v59 = vadd.f32 %v13221_v8, %v11235_v34 }
 0x516   :  { %v2754_v24 = vmax.f32 %v2618_v58, %v2619_v56  ;;  %v13545_v4 = vpack.c.b16 %v5264_v31, %v5263_v55  ;;  %v2365_v18 = vpop.f32.mrf.mxu3  ;;  %v2904_v17 = vld [vmem:[#allocation2 + $0x60] ss:$2 sm:$0xff]  ;;  %v3032_v26 = vld [vmem:[#allocation2 + $0x61] ss:$2 sm:$0xff]  ;;  %v2622_v22 = vmax.f32 %v1706_v53, 0.0 }
 0x517   :  { %2776 = vst [vmem:[#allocation2 + $0x70] sm:$0xff] %v2648_v41  ;;  %v2031_v3 = vpop.f32.mrf.mxu2  ;;  %6444 = vmatmul.bf16.gmra.mxu3 %v13543_v57  ;;  %v13550_v37 = vpack.c.b16 %v5456_v49, %v5455_v43  ;;  %v3153_v60 = vmax.f32 %v2904_v17, %v3032_v26  ;;  %v15816_v41 = vld [vmem:[#allocation93_spill] sm:$0xff] }
 0x518   :  { %2882 = vst [vmem:[#allocation2 + $0x3c0] sm:$0xff] %v2754_v24  ;;  %v2032_v35 = vadd.f32 %v2031_v3, %v11997_v25  ;;  %6613 = vmatmul.bf16.gmra.mxu0 %v13545_v4  ;;  %v2095_v28 = vpop.f32.mrf.mxu0  ;;  %v1772_v43 = vadd.f32 %v15816_v41, %v11997_v25 }
 0x519   :  { %15810 = vst [vmem:[#allocation100_spill] sm:$0xff] %v13550_v37  ;;  %6782 = vmatmul.bf16.gmra.mxu2 %v13550_v37  ;;  %v2096_v51 = vadd.f32 %v2095_v28, %v1767_v11  ;;  %v1708_v11 = vadd.f32 %v15817_v44, %v1379_v59 }
 0x51a   :  { %v2361_v9 = vadd.f32 %v2360_v52, %v2032_v35 }
 0x51b   :  { %v2409_v62 = vmax.f32 %v2096_v51, 0.0  ;;  %v2624_v33 = vmax.f32 %v1708_v11, 0.0 }
 0x51c   :  { %v2621_v54 = vmax.f32 %v2361_v9, 0.0 }
 0x51d   :  { %v2649_v13 = vmax.f32 %v2408_v23, %v2409_v62  ;;  %v15818_v23 = vld [vmem:[#allocation65_spill] sm:$0xff] }
 0x51e   :  { %v2755_v21 = vmax.f32 %v2620_v29, %v2621_v54  ;;  %v3288_v39 = vld [vmem:[#allocation2 + $0x62] ss:$2 sm:$0xff]  ;;  %v3416_v8 = vld [vmem:[#allocation2 + $0x63] ss:$2 sm:$0xff]  ;;  %v2368_v51 = vpop.f32.mrf.mxu3  ;;  %v2412_v62 = vmax.f32 %v15818_v23, 0.0  ;;  %v1382_v29 = vadd.f32 %v13229_v12, %v11235_v34 }
 0x51f   :  { %2777 = vst [vmem:[#allocation2 + $0x78] sm:$0xff] %v2649_v13  ;;  %v2034_v45 = vpop.f32.mrf.mxu2  ;;  %v3672_v9 = vld [vmem:[#allocation2 + $0x64] ss:$2 sm:$0xff]  ;;  %v3800_v46 = vld [vmem:[#allocation2 + $0x65] ss:$2 sm:$0xff] }
 0x520   :  { %2883 = vst [vmem:[#allocation2 + $0x3c8] sm:$0xff] %v2755_v21  ;;  %v2035_v52 = vadd.f32 %v2034_v45, %v11997_v25  ;;  %v2098_v16 = vpop.f32.mrf.mxu0  ;;  %v4056_v54 = vld [vmem:[#allocation2 + $0x66] ss:$2 sm:$0xff]  ;;  %v4184_v13 = vld [vmem:[#allocation2 + $0x67] ss:$2 sm:$0xff]  ;;  %v3537_v45 = vmax.f32 %v3288_v39, %v3416_v8 }
 0x521   :  { %v2099_v38 = vadd.f32 %v2098_v16, %v1770_v0  ;;  %v4305_v26 = vmax.f32 %v4056_v54, %v4184_v13 }
 0x522   :  { %v2364_v58 = vadd.f32 %v2363_v14, %v2035_v52  ;;  %v3217_v14 = vpack.c.bf16 %v3153_v60, %v3153_v60  ;;  %v3921_v52 = vmax.f32 %v3672_v9, %v3800_v46 }
 0x523   :  { %v2411_v19 = vmax.f32 %v2099_v38, 0.0  ;;  %v15819_v38 = vld [vmem:[#allocation66_spill] sm:$0xff]  ;;  %v4369_v11 = vpack.c.bf16 %v4305_v26, %v4305_v26 }
 0x524   :  { %v2623_v63 = vmax.f32 %v2364_v58, 0.0  ;;  %v4881_v32 = vunpack.c.l.b16 %v3217_v14  ;;  %v1711_v58 = vadd.f32 %v15819_v38, %v1382_v29  ;;  %v1384_v29 = vadd.f32 %v13242_v7, %v11235_v34  ;;  %v15824_v7 = vld [vmem:[#allocation68_spill] sm:$0xff] }
 0x525   :  { %v2650_v48 = vmax.f32 %v2410_v36, %v2411_v19 }
 0x526   :  { %v2756_v56 = vmax.f32 %v2622_v22, %v2623_v63  ;;  %v2906_v55 = vld [vmem:[#allocation2 + $0x70] ss:$2 sm:$0xff]  ;;  %v3034_v31 = vld [vmem:[#allocation2 + $0x71] ss:$2 sm:$0xff]  ;;  %v3601_v63 = vpack.c.bf16 %v3537_v45, %v3537_v45  ;;  %v2626_v39 = vmax.f32 %v1711_v58, 0.0  ;;  %v1713_v38 = vadd.f32 %v15824_v7, %v1384_v29 }
 0x527   :  { %2778 = vst [vmem:[#allocation2 + $0x80] sm:$0xff] %v2650_v48  ;;  %v2036_v49 = vpop.f32.mrf.mxu2  ;;  %v3154_v24 = vmax.f32 %v2906_v55, %v3034_v31  ;;  %v10261_v29 = vld [vmem:[%s15479_s3 + $0x260] sm:$0xf] }
 0x528   :  { %2884 = vst [vmem:[#allocation2 + $0x3d0] sm:$0xff] %v2756_v56  ;;  %v2037_v3 = vadd.f32 %v2036_v49, %v11997_v25  ;;  %v2100_v50 = vpop.f32.mrf.mxu0  ;;  %v5073_v9 = vunpack.c.l.b16 %v3601_v63  ;;  %v1387_v63 = vadd.f32 %v13253_v10, %v11235_v34  ;;  %v10659_v10 = vld [vmem:[%s15479_s3 + $0x64] sm:$0xf] }
 0x529   :  { %v2101_v35 = vadd.f32 %v2100_v50, %v1772_v43  ;;  %v3218_v28 = vpack.c.bf16 %v3154_v24, %v3154_v24  ;;  %v3985_v43 = vpack.c.bf16 %v3921_v52, %v3921_v52 }
 0x52a   :  { %v2366_v2 = vadd.f32 %v2365_v18, %v2037_v3  ;;  %v15820_v18 = vld [vmem:[#allocation94_spill] sm:$0xff]  ;;  %v15821_v3 = vld [vmem:[#allocation67_spill] sm:$0xff] }
 0x52b   :  { %v2413_v21 = vmax.f32 %v2101_v35, 0.0  ;;  %v4882_v0 = vunpack.c.l.b16 %v3218_v28  ;;  %v1775_v60 = vadd.f32 %v15820_v18, %v11997_v25  ;;  %v2414_v50 = vmax.f32 %v15821_v3, 0.0  ;;  %v15825_v18 = vld [vmem:[#allocation69_spill] sm:$0xff] }
 0x52c   :  { %v2625_v53 = vmax.f32 %v2366_v2, 0.0  ;;  %v5265_v54 = vunpack.c.l.b16 %v3985_v43 }
 0x52d   :  { %v2651_v16 = vmax.f32 %v2412_v62, %v2413_v21  ;;  %v13573_v17 = vpack.c.b16 %v4882_v0, %v4881_v32  ;;  %v2370_v62 = vpop.f32.mrf.mxu3  ;;  %v5457_v0 = vunpack.c.l.b16 %v4369_v11 }
 0x52e   :  { %v2757_v15 = vmax.f32 %v2624_v33, %v2625_v53  ;;  %v3290_v36 = vld [vmem:[#allocation2 + $0x72] ss:$2 sm:$0xff]  ;;  %v3418_v19 = vld [vmem:[#allocation2 + $0x73] ss:$2 sm:$0xff] }
 0x52f   :  { %v3674_v12 = vld [vmem:[#allocation2 + $0x74] ss:$2 sm:$0xff]  ;;  %2779 = vst [vmem:[#allocation2 + $0x88] sm:$0xff] %v2651_v16  ;;  %v2039_v22 = vpop.f32.mrf.mxu2  ;;  %6280 = vmatmul.bf16.gmra.mxu1 %v13573_v17  ;;  %v3538_v59 = vmax.f32 %v3290_v36, %v3418_v19  ;;  %v3802_v48 = vld [vmem:[#allocation2 + $0x75] ss:$2 sm:$0xff]  ;;  %v10792_v19 = vmov 0.0  }
 0x530   :  { %v4058_v56 = vld [vmem:[#allocation2 + $0x76] ss:$2 sm:$0xff]  ;;  %2885 = vst [vmem:[#allocation2 + $0x3d8] sm:$0xff] %v2757_v15  ;;  %v2040_v55 = vadd.f32 %v2039_v22, %v11997_v25  ;;  %v2103_v31 = vpop.f32.mrf.mxu0  ;;  %v3922_v41 = vmax.f32 %v3674_v12, %v3802_v48  ;;  %v4186_v49 = vld [vmem:[#allocation2 + $0x77] ss:$2 sm:$0xff] }
 0x531   :  { %v2104_v24 = vadd.f32 %v2103_v31, %v1775_v60  ;;  %v3602_v14 = vpack.c.bf16 %v3538_v59, %v3538_v59  ;;  %v4306_v44 = vmax.f32 %v4058_v56, %v4186_v49  ;;  %2890 = vst [vmem:[#allocation2 + $0x400] sm:$0xff] %v10792_v19  ;;  %v2416_v60 = vmax.f32 %v15825_v18, 0.0  ;;  %v15830_v19 = vld [vmem:[#allocation72_spill] sm:$0xff] }
 0x532   :  { %v2369_v8 = vadd.f32 %v2368_v51, %v2040_v55  ;;  %v3986_v35 = vpack.c.bf16 %v3922_v41, %v3922_v41  ;;  %v15822_v51 = vld [vmem:[#allocation95_spill] sm:$0xff]  ;;  %v2628_v59 = vmax.f32 %v1713_v38, 0.0  ;;  %v15826_v41 = vld [vmem:[#allocation96_spill] sm:$0xff] }
 0x533   :  { %v2415_v28 = vmax.f32 %v2104_v24, 0.0  ;;  %v5074_v46 = vunpack.c.l.b16 %v3602_v14  ;;  %v4370_v23 = vpack.c.bf16 %v4306_v44, %v4306_v44  ;;  %v1777_v52 = vadd.f32 %v15822_v51, %v11997_v25  ;;  %v15827_v14 = vld [vmem:[#allocation70_spill] sm:$0xff] }
 0x534   :  { %v2627_v2 = vmax.f32 %v2369_v8, 0.0  ;;  %v5266_v13 = vunpack.c.l.b16 %v3986_v35  ;;  %v1780_v43 = vadd.f32 %v15826_v41, %v11997_v25  ;;  %v1716_v44 = vadd.f32 %v15827_v14, %v1387_v63  ;;  %v10007_v8 = vld [vmem:[%s15479_s3 + $0x68] sm:$0xf0] }
 0x535   :  { %v2652_v21 = vmax.f32 %v2414_v50, %v2415_v28  ;;  %v13583_v32 = vpack.c.b16 %v5074_v46, %v5073_v9  ;;  %v5458_v45 = vunpack.c.l.b16 %v4370_v23  ;;  %v2373_v55 = vpop.f32.mrf.mxu3  ;;  %v10010_v28 = vor.u32 %v10659_v10, %v10007_v8  ;;  %v15828_v9 = vld [vmem:[#allocation71_spill] sm:$0xff] }
 0x536   :  { %v2758_v33 = vmax.f32 %v2626_v39, %v2627_v2  ;;  %v13585_v53 = vpack.c.b16 %v5266_v13, %v5265_v54  ;;  %v2908_v24 = vld [vmem:[#allocation2 + $0x80] ss:$2 sm:$0xff]  ;;  %v3036_v50 = vld [vmem:[#allocation2 + $0x81] ss:$2 sm:$0xff]  ;;  %v2418_v46 = vmax.f32 %v15828_v9, 0.0  ;;  %v2630_v54 = vmax.f32 %v1716_v44, 0.0 }
 0x537   :  { %2780 = vst [vmem:[#allocation2 + $0x90] sm:$0xff] %v2652_v21  ;;  %v2041_v16 = vpop.f32.mrf.mxu2  ;;  %6449 = vmatmul.bf16.gmra.mxu3 %v13583_v32  ;;  %v13590_v26 = vpack.c.b16 %v5458_v45, %v5457_v0  ;;  %v10724_v2 = vld [vmem:[%s15479_s3 + $0x264] sm:$0xf0]  ;;  %v1389_v13 = vadd.f32 %v13263_v6, %v11235_v34 }
 0x538   :  { %2886 = vst [vmem:[#allocation2 + $0x3e0] sm:$0xff] %v2758_v33  ;;  %v2042_v58 = vadd.f32 %v2041_v16, %v11997_v25  ;;  %6618 = vmatmul.bf16.gmra.mxu0 %v13585_v53  ;;  %v2105_v15 = vpop.f32.mrf.mxu0  ;;  %7103 = vmatpush.bf16.msra.mxu3 %v10010_v28  ;;  %v10262_v0 = vor.u32 %v10724_v2, %v10261_v29  ;;  %v15829_v16 = vld [vmem:[#allocation97_spill] sm:$0xff] }
 0x539   :  { %15823 = vst [vmem:[#allocation4_spill] sm:$0xff] %v13590_v26  ;;  %6787 = vmatmul.bf16.gmra.mxu2 %v13590_v26  ;;  %v2106_v36 = vadd.f32 %v2105_v15, %v1777_v52  ;;  %v1782_v7 = vadd.f32 %v15829_v16, %v11997_v25 }
 0x53a   :  { %v2371_v12 = vadd.f32 %v2370_v62, %v2042_v58  ;;  %v3155_v62 = vmax.f32 %v2908_v24, %v3036_v50  ;;  %6934 = vmatpush.bf16.msra.mxu1 %v10262_v0 }
 0x53b   :  { %v2417_v22 = vmax.f32 %v2106_v36, 0.0 }
 0x53c   :  { %v2629_v48 = vmax.f32 %v2371_v12, 0.0  ;;  %v3219_v36 = vpack.c.bf16 %v3155_v62, %v3155_v62  ;;  %v1718_v12 = vadd.f32 %v15830_v19, %v1389_v13 }
 0x53d   :  { %v2653_v56 = vmax.f32 %v2416_v60, %v2417_v22  ;;  %v2375_v58 = vpop.f32.mrf.mxu3 }
 0x53e   :  { %v2759_v31 = vmax.f32 %v2628_v59, %v2629_v48  ;;  %v3292_v18 = vld [vmem:[#allocation2 + $0x82] ss:$2 sm:$0xff]  ;;  %v3420_v60 = vld [vmem:[#allocation2 + $0x83] ss:$2 sm:$0xff]  ;;  %v4883_v24 = vunpack.c.l.b16 %v3219_v36 }
 0x53f   :  { %2781 = vst [vmem:[#allocation2 + $0x98] sm:$0xff] %v2653_v56  ;;  %v2044_v49 = vpop.f32.mrf.mxu2  ;;  %v3676_v63 = vld [vmem:[#allocation2 + $0x84] ss:$2 sm:$0xff]  ;;  %v3804_v48 = vld [vmem:[#allocation2 + $0x85] ss:$2 sm:$0xff]  ;;  %v15831_v56 = vld [vmem:[#allocation73_spill] sm:$0xff]  ;;  %v3539_v44 = vmax.f32 %v3292_v18, %v3420_v60 }
 0x540   :  { %2887 = vst [vmem:[#allocation2 + $0x3e8] sm:$0xff] %v2759_v31  ;;  %v2045_v11 = vadd.f32 %v2044_v49, %v11997_v25  ;;  %v2108_v3 = vpop.f32.mrf.mxu0  ;;  %v4060_v41 = vld [vmem:[#allocation2 + $0x86] ss:$2 sm:$0xff]  ;;  %v3923_v50 = vmax.f32 %v3676_v63, %v3804_v48 }
 0x541   :  { %v2109_v39 = vadd.f32 %v2108_v3, %v1780_v43  ;;  %v4188_v43 = vld [vmem:[#allocation2 + $0x87] ss:$2 sm:$0xff]  ;;  %v3603_v2 = vpack.c.bf16 %v3539_v44, %v3539_v44 }
 0x542   :  { %v2374_v35 = vadd.f32 %v2373_v55, %v2045_v11  ;;  %v2420_v55 = vmax.f32 %v15831_v56, 0.0  ;;  %v2632_v11 = vmax.f32 %v1718_v12, 0.0  ;;  %v4307_v8 = vmax.f32 %v4060_v41, %v4188_v43  ;;  %v15834_v41 = vld [vmem:[#allocation99_spill] sm:$0xff] }
 0x543   :  { %v2419_v23 = vmax.f32 %v2109_v39, 0.0  ;;  %v5075_v12 = vunpack.c.l.b16 %v3603_v2  ;;  %v1787_v43 = vadd.f32 %v15834_v41, %v11997_v25 }
 0x544   :  { %v2631_v21 = vmax.f32 %v2374_v35, 0.0 }
 0x545   :  { %v2654_v45 = vmax.f32 %v2418_v46, %v2419_v23  ;;  %v15832_v23 = vld [vmem:[#allocation98_spill] sm:$0xff] }
 0x546   :  { %v2760_v33 = vmax.f32 %v2630_v54, %v2631_v21  ;;  %v2910_v51 = vld [vmem:[#allocation2 + $0x90] ss:$2 sm:$0xff]  ;;  %v3038_v52 = vld [vmem:[#allocation2 + $0x91] ss:$2 sm:$0xff]  ;;  %v1785_v62 = vadd.f32 %v15832_v23, %v11997_v25 }
 0x547   :  { %2782 = vst [vmem:[#allocation2 + $0xa0] sm:$0xff] %v2654_v45  ;;  %v2046_v38 = vpop.f32.mrf.mxu2  ;;  %v3156_v15 = vmax.f32 %v2910_v51, %v3038_v52  ;;  %v3987_v45 = vpack.c.bf16 %v3923_v50, %v3923_v50  ;;  %v5851_v51 = vld [vmem:[%s15480_s4] sm:$0x3] }
 0x548   :  { %2888 = vst [vmem:[#allocation2 + $0x3f0] sm:$0xff] %v2760_v33  ;;  %v2047_v34 = vadd.f32 %v2046_v38, %v11997_v25  ;;  %v2110_v6 = vpop.f32.mrf.mxu0  ;;  %v4371_v38 = vpack.c.bf16 %v4307_v8, %v4307_v8  ;;  %v13632_v18 = vperm.slane %v5851_v51, 0 }
 0x549   :  { %v2111_v22 = vadd.f32 %v2110_v6, %v1782_v7  ;;  %v3220_v59 = vpack.c.bf16 %v3156_v15, %v3156_v15  ;;  %v5267_v60 = vunpack.c.l.b16 %v3987_v45 }
 0x54a   :  { %v2376_v31 = vadd.f32 %v2375_v58, %v2047_v34  ;;  %v15833_v58 = vld [vmem:[#allocation75_spill] sm:$0xff]  ;;  %v5459_v48 = vunpack.c.l.b16 %v4371_v38 }
 0x54b   :  { %v2421_v49 = vmax.f32 %v2111_v22, 0.0  ;;  %v4884_v14 = vunpack.c.l.b16 %v3220_v59  ;;  %v2422_v15 = vmax.f32 %v15833_v58, 0.0 }
 0x54c   :  { %v2633_v3 = vmax.f32 %v2376_v31, 0.0 }
 0x54d   :  { %v2655_v10 = vmax.f32 %v2420_v55, %v2421_v49  ;;  %v13623_v39 = vpack.c.b16 %v4884_v14, %v4883_v24  ;;  %v6266_v55 = vpop.f32.mrf.mxu1 }
 0x54e   :  { %v2761_v35 = vmax.f32 %v2632_v11, %v2633_v3  ;;  %v3294_v28 = vld [vmem:[#allocation2 + $0x92] ss:$2 sm:$0xff]  ;;  %v3422_v9 = vld [vmem:[#allocation2 + $0x93] ss:$2 sm:$0xff]  ;;  %v6267_v14 = vadd.f32 %v6266_v55, %v13632_v18 }
 0x54f   :  { %v3678_v46 = vld [vmem:[#allocation2 + $0x94] ss:$2 sm:$0xff]  ;;  %2783 = vst [vmem:[#allocation2 + $0xa8] sm:$0xff] %v2655_v10  ;;  %6285 = vmatmul.bf16.gmra.mxu1 %v13623_v39  ;;  %v3540_v29 = vmax.f32 %v3294_v28, %v3422_v9  ;;  %v3806_v54 = vld [vmem:[#allocation2 + $0x95] ss:$2 sm:$0xff] }
 0x550   :  { %v4062_v13 = vld [vmem:[#allocation2 + $0x96] ss:$2 sm:$0xff]  ;;  %2889 = vst [vmem:[#allocation2 + $0x3f8] sm:$0xff] %v2761_v35  ;;  %v2113_v21 = vpop.f32.mrf.mxu0  ;;  %v3924_v0 = vmax.f32 %v3678_v46, %v3806_v54  ;;  %v4190_v33 = vld [vmem:[#allocation2 + $0x97] ss:$2 sm:$0xff] }
 0x551   :  { %v2114_v52 = vadd.f32 %v2113_v21, %v1785_v62  ;;  %v3604_v16 = vpack.c.bf16 %v3540_v29, %v3540_v29  ;;  %v4308_v7 = vmax.f32 %v4062_v13, %v4190_v33  ;;  %v15836_v3 = vld [vmem:[#allocation77_spill] sm:$0xff] }
 0x552   :  { %v3988_v36 = vpack.c.bf16 %v3924_v0, %v3924_v0  ;;  %v2424_v50 = vmax.f32 %v15836_v3, 0.0 }
 0x553   :  { %v2423_v19 = vmax.f32 %v2114_v52, 0.0  ;;  %v5076_v34 = vunpack.c.l.b16 %v3604_v16  ;;  %v4372_v6 = vpack.c.bf16 %v4308_v7, %v4308_v7 }
 0x554   :  { %v5268_v22 = vunpack.c.l.b16 %v3988_v36 }
 0x555   :  { %v2656_v59 = vmax.f32 %v2422_v15, %v2423_v19  ;;  %v13634_v63 = vpack.c.b16 %v5076_v34, %v5075_v12  ;;  %v5460_v56 = vunpack.c.l.b16 %v4372_v6 }
 0x556   :  { %v13636_v31 = vpack.c.b16 %v5268_v22, %v5267_v60  ;;  %v2912_v28 = vld [vmem:[#allocation2 + $0xa0] ss:$2 sm:$0xff]  ;;  %v3040_v9 = vld [vmem:[#allocation2 + $0xa1] ss:$2 sm:$0xff] }
 0x557   :  { %2784 = vst [vmem:[#allocation2 + $0xb0] sm:$0xff] %v2656_v59  ;;  %6454 = vmatmul.bf16.gmra.mxu3 %v13634_v63  ;;  %v13641_v49 = vpack.c.b16 %v5460_v56, %v5459_v48  ;;  %v3157_v0 = vmax.f32 %v2912_v28, %v3040_v9  ;;  %v13651_v9 = vpop.f32.mrf.mxu1 }
 0x558   :  { %6623 = vmatmul.bf16.gmra.mxu0 %v13636_v31  ;;  %v2115_v24 = vpop.f32.mrf.mxu0  ;;  %15837 = vst [vmem:[#allocation8_spill] sm:$0xff] %v13651_v9 }
 0x559   :  { %15835 = vst [vmem:[#allocation6_spill] sm:$0xff] %v13641_v49  ;;  %6792 = vmatmul.bf16.gmra.mxu2 %v13641_v49  ;;  %v2116_v44 = vadd.f32 %v2115_v24, %v1787_v43  ;;  %v3221_v15 = vpack.c.bf16 %v3157_v0, %v3157_v0  ;;  %v3430_v0 = vld [vmem:[#allocation2 + $0xd3] ss:$2 sm:$0xff] }
 0x55a   :  { %v6435_v11 = vpop.f32.mrf.mxu3 }
 0x55b   :  { %v2425_v10 = vmax.f32 %v2116_v44, 0.0  ;;  %v6436_v8 = vadd.f32 %v6435_v11, %v6267_v14  ;;  %v6773_v21 = vpop.f32.mrf.mxu2  ;;  %v4885_v14 = vunpack.c.l.b16 %v3221_v15  ;;  %v3684_v15 = vld [vmem:[#allocation2 + $0xc4] ss:$2 sm:$0xff] }
 0x55d   :  { %v2657_v35 = vmax.f32 %v2424_v50, %v2425_v10 }
 0x55e   :  { %v3296_v46 = vld [vmem:[#allocation2 + $0xa2] ss:$2 sm:$0xff]  ;;  %v3424_v62 = vld [vmem:[#allocation2 + $0xa3] ss:$2 sm:$0xff] }
 0x55f   :  { %2785 = vst [vmem:[#allocation2 + $0xb8] sm:$0xff] %v2657_v35  ;;  %v3680_v29 = vld [vmem:[#allocation2 + $0xa4] ss:$2 sm:$0xff]  ;;  %v3808_v2 = vld [vmem:[#allocation2 + $0xa5] ss:$2 sm:$0xff]  ;;  %v3541_v45 = vmax.f32 %v3296_v46, %v3424_v62 }
 0x560   :  { %v6604_v25 = vpop.f32.mrf.mxu0  ;;  %v4064_v54 = vld [vmem:[#allocation2 + $0xa6] ss:$2 sm:$0xff]  ;;  %v4192_v13 = vld [vmem:[#allocation2 + $0xa7] ss:$2 sm:$0xff]  ;;  %v3925_v33 = vmax.f32 %v3680_v29, %v3808_v2 }
 0x561   :  { %v6605_v23 = vadd.f32 %v6604_v25, %v6436_v8  ;;  %v4309_v52 = vmax.f32 %v4064_v54, %v4192_v13  ;;  %v3605_v6 = vpack.c.bf16 %v3541_v45, %v3541_v45  ;;  %v2916_v62 = vld [vmem:[#allocation2 + $0xc0] ss:$2 sm:$0xff]  ;;  %v2918_v29 = vld [vmem:[#allocation2 + $0xd0] ss:$2 sm:$0xff]  ;;  %v3044_v2 = vld [vmem:[#allocation2 + $0xc1] ss:$2 sm:$0xff] }
 0x562   :  { %v3989_v22 = vpack.c.bf16 %v3925_v33, %v3925_v33  ;;  %v3046_v54 = vld [vmem:[#allocation2 + $0xd1] ss:$2 sm:$0xff]  ;;  %v3302_v13 = vld [vmem:[#allocation2 + $0xd2] ss:$2 sm:$0xff] }
 0x563   :  { %v13647_v51 = vadd.f32 %v6773_v21, %v6605_v23  ;;  %v4373_v41 = vpack.c.bf16 %v4309_v52, %v4309_v52  ;;  %v5077_v3 = vunpack.c.l.b16 %v3605_v6  ;;  %v3686_v45 = vld [vmem:[#allocation2 + $0xd4] ss:$2 sm:$0xff]  ;;  %v3814_v33 = vld [vmem:[#allocation2 + $0xd5] ss:$2 sm:$0xff] }
 0x564   :  { %v5269_v10 = vunpack.c.l.b16 %v3989_v22  ;;  %v3300_v52 = vld [vmem:[#allocation2 + $0xc2] ss:$2 sm:$0xff]  ;;  %v3159_v22 = vmax.f32 %v2916_v62, %v3044_v2 }
 0x565   :  { %v5461_v25 = vunpack.c.l.b16 %v4373_v41  ;;  %v4068_v6 = vld [vmem:[#allocation2 + $0xc6] ss:$2 sm:$0xff] }
 0x566   :  { %v2914_v16 = vld [vmem:[#allocation2 + $0xb0] ss:$2 sm:$0xff]  ;;  %v3042_v7 = vld [vmem:[#allocation2 + $0xb1] ss:$2 sm:$0xff] }
 0x567   :  { %v3298_v38 = vld [vmem:[#allocation2 + $0xb2] ss:$2 sm:$0xff]  ;;  %v3158_v58 = vmax.f32 %v2914_v16, %v3042_v7  ;;  %v3426_v36 = vld [vmem:[#allocation2 + $0xb3] ss:$2 sm:$0xff] }
 0x568   :  { %v3682_v19 = vld [vmem:[#allocation2 + $0xb4] ss:$2 sm:$0xff]  ;;  %v3810_v12 = vld [vmem:[#allocation2 + $0xb5] ss:$2 sm:$0xff]  ;;  %v3542_v34 = vmax.f32 %v3298_v38, %v3426_v36  ;;  %v3160_v38 = vmax.f32 %v2918_v29, %v3046_v54  ;;  %v3812_v36 = vld [vmem:[#allocation2 + $0xc5] ss:$2 sm:$0xff] }
 0x569   :  { %v3926_v60 = vmax.f32 %v3682_v19, %v3810_v12  ;;  %v4066_v59 = vld [vmem:[#allocation2 + $0xb6] ss:$2 sm:$0xff]  ;;  %v4194_v48 = vld [vmem:[#allocation2 + $0xb7] ss:$2 sm:$0xff]  ;;  %v3222_v56 = vpack.c.bf16 %v3158_v58, %v3158_v58  ;;  %v13663_v19 = vpop.f32.mrf.mxu3  ;;  %v3544_v12 = vmax.f32 %v3302_v13, %v3430_v0 }
 0x56a   :  { %v4310_v55 = vmax.f32 %v4066_v59, %v4194_v48  ;;  %v3606_v43 = vpack.c.bf16 %v3542_v34, %v3542_v34  ;;  %v4070_v16 = vld [vmem:[#allocation2 + $0xd6] ss:$2 sm:$0xff]  ;;  %v4198_v7 = vld [vmem:[#allocation2 + $0xd7] ss:$2 sm:$0xff]  ;;  %15839 = vst [vmem:[#allocation5_spill] sm:$0xff] %v13663_v19  ;;  %v3928_v34 = vmax.f32 %v3686_v45, %v3814_v33  ;;  %v13665_v48 = vpop.f32.mrf.mxu0  ;;  %v3224_v41 = vpack.c.bf16 %v3160_v38, %v3160_v38 }
 0x56b   :  { %v3990_v24 = vpack.c.bf16 %v3926_v60, %v3926_v60  ;;  %v4886_v44 = vunpack.c.l.b16 %v3222_v56  ;;  %v3428_v58 = vld [vmem:[#allocation2 + $0xc3] ss:$2 sm:$0xff]  ;;  %v4312_v59 = vmax.f32 %v4070_v16, %v4198_v7  ;;  %15840 = vst [vmem:[#allocation12_spill] sm:$0xff] %v13665_v48 }
 0x56c   :  { %v4374_v11 = vpack.c.bf16 %v4310_v55, %v4310_v55  ;;  %v5078_v50 = vunpack.c.l.b16 %v3606_v43  ;;  %v4196_v60 = vld [vmem:[#allocation2 + $0xc7] ss:$2 sm:$0xff]  ;;  %v3543_v56 = vmax.f32 %v3300_v52, %v3428_v58  ;;  %v3927_v55 = vmax.f32 %v3684_v15, %v3812_v36 }
 0x56d   :  { %v5270_v8 = vunpack.c.l.b16 %v3990_v24  ;;  %v13649_v35 = vpack.c.b16 %v4886_v44, %v4885_v14  ;;  %v4311_v43 = vmax.f32 %v4068_v6, %v4196_v60  ;;  %v13667_v24 = vpop.f32.mrf.mxu2  ;;  %v6271_v14 = vpop.f32.mrf.mxu1  ;;  %v3608_v44 = vpack.c.bf16 %v3544_v12, %v3544_v12  ;;  %v2922_v6 = vld [vmem:[#allocation2 + $0xf0] ss:$2 sm:$0xff]  ;;  %v3048_v60 = vld [vmem:[#allocation2 + $0xe1] ss:$2 sm:$0xff] }
 0x56e   :  { %v5462_v28 = vunpack.c.l.b16 %v4374_v11  ;;  %v13653_v46 = vpack.c.b16 %v5078_v50, %v5077_v3  ;;  %15841 = vst [vmem:[#allocation7_spill] sm:$0xff] %v13667_v24  ;;  %v3992_v11 = vpack.c.bf16 %v3928_v34, %v3928_v34  ;;  %v3223_v3 = vpack.c.bf16 %v3159_v22, %v3159_v22  ;;  %v2920_v34 = vld [vmem:[#allocation2 + $0xe0] ss:$2 sm:$0xff]  ;;  %v3050_v22 = vld [vmem:[#allocation2 + $0xf1] ss:$2 sm:$0xff] }
 0x56f   :  { %v13655_v23 = vpack.c.b16 %v5270_v8, %v5269_v10  ;;  %6290 = vmatmul.bf16.gmra.mxu1 %v13649_v35  ;;  %v4376_v50 = vpack.c.bf16 %v4312_v59, %v4312_v59  ;;  %v3607_v10 = vpack.c.bf16 %v3543_v56, %v3543_v56  ;;  %v3991_v8 = vpack.c.bf16 %v3927_v55, %v3927_v55  ;;  %v3306_v59 = vld [vmem:[#allocation2 + $0xf2] ss:$2 sm:$0xff] }
 0x570   :  { %v13658_v21 = vpack.c.b16 %v5462_v28, %v5461_v25  ;;  %6459 = vmatmul.bf16.gmra.mxu3 %v13653_v46  ;;  %v6272_v25 = vadd.f32 %v6271_v14, %v13632_v18  ;;  %v4888_v28 = vunpack.c.l.b16 %v3224_v41  ;;  %v4375_v62 = vpack.c.bf16 %v4311_v43, %v4311_v43  ;;  %v3304_v41 = vld [vmem:[#allocation2 + $0xe2] ss:$2 sm:$0xff]  ;;  %v3432_v43 = vld [vmem:[#allocation2 + $0xe3] ss:$2 sm:$0xff]  ;;  %v3434_v14 = vld [vmem:[#allocation2 + $0xf3] ss:$2 sm:$0xff] }
 0x571   :  { %6628 = vmatmul.bf16.gmra.mxu0 %v13655_v23  ;;  %v5080_v2 = vunpack.c.l.b16 %v3608_v44  ;;  %v5272_v54 = vunpack.c.l.b16 %v3992_v11  ;;  %v4887_v0 = vunpack.c.l.b16 %v3223_v3  ;;  %v5464_v45 = vunpack.c.l.b16 %v4376_v50  ;;  %v3690_v44 = vld [vmem:[#allocation2 + $0xf4] ss:$2 sm:$0xff]  ;;  %v3818_v11 = vld [vmem:[#allocation2 + $0xf5] ss:$2 sm:$0xff]  ;;  %v3688_v3 = vld [vmem:[#allocation2 + $0xe4] ss:$2 sm:$0xff] }
 0x572   :  { %15838 = vst [vmem:[#allocation10_spill] sm:$0xff] %v13658_v21  ;;  %6797 = vmatmul.bf16.gmra.mxu2 %v13658_v21  ;;  %v5079_v52 = vunpack.c.l.b16 %v3607_v10  ;;  %v5271_v16 = vunpack.c.l.b16 %v3991_v8  ;;  %v5463_v58 = vunpack.c.l.b16 %v4375_v62  ;;  %v4074_v50 = vld [vmem:[#allocation2 + $0xf6] ss:$2 sm:$0xff]  ;;  %v4202_v10 = vld [vmem:[#allocation2 + $0xf7] ss:$2 sm:$0xff]  ;;  %v3162_v8 = vmax.f32 %v2922_v6, %v3050_v22 }
 0x573   :  { %v13670_v38 = vpack.c.b16 %v4888_v28, %v4887_v0  ;;  %v10657_v28 = vld [vmem:[%s15479_s3 + $0x54] sm:$0xf]  ;;  %v9999_v62 = vld [vmem:[%s15479_s3 + $0x58] sm:$0xf0]  ;;  %v10253_v48 = vld [vmem:[%s15479_s3 + $0x250] sm:$0xf] }
 0x574   :  { %v13672_v36 = vpack.c.b16 %v5080_v2, %v5079_v52  ;;  %v13674_v12 = vpack.c.b16 %v5272_v54, %v5271_v16  ;;  %v13679_v55 = vpack.c.b16 %v5464_v45, %v5463_v58  ;;  %v3930_v2 = vmax.f32 %v3690_v44, %v3818_v11  ;;  %v4072_v54 = vld [vmem:[#allocation2 + $0xe6] ss:$2 sm:$0xff] }
 0x575   :  { %v6609_v33 = vpop.f32.mrf.mxu0  ;;  %v10002_v0 = vor.u32 %v10657_v28, %v9999_v62  ;;  %v3161_v45 = vmax.f32 %v2920_v34, %v3048_v60  ;;  %v3545_v52 = vmax.f32 %v3304_v41, %v3432_v43  ;;  %v13698_v62 = vpop.f32.mrf.mxu1 }
 0x576   :  { %15843 = vst [vmem:[#allocation9_spill] sm:$0xff] %v13679_v55  ;;  %v3994_v6 = vpack.c.bf16 %v3930_v2, %v3930_v2 }
 0x577   :  { %7104 = vmatpush.bf16.msra.mxu3 %v10002_v0  ;;  %v3225_v22 = vpack.c.bf16 %v3161_v45, %v3161_v45  ;;  %15844 = vst [vmem:[#allocation16_spill] sm:$0xff] %v13698_v62  ;;  %v3054_v0 = vld [vmem:[#allocation2 + $0x111] ss:$2 sm:$0xff]  ;;  %v3310_v45 = vld [vmem:[#allocation2 + $0x112] ss:$2 sm:$0xff] }
 0x578   :  { %v5274_v11 = vunpack.c.l.b16 %v3994_v6 }
 0x57a   :  { %v6440_v29 = vpop.f32.mrf.mxu3 }
 0x57b   :  { %v6441_v13 = vadd.f32 %v6440_v29, %v6272_v25  ;;  %v3816_v25 = vld [vmem:[#allocation2 + $0xe5] ss:$2 sm:$0xff]  ;;  %v3546_v29 = vmax.f32 %v3306_v59, %v3434_v14  ;;  %v10722_v59 = vld [vmem:[%s15479_s3 + $0x254] sm:$0xf0]  ;;  %v3609_v14 = vpack.c.bf16 %v3545_v52, %v3545_v52 }
 0x57c   :  { %v6778_v15 = vpop.f32.mrf.mxu2  ;;  %v3929_v16 = vmax.f32 %v3688_v3, %v3816_v25  ;;  %v10254_v60 = vor.u32 %v10722_v59, %v10253_v48  ;;  %v4889_v3 = vunpack.c.l.b16 %v3225_v22  ;;  %v2926_v48 = vld [vmem:[#allocation2 + $0x110] ss:$2 sm:$0xff]  ;;  %v3436_v22 = vld [vmem:[#allocation2 + $0x103] ss:$2 sm:$0xff] }
 0x57d   :  { %v6610_v7 = vadd.f32 %v6609_v33, %v6441_v13  ;;  %v4200_v13 = vld [vmem:[#allocation2 + $0xe7] ss:$2 sm:$0xff]  ;;  %v4314_v33 = vmax.f32 %v4074_v50, %v4202_v10  ;;  %v5081_v10 = vunpack.c.l.b16 %v3609_v14  ;;  %v3694_v52 = vld [vmem:[#allocation2 + $0x114] ss:$2 sm:$0xff]  ;;  %v3164_v6 = vmax.f32 %v2926_v48, %v3054_v0  ;;  %v3692_v59 = vld [vmem:[#allocation2 + $0x104] ss:$2 sm:$0xff] }
 0x57e   :  { %v4313_v58 = vmax.f32 %v4072_v54, %v4200_v13  ;;  %v3993_v34 = vpack.c.bf16 %v3929_v16, %v3929_v16  ;;  %6935 = vmatpush.bf16.msra.mxu1 %v10254_v60  ;;  %v2924_v54 = vld [vmem:[#allocation2 + $0x100] ss:$2 sm:$0xff]  ;;  %v3052_v13 = vld [vmem:[#allocation2 + $0x101] ss:$2 sm:$0xff] }
 0x57f   :  { %v13676_v56 = vadd.f32 %v6778_v15, %v6610_v7  ;;  %6295 = vmatmul.bf16.gmra.mxu1 %v13670_v38  ;;  %v3226_v7 = vpack.c.bf16 %v3162_v8, %v3162_v8  ;;  %v3610_v15 = vpack.c.bf16 %v3546_v29, %v3546_v29  ;;  %v4378_v24 = vpack.c.bf16 %v4314_v33, %v4314_v33  ;;  %v3822_v16 = vld [vmem:[#allocation2 + $0x115] ss:$2 sm:$0xff]  ;;  %v3820_v14 = vld [vmem:[#allocation2 + $0x105] ss:$2 sm:$0xff] }
 0x580   :  { %6464 = vmatmul.bf16.gmra.mxu3 %v13672_v36  ;;  %v4377_v43 = vpack.c.bf16 %v4313_v58, %v4313_v58  ;;  %v5273_v8 = vunpack.c.l.b16 %v3993_v34  ;;  %v4078_v58 = vld [vmem:[#allocation2 + $0x116] ss:$2 sm:$0xff] }
 0x581   :  { %15842 = vst [vmem:[#allocation14_spill] sm:$0xff] %v13676_v56  ;;  %6633 = vmatmul.bf16.gmra.mxu0 %v13674_v12  ;;  %v4890_v41 = vunpack.c.l.b16 %v3226_v7  ;;  %v5082_v44 = vunpack.c.l.b16 %v3610_v15  ;;  %v5466_v50 = vunpack.c.l.b16 %v4378_v24  ;;  %v3438_v24 = vld [vmem:[#allocation2 + $0x113] ss:$2 sm:$0xff]  ;;  %v3308_v7 = vld [vmem:[#allocation2 + $0x102] ss:$2 sm:$0xff] }
 0x582   :  { %6802 = vmatmul.bf16.gmra.mxu2 %v13679_v55  ;;  %v5465_v28 = vunpack.c.l.b16 %v4377_v43  ;;  %v13702_v2 = vpack.c.b16 %v5274_v11, %v5273_v8  ;;  %v4206_v15 = vld [vmem:[#allocation2 + $0x117] ss:$2 sm:$0xff]  ;;  %v13710_v34 = vpop.f32.mrf.mxu3  ;;  %v3548_v60 = vmax.f32 %v3310_v45, %v3438_v24  ;;  %v4076_v43 = vld [vmem:[#allocation2 + $0x106] ss:$2 sm:$0xff]  ;;  %v3163_v11 = vmax.f32 %v2924_v54, %v3052_v13 }
 0x583   :  { %v13696_v25 = vpack.c.b16 %v4890_v41, %v4889_v3  ;;  %v13700_v29 = vpack.c.b16 %v5082_v44, %v5081_v10  ;;  %15846 = vst [vmem:[#allocation18_spill] sm:$0xff] %v13710_v34  ;;  %v3932_v41 = vmax.f32 %v3694_v52, %v3822_v16  ;;  %v4204_v44 = vld [vmem:[#allocation2 + $0x107] ss:$2 sm:$0xff]  ;;  %v4316_v3 = vmax.f32 %v4078_v58, %v4206_v15 }
 0x584   :  { %v13705_v33 = vpack.c.b16 %v5466_v50, %v5465_v28  ;;  %v13712_v50 = vpop.f32.mrf.mxu0  ;;  %v3547_v10 = vmax.f32 %v3308_v7, %v3436_v22  ;;  %v3931_v8 = vmax.f32 %v3692_v59, %v3820_v14  ;;  %v3228_v28 = vpack.c.bf16 %v3164_v6, %v3164_v6  ;;  %v13714_v19 = vpop.f32.mrf.mxu2 }
 0x585   :  { %15847 = vst [vmem:[#allocation13_spill] sm:$0xff] %v13712_v50  ;;  %v4315_v62 = vmax.f32 %v4076_v43, %v4204_v44  ;;  %v3612_v0 = vpack.c.bf16 %v3548_v60, %v3548_v60  ;;  %v3996_v9 = vpack.c.bf16 %v3932_v41, %v3932_v41  ;;  %v4380_v55 = vpack.c.bf16 %v4316_v3, %v4316_v3 }
 0x586   :  { %15845 = vst [vmem:[#allocation11_spill] sm:$0xff] %v13705_v33  ;;  %v3611_v34 = vpack.c.bf16 %v3547_v10, %v3547_v10  ;;  %v3995_v45 = vpack.c.bf16 %v3931_v8, %v3931_v8  ;;  %v4892_v52 = vunpack.c.l.b16 %v3228_v28  ;;  %v2928_v10 = vld [vmem:[#allocation2 + $0x120] ss:$2 sm:$0xff]  ;;  %v3056_v8 = vld [vmem:[#allocation2 + $0x121] ss:$2 sm:$0xff] }
 0x587   :  { %15848 = vst [vmem:[#allocation20_spill] sm:$0xff] %v13714_v19  ;;  %v4379_v54 = vpack.c.bf16 %v4315_v62, %v4315_v62  ;;  %v5084_v16 = vunpack.c.l.b16 %v3612_v0  ;;  %v5276_v58 = vunpack.c.l.b16 %v3996_v9  ;;  %v5468_v6 = vunpack.c.l.b16 %v4380_v55  ;;  %v2930_v62 = vld [vmem:[#allocation2 + $0x130] ss:$2 sm:$0xff]  ;;  %v3058_v28 = vld [vmem:[#allocation2 + $0x131] ss:$2 sm:$0xff] }
 0x588   :  { %v5083_v59 = vunpack.c.l.b16 %v3611_v34  ;;  %v5275_v14 = vunpack.c.l.b16 %v3995_v45  ;;  %v3314_v9 = vld [vmem:[#allocation2 + $0x132] ss:$2 sm:$0xff]  ;;  %v3826_v0 = vld [vmem:[#allocation2 + $0x135] ss:$2 sm:$0xff]  ;;  %v3312_v45 = vld [vmem:[#allocation2 + $0x122] ss:$2 sm:$0xff] }
 0x589   :  { %v5467_v41 = vunpack.c.l.b16 %v4379_v54  ;;  %v3698_v34 = vld [vmem:[#allocation2 + $0x134] ss:$2 sm:$0xff]  ;;  %v3166_v54 = vmax.f32 %v2930_v62, %v3058_v28 }
 0x58a   :  { %v13721_v3 = vpack.c.b16 %v5276_v58, %v5275_v14  ;;  %v3824_v58 = vld [vmem:[#allocation2 + $0x125] ss:$2 sm:$0xff] }
 0x58b   :  { %v13726_v55 = vpack.c.b16 %v5468_v6, %v5467_v41  ;;  %v4080_v6 = vld [vmem:[#allocation2 + $0x126] ss:$2 sm:$0xff] }
 0x58c   :  { %v6276_v48 = vpop.f32.mrf.mxu1  ;;  %15849 = vst [vmem:[#allocation15_spill] sm:$0xff] %v13721_v3 }
 0x58d   :  { %v6277_v24 = vadd.f32 %v6276_v48, %v13632_v18  ;;  %15851 = vst [vmem:[#allocation17_spill] sm:$0xff] %v13726_v55 }
 0x58f   :  { %6300 = vmatmul.bf16.gmra.mxu1 %v13696_v25 }
 0x590   :  { %6469 = vmatmul.bf16.gmra.mxu3 %v13700_v29 }
 0x591   :  { %6638 = vmatmul.bf16.gmra.mxu0 %v13702_v2 }
 0x592   :  { %6807 = vmatmul.bf16.gmra.mxu2 %v13705_v33  ;;  %v3227_v33 = vpack.c.bf16 %v3163_v11, %v3163_v11  ;;  %v13719_v11 = vpack.c.b16 %v5084_v16, %v5083_v59  ;;  %v3696_v16 = vld [vmem:[#allocation2 + $0x124] ss:$2 sm:$0xff]  ;;  %v3165_v59 = vmax.f32 %v2928_v10, %v3056_v8 }
 0x593   :  { %v3933_v41 = vmax.f32 %v3696_v16, %v3824_v58  ;;  %v3060_v16 = vld [vmem:[#allocation2 + $0x141] ss:$2 sm:$0xff]  ;;  %v3062_v58 = vld [vmem:[#allocation2 + $0x151] ss:$2 sm:$0xff] }
 0x594   :  { %v4891_v15 = vunpack.c.l.b16 %v3227_v33  ;;  %v3442_v33 = vld [vmem:[#allocation2 + $0x133] ss:$2 sm:$0xff]  ;;  %v3229_v49 = vpack.c.bf16 %v3165_v59, %v3165_v59 }
 0x595   :  { %v6614_v22 = vpop.f32.mrf.mxu0 }
 0x596   :  { %v13717_v60 = vpack.c.b16 %v4892_v52, %v4891_v15  ;;  %v4210_v52 = vld [vmem:[#allocation2 + $0x137] ss:$2 sm:$0xff]  ;;  %v3934_v15 = vmax.f32 %v3698_v34, %v3826_v0 }
 0x598   :  { %v3998_v21 = vpack.c.bf16 %v3934_v15, %v3934_v15  ;;  %v3700_v15 = vld [vmem:[#allocation2 + $0x144] ss:$2 sm:$0xff] }
 0x59a   :  { %v6445_v13 = vpop.f32.mrf.mxu3  ;;  %v5278_v1 = vunpack.c.l.b16 %v3998_v21  ;;  %v3830_v21 = vld [vmem:[#allocation2 + $0x155] ss:$2 sm:$0xff] }
 0x59b   :  { %v6446_v7 = vadd.f32 %v6445_v13, %v6277_v24  ;;  %v4082_v24 = vld [vmem:[#allocation2 + $0x136] ss:$2 sm:$0xff]  ;;  %v3440_v13 = vld [vmem:[#allocation2 + $0x123] ss:$2 sm:$0xff] }
 0x59c   :  { %v6783_v44 = vpop.f32.mrf.mxu2  ;;  %v4318_v14 = vmax.f32 %v4082_v24, %v4210_v52 }
 0x59d   :  { %v6615_v43 = vadd.f32 %v6614_v22, %v6446_v7  ;;  %v3550_v7 = vmax.f32 %v3314_v9, %v3442_v33  ;;  %v4208_v22 = vld [vmem:[#allocation2 + $0x127] ss:$2 sm:$0xff]  ;;  %v4893_v9 = vunpack.c.l.b16 %v3229_v49 }
 0x59e   :  { %v4317_v19 = vmax.f32 %v4080_v6, %v4208_v22  ;;  %v4382_v26 = vpack.c.bf16 %v4318_v14, %v4318_v14  ;;  %v3828_v6 = vld [vmem:[#allocation2 + $0x145] ss:$2 sm:$0xff] }
 0x59f   :  { %v13723_v48 = vadd.f32 %v6783_v44, %v6615_v43  ;;  %6305 = vmatmul.bf16.gmra.mxu1 %v13717_v60  ;;  %v3549_v43 = vmax.f32 %v3312_v45, %v3440_v13  ;;  %v3230_v44 = vpack.c.bf16 %v3166_v54, %v3166_v54  ;;  %v3614_v50 = vpack.c.bf16 %v3550_v7, %v3550_v7  ;;  %v13733_v45 = vpop.f32.mrf.mxu1  ;;  %v2932_v54 = vld [vmem:[#allocation2 + $0x140] ss:$2 sm:$0xff]  ;;  %v2934_v13 = vld [vmem:[#allocation2 + $0x150] ss:$2 sm:$0xff]  ;;  %v3444_v7 = vld [vmem:[#allocation2 + $0x143] ss:$2 sm:$0xff] }
 0x5a0   :  { %6474 = vmatmul.bf16.gmra.mxu3 %v13719_v11  ;;  %v4381_v28 = vpack.c.bf16 %v4317_v19, %v4317_v19  ;;  %v5470_v33 = vunpack.c.l.b16 %v4382_v26  ;;  %15853 = vst [vmem:[#allocation22_spill] sm:$0xff] %v13733_v45  ;;  %v3318_v19 = vld [vmem:[#allocation2 + $0x152] ss:$2 sm:$0xff] }
 0x5a1   :  { %15850 = vst [vmem:[#allocation24_spill] sm:$0xff] %v13723_v48  ;;  %6643 = vmatmul.bf16.gmra.mxu0 %v13721_v3  ;;  %v3613_v37 = vpack.c.bf16 %v3549_v43, %v3549_v43  ;;  %v4894_v62 = vunpack.c.l.b16 %v3230_v44  ;;  %v5086_v27 = vunpack.c.l.b16 %v3614_v50  ;;  %v3702_v26 = vld [vmem:[#allocation2 + $0x154] ss:$2 sm:$0xff]  ;;  %v3167_v44 = vmax.f32 %v2932_v54, %v3060_v16 }
 0x5a2   :  { %6812 = vmatmul.bf16.gmra.mxu2 %v13726_v55  ;;  %v3997_v55 = vpack.c.bf16 %v3933_v41, %v3933_v41  ;;  %v5469_v8 = vunpack.c.l.b16 %v4381_v28  ;;  %v4086_v50 = vld [vmem:[#allocation2 + $0x156] ss:$2 sm:$0xff]  ;;  %v13745_v22 = vpop.f32.mrf.mxu3  ;;  %v3936_v14 = vmax.f32 %v3702_v26, %v3830_v21  ;;  %v4084_v43 = vld [vmem:[#allocation2 + $0x146] ss:$2 sm:$0xff]  ;;  %v4212_v41 = vld [vmem:[#allocation2 + $0x147] ss:$2 sm:$0xff]  ;;  %v13747_v28 = vpop.f32.mrf.mxu0 }
 0x5a3   :  { %v5085_v34 = vunpack.c.l.b16 %v3613_v37  ;;  %v13731_v10 = vpack.c.b16 %v4894_v62, %v4893_v9  ;;  %v3446_v37 = vld [vmem:[#allocation2 + $0x153] ss:$2 sm:$0xff]  ;;  %15857 = vst [vmem:[#allocation74_spill] sm:$0xff] %v13745_v22 }
 0x5a4   :  { %v5277_v0 = vunpack.c.l.b16 %v3997_v55  ;;  %v13740_v49 = vpack.c.b16 %v5470_v33, %v5469_v8  ;;  %v3168_v55 = vmax.f32 %v2934_v13, %v3062_v58  ;;  %v3552_v59 = vmax.f32 %v3318_v19, %v3446_v37  ;;  %15858 = vst [vmem:[#allocation26_spill] sm:$0xff] %v13747_v28  ;;  %v13749_v8 = vpop.f32.mrf.mxu2 }
 0x5a5   :  { %15852 = vst [vmem:[#allocation29_spill] sm:$0xff] %v13731_v10  ;;  %v13735_v24 = vpack.c.b16 %v5086_v27, %v5085_v34  ;;  %v3316_v27 = vld [vmem:[#allocation2 + $0x142] ss:$2 sm:$0xff]  ;;  %v3935_v33 = vmax.f32 %v3700_v15, %v3828_v6  ;;  %v4000_v45 = vpack.c.bf16 %v3936_v14, %v3936_v14 }
 0x5a6   :  { %v13737_v52 = vpack.c.b16 %v5278_v1, %v5277_v0  ;;  %15856 = vst [vmem:[#allocation35_spill] sm:$0xff] %v13740_v49  ;;  %v4214_v1 = vld [vmem:[#allocation2 + $0x157] ss:$2 sm:$0xff]  ;;  %v3551_v9 = vmax.f32 %v3316_v27, %v3444_v7  ;;  %v3232_v34 = vpack.c.bf16 %v3168_v55, %v3168_v55  ;;  %v4319_v0 = vmax.f32 %v4084_v43, %v4212_v41 }
 0x5a7   :  { %15854 = vst [vmem:[#allocation19_spill] sm:$0xff] %v13735_v24  ;;  %v4320_v62 = vmax.f32 %v4086_v50, %v4214_v1  ;;  %v3616_v58 = vpack.c.bf16 %v3552_v59, %v3552_v59  ;;  %v3999_v19 = vpack.c.bf16 %v3935_v33, %v3935_v33  ;;  %v5280_v50 = vunpack.c.l.b16 %v4000_v45  ;;  %v2938_v33 = vld [vmem:[#allocation2 + $0x170] ss:$2 sm:$0xff] }
 0x5a8   :  { %15855 = vst [vmem:[#allocation23_spill] sm:$0xff] %v13737_v52  ;;  %v3615_v22 = vpack.c.bf16 %v3551_v9, %v3551_v9  ;;  %v4896_v26 = vunpack.c.l.b16 %v3232_v34  ;;  %v4383_v54 = vpack.c.bf16 %v4319_v0, %v4319_v0  ;;  %v2936_v9 = vld [vmem:[#allocation2 + $0x160] ss:$2 sm:$0xff]  ;;  %v3064_v34 = vld [vmem:[#allocation2 + $0x161] ss:$2 sm:$0xff] }
 0x5a9   :  { %15859 = vst [vmem:[#allocation27_spill] sm:$0xff] %v13749_v8  ;;  %v4384_v48 = vpack.c.bf16 %v4320_v62, %v4320_v62  ;;  %v5088_v21 = vunpack.c.l.b16 %v3616_v58  ;;  %v5279_v6 = vunpack.c.l.b16 %v3999_v19  ;;  %v3066_v0 = vld [vmem:[#allocation2 + $0x171] ss:$2 sm:$0xff]  ;;  %v3322_v45 = vld [vmem:[#allocation2 + $0x172] ss:$2 sm:$0xff] }
 0x5aa   :  { %v5087_v15 = vunpack.c.l.b16 %v3615_v22  ;;  %v5471_v14 = vunpack.c.l.b16 %v4383_v54  ;;  %v3448_v22 = vld [vmem:[#allocation2 + $0x163] ss:$2 sm:$0xff]  ;;  %v3450_v58 = vld [vmem:[#allocation2 + $0x173] ss:$2 sm:$0xff]  ;;  %v3706_v19 = vld [vmem:[#allocation2 + $0x174] ss:$2 sm:$0xff] }
 0x5ab   :  { %v5472_v55 = vunpack.c.l.b16 %v4384_v48  ;;  %v13756_v62 = vpack.c.b16 %v5280_v50, %v5279_v6  ;;  %v4090_v54 = vld [vmem:[#allocation2 + $0x176] ss:$2 sm:$0xff]  ;;  %v3832_v50 = vld [vmem:[#allocation2 + $0x165] ss:$2 sm:$0xff] }
 0x5ac   :  { %v6281_v13 = vpop.f32.mrf.mxu1  ;;  %v4216_v6 = vld [vmem:[#allocation2 + $0x167] ss:$2 sm:$0xff] }
 0x5ad   :  { %v6282_v37 = vadd.f32 %v6281_v13, %v13632_v18  ;;  %15862 = vst [vmem:[#allocation28_spill] sm:$0xff] %v13756_v62  ;;  %v13761_v48 = vpack.c.b16 %v5472_v55, %v5471_v14  ;;  %v3554_v55 = vmax.f32 %v3322_v45, %v3450_v58  ;;  %v3169_v14 = vmax.f32 %v2936_v9, %v3064_v34  ;;  %v10720_v45 = vld [vmem:[%s15479_s3 + $0x244] sm:$0xf0] }
 0x5af   :  { %6310 = vmatmul.bf16.gmra.mxu1 %v13731_v10  ;;  %15864 = vst [vmem:[#allocation78_spill] sm:$0xff] %v13761_v48 }
 0x5b0   :  { %6479 = vmatmul.bf16.gmra.mxu3 %v13735_v24 }
 0x5b1   :  { %6648 = vmatmul.bf16.gmra.mxu0 %v13737_v52 }
 0x5b2   :  { %6817 = vmatmul.bf16.gmra.mxu2 %v13740_v49  ;;  %v3231_v49 = vpack.c.bf16 %v3167_v44, %v3167_v44  ;;  %v13754_v44 = vpack.c.b16 %v5088_v21, %v5087_v15  ;;  %v3170_v21 = vmax.f32 %v2938_v33, %v3066_v0  ;;  %v4088_v15 = vld [vmem:[#allocation2 + $0x166] ss:$2 sm:$0xff] }
 0x5b3   :  { %v4321_v0 = vmax.f32 %v4088_v15, %v4216_v6  ;;  %v3070_v15 = vld [vmem:[#allocation2 + $0x191] ss:$2 sm:$0xff] }
 0x5b4   :  { %v4895_v1 = vunpack.c.l.b16 %v3231_v49  ;;  %15861 = vst [vmem:[#allocation76_spill] sm:$0xff] %v13754_v44  ;;  %v3320_v49 = vld [vmem:[#allocation2 + $0x162] ss:$2 sm:$0xff]  ;;  %v3234_v33 = vpack.c.bf16 %v3170_v21, %v3170_v21  ;;  %v3838_v6 = vld [vmem:[#allocation2 + $0x195] ss:$2 sm:$0xff] }
 0x5b5   :  { %v6619_v7 = vpop.f32.mrf.mxu0  ;;  %v3553_v8 = vmax.f32 %v3320_v49, %v3448_v22  ;;  %v4385_v22 = vpack.c.bf16 %v4321_v0, %v4321_v0  ;;  %v3452_v0 = vld [vmem:[#allocation2 + $0x183] ss:$2 sm:$0xff] }
 0x5b6   :  { %v13752_v59 = vpack.c.b16 %v4896_v26, %v4895_v1  ;;  %v3704_v26 = vld [vmem:[#allocation2 + $0x164] ss:$2 sm:$0xff]  ;;  %v4898_v49 = vunpack.c.l.b16 %v3234_v33 }
 0x5b7   :  { %v9991_v1 = vld [vmem:[%s15479_s3 + $0x48] sm:$0xf0]  ;;  %v3937_v28 = vmax.f32 %v3704_v26, %v3832_v50  ;;  %v3617_v58 = vpack.c.bf16 %v3553_v8, %v3553_v8  ;;  %v2942_v8 = vld [vmem:[#allocation2 + $0x190] ss:$2 sm:$0xff] }
 0x5b8   :  { %15860 = vst [vmem:[#allocation21_spill] sm:$0xff] %v13752_v59  ;;  %v3172_v33 = vmax.f32 %v2942_v8, %v3070_v15 }
 0x5b9   :  { %v4001_v9 = vpack.c.bf16 %v3937_v28, %v3937_v28  ;;  %v5089_v21 = vunpack.c.l.b16 %v3617_v58  ;;  %v2940_v28 = vld [vmem:[#allocation2 + $0x180] ss:$2 sm:$0xff]  ;;  %v3836_v58 = vld [vmem:[#allocation2 + $0x185] ss:$2 sm:$0xff] }
 0x5ba   :  { %v6450_v16 = vpop.f32.mrf.mxu3 }
 0x5bb   :  { %v6451_v27 = vadd.f32 %v6450_v16, %v6282_v37  ;;  %v3834_v37 = vld [vmem:[#allocation2 + $0x175] ss:$2 sm:$0xff]  ;;  %v5281_v50 = vunpack.c.l.b16 %v4001_v9 }
 0x5bc   :  { %v6788_v41 = vpop.f32.mrf.mxu2  ;;  %v4218_v16 = vld [vmem:[#allocation2 + $0x177] ss:$2 sm:$0xff] }
 0x5bd   :  { %v6620_v43 = vadd.f32 %v6619_v7, %v6451_v27  ;;  %v10655_v27 = vld [vmem:[%s15479_s3 + $0x44] sm:$0xf]  ;;  %v3938_v7 = vmax.f32 %v3706_v19, %v3834_v37  ;;  %v13792_v9 = vpop.f32.mrf.mxu0 }
 0x5be   :  { %15870 = vst [vmem:[#allocation37_spill] sm:$0xff] %v13792_v9 }
 0x5bf   :  { %v13758_v13 = vadd.f32 %v6788_v41, %v6620_v43  ;;  %6315 = vmatmul.bf16.gmra.mxu1 %v13752_v59  ;;  %v9994_v43 = vor.u32 %v10655_v27, %v9991_v1  ;;  %v4322_v41 = vmax.f32 %v4090_v54, %v4218_v16  ;;  %v10245_v59 = vld [vmem:[%s15479_s3 + $0x240] sm:$0xf]  ;;  %v13778_v16 = vpop.f32.mrf.mxu1  ;;  %v5473_v1 = vunpack.c.l.b16 %v4385_v22 }
 0x5c0   :  { %6484 = vmatmul.bf16.gmra.mxu3 %v13754_v44  ;;  %v10246_v34 = vor.u32 %v10720_v45, %v10245_v59  ;;  %15865 = vst [vmem:[#allocation32_spill] sm:$0xff] %v13778_v16  ;;  %v3068_v59 = vld [vmem:[#allocation2 + $0x181] ss:$2 sm:$0xff]  ;;  %v3708_v45 = vld [vmem:[#allocation2 + $0x184] ss:$2 sm:$0xff] }
 0x5c1   :  { %15863 = vst [vmem:[#allocation31_spill] sm:$0xff] %v13758_v13  ;;  %6653 = vmatmul.bf16.gmra.mxu0 %v13756_v62  ;;  %7105 = vmatpush.bf16.msra.mxu3 %v9994_v43  ;;  %v4002_v13 = vpack.c.bf16 %v3938_v7, %v3938_v7  ;;  %v3233_v62 = vpack.c.bf16 %v3169_v14, %v3169_v14  ;;  %v3324_v43 = vld [vmem:[#allocation2 + $0x182] ss:$2 sm:$0xff] }
 0x5c2   :  { %6822 = vmatmul.bf16.gmra.mxu2 %v13761_v48  ;;  %v3618_v48 = vpack.c.bf16 %v3554_v55, %v3554_v55  ;;  %v4386_v44 = vpack.c.bf16 %v4322_v41, %v4322_v41  ;;  %6936 = vmatpush.bf16.msra.mxu1 %v10246_v34  ;;  %v4094_v14 = vld [vmem:[#allocation2 + $0x196] ss:$2 sm:$0xff]  ;;  %v4222_v41 = vld [vmem:[#allocation2 + $0x197] ss:$2 sm:$0xff]  ;;  %v13794_v34 = vpop.f32.mrf.mxu3  ;;  %v3939_v16 = vmax.f32 %v3708_v45, %v3836_v58 }
 0x5c3   :  { %v5282_v37 = vunpack.c.l.b16 %v4002_v13  ;;  %v4897_v26 = vunpack.c.l.b16 %v3233_v62  ;;  %v3710_v13 = vld [vmem:[#allocation2 + $0x194] ss:$2 sm:$0xff]  ;;  %15871 = vst [vmem:[#allocation80_spill] sm:$0xff] %v13794_v34 }
 0x5c4   :  { %v5090_v19 = vunpack.c.l.b16 %v3618_v48  ;;  %v5474_v54 = vunpack.c.l.b16 %v4386_v44  ;;  %v3326_v48 = vld [vmem:[#allocation2 + $0x192] ss:$2 sm:$0xff]  ;;  %v3454_v44 = vld [vmem:[#allocation2 + $0x193] ss:$2 sm:$0xff]  ;;  %v3940_v22 = vmax.f32 %v3710_v13, %v3838_v6  ;;  %v4003_v52 = vpack.c.bf16 %v3939_v16, %v3939_v16 }
 0x5c5   :  { %v13780_v27 = vpack.c.b16 %v4898_v49, %v4897_v26  ;;  %v13784_v7 = vpack.c.b16 %v5282_v37, %v5281_v50  ;;  %v3556_v49 = vmax.f32 %v3326_v48, %v3454_v44  ;;  %v4220_v37 = vld [vmem:[#allocation2 + $0x187] ss:$2 sm:$0xff]  ;;  %v3171_v26 = vmax.f32 %v2940_v28, %v3068_v59 }
 0x5c6   :  { %v13782_v55 = vpack.c.b16 %v5090_v19, %v5089_v21  ;;  %v13787_v62 = vpack.c.b16 %v5474_v54, %v5473_v1  ;;  %v4092_v19 = vld [vmem:[#allocation2 + $0x186] ss:$2 sm:$0xff]  ;;  %v4324_v54 = vmax.f32 %v4094_v14, %v4222_v41  ;;  %v13796_v21 = vpop.f32.mrf.mxu2  ;;  %v3555_v1 = vmax.f32 %v3324_v43, %v3452_v0 }
 0x5c7   :  { %15866 = vst [vmem:[#allocation33_spill] sm:$0xff] %v13780_v27  ;;  %v4323_v8 = vmax.f32 %v4092_v19, %v4220_v37  ;;  %v3620_v15 = vpack.c.bf16 %v3556_v49, %v3556_v49  ;;  %v5283_v45 = vunpack.c.l.b16 %v4003_v52  ;;  %v3458_v52 = vld [vmem:[#allocation2 + $0x1b3] ss:$2 sm:$0xff] }
 0x5c8   :  { %15867 = vst [vmem:[#allocation25_spill] sm:$0xff] %v13782_v55  ;;  %v3619_v9 = vpack.c.bf16 %v3555_v1, %v3555_v1 }
 0x5c9   :  { %15868 = vst [vmem:[#allocation79_spill] sm:$0xff] %v13784_v7  ;;  %v4387_v13 = vpack.c.bf16 %v4323_v8, %v4323_v8  ;;  %v5092_v59 = vunpack.c.l.b16 %v3620_v15  ;;  %v4098_v8 = vld [vmem:[#allocation2 + $0x1b6] ss:$2 sm:$0xff]  ;;  %v4226_v15 = vld [vmem:[#allocation2 + $0x1b7] ss:$2 sm:$0xff] }
 0x5ca   :  { %15869 = vst [vmem:[#allocation34_spill] sm:$0xff] %v13787_v62 }
 0x5cb   :  { %15872 = vst [vmem:[#allocation38_spill] sm:$0xff] %v13796_v21 }
 0x5cc   :  { %v6286_v50 = vpop.f32.mrf.mxu1 }
 0x5cd   :  { %v6287_v48 = vadd.f32 %v6286_v50, %v13632_v18  ;;  %v3074_v50 = vld [vmem:[#allocation2 + $0x1b1] ss:$2 sm:$0xff] }
 0x5cf   :  { %6320 = vmatmul.bf16.gmra.mxu1 %v13780_v27  ;;  %v4388_v27 = vpack.c.bf16 %v4324_v54, %v4324_v54  ;;  %v3072_v54 = vld [vmem:[#allocation2 + $0x1a1] ss:$2 sm:$0xff] }
 0x5d0   :  { %6489 = vmatmul.bf16.gmra.mxu3 %v13782_v55  ;;  %v3235_v55 = vpack.c.bf16 %v3171_v26, %v3171_v26  ;;  %v2946_v26 = vld [vmem:[#allocation2 + $0x1b0] ss:$2 sm:$0xff] }
 0x5d1   :  { %6658 = vmatmul.bf16.gmra.mxu0 %v13784_v7  ;;  %v4004_v7 = vpack.c.bf16 %v3940_v22, %v3940_v22  ;;  %v5476_v43 = vunpack.c.l.b16 %v4388_v27  ;;  %v5475_v22 = vunpack.c.l.b16 %v4387_v13  ;;  %v3456_v13 = vld [vmem:[#allocation2 + $0x1a3] ss:$2 sm:$0xff] }
 0x5d2   :  { %6827 = vmatmul.bf16.gmra.mxu2 %v13787_v62  ;;  %v3236_v62 = vpack.c.bf16 %v3172_v33, %v3172_v33  ;;  %v4899_v21 = vunpack.c.l.b16 %v3235_v55  ;;  %v5091_v33 = vunpack.c.l.b16 %v3619_v9  ;;  %v3714_v55 = vld [vmem:[#allocation2 + $0x1b4] ss:$2 sm:$0xff]  ;;  %v3842_v9 = vld [vmem:[#allocation2 + $0x1b5] ss:$2 sm:$0xff] }
 0x5d3   :  { %v5284_v14 = vunpack.c.l.b16 %v4004_v7  ;;  %v3330_v7 = vld [vmem:[#allocation2 + $0x1b2] ss:$2 sm:$0xff]  ;;  %v13808_v27 = vpack.c.b16 %v5476_v43, %v5475_v22 }
 0x5d4   :  { %v4900_v44 = vunpack.c.l.b16 %v3236_v62  ;;  %v6288_v19 = vpop.f32.mrf.mxu1  ;;  %v13801_v16 = vpack.c.b16 %v5092_v59, %v5091_v33  ;;  %v2944_v62 = vld [vmem:[#allocation2 + $0x1a0] ss:$2 sm:$0xff] }
 0x5d5   :  { %v6624_v6 = vpop.f32.mrf.mxu0  ;;  %v13803_v37 = vpack.c.b16 %v5284_v14, %v5283_v45  ;;  %15877 = vst [vmem:[#allocation41_spill] sm:$0xff] %v13808_v27  ;;  %v3558_v14 = vmax.f32 %v3330_v7, %v3458_v52  ;;  %v4096_v43 = vld [vmem:[#allocation2 + $0x1a6] ss:$2 sm:$0xff]  ;;  %v3173_v45 = vmax.f32 %v2944_v62, %v3072_v54 }
 0x5d6   :  { %v13799_v49 = vpack.c.b16 %v4900_v44, %v4899_v21  ;;  %15874 = vst [vmem:[#allocation30_spill] sm:$0xff] %v13801_v16  ;;  %v3328_v21 = vld [vmem:[#allocation2 + $0x1a2] ss:$2 sm:$0xff]  ;;  %v3174_v44 = vmax.f32 %v2946_v26, %v3074_v50 }
 0x5d7   :  { %15875 = vst [vmem:[#allocation81_spill] sm:$0xff] %v13803_v37  ;;  %v3557_v34 = vmax.f32 %v3328_v21, %v3456_v13  ;;  %v3237_v24 = vpack.c.bf16 %v3173_v45, %v3173_v45 }
 0x5d8   :  { %15873 = vst [vmem:[#allocation39_spill] sm:$0xff] %v13799_v49 }
 0x5d9   :  { %v3621_v7 = vpack.c.bf16 %v3557_v34, %v3557_v34  ;;  %v4901_v54 = vunpack.c.l.b16 %v3237_v24  ;;  %v2950_v34 = vld [vmem:[#allocation2 + $0x1d0] ss:$2 sm:$0xff] }
 0x5da   :  { %v6455_v28 = vpop.f32.mrf.mxu3 }
 0x5db   :  { %v6456_v41 = vadd.f32 %v6455_v28, %v6287_v48  ;;  %v6289_v48 = vadd.f32 %v6288_v19, %v13632_v18  ;;  %v3840_v28 = vld [vmem:[#allocation2 + $0x1a5] ss:$2 sm:$0xff] }
 0x5dc   :  { %v6793_v0 = vpop.f32.mrf.mxu2 }
 0x5dd   :  { %v6625_v58 = vadd.f32 %v6624_v6, %v6456_v41  ;;  %v3712_v6 = vld [vmem:[#allocation2 + $0x1a4] ss:$2 sm:$0xff]  ;;  %v3942_v41 = vmax.f32 %v3714_v55, %v3842_v9  ;;  %v6626_v22 = vpop.f32.mrf.mxu0 }
 0x5df   :  { %v13805_v1 = vadd.f32 %v6793_v0, %v6625_v58  ;;  %6325 = vmatmul.bf16.gmra.mxu1 %v13799_v49  ;;  %v4224_v0 = vld [vmem:[#allocation2 + $0x1a7] ss:$2 sm:$0xff]  ;;  %v4326_v58 = vmax.f32 %v4098_v8, %v4226_v15  ;;  %v3238_v49 = vpack.c.bf16 %v3174_v44, %v3174_v44  ;;  %v4006_v26 = vpack.c.bf16 %v3942_v41, %v3942_v41 }
 0x5e0   :  { %6494 = vmatmul.bf16.gmra.mxu3 %v13801_v16  ;;  %v4325_v19 = vmax.f32 %v4096_v43, %v4224_v0  ;;  %v5093_v15 = vunpack.c.l.b16 %v3621_v7  ;;  %v3846_v41 = vld [vmem:[#allocation2 + $0x1d5] ss:$2 sm:$0xff]  ;;  %v3332_v43 = vld [vmem:[#allocation2 + $0x1c2] ss:$2 sm:$0xff] }
 0x5e1   :  { %15876 = vst [vmem:[#allocation40_spill] sm:$0xff] %v13805_v1  ;;  %6663 = vmatmul.bf16.gmra.mxu0 %v13803_v37  ;;  %v3941_v37 = vmax.f32 %v3712_v6, %v3840_v28  ;;  %v4390_v10 = vpack.c.bf16 %v4326_v58, %v4326_v58  ;;  %v4902_v55 = vunpack.c.l.b16 %v3238_v49  ;;  %v5286_v62 = vunpack.c.l.b16 %v4006_v26  ;;  %v3078_v49 = vld [vmem:[#allocation2 + $0x1d1] ss:$2 sm:$0xff]  ;;  %v4102_v0 = vld [vmem:[#allocation2 + $0x1d6] ss:$2 sm:$0xff] }
 0x5e2   :  { %6832 = vmatmul.bf16.gmra.mxu2 %v13808_v27  ;;  %v6457_v59 = vpop.f32.mrf.mxu3  ;;  %v3622_v27 = vpack.c.bf16 %v3558_v14, %v3558_v14  ;;  %v4389_v9 = vpack.c.bf16 %v4325_v19, %v4325_v19  ;;  %v3334_v14 = vld [vmem:[#allocation2 + $0x1d2] ss:$2 sm:$0xff]  ;;  %v3176_v45 = vmax.f32 %v2950_v34, %v3078_v49  ;;  %v3460_v58 = vld [vmem:[#allocation2 + $0x1c3] ss:$2 sm:$0xff] }
 0x5e3   :  { %v6458_v33 = vadd.f32 %v6457_v59, %v6289_v48  ;;  %v4005_v52 = vpack.c.bf16 %v3941_v37, %v3941_v37  ;;  %v5478_v8 = vunpack.c.l.b16 %v4390_v10  ;;  %v13816_v6 = vpack.c.b16 %v4902_v55, %v4901_v54  ;;  %v3076_v37 = vld [vmem:[#allocation2 + $0x1c1] ss:$2 sm:$0xff]  ;;  %v4100_v55 = vld [vmem:[#allocation2 + $0x1c6] ss:$2 sm:$0xff] }
 0x5e4   :  { %v6795_v1 = vpop.f32.mrf.mxu2  ;;  %v5094_v48 = vunpack.c.l.b16 %v3622_v27  ;;  %v5477_v28 = vunpack.c.l.b16 %v4389_v9  ;;  %v3462_v10 = vld [vmem:[#allocation2 + $0x1d3] ss:$2 sm:$0xff]  ;;  %v3718_v27 = vld [vmem:[#allocation2 + $0x1d4] ss:$2 sm:$0xff] }
 0x5e5   :  { %v6627_v16 = vadd.f32 %v6626_v22, %v6458_v33  ;;  %v5285_v13 = vunpack.c.l.b16 %v4005_v52  ;;  %15879 = vst [vmem:[#allocation42_spill] sm:$0xff] %v13816_v6  ;;  %v4230_v33 = vld [vmem:[#allocation2 + $0x1d7] ss:$2 sm:$0xff]  ;;  %v3716_v22 = vld [vmem:[#allocation2 + $0x1c4] ss:$2 sm:$0xff]  ;;  %v3560_v7 = vmax.f32 %v3334_v14, %v3462_v10  ;;  %v3944_v52 = vmax.f32 %v3718_v27, %v3846_v41 }
 0x5e6   :  { %v13818_v59 = vpack.c.b16 %v5094_v48, %v5093_v15  ;;  %v13823_v24 = vpack.c.b16 %v5478_v8, %v5477_v28  ;;  %v3844_v19 = vld [vmem:[#allocation2 + $0x1c5] ss:$2 sm:$0xff]  ;;  %v4328_v54 = vmax.f32 %v4102_v0, %v4230_v33  ;;  %v3559_v28 = vmax.f32 %v3332_v43, %v3460_v58 }
 0x5e7   :  { %v13814_v50 = vadd.f32 %v6795_v1, %v6627_v16  ;;  %v13820_v16 = vpack.c.b16 %v5286_v62, %v5285_v13  ;;  %v2948_v1 = vld [vmem:[#allocation2 + $0x1c0] ss:$2 sm:$0xff]  ;;  %v4228_v9 = vld [vmem:[#allocation2 + $0x1c7] ss:$2 sm:$0xff] }
 0x5e8   :  { %15880 = vst [vmem:[#allocation43_spill] sm:$0xff] %v13818_v59  ;;  %v3175_v62 = vmax.f32 %v2948_v1, %v3076_v37  ;;  %v4327_v34 = vmax.f32 %v4100_v55, %v4228_v9  ;;  %v3623_v10 = vpack.c.bf16 %v3559_v28, %v3559_v28  ;;  %v3466_v28 = vld [vmem:[#allocation2 + $0x1f3] ss:$2 sm:$0xff] }
 0x5e9   :  { %15878 = vst [vmem:[#allocation82_spill] sm:$0xff] %v13814_v50  ;;  %v4008_v50 = vpack.c.bf16 %v3944_v52, %v3944_v52 }
 0x5ea   :  { %15881 = vst [vmem:[#allocation36_spill] sm:$0xff] %v13820_v16  ;;  %v3239_v56 = vpack.c.bf16 %v3175_v62, %v3175_v62  ;;  %v4391_v1 = vpack.c.bf16 %v4327_v34, %v4327_v34  ;;  %v2952_v62 = vld [vmem:[#allocation2 + $0x1e0] ss:$2 sm:$0xff] }
 0x5eb   :  { %15882 = vst [vmem:[#allocation83_spill] sm:$0xff] %v13823_v24  ;;  %v5288_v33 = vunpack.c.l.b16 %v4008_v50  ;;  %v3080_v50 = vld [vmem:[#allocation2 + $0x1e1] ss:$2 sm:$0xff]  ;;  %v3722_v34 = vld [vmem:[#allocation2 + $0x1f4] ss:$2 sm:$0xff] }
 0x5ec   :  { %v6291_v21 = vpop.f32.mrf.mxu1  ;;  %v4903_v58 = vunpack.c.l.b16 %v3239_v56  ;;  %v5479_v9 = vunpack.c.l.b16 %v4391_v1  ;;  %v3338_v56 = vld [vmem:[#allocation2 + $0x1f2] ss:$2 sm:$0xff]  ;;  %v3848_v1 = vld [vmem:[#allocation2 + $0x1e5] ss:$2 sm:$0xff] }
 0x5ed   :  { %v6292_v26 = vadd.f32 %v6291_v21, %v13632_v18  ;;  %v4392_v21 = vpack.c.bf16 %v4328_v54, %v4328_v54  ;;  %v3082_v54 = vld [vmem:[#allocation2 + $0x1f1] ss:$2 sm:$0xff] }
 0x5ee   :  { %v6629_v44 = vpop.f32.mrf.mxu0 }
 0x5ef   :  { %6330 = vmatmul.bf16.gmra.mxu1 %v13816_v6  ;;  %v3624_v6 = vpack.c.bf16 %v3560_v7, %v3560_v7 }
 0x5f0   :  { %6499 = vmatmul.bf16.gmra.mxu3 %v13818_v59 }
 0x5f1   :  { %6668 = vmatmul.bf16.gmra.mxu0 %v13820_v16  ;;  %v3943_v16 = vmax.f32 %v3716_v22, %v3844_v19  ;;  %v5096_v0 = vunpack.c.l.b16 %v3624_v6  ;;  %v5480_v22 = vunpack.c.l.b16 %v4392_v21  ;;  %v2954_v6 = vld [vmem:[#allocation2 + $0x1f0] ss:$2 sm:$0xff] }
 0x5f2   :  { %6837 = vmatmul.bf16.gmra.mxu2 %v13823_v24  ;;  %v3240_v24 = vpack.c.bf16 %v3176_v45, %v3176_v45 }
 0x5f3   :  { %v6460_v48 = vpop.f32.mrf.mxu3  ;;  %v4007_v27 = vpack.c.bf16 %v3943_v16, %v3943_v16 }
 0x5f4   :  { %v6461_v8 = vadd.f32 %v6460_v48, %v6292_v26  ;;  %v6293_v13 = vpop.f32.mrf.mxu1  ;;  %v4904_v41 = vunpack.c.l.b16 %v3240_v24  ;;  %v5095_v26 = vunpack.c.l.b16 %v3623_v10  ;;  %v4106_v10 = vld [vmem:[#allocation2 + $0x1f6] ss:$2 sm:$0xff] }
 0x5f5   :  { %v6798_v15 = vpop.f32.mrf.mxu2  ;;  %v6294_v37 = vadd.f32 %v6293_v13, %v13632_v18  ;;  %v5287_v7 = vunpack.c.l.b16 %v4007_v27  ;;  %v3464_v13 = vld [vmem:[#allocation2 + $0x1e3] ss:$2 sm:$0xff] }
 0x5f6   :  { %v6631_v59 = vpop.f32.mrf.mxu0  ;;  %v6630_v49 = vadd.f32 %v6629_v44, %v6461_v8  ;;  %v13832_v55 = vpack.c.b16 %v4904_v41, %v4903_v58  ;;  %v13834_v16 = vpack.c.b16 %v5096_v0, %v5095_v26  ;;  %v13839_v8 = vpack.c.b16 %v5480_v22, %v5479_v9  ;;  %v4234_v27 = vld [vmem:[#allocation2 + $0x1f7] ss:$2 sm:$0xff]  ;;  %v4104_v22 = vld [vmem:[#allocation2 + $0x1e6] ss:$2 sm:$0xff] }
 0x5f7   :  { %v13836_v24 = vpack.c.b16 %v5288_v33, %v5287_v7  ;;  %v3178_v41 = vmax.f32 %v2954_v6, %v3082_v54  ;;  %v9983_v0 = vld [vmem:[%s15479_s3 + $0x38] sm:$0xf0]  ;;  %v3177_v7 = vmax.f32 %v2952_v62, %v3080_v50  ;;  %v4330_v9 = vmax.f32 %v4106_v10, %v4234_v27  ;;  %v10237_v62 = vld [vmem:[%s15479_s3 + $0x230] sm:$0xf]  ;;  %v10718_v50 = vld [vmem:[%s15479_s3 + $0x234] sm:$0xf0] }
 0x5f8   :  { %v13829_v14 = vadd.f32 %v6798_v15, %v6630_v49  ;;  %15884 = vst [vmem:[#allocation45_spill] sm:$0xff] %v13832_v55  ;;  %v3336_v15 = vld [vmem:[#allocation2 + $0x1e2] ss:$2 sm:$0xff]  ;;  %v3850_v49 = vld [vmem:[#allocation2 + $0x1f5] ss:$2 sm:$0xff] }
 0x5f9   :  { %15885 = vst [vmem:[#allocation84_spill] sm:$0xff] %v13834_v16  ;;  %v3946_v58 = vmax.f32 %v3722_v34, %v3850_v49 }
 0x5fa   :  { %15883 = vst [vmem:[#allocation44_spill] sm:$0xff] %v13829_v14 }
 0x5fb   :  { %v6462_v43 = vpop.f32.mrf.mxu3  ;;  %15886 = vst [vmem:[#allocation46_spill] sm:$0xff] %v13836_v24 }
 0x5fc   :  { %v6463_v45 = vadd.f32 %v6462_v43, %v6294_v37  ;;  %v6296_v44 = vpop.f32.mrf.mxu1  ;;  %15887 = vst [vmem:[#allocation47_spill] sm:$0xff] %v13839_v8  ;;  %v10653_v37 = vld [vmem:[%s15479_s3 + $0x34] sm:$0xf]  ;;  %v3562_v43 = vmax.f32 %v3338_v56, %v3466_v28  ;;  %v3241_v56 = vpack.c.bf16 %v3177_v7, %v3177_v7  ;;  %v4394_v28 = vpack.c.bf16 %v4330_v9, %v4330_v9  ;;  %v3084_v7 = vld [vmem:[#allocation2 + $0x201] ss:$2 sm:$0xff] }
 0x5fd   :  { %v6800_v19 = vpop.f32.mrf.mxu2  ;;  %v6297_v33 = vadd.f32 %v6296_v44, %v13632_v18  ;;  %v4010_v44 = vpack.c.bf16 %v3946_v58, %v3946_v58  ;;  %v3086_v9 = vld [vmem:[#allocation2 + $0x211] ss:$2 sm:$0xff] }
 0x5fe   :  { %v6634_v52 = vpop.f32.mrf.mxu0  ;;  %v6632_v48 = vadd.f32 %v6631_v59, %v6463_v45  ;;  %v3720_v59 = vld [vmem:[#allocation2 + $0x1e4] ss:$2 sm:$0xff]  ;;  %v4232_v45 = vld [vmem:[#allocation2 + $0x1e7] ss:$2 sm:$0xff]  ;;  %v3626_v3 = vpack.c.bf16 %v3562_v43, %v3562_v43 }
 0x5ff   :  { %6335 = vmatmul.bf16.gmra.mxu1 %v13832_v55  ;;  %v3242_v55 = vpack.c.bf16 %v3178_v41, %v3178_v41  ;;  %v5290_v27 = vunpack.c.l.b16 %v4010_v44  ;;  %v3726_v44 = vld [vmem:[#allocation2 + $0x214] ss:$2 sm:$0xff] }
 0x600   :  { %v13841_v21 = vadd.f32 %v6800_v19, %v6632_v48  ;;  %6504 = vmatmul.bf16.gmra.mxu3 %v13834_v16  ;;  %v9986_v19 = vor.u32 %v10653_v37, %v9983_v0  ;;  %v5098_v10 = vunpack.c.l.b16 %v3626_v3  ;;  %v2956_v3 = vld [vmem:[#allocation2 + $0x200] ss:$2 sm:$0xff] }
 0x601   :  { %6673 = vmatmul.bf16.gmra.mxu0 %v13836_v24  ;;  %v3945_v24 = vmax.f32 %v3720_v59, %v3848_v1  ;;  %v10238_v59 = vor.u32 %v10718_v50, %v10237_v62  ;;  %v5482_v1 = vunpack.c.l.b16 %v4394_v28  ;;  %v3468_v50 = vld [vmem:[#allocation2 + $0x203] ss:$2 sm:$0xff] }
 0x602   :  { %15888 = vst [vmem:[#allocation85_spill] sm:$0xff] %v13841_v21  ;;  %6842 = vmatmul.bf16.gmra.mxu2 %v13839_v8  ;;  %v3561_v8 = vmax.f32 %v3336_v15, %v3464_v13  ;;  %7106 = vmatpush.bf16.msra.mxu3 %v9986_v19  ;;  %v4329_v21 = vmax.f32 %v4104_v22, %v4232_v45  ;;  %v4906_v15 = vunpack.c.l.b16 %v3242_v55 }
 0x603   :  { %v6465_v26 = vpop.f32.mrf.mxu3  ;;  %v4009_v37 = vpack.c.bf16 %v3945_v24, %v3945_v24  ;;  %6937 = vmatpush.bf16.msra.mxu1 %v10238_v59 }
 0x604   :  { %v6466_v48 = vadd.f32 %v6465_v26, %v6297_v33  ;;  %v6298_v54 = vpop.f32.mrf.mxu1  ;;  %v3625_v49 = vpack.c.bf16 %v3561_v8, %v3561_v8  ;;  %v4393_v13 = vpack.c.bf16 %v4329_v21, %v4329_v21  ;;  %v2958_v26 = vld [vmem:[#allocation2 + $0x210] ss:$2 sm:$0xff] }
 0x605   :  { %v6803_v6 = vpop.f32.mrf.mxu2  ;;  %v5289_v43 = vunpack.c.l.b16 %v4009_v37  ;;  %v4238_v37 = vld [vmem:[#allocation2 + $0x217] ss:$2 sm:$0xff]  ;;  %v3180_v62 = vmax.f32 %v2958_v26, %v3086_v9 }
 0x606   :  { %v6636_v16 = vpop.f32.mrf.mxu0  ;;  %v6635_v14 = vadd.f32 %v6634_v52, %v6466_v48  ;;  %v6299_v52 = vadd.f32 %v6298_v54, %v13632_v18  ;;  %v5097_v33 = vunpack.c.l.b16 %v3625_v49  ;;  %v5481_v45 = vunpack.c.l.b16 %v4393_v13  ;;  %v3342_v48 = vld [vmem:[#allocation2 + $0x212] ss:$2 sm:$0xff]  ;;  %v3470_v54 = vld [vmem:[#allocation2 + $0x213] ss:$2 sm:$0xff] }
 0x607   :  { %v13866_v19 = vpack.c.b16 %v5290_v27, %v5289_v43  ;;  %v4110_v49 = vld [vmem:[#allocation2 + $0x216] ss:$2 sm:$0xff]  ;;  %v3852_v13 = vld [vmem:[#allocation2 + $0x205] ss:$2 sm:$0xff]  ;;  %v4108_v27 = vld [vmem:[#allocation2 + $0x206] ss:$2 sm:$0xff] }
 0x608   :  { %v13853_v34 = vadd.f32 %v6803_v6, %v6635_v14  ;;  %v4905_v14 = vunpack.c.l.b16 %v3241_v56  ;;  %v13864_v21 = vpack.c.b16 %v5098_v10, %v5097_v33  ;;  %v13869_v6 = vpack.c.b16 %v5482_v1, %v5481_v45  ;;  %v3854_v56 = vld [vmem:[#allocation2 + $0x215] ss:$2 sm:$0xff] }
 0x609   :  { %15892 = vst [vmem:[#allocation86_spill] sm:$0xff] %v13866_v19  ;;  %v3948_v10 = vmax.f32 %v3726_v44, %v3854_v56  ;;  %v3179_v1 = vmax.f32 %v2956_v3, %v3084_v7 }
 0x60a   :  { %15889 = vst [vmem:[#allocation48_spill] sm:$0xff] %v13853_v34  ;;  %v13862_v22 = vpack.c.b16 %v4906_v15, %v4905_v14  ;;  %v3724_v15 = vld [vmem:[#allocation2 + $0x204] ss:$2 sm:$0xff] }
 0x60b   :  { %v6467_v41 = vpop.f32.mrf.mxu3  ;;  %15891 = vst [vmem:[#allocation50_spill] sm:$0xff] %v13864_v21 }
 0x60c   :  { %v6468_v24 = vadd.f32 %v6467_v41, %v6299_v52  ;;  %v6301_v0 = vpop.f32.mrf.mxu1  ;;  %15890 = vst [vmem:[#allocation49_spill] sm:$0xff] %v13862_v22  ;;  %v3564_v52 = vmax.f32 %v3342_v48, %v3470_v54  ;;  %v4236_v41 = vld [vmem:[#allocation2 + $0x207] ss:$2 sm:$0xff] }
 0x60d   :  { %v6805_v8 = vpop.f32.mrf.mxu2  ;;  %15893 = vst [vmem:[#allocation51_spill] sm:$0xff] %v13869_v6  ;;  %v6302_v59 = vadd.f32 %v6301_v0, %v13632_v18  ;;  %v4331_v26 = vmax.f32 %v4108_v27, %v4236_v41 }
 0x60e   :  { %v6639_v58 = vpop.f32.mrf.mxu0  ;;  %v6637_v55 = vadd.f32 %v6636_v16, %v6468_v24  ;;  %v3340_v16 = vld [vmem:[#allocation2 + $0x202] ss:$2 sm:$0xff]  ;;  %v4332_v24 = vmax.f32 %v4110_v49, %v4238_v37 }
 0x60f   :  { %6340 = vmatmul.bf16.gmra.mxu1 %v13862_v22  ;;  %v3563_v45 = vmax.f32 %v3340_v16, %v3468_v50  ;;  %v4012_v22 = vpack.c.bf16 %v3948_v10, %v3948_v10  ;;  %v4395_v3 = vpack.c.bf16 %v4331_v26, %v4331_v26 }
 0x610   :  { %v13871_v28 = vadd.f32 %v6805_v8, %v6637_v55  ;;  %6509 = vmatmul.bf16.gmra.mxu3 %v13864_v21  ;;  %v3947_v55 = vmax.f32 %v3724_v15, %v3852_v13  ;;  %v3628_v21 = vpack.c.bf16 %v3564_v52, %v3564_v52  ;;  %v4396_v0 = vpack.c.bf16 %v4332_v24, %v4332_v24  ;;  %v2960_v24 = vld [vmem:[#allocation2 + $0x220] ss:$2 sm:$0xff] }
 0x611   :  { %6678 = vmatmul.bf16.gmra.mxu0 %v13866_v19  ;;  %v3627_v54 = vpack.c.bf16 %v3563_v45, %v3563_v45  ;;  %v5292_v37 = vunpack.c.l.b16 %v4012_v22  ;;  %v5483_v41 = vunpack.c.l.b16 %v4395_v3  ;;  %v3088_v22 = vld [vmem:[#allocation2 + $0x221] ss:$2 sm:$0xff]  ;;  %v3730_v45 = vld [vmem:[#allocation2 + $0x234] ss:$2 sm:$0xff] }
 0x612   :  { %15894 = vst [vmem:[#allocation87_spill] sm:$0xff] %v13871_v28  ;;  %6847 = vmatmul.bf16.gmra.mxu2 %v13869_v6  ;;  %v3244_v6 = vpack.c.bf16 %v3180_v62, %v3180_v62  ;;  %v3243_v28 = vpack.c.bf16 %v3179_v1, %v3179_v1  ;;  %v4011_v44 = vpack.c.bf16 %v3947_v55, %v3947_v55  ;;  %v5100_v49 = vunpack.c.l.b16 %v3628_v21  ;;  %v2962_v21 = vld [vmem:[#allocation2 + $0x230] ss:$2 sm:$0xff]  ;;  %v3858_v55 = vld [vmem:[#allocation2 + $0x235] ss:$2 sm:$0xff] }
 0x613   :  { %v6470_v14 = vpop.f32.mrf.mxu3  ;;  %v5484_v15 = vunpack.c.l.b16 %v4396_v0  ;;  %v4242_v0 = vld [vmem:[#allocation2 + $0x237] ss:$2 sm:$0xff] }
 0x614   :  { %v6471_v8 = vadd.f32 %v6470_v14, %v6302_v59  ;;  %v6303_v43 = vpop.f32.mrf.mxu1  ;;  %v4908_v56 = vunpack.c.l.b16 %v3244_v6  ;;  %v4907_v50 = vunpack.c.l.b16 %v3243_v28  ;;  %v5099_v59 = vunpack.c.l.b16 %v3627_v54  ;;  %v3346_v28 = vld [vmem:[#allocation2 + $0x232] ss:$2 sm:$0xff]  ;;  %v3856_v3 = vld [vmem:[#allocation2 + $0x225] ss:$2 sm:$0xff] }
 0x615   :  { %v6808_v33 = vpop.f32.mrf.mxu2  ;;  %v6304_v7 = vadd.f32 %v6303_v43, %v13632_v18  ;;  %v5291_v52 = vunpack.c.l.b16 %v4011_v44  ;;  %v3474_v43 = vld [vmem:[#allocation2 + $0x233] ss:$2 sm:$0xff]  ;;  %v3472_v44 = vld [vmem:[#allocation2 + $0x223] ss:$2 sm:$0xff] }
 0x616   :  { %v6641_v19 = vpop.f32.mrf.mxu0  ;;  %v6640_v9 = vadd.f32 %v6639_v58, %v6471_v8  ;;  %v13880_v27 = vpack.c.b16 %v4908_v56, %v4907_v50  ;;  %v13882_v1 = vpack.c.b16 %v5100_v49, %v5099_v59  ;;  %v3090_v8 = vld [vmem:[#allocation2 + $0x231] ss:$2 sm:$0xff]  ;;  %v3728_v56 = vld [vmem:[#allocation2 + $0x224] ss:$2 sm:$0xff]  ;;  %v3566_v49 = vmax.f32 %v3346_v28, %v3474_v43 }
 0x617   :  { %v13884_v6 = vpack.c.b16 %v5292_v37, %v5291_v52  ;;  %v3182_v54 = vmax.f32 %v2962_v21, %v3090_v8  ;;  %v3950_v37 = vmax.f32 %v3730_v45, %v3858_v55  ;;  %v4240_v50 = vld [vmem:[#allocation2 + $0x227] ss:$2 sm:$0xff] }
 0x618   :  { %v13877_v48 = vadd.f32 %v6808_v33, %v6640_v9  ;;  %15896 = vst [vmem:[#allocation53_spill] sm:$0xff] %v13880_v27  ;;  %v13887_v33 = vpack.c.b16 %v5484_v15, %v5483_v41  ;;  %v4114_v9 = vld [vmem:[#allocation2 + $0x236] ss:$2 sm:$0xff] }
 0x619   :  { %15897 = vst [vmem:[#allocation88_spill] sm:$0xff] %v13882_v1 }
 0x61a   :  { %15895 = vst [vmem:[#allocation52_spill] sm:$0xff] %v13877_v48 }
 0x61b   :  { %v6472_v16 = vpop.f32.mrf.mxu3  ;;  %15898 = vst [vmem:[#allocation54_spill] sm:$0xff] %v13884_v6 }
 0x61c   :  { %v6473_v62 = vadd.f32 %v6472_v16, %v6304_v7  ;;  %v6306_v58 = vpop.f32.mrf.mxu1  ;;  %15899 = vst [vmem:[#allocation55_spill] sm:$0xff] %v13887_v33  ;;  %v4112_v16 = vld [vmem:[#allocation2 + $0x226] ss:$2 sm:$0xff] }
 0x61d   :  { %v6810_v13 = vpop.f32.mrf.mxu2  ;;  %v6307_v7 = vadd.f32 %v6306_v58, %v13632_v18  ;;  %v4333_v21 = vmax.f32 %v4112_v16, %v4240_v50 }
 0x61e   :  { %v6644_v10 = vpop.f32.mrf.mxu0  ;;  %v6642_v14 = vadd.f32 %v6641_v19, %v6473_v62  ;;  %v3344_v19 = vld [vmem:[#allocation2 + $0x222] ss:$2 sm:$0xff]  ;;  %v3181_v62 = vmax.f32 %v2960_v24, %v3088_v22 }
 0x61f   :  { %6345 = vmatmul.bf16.gmra.mxu1 %v13880_v27  ;;  %v3630_v27 = vpack.c.bf16 %v3566_v49, %v3566_v49  ;;  %v4397_v24 = vpack.c.bf16 %v4333_v21, %v4333_v21 }
 0x620   :  { %v13889_v26 = vadd.f32 %v6810_v13, %v6642_v14  ;;  %6514 = vmatmul.bf16.gmra.mxu3 %v13882_v1  ;;  %v4334_v13 = vmax.f32 %v4114_v9, %v4242_v0  ;;  %v3565_v14 = vmax.f32 %v3344_v19, %v3472_v44  ;;  %v3245_v48 = vpack.c.bf16 %v3181_v62, %v3181_v62  ;;  %v2964_v62 = vld [vmem:[#allocation2 + $0x240] ss:$2 sm:$0xff] }
 0x621   :  { %6683 = vmatmul.bf16.gmra.mxu0 %v13884_v6  ;;  %v3949_v6 = vmax.f32 %v3728_v56, %v3856_v3  ;;  %v5102_v9 = vunpack.c.l.b16 %v3630_v27  ;;  %v5485_v50 = vunpack.c.l.b16 %v4397_v24  ;;  %v2966_v27 = vld [vmem:[#allocation2 + $0x250] ss:$2 sm:$0xff]  ;;  %v3860_v24 = vld [vmem:[#allocation2 + $0x245] ss:$2 sm:$0xff] }
 0x622   :  { %15900 = vst [vmem:[#allocation89_spill] sm:$0xff] %v13889_v26  ;;  %6852 = vmatmul.bf16.gmra.mxu2 %v13887_v33  ;;  %v3246_v33 = vpack.c.bf16 %v3182_v54, %v3182_v54  ;;  %v4014_v26 = vpack.c.bf16 %v3950_v37, %v3950_v37  ;;  %v4398_v58 = vpack.c.bf16 %v4334_v13, %v4334_v13  ;;  %v4909_v44 = vunpack.c.l.b16 %v3245_v48  ;;  %v3094_v13 = vld [vmem:[#allocation2 + $0x251] ss:$2 sm:$0xff]  ;;  %v3350_v48 = vld [vmem:[#allocation2 + $0x252] ss:$2 sm:$0xff] }
 0x623   :  { %v6475_v15 = vpop.f32.mrf.mxu3  ;;  %v3629_v43 = vpack.c.bf16 %v3565_v14, %v3565_v14  ;;  %v4013_v45 = vpack.c.bf16 %v3949_v6, %v3949_v6  ;;  %v3862_v14 = vld [vmem:[#allocation2 + $0x255] ss:$2 sm:$0xff] }
 0x624   :  { %v6476_v59 = vadd.f32 %v6475_v15, %v6307_v7  ;;  %v6308_v41 = vpop.f32.mrf.mxu1  ;;  %v4910_v55 = vunpack.c.l.b16 %v3246_v33  ;;  %v5294_v0 = vunpack.c.l.b16 %v4014_v26  ;;  %v5486_v56 = vunpack.c.l.b16 %v4398_v58  ;;  %v3092_v26 = vld [vmem:[#allocation2 + $0x241] ss:$2 sm:$0xff] }
 0x625   :  { %v6813_v52 = vpop.f32.mrf.mxu2  ;;  %v6309_v22 = vadd.f32 %v6308_v41, %v13632_v18  ;;  %v5101_v7 = vunpack.c.l.b16 %v3629_v43  ;;  %v5293_v49 = vunpack.c.l.b16 %v4013_v45  ;;  %v3734_v41 = vld [vmem:[#allocation2 + $0x254] ss:$2 sm:$0xff]  ;;  %v4246_v58 = vld [vmem:[#allocation2 + $0x257] ss:$2 sm:$0xff]  ;;  %v3184_v43 = vmax.f32 %v2966_v27, %v3094_v13 }
 0x626   :  { %v6646_v1 = vpop.f32.mrf.mxu0  ;;  %v6645_v8 = vadd.f32 %v6644_v10, %v6476_v59  ;;  %v13898_v16 = vpack.c.b16 %v4910_v55, %v4909_v44  ;;  %v13905_v59 = vpack.c.b16 %v5486_v56, %v5485_v50  ;;  %v3476_v45 = vld [vmem:[#allocation2 + $0x243] ss:$2 sm:$0xff]  ;;  %v3732_v55 = vld [vmem:[#allocation2 + $0x244] ss:$2 sm:$0xff] }
 0x627   :  { %v13900_v6 = vpack.c.b16 %v5102_v9, %v5101_v7  ;;  %v13902_v33 = vpack.c.b16 %v5294_v0, %v5293_v49  ;;  %v3952_v0 = vmax.f32 %v3734_v41, %v3862_v14  ;;  %v4244_v44 = vld [vmem:[#allocation2 + $0x247] ss:$2 sm:$0xff] }
 0x628   :  { %v13895_v28 = vadd.f32 %v6813_v52, %v6645_v8  ;;  %15902 = vst [vmem:[#allocation57_spill] sm:$0xff] %v13898_v16  ;;  %v3478_v52 = vld [vmem:[#allocation2 + $0x253] ss:$2 sm:$0xff]  ;;  %v4118_v8 = vld [vmem:[#allocation2 + $0x256] ss:$2 sm:$0xff] }
 0x629   :  { %15903 = vst [vmem:[#allocation58_spill] sm:$0xff] %v13900_v6  ;;  %v3568_v9 = vmax.f32 %v3350_v48, %v3478_v52 }
 0x62a   :  { %15901 = vst [vmem:[#allocation56_spill] sm:$0xff] %v13895_v28 }
 0x62b   :  { %v6477_v19 = vpop.f32.mrf.mxu3  ;;  %15904 = vst [vmem:[#allocation90_spill] sm:$0xff] %v13902_v33 }
 0x62c   :  { %v6478_v54 = vadd.f32 %v6477_v19, %v6309_v22  ;;  %v6311_v10 = vpop.f32.mrf.mxu1  ;;  %15905 = vst [vmem:[#allocation59_spill] sm:$0xff] %v13905_v59  ;;  %v4116_v19 = vld [vmem:[#allocation2 + $0x246] ss:$2 sm:$0xff] }
 0x62d   :  { %v6815_v3 = vpop.f32.mrf.mxu2  ;;  %v6312_v22 = vadd.f32 %v6311_v10, %v13632_v18  ;;  %v4335_v27 = vmax.f32 %v4116_v19, %v4244_v44 }
 0x62e   :  { %v6649_v37 = vpop.f32.mrf.mxu0  ;;  %v6647_v15 = vadd.f32 %v6646_v1, %v6478_v54  ;;  %v3348_v1 = vld [vmem:[#allocation2 + $0x242] ss:$2 sm:$0xff]  ;;  %v3183_v54 = vmax.f32 %v2964_v62, %v3092_v26 }
 0x62f   :  { %6350 = vmatmul.bf16.gmra.mxu1 %v13898_v16  ;;  %v3632_v16 = vpack.c.bf16 %v3568_v9, %v3568_v9  ;;  %v4399_v62 = vpack.c.bf16 %v4335_v27, %v4335_v27  ;;  %v3738_v27 = vld [vmem:[#allocation2 + $0x274] ss:$2 sm:$0xff] }
 0x630   :  { %v13907_v21 = vadd.f32 %v6815_v3, %v6647_v15  ;;  %6519 = vmatmul.bf16.gmra.mxu3 %v13900_v6  ;;  %v4336_v3 = vmax.f32 %v4118_v8, %v4246_v58  ;;  %v3567_v15 = vmax.f32 %v3348_v1, %v3476_v45  ;;  %v3247_v28 = vpack.c.bf16 %v3183_v54, %v3183_v54  ;;  %v2968_v54 = vld [vmem:[#allocation2 + $0x260] ss:$2 sm:$0xff] }
 0x631   :  { %6688 = vmatmul.bf16.gmra.mxu0 %v13902_v33  ;;  %v3951_v33 = vmax.f32 %v3732_v55, %v3860_v24  ;;  %v5104_v8 = vunpack.c.l.b16 %v3632_v16  ;;  %v5487_v44 = vunpack.c.l.b16 %v4399_v62  ;;  %v2970_v16 = vld [vmem:[#allocation2 + $0x270] ss:$2 sm:$0xff]  ;;  %v3864_v62 = vld [vmem:[#allocation2 + $0x265] ss:$2 sm:$0xff] }
 0x632   :  { %15906 = vst [vmem:[#allocation91_spill] sm:$0xff] %v13907_v21  ;;  %6857 = vmatmul.bf16.gmra.mxu2 %v13905_v59  ;;  %v3248_v59 = vpack.c.bf16 %v3184_v43, %v3184_v43  ;;  %v4016_v21 = vpack.c.bf16 %v3952_v0, %v3952_v0  ;;  %v4400_v10 = vpack.c.bf16 %v4336_v3, %v4336_v3  ;;  %v4911_v45 = vunpack.c.l.b16 %v3247_v28  ;;  %v3098_v3 = vld [vmem:[#allocation2 + $0x271] ss:$2 sm:$0xff]  ;;  %v3354_v28 = vld [vmem:[#allocation2 + $0x272] ss:$2 sm:$0xff] }
 0x633   :  { %v6480_v56 = vpop.f32.mrf.mxu3  ;;  %v3631_v52 = vpack.c.bf16 %v3567_v15, %v3567_v15  ;;  %v4015_v41 = vpack.c.bf16 %v3951_v33, %v3951_v33  ;;  %v3482_v15 = vld [vmem:[#allocation2 + $0x273] ss:$2 sm:$0xff] }
 0x634   :  { %v6481_v7 = vadd.f32 %v6480_v56, %v6312_v22  ;;  %v6313_v50 = vpop.f32.mrf.mxu1  ;;  %v4912_v14 = vunpack.c.l.b16 %v3248_v59  ;;  %v5296_v58 = vunpack.c.l.b16 %v4016_v21  ;;  %v5488_v55 = vunpack.c.l.b16 %v4400_v10  ;;  %v3096_v21 = vld [vmem:[#allocation2 + $0x261] ss:$2 sm:$0xff] }
 0x635   :  { %v6818_v49 = vpop.f32.mrf.mxu2  ;;  %v6314_v26 = vadd.f32 %v6313_v50, %v13632_v18  ;;  %v5103_v22 = vunpack.c.l.b16 %v3631_v52  ;;  %v5295_v9 = vunpack.c.l.b16 %v4015_v41  ;;  %v3480_v50 = vld [vmem:[#allocation2 + $0x263] ss:$2 sm:$0xff]  ;;  %v4122_v52 = vld [vmem:[#allocation2 + $0x276] ss:$2 sm:$0xff] }
 0x636   :  { %v6651_v6 = vpop.f32.mrf.mxu0  ;;  %v6650_v13 = vadd.f32 %v6649_v37, %v6481_v7  ;;  %v13916_v19 = vpack.c.b16 %v4912_v14, %v4911_v45  ;;  %v13923_v7 = vpack.c.b16 %v5488_v55, %v5487_v44  ;;  %v4250_v41 = vld [vmem:[#allocation2 + $0x277] ss:$2 sm:$0xff]  ;;  %v3186_v14 = vmax.f32 %v2970_v16, %v3098_v3  ;;  %v4120_v55 = vld [vmem:[#allocation2 + $0x266] ss:$2 sm:$0xff] }
 0x637   :  { %v13918_v33 = vpack.c.b16 %v5104_v8, %v5103_v22  ;;  %v13920_v59 = vpack.c.b16 %v5296_v58, %v5295_v9  ;;  %v9975_v8 = vld [vmem:[%s15479_s3 + $0x28] sm:$0xf0]  ;;  %v3185_v9 = vmax.f32 %v2968_v54, %v3096_v21  ;;  %v4338_v44 = vmax.f32 %v4122_v52, %v4250_v41  ;;  %v10229_v54 = vld [vmem:[%s15479_s3 + $0x220] sm:$0xf]  ;;  %v10716_v21 = vld [vmem:[%s15479_s3 + $0x224] sm:$0xf0] }
 0x638   :  { %v13913_v48 = vadd.f32 %v6818_v49, %v6650_v13  ;;  %15908 = vst [vmem:[#allocation61_spill] sm:$0xff] %v13916_v19  ;;  %v3352_v49 = vld [vmem:[#allocation2 + $0x262] ss:$2 sm:$0xff]  ;;  %v3866_v13 = vld [vmem:[#allocation2 + $0x275] ss:$2 sm:$0xff] }
 0x639   :  { %15909 = vst [vmem:[#allocation92_spill] sm:$0xff] %v13918_v33  ;;  %v3954_v45 = vmax.f32 %v3738_v27, %v3866_v13 }
 0x63a   :  { %15907 = vst [vmem:[#allocation60_spill] sm:$0xff] %v13913_v48 }
 0x63b   :  { %v6482_v1 = vpop.f32.mrf.mxu3  ;;  %15910 = vst [vmem:[#allocation62_spill] sm:$0xff] %v13920_v59 }
 0x63c   :  { %v6483_v43 = vadd.f32 %v6482_v1, %v6314_v26  ;;  %v6316_v37 = vpop.f32.mrf.mxu1  ;;  %15911 = vst [vmem:[#allocation63_spill] sm:$0xff] %v13923_v7  ;;  %v10651_v26 = vld [vmem:[%s15479_s3 + $0x24] sm:$0xf]  ;;  %v3570_v1 = vmax.f32 %v3354_v28, %v3482_v15  ;;  %v3249_v28 = vpack.c.bf16 %v3185_v9, %v3185_v9  ;;  %v4402_v15 = vpack.c.bf16 %v4338_v44, %v4338_v44  ;;  %v3102_v44 = vld [vmem:[#allocation2 + $0x291] ss:$2 sm:$0xff] }
 0x63d   :  { %v6820_v24 = vpop.f32.mrf.mxu2  ;;  %v6317_v58 = vadd.f32 %v6316_v37, %v13632_v18  ;;  %v4018_v37 = vpack.c.bf16 %v3954_v45, %v3954_v45  ;;  %v3100_v9 = vld [vmem:[#allocation2 + $0x281] ss:$2 sm:$0xff] }
 0x63e   :  { %v6654_v0 = vpop.f32.mrf.mxu0  ;;  %v6652_v56 = vadd.f32 %v6651_v6, %v6483_v43  ;;  %v3736_v6 = vld [vmem:[#allocation2 + $0x264] ss:$2 sm:$0xff]  ;;  %v4248_v43 = vld [vmem:[#allocation2 + $0x267] ss:$2 sm:$0xff]  ;;  %v3634_v34 = vpack.c.bf16 %v3570_v1, %v3570_v1 }
 0x63f   :  { %6355 = vmatmul.bf16.gmra.mxu1 %v13916_v19  ;;  %v3250_v19 = vpack.c.bf16 %v3186_v14, %v3186_v14  ;;  %v5298_v41 = vunpack.c.l.b16 %v4018_v37  ;;  %v3742_v37 = vld [vmem:[#allocation2 + $0x294] ss:$2 sm:$0xff] }
 0x640   :  { %v13925_v10 = vadd.f32 %v6820_v24, %v6652_v56  ;;  %6524 = vmatmul.bf16.gmra.mxu3 %v13918_v33  ;;  %v9978_v24 = vor.u32 %v10651_v26, %v9975_v8  ;;  %v5106_v52 = vunpack.c.l.b16 %v3634_v34  ;;  %v2972_v34 = vld [vmem:[#allocation2 + $0x280] ss:$2 sm:$0xff] }
 0x641   :  { %6693 = vmatmul.bf16.gmra.mxu0 %v13920_v59  ;;  %v3953_v59 = vmax.f32 %v3736_v6, %v3864_v62  ;;  %v10230_v6 = vor.u32 %v10716_v21, %v10229_v54  ;;  %v5490_v62 = vunpack.c.l.b16 %v4402_v15  ;;  %v3484_v21 = vld [vmem:[#allocation2 + $0x283] ss:$2 sm:$0xff] }
 0x642   :  { %15912 = vst [vmem:[#allocation93_spill] sm:$0xff] %v13925_v10  ;;  %6862 = vmatmul.bf16.gmra.mxu2 %v13923_v7  ;;  %v3569_v7 = vmax.f32 %v3352_v49, %v3480_v50  ;;  %7107 = vmatpush.bf16.msra.mxu3 %v9978_v24  ;;  %v4337_v10 = vmax.f32 %v4120_v55, %v4248_v43  ;;  %v4914_v49 = vunpack.c.l.b16 %v3250_v19 }
 0x643   :  { %v6485_v22 = vpop.f32.mrf.mxu3  ;;  %v4017_v26 = vpack.c.bf16 %v3953_v59, %v3953_v59  ;;  %6938 = vmatpush.bf16.msra.mxu1 %v10230_v6 }
 0x644   :  { %v6486_v56 = vadd.f32 %v6485_v22, %v6317_v58  ;;  %v6318_v3 = vpop.f32.mrf.mxu1  ;;  %v3633_v13 = vpack.c.bf16 %v3569_v7, %v3569_v7  ;;  %v4401_v50 = vpack.c.bf16 %v4337_v10, %v4337_v10  ;;  %v2974_v22 = vld [vmem:[#allocation2 + $0x290] ss:$2 sm:$0xff] }
 0x645   :  { %v6823_v16 = vpop.f32.mrf.mxu2  ;;  %v5297_v1 = vunpack.c.l.b16 %v4017_v26  ;;  %v4254_v26 = vld [vmem:[#allocation2 + $0x297] ss:$2 sm:$0xff]  ;;  %v3188_v54 = vmax.f32 %v2974_v22, %v3102_v44 }
 0x646   :  { %v6656_v33 = vpop.f32.mrf.mxu0  ;;  %v6655_v48 = vadd.f32 %v6654_v0, %v6486_v56  ;;  %v6319_v0 = vadd.f32 %v6318_v3, %v13632_v18  ;;  %v5105_v58 = vunpack.c.l.b16 %v3633_v13  ;;  %v5489_v43 = vunpack.c.l.b16 %v4401_v50  ;;  %v3358_v56 = vld [vmem:[#allocation2 + $0x292] ss:$2 sm:$0xff]  ;;  %v3486_v3 = vld [vmem:[#allocation2 + $0x293] ss:$2 sm:$0xff] }
 0x647   :  { %v13950_v24 = vpack.c.b16 %v5298_v41, %v5297_v1  ;;  %v4126_v13 = vld [vmem:[#allocation2 + $0x296] ss:$2 sm:$0xff]  ;;  %v3868_v50 = vld [vmem:[#allocation2 + $0x285] ss:$2 sm:$0xff]  ;;  %v4124_v41 = vld [vmem:[#allocation2 + $0x286] ss:$2 sm:$0xff] }
 0x648   :  { %v13937_v27 = vadd.f32 %v6823_v16, %v6655_v48  ;;  %v4913_v48 = vunpack.c.l.b16 %v3249_v28  ;;  %v13948_v10 = vpack.c.b16 %v5106_v52, %v5105_v58  ;;  %v13953_v16 = vpack.c.b16 %v5490_v62, %v5489_v43  ;;  %v3870_v28 = vld [vmem:[#allocation2 + $0x295] ss:$2 sm:$0xff] }
 0x649   :  { %15916 = vst [vmem:[#allocation94_spill] sm:$0xff] %v13950_v24  ;;  %v3956_v52 = vmax.f32 %v3742_v37, %v3870_v28  ;;  %v3187_v62 = vmax.f32 %v2972_v34, %v3100_v9 }
 0x64a   :  { %15913 = vst [vmem:[#allocation64_spill] sm:$0xff] %v13937_v27  ;;  %v13946_v55 = vpack.c.b16 %v4914_v49, %v4913_v48  ;;  %v3740_v49 = vld [vmem:[#allocation2 + $0x284] ss:$2 sm:$0xff] }
 0x64b   :  { %v6487_v14 = vpop.f32.mrf.mxu3  ;;  %15915 = vst [vmem:[#allocation66_spill] sm:$0xff] %v13948_v10 }
 0x64c   :  { %v6488_v59 = vadd.f32 %v6487_v14, %v6319_v0  ;;  %v6321_v8 = vpop.f32.mrf.mxu1  ;;  %15914 = vst [vmem:[#allocation65_spill] sm:$0xff] %v13946_v55  ;;  %v3572_v0 = vmax.f32 %v3358_v56, %v3486_v3  ;;  %v4252_v14 = vld [vmem:[#allocation2 + $0x287] ss:$2 sm:$0xff] }
 0x64d   :  { %v6825_v7 = vpop.f32.mrf.mxu2  ;;  %15917 = vst [vmem:[#allocation67_spill] sm:$0xff] %v13953_v16  ;;  %v6322_v6 = vadd.f32 %v6321_v8, %v13632_v18  ;;  %v4339_v22 = vmax.f32 %v4124_v41, %v4252_v14 }
 0x64e   :  { %v6659_v45 = vpop.f32.mrf.mxu0  ;;  %v6657_v19 = vadd.f32 %v6656_v33, %v6488_v59  ;;  %v3356_v33 = vld [vmem:[#allocation2 + $0x282] ss:$2 sm:$0xff]  ;;  %v4340_v59 = vmax.f32 %v4126_v13, %v4254_v26 }
 0x64f   :  { %6360 = vmatmul.bf16.gmra.mxu1 %v13946_v55  ;;  %v3571_v43 = vmax.f32 %v3356_v33, %v3484_v21  ;;  %v4020_v55 = vpack.c.bf16 %v3956_v52, %v3956_v52  ;;  %v4403_v34 = vpack.c.bf16 %v4339_v22, %v4339_v22 }
 0x650   :  { %v13955_v15 = vadd.f32 %v6825_v7, %v6657_v19  ;;  %6529 = vmatmul.bf16.gmra.mxu3 %v13948_v10  ;;  %v3955_v19 = vmax.f32 %v3740_v49, %v3868_v50  ;;  %v3636_v10 = vpack.c.bf16 %v3572_v0, %v3572_v0  ;;  %v4404_v8 = vpack.c.bf16 %v4340_v59, %v4340_v59  ;;  %v2976_v59 = vld [vmem:[#allocation2 + $0x2a0] ss:$2 sm:$0xff] }
 0x651   :  { %6698 = vmatmul.bf16.gmra.mxu0 %v13950_v24  ;;  %v3635_v3 = vpack.c.bf16 %v3571_v43, %v3571_v43  ;;  %v5300_v26 = vunpack.c.l.b16 %v4020_v55  ;;  %v5491_v14 = vunpack.c.l.b16 %v4403_v34  ;;  %v3104_v55 = vld [vmem:[#allocation2 + $0x2a1] ss:$2 sm:$0xff]  ;;  %v3746_v43 = vld [vmem:[#allocation2 + $0x2b4] ss:$2 sm:$0xff] }
 0x652   :  { %15918 = vst [vmem:[#allocation95_spill] sm:$0xff] %v13955_v15  ;;  %6867 = vmatmul.bf16.gmra.mxu2 %v13953_v16  ;;  %v3252_v16 = vpack.c.bf16 %v3188_v54, %v3188_v54  ;;  %v3251_v15 = vpack.c.bf16 %v3187_v62, %v3187_v62  ;;  %v4019_v37 = vpack.c.bf16 %v3955_v19, %v3955_v19  ;;  %v5108_v13 = vunpack.c.l.b16 %v3636_v10  ;;  %v2978_v10 = vld [vmem:[#allocation2 + $0x2b0] ss:$2 sm:$0xff]  ;;  %v3874_v19 = vld [vmem:[#allocation2 + $0x2b5] ss:$2 sm:$0xff] }
 0x653   :  { %v6490_v48 = vpop.f32.mrf.mxu3  ;;  %v5492_v49 = vunpack.c.l.b16 %v4404_v8  ;;  %v4258_v8 = vld [vmem:[#allocation2 + $0x2b7] ss:$2 sm:$0xff] }
 0x654   :  { %v6491_v7 = vadd.f32 %v6490_v48, %v6322_v6  ;;  %v6323_v1 = vpop.f32.mrf.mxu1  ;;  %v4916_v28 = vunpack.c.l.b16 %v3252_v16  ;;  %v4915_v21 = vunpack.c.l.b16 %v3251_v15  ;;  %v5107_v6 = vunpack.c.l.b16 %v3635_v3  ;;  %v3362_v15 = vld [vmem:[#allocation2 + $0x2b2] ss:$2 sm:$0xff]  ;;  %v3872_v34 = vld [vmem:[#allocation2 + $0x2a5] ss:$2 sm:$0xff] }
 0x655   :  { %v6828_v58 = vpop.f32.mrf.mxu2  ;;  %v6324_v9 = vadd.f32 %v6323_v1, %v13632_v18  ;;  %v5299_v0 = vunpack.c.l.b16 %v4019_v37  ;;  %v3490_v1 = vld [vmem:[#allocation2 + $0x2b3] ss:$2 sm:$0xff]  ;;  %v3488_v37 = vld [vmem:[#allocation2 + $0x2a3] ss:$2 sm:$0xff] }
 0x656   :  { %v6661_v24 = vpop.f32.mrf.mxu0  ;;  %v6660_v44 = vadd.f32 %v6659_v45, %v6491_v7  ;;  %v13964_v41 = vpack.c.b16 %v4916_v28, %v4915_v21  ;;  %v13966_v62 = vpack.c.b16 %v5108_v13, %v5107_v6  ;;  %v3106_v7 = vld [vmem:[#allocation2 + $0x2b1] ss:$2 sm:$0xff]  ;;  %v3744_v28 = vld [vmem:[#allocation2 + $0x2a4] ss:$2 sm:$0xff]  ;;  %v3574_v13 = vmax.f32 %v3362_v15, %v3490_v1 }
 0x657   :  { %v13968_v16 = vpack.c.b16 %v5300_v26, %v5299_v0  ;;  %v3190_v3 = vmax.f32 %v2978_v10, %v3106_v7  ;;  %v3958_v26 = vmax.f32 %v3746_v43, %v3874_v19  ;;  %v4256_v21 = vld [vmem:[#allocation2 + $0x2a7] ss:$2 sm:$0xff] }
 0x658   :  { %v13961_v56 = vadd.f32 %v6828_v58, %v6660_v44  ;;  %15920 = vst [vmem:[#allocation69_spill] sm:$0xff] %v13964_v41  ;;  %v13971_v58 = vpack.c.b16 %v5492_v49, %v5491_v14  ;;  %v4130_v44 = vld [vmem:[#allocation2 + $0x2b6] ss:$2 sm:$0xff] }
 0x659   :  { %15921 = vst [vmem:[#allocation96_spill] sm:$0xff] %v13966_v62 }
 0x65a   :  { %15919 = vst [vmem:[#allocation68_spill] sm:$0xff] %v13961_v56 }
 0x65b   :  { %v6492_v33 = vpop.f32.mrf.mxu3  ;;  %15922 = vst [vmem:[#allocation70_spill] sm:$0xff] %v13968_v16 }
 0x65c   :  { %v6493_v54 = vadd.f32 %v6492_v33, %v6324_v9  ;;  %v6326_v45 = vpop.f32.mrf.mxu1  ;;  %15923 = vst [vmem:[#allocation71_spill] sm:$0xff] %v13971_v58  ;;  %v4128_v33 = vld [vmem:[#allocation2 + $0x2a6] ss:$2 sm:$0xff] }
 0x65d   :  { %v6830_v50 = vpop.f32.mrf.mxu2  ;;  %v6327_v9 = vadd.f32 %v6326_v45, %v13632_v18  ;;  %v4341_v10 = vmax.f32 %v4128_v33, %v4256_v21 }
 0x65e   :  { %v6664_v52 = vpop.f32.mrf.mxu0  ;;  %v6662_v48 = vadd.f32 %v6661_v24, %v6493_v54  ;;  %v3360_v24 = vld [vmem:[#allocation2 + $0x2a2] ss:$2 sm:$0xff]  ;;  %v3189_v54 = vmax.f32 %v2976_v59, %v3104_v55 }
 0x65f   :  { %6365 = vmatmul.bf16.gmra.mxu1 %v13964_v41  ;;  %v3638_v41 = vpack.c.bf16 %v3574_v13, %v3574_v13  ;;  %v4405_v59 = vpack.c.bf16 %v4341_v10, %v4341_v10 }
 0x660   :  { %v13973_v22 = vadd.f32 %v6830_v50, %v6662_v48  ;;  %6534 = vmatmul.bf16.gmra.mxu3 %v13966_v62  ;;  %v4342_v50 = vmax.f32 %v4130_v44, %v4258_v8  ;;  %v3573_v48 = vmax.f32 %v3360_v24, %v3488_v37  ;;  %v3253_v56 = vpack.c.bf16 %v3189_v54, %v3189_v54  ;;  %v2980_v54 = vld [vmem:[#allocation2 + $0x2c0] ss:$2 sm:$0xff] }
 0x661   :  { %6703 = vmatmul.bf16.gmra.mxu0 %v13968_v16  ;;  %v3957_v16 = vmax.f32 %v3744_v28, %v3872_v34  ;;  %v5110_v44 = vunpack.c.l.b16 %v3638_v41  ;;  %v5493_v21 = vunpack.c.l.b16 %v4405_v59  ;;  %v2982_v41 = vld [vmem:[#allocation2 + $0x2d0] ss:$2 sm:$0xff]  ;;  %v3876_v59 = vld [vmem:[#allocation2 + $0x2c5] ss:$2 sm:$0xff] }
 0x662   :  { %15924 = vst [vmem:[#allocation97_spill] sm:$0xff] %v13973_v22  ;;  %6872 = vmatmul.bf16.gmra.mxu2 %v13971_v58  ;;  %v3254_v58 = vpack.c.bf16 %v3190_v3, %v3190_v3  ;;  %v4022_v22 = vpack.c.bf16 %v3958_v26, %v3958_v26  ;;  %v4406_v45 = vpack.c.bf16 %v4342_v50, %v4342_v50  ;;  %v4917_v37 = vunpack.c.l.b16 %v3253_v56  ;;  %v3110_v50 = vld [vmem:[#allocation2 + $0x2d1] ss:$2 sm:$0xff]  ;;  %v3366_v56 = vld [vmem:[#allocation2 + $0x2d2] ss:$2 sm:$0xff] }
 0x663   :  { %v6495_v49 = vpop.f32.mrf.mxu3  ;;  %v3637_v1 = vpack.c.bf16 %v3573_v48, %v3573_v48  ;;  %v4021_v43 = vpack.c.bf16 %v3957_v16, %v3957_v16  ;;  %v3878_v48 = vld [vmem:[#allocation2 + $0x2d5] ss:$2 sm:$0xff] }
 0x664   :  { %v6496_v6 = vadd.f32 %v6495_v49, %v6327_v9  ;;  %v6328_v14 = vpop.f32.mrf.mxu1  ;;  %v4918_v19 = vunpack.c.l.b16 %v3254_v58  ;;  %v5302_v8 = vunpack.c.l.b16 %v4022_v22  ;;  %v5494_v28 = vunpack.c.l.b16 %v4406_v45  ;;  %v3108_v22 = vld [vmem:[#allocation2 + $0x2c1] ss:$2 sm:$0xff] }
 0x665   :  { %v6833_v0 = vpop.f32.mrf.mxu2  ;;  %v6329_v55 = vadd.f32 %v6328_v14, %v13632_v18  ;;  %v5109_v9 = vunpack.c.l.b16 %v3637_v1  ;;  %v5301_v13 = vunpack.c.l.b16 %v4021_v43  ;;  %v3750_v14 = vld [vmem:[#allocation2 + $0x2d4] ss:$2 sm:$0xff]  ;;  %v4262_v45 = vld [vmem:[#allocation2 + $0x2d7] ss:$2 sm:$0xff]  ;;  %v3192_v1 = vmax.f32 %v2982_v41, %v3110_v50 }
 0x666   :  { %v6666_v62 = vpop.f32.mrf.mxu0  ;;  %v6665_v7 = vadd.f32 %v6664_v52, %v6496_v6  ;;  %v13982_v33 = vpack.c.b16 %v4918_v19, %v4917_v37  ;;  %v13989_v6 = vpack.c.b16 %v5494_v28, %v5493_v21  ;;  %v3492_v43 = vld [vmem:[#allocation2 + $0x2c3] ss:$2 sm:$0xff]  ;;  %v3748_v19 = vld [vmem:[#allocation2 + $0x2c4] ss:$2 sm:$0xff] }
 0x667   :  { %v13984_v16 = vpack.c.b16 %v5110_v44, %v5109_v9  ;;  %v13986_v58 = vpack.c.b16 %v5302_v8, %v5301_v13  ;;  %v3960_v8 = vmax.f32 %v3750_v14, %v3878_v48  ;;  %v4260_v37 = vld [vmem:[#allocation2 + $0x2c7] ss:$2 sm:$0xff] }
 0x668   :  { %v13979_v15 = vadd.f32 %v6833_v0, %v6665_v7  ;;  %15926 = vst [vmem:[#allocation73_spill] sm:$0xff] %v13982_v33  ;;  %v3494_v0 = vld [vmem:[#allocation2 + $0x2d3] ss:$2 sm:$0xff]  ;;  %v4134_v7 = vld [vmem:[#allocation2 + $0x2d6] ss:$2 sm:$0xff] }
 0x669   :  { %15927 = vst [vmem:[#allocation98_spill] sm:$0xff] %v13984_v16  ;;  %v3576_v44 = vmax.f32 %v3366_v56, %v3494_v0 }
 0x66a   :  { %15925 = vst [vmem:[#allocation72_spill] sm:$0xff] %v13979_v15 }
 0x66b   :  { %v6497_v24 = vpop.f32.mrf.mxu3  ;;  %15928 = vst [vmem:[#allocation75_spill] sm:$0xff] %v13986_v58 }
 0x66c   :  { %v6498_v3 = vadd.f32 %v6497_v24, %v6329_v55  ;;  %v6331_v52 = vpop.f32.mrf.mxu1  ;;  %15929 = vst [vmem:[#allocation99_spill] sm:$0xff] %v13989_v6  ;;  %v4132_v24 = vld [vmem:[#allocation2 + $0x2c6] ss:$2 sm:$0xff] }
 0x66d   :  { %v6835_v34 = vpop.f32.mrf.mxu2  ;;  %v6332_v55 = vadd.f32 %v6331_v52, %v13632_v18  ;;  %v4343_v41 = vmax.f32 %v4132_v24, %v4260_v37 }
 0x66e   :  { %v6669_v26 = vpop.f32.mrf.mxu0  ;;  %v6667_v49 = vadd.f32 %v6666_v62, %v6498_v3  ;;  %v3364_v62 = vld [vmem:[#allocation2 + $0x2c2] ss:$2 sm:$0xff]  ;;  %v3191_v3 = vmax.f32 %v2980_v54, %v3108_v22 }
 0x66f   :  { %6370 = vmatmul.bf16.gmra.mxu1 %v13982_v33  ;;  %v3640_v33 = vpack.c.bf16 %v3576_v44, %v3576_v44  ;;  %v4407_v54 = vpack.c.bf16 %v4343_v41, %v4343_v41  ;;  %v3754_v41 = vld [vmem:[#allocation2 + $0x2f4] ss:$2 sm:$0xff] }
 0x670   :  { %v13991_v10 = vadd.f32 %v6835_v34, %v6667_v49  ;;  %6539 = vmatmul.bf16.gmra.mxu3 %v13984_v16  ;;  %v4344_v34 = vmax.f32 %v4134_v7, %v4262_v45  ;;  %v3575_v49 = vmax.f32 %v3364_v62, %v3492_v43  ;;  %v3255_v15 = vpack.c.bf16 %v3191_v3, %v3191_v3  ;;  %v2984_v3 = vld [vmem:[#allocation2 + $0x2e0] ss:$2 sm:$0xff] }
 0x671   :  { %6708 = vmatmul.bf16.gmra.mxu0 %v13986_v58  ;;  %v3959_v58 = vmax.f32 %v3748_v19, %v3876_v59  ;;  %v5112_v7 = vunpack.c.l.b16 %v3640_v33  ;;  %v5495_v37 = vunpack.c.l.b16 %v4407_v54  ;;  %v2986_v33 = vld [vmem:[#allocation2 + $0x2f0] ss:$2 sm:$0xff]  ;;  %v3880_v54 = vld [vmem:[#allocation2 + $0x2e5] ss:$2 sm:$0xff] }
 0x672   :  { %15930 = vst [vmem:[#allocation77_spill] sm:$0xff] %v13991_v10  ;;  %6877 = vmatmul.bf16.gmra.mxu2 %v13989_v6  ;;  %v3256_v6 = vpack.c.bf16 %v3192_v1, %v3192_v1  ;;  %v4024_v10 = vpack.c.bf16 %v3960_v8, %v3960_v8  ;;  %v4408_v52 = vpack.c.bf16 %v4344_v34, %v4344_v34  ;;  %v4919_v43 = vunpack.c.l.b16 %v3255_v15  ;;  %v3114_v34 = vld [vmem:[#allocation2 + $0x2f1] ss:$2 sm:$0xff]  ;;  %v3370_v15 = vld [vmem:[#allocation2 + $0x2f2] ss:$2 sm:$0xff] }
 0x673   :  { %v6500_v28 = vpop.f32.mrf.mxu3  ;;  %v3639_v0 = vpack.c.bf16 %v3575_v49, %v3575_v49  ;;  %v4023_v14 = vpack.c.bf16 %v3959_v58, %v3959_v58  ;;  %v3498_v49 = vld [vmem:[#allocation2 + $0x2f3] ss:$2 sm:$0xff] }
 0x674   :  { %v6501_v9 = vadd.f32 %v6500_v28, %v6332_v55  ;;  %v6333_v21 = vpop.f32.mrf.mxu1  ;;  %v4920_v48 = vunpack.c.l.b16 %v3256_v6  ;;  %v5304_v45 = vunpack.c.l.b16 %v4024_v10  ;;  %v5496_v19 = vunpack.c.l.b16 %v4408_v52  ;;  %v3112_v10 = vld [vmem:[#allocation2 + $0x2e1] ss:$2 sm:$0xff] }
 0x675   :  { %v6838_v13 = vpop.f32.mrf.mxu2  ;;  %v6334_v22 = vadd.f32 %v6333_v21, %v13632_v18  ;;  %v5111_v55 = vunpack.c.l.b16 %v3639_v0  ;;  %v5303_v44 = vunpack.c.l.b16 %v4023_v14  ;;  %v3496_v21 = vld [vmem:[#allocation2 + $0x2e3] ss:$2 sm:$0xff]  ;;  %v4138_v0 = vld [vmem:[#allocation2 + $0x2f6] ss:$2 sm:$0xff] }
 0x676   :  { %v6671_v16 = vpop.f32.mrf.mxu0  ;;  %v6670_v50 = vadd.f32 %v6669_v26, %v6501_v9  ;;  %v14000_v24 = vpack.c.b16 %v4920_v48, %v4919_v43  ;;  %v14007_v9 = vpack.c.b16 %v5496_v19, %v5495_v37  ;;  %v4266_v14 = vld [vmem:[#allocation2 + $0x2f7] ss:$2 sm:$0xff]  ;;  %v3194_v48 = vmax.f32 %v2986_v33, %v3114_v34  ;;  %v4136_v19 = vld [vmem:[#allocation2 + $0x2e6] ss:$2 sm:$0xff] }
 0x677   :  { %v14002_v58 = vpack.c.b16 %v5112_v7, %v5111_v55  ;;  %v14004_v6 = vpack.c.b16 %v5304_v45, %v5303_v44  ;;  %v9967_v7 = vld [vmem:[%s15479_s3 + $0x18] sm:$0xf0]  ;;  %v3193_v44 = vmax.f32 %v2984_v3, %v3112_v10  ;;  %v4346_v37 = vmax.f32 %v4138_v0, %v4266_v14  ;;  %v10221_v3 = vld [vmem:[%s15479_s3 + $0x210] sm:$0xf]  ;;  %v10714_v10 = vld [vmem:[%s15479_s3 + $0x214] sm:$0xf0] }
 0x678   :  { %v13997_v56 = vadd.f32 %v6838_v13, %v6670_v50  ;;  %15932 = vst [vmem:[#allocation104_spill] sm:$0xff] %v14000_v24  ;;  %v3368_v13 = vld [vmem:[#allocation2 + $0x2e2] ss:$2 sm:$0xff]  ;;  %v3882_v50 = vld [vmem:[#allocation2 + $0x2f5] ss:$2 sm:$0xff] }
 0x679   :  { %15933 = vst [vmem:[#allocation105_spill] sm:$0xff] %v14002_v58  ;;  %v3962_v43 = vmax.f32 %v3754_v41, %v3882_v50 }
 0x67a   :  { %15931 = vst [vmem:[#allocation103_spill] sm:$0xff] %v13997_v56 }
 0x67b   :  { %v6502_v62 = vpop.f32.mrf.mxu3  ;;  %15934 = vst [vmem:[#allocation106_spill] sm:$0xff] %v14004_v6 }
 0x67c   :  { %v6503_v1 = vadd.f32 %v6502_v62, %v6334_v22  ;;  %v6336_v26 = vpop.f32.mrf.mxu1  ;;  %15935 = vst [vmem:[#allocation107_spill] sm:$0xff] %v14007_v9  ;;  %v10649_v22 = vld [vmem:[%s15479_s3 + $0x14] sm:$0xf]  ;;  %v3578_v62 = vmax.f32 %v3370_v15, %v3498_v49  ;;  %v3257_v15 = vpack.c.bf16 %v3193_v44, %v3193_v44  ;;  %v4410_v49 = vpack.c.bf16 %v4346_v37, %v4346_v37  ;;  %v3116_v44 = vld [vmem:[#allocation2 + $0x301] ss:$2 sm:$0xff] }
 0x67d   :  { %v6840_v59 = vpop.f32.mrf.mxu2  ;;  %v6337_v45 = vadd.f32 %v6336_v26, %v13632_v18  ;;  %v4026_v26 = vpack.c.bf16 %v3962_v43, %v3962_v43  ;;  %v3118_v37 = vld [vmem:[#allocation2 + $0x311] ss:$2 sm:$0xff] }
 0x67e   :  { %v6674_v8 = vpop.f32.mrf.mxu0  ;;  %v6672_v28 = vadd.f32 %v6671_v16, %v6503_v1  ;;  %v3752_v16 = vld [vmem:[#allocation2 + $0x2e4] ss:$2 sm:$0xff]  ;;  %v4264_v1 = vld [vmem:[#allocation2 + $0x2e7] ss:$2 sm:$0xff]  ;;  %v3642_v27 = vpack.c.bf16 %v3578_v62, %v3578_v62 }
 0x67f   :  { %6375 = vmatmul.bf16.gmra.mxu1 %v14000_v24  ;;  %v3258_v24 = vpack.c.bf16 %v3194_v48, %v3194_v48  ;;  %v5306_v14 = vunpack.c.l.b16 %v4026_v26  ;;  %v3758_v26 = vld [vmem:[#allocation2 + $0x314] ss:$2 sm:$0xff] }
 0x680   :  { %v14009_v52 = vadd.f32 %v6840_v59, %v6672_v28  ;;  %6544 = vmatmul.bf16.gmra.mxu3 %v14002_v58  ;;  %v9970_v59 = vor.u32 %v10649_v22, %v9967_v7  ;;  %v5114_v0 = vunpack.c.l.b16 %v3642_v27  ;;  %v2988_v27 = vld [vmem:[#allocation2 + $0x300] ss:$2 sm:$0xff] }
 0x681   :  { %6713 = vmatmul.bf16.gmra.mxu0 %v14004_v6  ;;  %v3961_v6 = vmax.f32 %v3752_v16, %v3880_v54  ;;  %v10222_v16 = vor.u32 %v10714_v10, %v10221_v3  ;;  %v5498_v54 = vunpack.c.l.b16 %v4410_v49  ;;  %v3500_v10 = vld [vmem:[#allocation2 + $0x303] ss:$2 sm:$0xff] }
 0x682   :  { %15936 = vst [vmem:[#allocation108_spill] sm:$0xff] %v14009_v52  ;;  %6882 = vmatmul.bf16.gmra.mxu2 %v14007_v9  ;;  %v3577_v9 = vmax.f32 %v3368_v13, %v3496_v21  ;;  %7108 = vmatpush.bf16.msra.mxu3 %v9970_v59  ;;  %v4345_v52 = vmax.f32 %v4136_v19, %v4264_v1  ;;  %v4922_v13 = vunpack.c.l.b16 %v3258_v24 }
 0x683   :  { %v6505_v55 = vpop.f32.mrf.mxu3  ;;  %v4025_v22 = vpack.c.bf16 %v3961_v6, %v3961_v6  ;;  %6939 = vmatpush.bf16.msra.mxu1 %v10222_v16 }
 0x684   :  { %v6506_v28 = vadd.f32 %v6505_v55, %v6337_v45  ;;  %v6338_v34 = vpop.f32.mrf.mxu1  ;;  %v3641_v50 = vpack.c.bf16 %v3577_v9, %v3577_v9  ;;  %v4409_v21 = vpack.c.bf16 %v4345_v52, %v4345_v52  ;;  %v2990_v55 = vld [vmem:[#allocation2 + $0x310] ss:$2 sm:$0xff] }
 0x685   :  { %v6843_v33 = vpop.f32.mrf.mxu2  ;;  %v5305_v62 = vunpack.c.l.b16 %v4025_v22  ;;  %v4270_v22 = vld [vmem:[#allocation2 + $0x317] ss:$2 sm:$0xff]  ;;  %v3196_v3 = vmax.f32 %v2990_v55, %v3118_v37 }
 0x686   :  { %v6676_v58 = vpop.f32.mrf.mxu0  ;;  %v6675_v56 = vadd.f32 %v6674_v8, %v6506_v28  ;;  %v6339_v8 = vadd.f32 %v6338_v34, %v13632_v18  ;;  %v5113_v45 = vunpack.c.l.b16 %v3641_v50  ;;  %v5497_v1 = vunpack.c.l.b16 %v4409_v21  ;;  %v3374_v28 = vld [vmem:[#allocation2 + $0x312] ss:$2 sm:$0xff]  ;;  %v3502_v34 = vld [vmem:[#allocation2 + $0x313] ss:$2 sm:$0xff] }
 0x687   :  { %v14034_v59 = vpack.c.b16 %v5306_v14, %v5305_v62  ;;  %v4142_v50 = vld [vmem:[#allocation2 + $0x316] ss:$2 sm:$0xff]  ;;  %v3884_v21 = vld [vmem:[#allocation2 + $0x305] ss:$2 sm:$0xff]  ;;  %v4140_v14 = vld [vmem:[#allocation2 + $0x306] ss:$2 sm:$0xff] }
 0x688   :  { %v14021_v41 = vadd.f32 %v6843_v33, %v6675_v56  ;;  %v4921_v56 = vunpack.c.l.b16 %v3257_v15  ;;  %v14032_v52 = vpack.c.b16 %v5114_v0, %v5113_v45  ;;  %v14037_v33 = vpack.c.b16 %v5498_v54, %v5497_v1  ;;  %v3886_v15 = vld [vmem:[#allocation2 + $0x315] ss:$2 sm:$0xff] }
 0x689   :  { %15940 = vst [vmem:[#allocation112_spill] sm:$0xff] %v14034_v59  ;;  %v3964_v0 = vmax.f32 %v3758_v26, %v3886_v15  ;;  %v3195_v54 = vmax.f32 %v2988_v27, %v3116_v44 }
 0x68a   :  { %15937 = vst [vmem:[#allocation109_spill] sm:$0xff] %v14021_v41  ;;  %v14030_v19 = vpack.c.b16 %v4922_v13, %v4921_v56  ;;  %v3756_v13 = vld [vmem:[#allocation2 + $0x304] ss:$2 sm:$0xff] }
 0x68b   :  { %v6507_v48 = vpop.f32.mrf.mxu3  ;;  %15939 = vst [vmem:[#allocation111_spill] sm:$0xff] %v14032_v52 }
 0x68c   :  { %v6508_v6 = vadd.f32 %v6507_v48, %v6339_v8  ;;  %v6341_v7 = vpop.f32.mrf.mxu1  ;;  %15938 = vst [vmem:[#allocation110_spill] sm:$0xff] %v14030_v19  ;;  %v3580_v8 = vmax.f32 %v3374_v28, %v3502_v34  ;;  %v4268_v48 = vld [vmem:[#allocation2 + $0x307] ss:$2 sm:$0xff] }
 0x68d   :  { %v6845_v9 = vpop.f32.mrf.mxu2  ;;  %15941 = vst [vmem:[#allocation113_spill] sm:$0xff] %v14037_v33  ;;  %v6342_v16 = vadd.f32 %v6341_v7, %v13632_v18  ;;  %v4347_v55 = vmax.f32 %v4140_v14, %v4268_v48 }
 0x68e   :  { %v6679_v43 = vpop.f32.mrf.mxu0  ;;  %v6677_v24 = vadd.f32 %v6676_v58, %v6508_v6  ;;  %v3372_v58 = vld [vmem:[#allocation2 + $0x302] ss:$2 sm:$0xff]  ;;  %v4348_v6 = vmax.f32 %v4142_v50, %v4270_v22 }
 0x68f   :  { %6380 = vmatmul.bf16.gmra.mxu1 %v14030_v19  ;;  %v3579_v1 = vmax.f32 %v3372_v58, %v3500_v10  ;;  %v4028_v19 = vpack.c.bf16 %v3964_v0, %v3964_v0  ;;  %v4411_v27 = vpack.c.bf16 %v4347_v55, %v4347_v55 }
 0x690   :  { %v14039_v49 = vadd.f32 %v6845_v9, %v6677_v24  ;;  %6549 = vmatmul.bf16.gmra.mxu3 %v14032_v52  ;;  %v3963_v24 = vmax.f32 %v3756_v13, %v3884_v21  ;;  %v3644_v52 = vpack.c.bf16 %v3580_v8, %v3580_v8  ;;  %v4412_v7 = vpack.c.bf16 %v4348_v6, %v4348_v6  ;;  %v2992_v6 = vld [vmem:[#allocation2 + $0x320] ss:$2 sm:$0xff] }
 0x691   :  { %6718 = vmatmul.bf16.gmra.mxu0 %v14034_v59  ;;  %v3643_v34 = vpack.c.bf16 %v3579_v1, %v3579_v1  ;;  %v5308_v22 = vunpack.c.l.b16 %v4028_v19  ;;  %v5499_v48 = vunpack.c.l.b16 %v4411_v27  ;;  %v3120_v19 = vld [vmem:[#allocation2 + $0x321] ss:$2 sm:$0xff]  ;;  %v3762_v1 = vld [vmem:[#allocation2 + $0x334] ss:$2 sm:$0xff] }
 0x692   :  { %15942 = vst [vmem:[#allocation114_spill] sm:$0xff] %v14039_v49  ;;  %6887 = vmatmul.bf16.gmra.mxu2 %v14037_v33  ;;  %v3260_v33 = vpack.c.bf16 %v3196_v3, %v3196_v3  ;;  %v3259_v49 = vpack.c.bf16 %v3195_v54, %v3195_v54  ;;  %v4027_v26 = vpack.c.bf16 %v3963_v24, %v3963_v24  ;;  %v5116_v50 = vunpack.c.l.b16 %v3644_v52  ;;  %v2994_v52 = vld [vmem:[#allocation2 + $0x330] ss:$2 sm:$0xff]  ;;  %v3890_v24 = vld [vmem:[#allocation2 + $0x335] ss:$2 sm:$0xff] }
 0x693   :  { %v6510_v56 = vpop.f32.mrf.mxu3  ;;  %v5500_v13 = vunpack.c.l.b16 %v4412_v7  ;;  %v4274_v7 = vld [vmem:[#allocation2 + $0x337] ss:$2 sm:$0xff] }
 0x694   :  { %v6511_v9 = vadd.f32 %v6510_v56, %v6342_v16  ;;  %v6343_v62 = vpop.f32.mrf.mxu1  ;;  %v4924_v15 = vunpack.c.l.b16 %v3260_v33  ;;  %v4923_v10 = vunpack.c.l.b16 %v3259_v49  ;;  %v5115_v16 = vunpack.c.l.b16 %v3643_v34  ;;  %v3378_v49 = vld [vmem:[#allocation2 + $0x332] ss:$2 sm:$0xff]  ;;  %v3888_v27 = vld [vmem:[#allocation2 + $0x325] ss:$2 sm:$0xff] }
 0x695   :  { %v6848_v45 = vpop.f32.mrf.mxu2  ;;  %v6344_v44 = vadd.f32 %v6343_v62, %v13632_v18  ;;  %v5307_v8 = vunpack.c.l.b16 %v4027_v26  ;;  %v3506_v62 = vld [vmem:[#allocation2 + $0x333] ss:$2 sm:$0xff]  ;;  %v3504_v26 = vld [vmem:[#allocation2 + $0x323] ss:$2 sm:$0xff] }
 0x696   :  { %v6681_v59 = vpop.f32.mrf.mxu0  ;;  %v6680_v37 = vadd.f32 %v6679_v43, %v6511_v9  ;;  %v14048_v14 = vpack.c.b16 %v4924_v15, %v4923_v10  ;;  %v14050_v54 = vpack.c.b16 %v5116_v50, %v5115_v16  ;;  %v3122_v9 = vld [vmem:[#allocation2 + $0x331] ss:$2 sm:$0xff]  ;;  %v3760_v15 = vld [vmem:[#allocation2 + $0x324] ss:$2 sm:$0xff]  ;;  %v3582_v50 = vmax.f32 %v3378_v49, %v3506_v62 }
 0x697   :  { %v14052_v33 = vpack.c.b16 %v5308_v22, %v5307_v8  ;;  %v3198_v34 = vmax.f32 %v2994_v52, %v3122_v9  ;;  %v3966_v22 = vmax.f32 %v3762_v1, %v3890_v24  ;;  %v4272_v10 = vld [vmem:[#allocation2 + $0x327] ss:$2 sm:$0xff] }
 0x698   :  { %v14045_v28 = vadd.f32 %v6848_v45, %v6680_v37  ;;  %15944 = vst [vmem:[#allocation116_spill] sm:$0xff] %v14048_v14  ;;  %v14055_v45 = vpack.c.b16 %v5500_v13, %v5499_v48  ;;  %v4146_v37 = vld [vmem:[#allocation2 + $0x336] ss:$2 sm:$0xff] }
 0x699   :  { %15945 = vst [vmem:[#allocation117_spill] sm:$0xff] %v14050_v54 }
 0x69a   :  { %15943 = vst [vmem:[#allocation115_spill] sm:$0xff] %v14045_v28 }
 0x69b   :  { %v6512_v58 = vpop.f32.mrf.mxu3  ;;  %15946 = vst [vmem:[#allocation118_spill] sm:$0xff] %v14052_v33 }
 0x69c   :  { %v6513_v3 = vadd.f32 %v6512_v58, %v6344_v44  ;;  %v6346_v43 = vpop.f32.mrf.mxu1  ;;  %15947 = vst [vmem:[#allocation119_spill] sm:$0xff] %v14055_v45  ;;  %v4144_v58 = vld [vmem:[#allocation2 + $0x326] ss:$2 sm:$0xff] }
 0x69d   :  { %v6850_v21 = vpop.f32.mrf.mxu2  ;;  %v6347_v44 = vadd.f32 %v6346_v43, %v13632_v18  ;;  %v4349_v52 = vmax.f32 %v4144_v58, %v4272_v10 }
 0x69e   :  { %v6684_v0 = vpop.f32.mrf.mxu0  ;;  %v6682_v56 = vadd.f32 %v6681_v59, %v6513_v3  ;;  %v3376_v59 = vld [vmem:[#allocation2 + $0x322] ss:$2 sm:$0xff]  ;;  %v3197_v3 = vmax.f32 %v2992_v6, %v3120_v19 }
 0x69f   :  { %6385 = vmatmul.bf16.gmra.mxu1 %v14048_v14  ;;  %v3646_v14 = vpack.c.bf16 %v3582_v50, %v3582_v50  ;;  %v4413_v6 = vpack.c.bf16 %v4349_v52, %v4349_v52 }
 0x6a0   :  { %v14057_v55 = vadd.f32 %v6850_v21, %v6682_v56  ;;  %6554 = vmatmul.bf16.gmra.mxu3 %v14050_v54  ;;  %v4350_v21 = vmax.f32 %v4146_v37, %v4274_v7  ;;  %v3581_v56 = vmax.f32 %v3376_v59, %v3504_v26  ;;  %v3261_v28 = vpack.c.bf16 %v3197_v3, %v3197_v3  ;;  %v2996_v3 = vld [vmem:[#allocation2 + $0x340] ss:$2 sm:$0xff] }
 0x6a1   :  { %6723 = vmatmul.bf16.gmra.mxu0 %v14052_v33  ;;  %v3965_v33 = vmax.f32 %v3760_v15, %v3888_v27  ;;  %v5118_v37 = vunpack.c.l.b16 %v3646_v14  ;;  %v5501_v10 = vunpack.c.l.b16 %v4413_v6  ;;  %v2998_v14 = vld [vmem:[#allocation2 + $0x350] ss:$2 sm:$0xff]  ;;  %v3892_v6 = vld [vmem:[#allocation2 + $0x345] ss:$2 sm:$0xff] }
 0x6a2   :  { %15948 = vst [vmem:[#allocation120_spill] sm:$0xff] %v14057_v55  ;;  %6892 = vmatmul.bf16.gmra.mxu2 %v14055_v45  ;;  %v3262_v45 = vpack.c.bf16 %v3198_v34, %v3198_v34  ;;  %v4030_v55 = vpack.c.bf16 %v3966_v22, %v3966_v22  ;;  %v4414_v43 = vpack.c.bf16 %v4350_v21, %v4350_v21  ;;  %v4925_v26 = vunpack.c.l.b16 %v3261_v28  ;;  %v3126_v21 = vld [vmem:[#allocation2 + $0x351] ss:$2 sm:$0xff]  ;;  %v3382_v28 = vld [vmem:[#allocation2 + $0x352] ss:$2 sm:$0xff] }
 0x6a3   :  { %v6515_v13 = vpop.f32.mrf.mxu3  ;;  %v3645_v62 = vpack.c.bf16 %v3581_v56, %v3581_v56  ;;  %v4029_v1 = vpack.c.bf16 %v3965_v33, %v3965_v33  ;;  %v3894_v56 = vld [vmem:[#allocation2 + $0x355] ss:$2 sm:$0xff] }
 0x6a4   :  { %v6516_v16 = vadd.f32 %v6515_v13, %v6347_v44  ;;  %v6348_v48 = vpop.f32.mrf.mxu1  ;;  %v4926_v24 = vunpack.c.l.b16 %v3262_v45  ;;  %v5310_v7 = vunpack.c.l.b16 %v4030_v55  ;;  %v5502_v15 = vunpack.c.l.b16 %v4414_v43  ;;  %v3124_v55 = vld [vmem:[#allocation2 + $0x341] ss:$2 sm:$0xff] }
 0x6a5   :  { %v6853_v8 = vpop.f32.mrf.mxu2  ;;  %v6349_v19 = vadd.f32 %v6348_v48, %v13632_v18  ;;  %v5117_v44 = vunpack.c.l.b16 %v3645_v62  ;;  %v5309_v50 = vunpack.c.l.b16 %v4029_v1  ;;  %v3766_v48 = vld [vmem:[#allocation2 + $0x354] ss:$2 sm:$0xff]  ;;  %v4278_v43 = vld [vmem:[#allocation2 + $0x357] ss:$2 sm:$0xff]  ;;  %v3200_v62 = vmax.f32 %v2998_v14, %v3126_v21 }
 0x6a6   :  { %v6686_v54 = vpop.f32.mrf.mxu0  ;;  %v6685_v9 = vadd.f32 %v6684_v0, %v6516_v16  ;;  %v14066_v58 = vpack.c.b16 %v4926_v24, %v4925_v26  ;;  %v14073_v16 = vpack.c.b16 %v5502_v15, %v5501_v10  ;;  %v3508_v1 = vld [vmem:[#allocation2 + $0x343] ss:$2 sm:$0xff]  ;;  %v3764_v24 = vld [vmem:[#allocation2 + $0x344] ss:$2 sm:$0xff] }
 0x6a7   :  { %v14068_v33 = vpack.c.b16 %v5118_v37, %v5117_v44  ;;  %v14070_v45 = vpack.c.b16 %v5310_v7, %v5309_v50  ;;  %v3968_v7 = vmax.f32 %v3766_v48, %v3894_v56  ;;  %v4276_v26 = vld [vmem:[#allocation2 + $0x347] ss:$2 sm:$0xff] }
 0x6a8   :  { %v14063_v49 = vadd.f32 %v6853_v8, %v6685_v9  ;;  %15950 = vst [vmem:[#allocation122_spill] sm:$0xff] %v14066_v58  ;;  %v3510_v8 = vld [vmem:[#allocation2 + $0x353] ss:$2 sm:$0xff]  ;;  %v4150_v9 = vld [vmem:[#allocation2 + $0x356] ss:$2 sm:$0xff] }
 0x6a9   :  { %15951 = vst [vmem:[#allocation123_spill] sm:$0xff] %v14068_v33  ;;  %v3584_v37 = vmax.f32 %v3382_v28, %v3510_v8 }
 0x6aa   :  { %15949 = vst [vmem:[#allocation121_spill] sm:$0xff] %v14063_v49 }
 0x6ab   :  { %v6517_v59 = vpop.f32.mrf.mxu3  ;;  %15952 = vst [vmem:[#allocation124_spill] sm:$0xff] %v14070_v45 }
 0x6ac   :  { %v6518_v34 = vadd.f32 %v6517_v59, %v6349_v19  ;;  %v6351_v0 = vpop.f32.mrf.mxu1  ;;  %15953 = vst [vmem:[#allocation125_spill] sm:$0xff] %v14073_v16  ;;  %v4148_v59 = vld [vmem:[#allocation2 + $0x346] ss:$2 sm:$0xff] }
 0x6ad   :  { %v6855_v27 = vpop.f32.mrf.mxu2  ;;  %v6352_v19 = vadd.f32 %v6351_v0, %v13632_v18  ;;  %v4351_v14 = vmax.f32 %v4148_v59, %v4276_v26 }
 0x6ae   :  { %v6689_v22 = vpop.f32.mrf.mxu0  ;;  %v6687_v13 = vadd.f32 %v6686_v54, %v6518_v34  ;;  %v3380_v54 = vld [vmem:[#allocation2 + $0x342] ss:$2 sm:$0xff]  ;;  %v3199_v34 = vmax.f32 %v2996_v3, %v3124_v55 }
 0x6af   :  { %6390 = vmatmul.bf16.gmra.mxu1 %v14066_v58  ;;  %v3648_v58 = vpack.c.bf16 %v3584_v37, %v3584_v37  ;;  %v4415_v3 = vpack.c.bf16 %v4351_v14, %v4351_v14  ;;  %v3770_v14 = vld [vmem:[#allocation2 + $0x374] ss:$2 sm:$0xff] }
 0x6b0   :  { %v14075_v52 = vadd.f32 %v6855_v27, %v6687_v13  ;;  %6559 = vmatmul.bf16.gmra.mxu3 %v14068_v33  ;;  %v4352_v27 = vmax.f32 %v4150_v9, %v4278_v43  ;;  %v3583_v13 = vmax.f32 %v3380_v54, %v3508_v1  ;;  %v3263_v49 = vpack.c.bf16 %v3199_v34, %v3199_v34  ;;  %v3000_v34 = vld [vmem:[#allocation2 + $0x360] ss:$2 sm:$0xff] }
 0x6b1   :  { %6728 = vmatmul.bf16.gmra.mxu0 %v14070_v45  ;;  %v3967_v45 = vmax.f32 %v3764_v24, %v3892_v6  ;;  %v5120_v9 = vunpack.c.l.b16 %v3648_v58  ;;  %v5503_v26 = vunpack.c.l.b16 %v4415_v3  ;;  %v3002_v58 = vld [vmem:[#allocation2 + $0x370] ss:$2 sm:$0xff]  ;;  %v3896_v3 = vld [vmem:[#allocation2 + $0x365] ss:$2 sm:$0xff] }
 0x6b2   :  { %15954 = vst [vmem:[#allocation126_spill] sm:$0xff] %v14075_v52  ;;  %6897 = vmatmul.bf16.gmra.mxu2 %v14073_v16  ;;  %v3264_v16 = vpack.c.bf16 %v3200_v62, %v3200_v62  ;;  %v4032_v52 = vpack.c.bf16 %v3968_v7, %v3968_v7  ;;  %v4416_v0 = vpack.c.bf16 %v4352_v27, %v4352_v27  ;;  %v4927_v1 = vunpack.c.l.b16 %v3263_v49  ;;  %v3130_v27 = vld [vmem:[#allocation2 + $0x371] ss:$2 sm:$0xff]  ;;  %v3386_v49 = vld [vmem:[#allocation2 + $0x372] ss:$2 sm:$0xff] }
 0x6b3   :  { %v6520_v15 = vpop.f32.mrf.mxu3  ;;  %v3647_v8 = vpack.c.bf16 %v3583_v13, %v3583_v13  ;;  %v4031_v48 = vpack.c.bf16 %v3967_v45, %v3967_v45  ;;  %v3514_v13 = vld [vmem:[#allocation2 + $0x373] ss:$2 sm:$0xff] }
 0x6b4   :  { %v6521_v44 = vadd.f32 %v6520_v15, %v6352_v19  ;;  %v6353_v10 = vpop.f32.mrf.mxu1  ;;  %v4928_v56 = vunpack.c.l.b16 %v3264_v16  ;;  %v5312_v43 = vunpack.c.l.b16 %v4032_v52  ;;  %v5504_v24 = vunpack.c.l.b16 %v4416_v0  ;;  %v3128_v52 = vld [vmem:[#allocation2 + $0x361] ss:$2 sm:$0xff] }
 0x6b5   :  { %v6858_v50 = vpop.f32.mrf.mxu2  ;;  %v6354_v55 = vadd.f32 %v6353_v10, %v13632_v18  ;;  %v5119_v19 = vunpack.c.l.b16 %v3647_v8  ;;  %v5311_v37 = vunpack.c.l.b16 %v4031_v48  ;;  %v3512_v10 = vld [vmem:[#allocation2 + $0x363] ss:$2 sm:$0xff]  ;;  %v4154_v8 = vld [vmem:[#allocation2 + $0x376] ss:$2 sm:$0xff] }
 0x6b6   :  { %v6691_v33 = vpop.f32.mrf.mxu0  ;;  %v6690_v21 = vadd.f32 %v6689_v22, %v6521_v44  ;;  %v14084_v59 = vpack.c.b16 %v4928_v56, %v4927_v1  ;;  %v14091_v44 = vpack.c.b16 %v5504_v24, %v5503_v26  ;;  %v4282_v48 = vld [vmem:[#allocation2 + $0x377] ss:$2 sm:$0xff]  ;;  %v3202_v56 = vmax.f32 %v3002_v58, %v3130_v27  ;;  %v4152_v24 = vld [vmem:[#allocation2 + $0x366] ss:$2 sm:$0xff] }
 0x6b7   :  { %v14086_v45 = vpack.c.b16 %v5120_v9, %v5119_v19  ;;  %v14088_v16 = vpack.c.b16 %v5312_v43, %v5311_v37  ;;  %v9959_v9 = vld [vmem:[%s15479_s3 + $0x8] sm:$0xf0]  ;;  %v3201_v37 = vmax.f32 %v3000_v34, %v3128_v52  ;;  %v4354_v26 = vmax.f32 %v4154_v8, %v4282_v48  ;;  %v10213_v34 = vld [vmem:[%s15479_s3 + $0x200] sm:$0xf]  ;;  %v10712_v52 = vld [vmem:[%s15479_s3 + $0x204] sm:$0xf0] }
 0x6b8   :  { %v14081_v28 = vadd.f32 %v6858_v50, %v6690_v21  ;;  %15956 = vst [vmem:[#allocation128_spill] sm:$0xff] %v14084_v59  ;;  %v3384_v50 = vld [vmem:[#allocation2 + $0x362] ss:$2 sm:$0xff]  ;;  %v3898_v21 = vld [vmem:[#allocation2 + $0x375] ss:$2 sm:$0xff] }
 0x6b9   :  { %15957 = vst [vmem:[#allocation129_spill] sm:$0xff] %v14086_v45  ;;  %v3970_v1 = vmax.f32 %v3770_v14, %v3898_v21 }
 0x6ba   :  { %15955 = vst [vmem:[#allocation127_spill] sm:$0xff] %v14081_v28 }
 0x6bb   :  { %v6522_v54 = vpop.f32.mrf.mxu3  ;;  %15958 = vst [vmem:[#allocation130_spill] sm:$0xff] %v14088_v16 }
 0x6bc   :  { %v6523_v62 = vadd.f32 %v6522_v54, %v6354_v55  ;;  %v6356_v22 = vpop.f32.mrf.mxu1  ;;  %15959 = vst [vmem:[#allocation131_spill] sm:$0xff] %v14091_v44  ;;  %v10647_v55 = vld [vmem:[%s15479_s3 + $0x4] sm:$0xf]  ;;  %v3586_v54 = vmax.f32 %v3386_v49, %v3514_v13  ;;  %v3265_v49 = vpack.c.bf16 %v3201_v37, %v3201_v37  ;;  %v4418_v13 = vpack.c.bf16 %v4354_v26, %v4354_v26  ;;  %v3134_v26 = vld [vmem:[#allocation2 + $0x391] ss:$2 sm:$0xff] }
 0x6bd   :  { %v6860_v6 = vpop.f32.mrf.mxu2  ;;  %v6357_v43 = vadd.f32 %v6356_v22, %v13632_v18  ;;  %v4034_v22 = vpack.c.bf16 %v3970_v1, %v3970_v1  ;;  %v3132_v37 = vld [vmem:[#allocation2 + $0x381] ss:$2 sm:$0xff] }
 0x6be   :  { %v6694_v7 = vpop.f32.mrf.mxu0  ;;  %v6692_v15 = vadd.f32 %v6691_v33, %v6523_v62  ;;  %v3768_v33 = vld [vmem:[#allocation2 + $0x364] ss:$2 sm:$0xff]  ;;  %v4280_v62 = vld [vmem:[#allocation2 + $0x367] ss:$2 sm:$0xff]  ;;  %v3650_v41 = vpack.c.bf16 %v3586_v54, %v3586_v54 }
 0x6bf   :  { %6395 = vmatmul.bf16.gmra.mxu1 %v14084_v59  ;;  %v3266_v59 = vpack.c.bf16 %v3202_v56, %v3202_v56  ;;  %v5314_v48 = vunpack.c.l.b16 %v4034_v22  ;;  %v3774_v22 = vld [vmem:[#allocation2 + $0x394] ss:$2 sm:$0xff] }
 0x6c0   :  { %v14093_v0 = vadd.f32 %v6860_v6, %v6692_v15  ;;  %6564 = vmatmul.bf16.gmra.mxu3 %v14086_v45  ;;  %v9962_v6 = vor.u32 %v10647_v55, %v9959_v9  ;;  %v5122_v8 = vunpack.c.l.b16 %v3650_v41  ;;  %v3004_v41 = vld [vmem:[#allocation2 + $0x380] ss:$2 sm:$0xff] }
 0x6c1   :  { %6733 = vmatmul.bf16.gmra.mxu0 %v14088_v16  ;;  %v3969_v16 = vmax.f32 %v3768_v33, %v3896_v3  ;;  %v10214_v33 = vor.u32 %v10712_v52, %v10213_v34  ;;  %v5506_v3 = vunpack.c.l.b16 %v4418_v13  ;;  %v3516_v52 = vld [vmem:[#allocation2 + $0x383] ss:$2 sm:$0xff] }
 0x6c2   :  { %15960 = vst [vmem:[#allocation132_spill] sm:$0xff] %v14093_v0  ;;  %6902 = vmatmul.bf16.gmra.mxu2 %v14091_v44  ;;  %v3585_v44 = vmax.f32 %v3384_v50, %v3512_v10  ;;  %7109 = vmatpush.bf16.msra.mxu3 %v9962_v6  ;;  %v4353_v0 = vmax.f32 %v4152_v24, %v4280_v62  ;;  %v4930_v50 = vunpack.c.l.b16 %v3266_v59 }
 0x6c3   :  { %v6525_v19 = vpop.f32.mrf.mxu3  ;;  %v4033_v55 = vpack.c.bf16 %v3969_v16, %v3969_v16  ;;  %6940 = vmatpush.bf16.msra.mxu1 %v10214_v33 }
 0x6c4   :  { %v6526_v15 = vadd.f32 %v6525_v19, %v6357_v43  ;;  %v6358_v27 = vpop.f32.mrf.mxu1  ;;  %v3649_v21 = vpack.c.bf16 %v3585_v44, %v3585_v44  ;;  %v4417_v10 = vpack.c.bf16 %v4353_v0, %v4353_v0  ;;  %v3006_v19 = vld [vmem:[#allocation2 + $0x390] ss:$2 sm:$0xff] }
 0x6c5   :  { %v6863_v58 = vpop.f32.mrf.mxu2  ;;  %v5313_v54 = vunpack.c.l.b16 %v4033_v55  ;;  %v4286_v55 = vld [vmem:[#allocation2 + $0x397] ss:$2 sm:$0xff]  ;;  %v3204_v34 = vmax.f32 %v3006_v19, %v3134_v26 }
 0x6c6   :  { %v6696_v45 = vpop.f32.mrf.mxu0  ;;  %v6695_v28 = vadd.f32 %v6694_v7, %v6526_v15  ;;  %v6359_v7 = vadd.f32 %v6358_v27, %v13632_v18  ;;  %v5121_v43 = vunpack.c.l.b16 %v3649_v21  ;;  %v5505_v62 = vunpack.c.l.b16 %v4417_v10  ;;  %v3390_v15 = vld [vmem:[#allocation2 + $0x392] ss:$2 sm:$0xff]  ;;  %v3518_v27 = vld [vmem:[#allocation2 + $0x393] ss:$2 sm:$0xff] }
 0x6c7   :  { %v14118_v6 = vpack.c.b16 %v5314_v48, %v5313_v54  ;;  %v4158_v21 = vld [vmem:[#allocation2 + $0x396] ss:$2 sm:$0xff]  ;;  %v3900_v10 = vld [vmem:[#allocation2 + $0x385] ss:$2 sm:$0xff]  ;;  %v4156_v48 = vld [vmem:[#allocation2 + $0x386] ss:$2 sm:$0xff] }
 0x6c8   :  { %v14105_v14 = vadd.f32 %v6863_v58, %v6695_v28  ;;  %v4929_v28 = vunpack.c.l.b16 %v3265_v49  ;;  %v14116_v0 = vpack.c.b16 %v5122_v8, %v5121_v43  ;;  %v14121_v58 = vpack.c.b16 %v5506_v3, %v5505_v62  ;;  %v3902_v49 = vld [vmem:[#allocation2 + $0x395] ss:$2 sm:$0xff] }
 0x6c9   :  { %15964 = vst [vmem:[#allocation136_spill] sm:$0xff] %v14118_v6  ;;  %v3972_v8 = vmax.f32 %v3774_v22, %v3902_v49  ;;  %v3203_v3 = vmax.f32 %v3004_v41, %v3132_v37 }
 0x6ca   :  { %15961 = vst [vmem:[#allocation133_spill] sm:$0xff] %v14105_v14  ;;  %v14114_v24 = vpack.c.b16 %v4930_v50, %v4929_v28  ;;  %v3772_v50 = vld [vmem:[#allocation2 + $0x384] ss:$2 sm:$0xff] }
 0x6cb   :  { %v6527_v56 = vpop.f32.mrf.mxu3  ;;  %15963 = vst [vmem:[#allocation135_spill] sm:$0xff] %v14116_v0 }
 0x6cc   :  { %v6528_v16 = vadd.f32 %v6527_v56, %v6359_v7  ;;  %v6361_v9 = vpop.f32.mrf.mxu1  ;;  %15962 = vst [vmem:[#allocation134_spill] sm:$0xff] %v14114_v24  ;;  %v3588_v7 = vmax.f32 %v3390_v15, %v3518_v27  ;;  %v4284_v56 = vld [vmem:[#allocation2 + $0x387] ss:$2 sm:$0xff] }
 0x6cd   :  { %v6865_v44 = vpop.f32.mrf.mxu2  ;;  %15965 = vst [vmem:[#allocation137_spill] sm:$0xff] %v14121_v58  ;;  %v6362_v33 = vadd.f32 %v6361_v9, %v13632_v18  ;;  %v4355_v19 = vmax.f32 %v4156_v48, %v4284_v56 }
 0x6ce   :  { %v6699_v1 = vpop.f32.mrf.mxu0  ;;  %v6697_v59 = vadd.f32 %v6696_v45, %v6528_v16  ;;  %v3388_v45 = vld [vmem:[#allocation2 + $0x382] ss:$2 sm:$0xff]  ;;  %v4356_v16 = vmax.f32 %v4158_v21, %v4286_v55 }
 0x6cf   :  { %6400 = vmatmul.bf16.gmra.mxu1 %v14114_v24  ;;  %v3587_v62 = vmax.f32 %v3388_v45, %v3516_v52  ;;  %v4036_v24 = vpack.c.bf16 %v3972_v8, %v3972_v8  ;;  %v4419_v41 = vpack.c.bf16 %v4355_v19, %v4355_v19  ;;  %v3776_v19 = vld [vmem:[#allocation2 + $0x3a4] ss:$2 sm:$0xff] }
 0x6d0   :  { %v14123_v13 = vadd.f32 %v6865_v44, %v6697_v59  ;;  %6569 = vmatmul.bf16.gmra.mxu3 %v14116_v0  ;;  %v3971_v59 = vmax.f32 %v3772_v50, %v3900_v10  ;;  %v3652_v0 = vpack.c.bf16 %v3588_v7, %v3588_v7  ;;  %v4420_v9 = vpack.c.bf16 %v4356_v16, %v4356_v16  ;;  %v3008_v16 = vld [vmem:[#allocation2 + $0x3a0] ss:$2 sm:$0xff] }
 0x6d1   :  { %6738 = vmatmul.bf16.gmra.mxu0 %v14118_v6  ;;  %v3651_v27 = vpack.c.bf16 %v3587_v62, %v3587_v62  ;;  %v5316_v55 = vunpack.c.l.b16 %v4036_v24  ;;  %v5507_v56 = vunpack.c.l.b16 %v4419_v41  ;;  %v3136_v24 = vld [vmem:[#allocation2 + $0x3a1] ss:$2 sm:$0xff] }
 0x6d2   :  { %15966 = vst [vmem:[#allocation138_spill] sm:$0xff] %v14123_v13  ;;  %6907 = vmatmul.bf16.gmra.mxu2 %v14121_v58  ;;  %v3268_v58 = vpack.c.bf16 %v3204_v34, %v3204_v34  ;;  %v3267_v13 = vpack.c.bf16 %v3203_v3, %v3203_v3  ;;  %v4035_v22 = vpack.c.bf16 %v3971_v59, %v3971_v59  ;;  %v5124_v21 = vunpack.c.l.b16 %v3652_v0  ;;  %v3010_v0 = vld [vmem:[#allocation2 + $0x3b0] ss:$2 sm:$0xff]  ;;  %v3520_v62 = vld [vmem:[#allocation2 + $0x3a3] ss:$2 sm:$0xff] }
 0x6d3   :  { %v6530_v28 = vpop.f32.mrf.mxu3  ;;  %v5508_v50 = vunpack.c.l.b16 %v4420_v9  ;;  %v3522_v59 = vld [vmem:[#allocation2 + $0x3b3] ss:$2 sm:$0xff] }
 0x6d4   :  { %v6531_v44 = vadd.f32 %v6530_v28, %v6362_v33  ;;  %v6363_v54 = vpop.f32.mrf.mxu1  ;;  %v4932_v49 = vunpack.c.l.b16 %v3268_v58  ;;  %v4931_v52 = vunpack.c.l.b16 %v3267_v13  ;;  %v5123_v33 = vunpack.c.l.b16 %v3651_v27  ;;  %v3394_v13 = vld [vmem:[#allocation2 + $0x3b2] ss:$2 sm:$0xff]  ;;  %v3906_v9 = vld [vmem:[#allocation2 + $0x3b5] ss:$2 sm:$0xff]  ;;  %v3904_v27 = vld [vmem:[#allocation2 + $0x3a5] ss:$2 sm:$0xff] }
 0x6d5   :  { %v6868_v43 = vpop.f32.mrf.mxu2  ;;  %v6364_v37 = vadd.f32 %v6363_v54, %v13632_v18  ;;  %v5315_v7 = vunpack.c.l.b16 %v4035_v22  ;;  %v3392_v54 = vld [vmem:[#allocation2 + $0x3a2] ss:$2 sm:$0xff] }
 0x6d6   :  { %v6701_v6 = vpop.f32.mrf.mxu0  ;;  %v6700_v26 = vadd.f32 %v6699_v1, %v6531_v44  ;;  %v14132_v48 = vpack.c.b16 %v4932_v49, %v4931_v52  ;;  %v14134_v3 = vpack.c.b16 %v5124_v21, %v5123_v33  ;;  %v3138_v44 = vld [vmem:[#allocation2 + $0x3b1] ss:$2 sm:$0xff]  ;;  %v4162_v22 = vld [vmem:[#allocation2 + $0x3b6] ss:$2 sm:$0xff]  ;;  %v3590_v52 = vmax.f32 %v3394_v13, %v3522_v59 }
 0x6d7   :  { %v14136_v58 = vpack.c.b16 %v5316_v55, %v5315_v7  ;;  %v4290_v49 = vld [vmem:[#allocation2 + $0x3b7] ss:$2 sm:$0xff]  ;;  %v3206_v41 = vmax.f32 %v3010_v0, %v3138_v44 }
 0x6d8   :  { %v14129_v15 = vadd.f32 %v6868_v43, %v6700_v26  ;;  %15968 = vst [vmem:[#allocation140_spill] sm:$0xff] %v14132_v48  ;;  %v14139_v43 = vpack.c.b16 %v5508_v50, %v5507_v56  ;;  %v3778_v26 = vld [vmem:[#allocation2 + $0x3b4] ss:$2 sm:$0xff]  ;;  %v4358_v0 = vmax.f32 %v4162_v22, %v4290_v49 }
 0x6d9   :  { %15969 = vst [vmem:[#allocation141_spill] sm:$0xff] %v14134_v3  ;;  %v10079_v21 = vld [vmem:[%s15479_s3 + $0xf8] sm:$0xf0]  ;;  %v10693_v55 = vld [vmem:[%s15479_s3 + $0x174] sm:$0xf]  ;;  %v3974_v50 = vmax.f32 %v3778_v26, %v3906_v9  ;;  %v3270_v13 = vpack.c.bf16 %v3206_v41, %v3206_v41  ;;  %v3654_v9 = vpack.c.bf16 %v3590_v52, %v3590_v52 }
 0x6da   :  { %15967 = vst [vmem:[#allocation139_spill] sm:$0xff] %v14129_v15  ;;  %v10143_v7 = vld [vmem:[%s15479_s3 + $0x178] sm:$0xf0]  ;;  %v4422_v15 = vpack.c.bf16 %v4358_v0, %v4358_v0  ;;  %v10673_v22 = vld [vmem:[%s15479_s3 + $0xd4] sm:$0xf] }
 0x6db   :  { %v6532_v45 = vpop.f32.mrf.mxu3  ;;  %15970 = vst [vmem:[#allocation142_spill] sm:$0xff] %v14136_v58  ;;  %v10146_v44 = vor.u32 %v10693_v55, %v10143_v7  ;;  %v10063_v49 = vld [vmem:[%s15479_s3 + $0xd8] sm:$0xf0]  ;;  %v4934_v41 = vunpack.c.l.b16 %v3270_v13  ;;  %v5126_v52 = vunpack.c.l.b16 %v3654_v9 }
 0x6dc   :  { %v6533_v34 = vadd.f32 %v6532_v45, %v6364_v37  ;;  %v6366_v1 = vpop.f32.mrf.mxu1  ;;  %15971 = vst [vmem:[#allocation143_spill] sm:$0xff] %v14139_v43  ;;  %v10677_v37 = vld [vmem:[%s15479_s3 + $0xf4] sm:$0xf]  ;;  %v5510_v7 = vunpack.c.l.b16 %v4422_v15  ;;  %v3012_v15 = vld [vmem:[#allocation2 + $0x3c0] ss:$2 sm:$0xff] }
 0x6dd   :  { %v6870_v10 = vpop.f32.mrf.mxu2  ;;  %v6367_v45 = vadd.f32 %v6366_v1, %v13632_v18  ;;  %v10082_v33 = vor.u32 %v10677_v37, %v10079_v21  ;;  %7440 = vmatpush.bf16.msrb.mxu2 %v10146_v44  ;;  %v4038_v37 = vpack.c.bf16 %v3974_v50, %v3974_v50  ;;  %v3398_v9 = vld [vmem:[#allocation2 + $0x3d2] ss:$2 sm:$0xff] }
 0x6de   :  { %v6704_v8 = vpop.f32.mrf.mxu0  ;;  %v6702_v28 = vadd.f32 %v6701_v6, %v6533_v34  ;;  %v4160_v34 = vld [vmem:[#allocation2 + $0x3a6] ss:$2 sm:$0xff] }
 0x6df   :  { %6405 = vmatmul.bf16.gmra.mxu1 %v14132_v48  ;;  %v3589_v48 = vmax.f32 %v3392_v54, %v3520_v62  ;;  %7271 = vmatpush.bf16.msrb.mxu0 %v10082_v33  ;;  %v10691_v54 = vld [vmem:[%s15479_s3 + $0x164] sm:$0xf]  ;;  %v5318_v50 = vunpack.c.l.b16 %v4038_v37 }
 0x6e0   :  { %v14141_v6 = vadd.f32 %v6870_v10, %v6702_v28  ;;  %6574 = vmatmul.bf16.gmra.mxu3 %v14134_v3  ;;  %v4288_v10 = vld [vmem:[#allocation2 + $0x3a7] ss:$2 sm:$0xff]  ;;  %v3205_v28 = vmax.f32 %v3008_v16, %v3136_v24 }
 0x6e1   :  { %6743 = vmatmul.bf16.gmra.mxu0 %v14136_v58  ;;  %v4357_v59 = vmax.f32 %v4160_v34, %v4288_v10  ;;  %v10675_v16 = vld [vmem:[%s15479_s3 + $0xe4] sm:$0xf]  ;;  %v10071_v24 = vld [vmem:[%s15479_s3 + $0xe8] sm:$0xf0]  ;;  %v10066_v34 = vor.u32 %v10673_v22, %v10063_v49  ;;  %v3526_v22 = vld [vmem:[#allocation2 + $0x3d3] ss:$2 sm:$0xff] }
 0x6e2   :  { %15972 = vst [vmem:[#allocation144_spill] sm:$0xff] %v14141_v6  ;;  %6912 = vmatmul.bf16.gmra.mxu2 %v14139_v43  ;;  %v3973_v6 = vmax.f32 %v3776_v19, %v3904_v27  ;;  %v3269_v21 = vpack.c.bf16 %v3205_v28, %v3205_v28  ;;  %v3653_v19 = vpack.c.bf16 %v3589_v48, %v3589_v48  ;;  %v10135_v27 = vld [vmem:[%s15479_s3 + $0x168] sm:$0xf0]  ;;  %v10689_v48 = vld [vmem:[%s15479_s3 + $0x154] sm:$0xf] }
 0x6e3   :  { %v6535_v56 = vpop.f32.mrf.mxu3  ;;  %v4421_v55 = vpack.c.bf16 %v4357_v59, %v4357_v59  ;;  %v3782_v49 = vld [vmem:[#allocation2 + $0x3d4] ss:$2 sm:$0xff] }
 0x6e4   :  { %v6536_v43 = vadd.f32 %v6535_v56, %v6367_v45  ;;  %v6368_v3 = vpop.f32.mrf.mxu1  ;;  %v10138_v45 = vor.u32 %v10691_v54, %v10135_v27  ;;  %v4933_v33 = vunpack.c.l.b16 %v3269_v21  ;;  %v5125_v13 = vunpack.c.l.b16 %v3653_v19  ;;  %v3014_v54 = vld [vmem:[#allocation2 + $0x3d0] ss:$2 sm:$0xff]  ;;  %v3140_v21 = vld [vmem:[#allocation2 + $0x3c1] ss:$2 sm:$0xff] }
 0x6e5   :  { %v6873_v58 = vpop.f32.mrf.mxu2 }
 0x6e6   :  { %v6706_v1 = vpop.f32.mrf.mxu0  ;;  %v6705_v26 = vadd.f32 %v6704_v8, %v6536_v43  ;;  %v4037_v8 = vpack.c.bf16 %v3973_v6, %v3973_v6  ;;  %v10074_v43 = vor.u32 %v10675_v16, %v10071_v24  ;;  %v6369_v6 = vadd.f32 %v6368_v3, %v13632_v18  ;;  %7441 = vmatpush.bf16.msrb.mxu2 %v10138_v45  ;;  %v3142_v3 = vld [vmem:[#allocation2 + $0x3d1] ss:$2 sm:$0xff] }
 0x6e7   :  { %v14186_v16 = vpack.c.b16 %v4934_v41, %v4933_v33  ;;  %v5509_v24 = vunpack.c.l.b16 %v4421_v55  ;;  %v3910_v45 = vld [vmem:[#allocation2 + $0x3d5] ss:$2 sm:$0xff]  ;;  %v3780_v55 = vld [vmem:[#allocation2 + $0x3c4] ss:$2 sm:$0xff] }
 0x6e8   :  { %v14168_v62 = vadd.f32 %v6873_v58, %v6705_v26  ;;  %v10127_v58 = vld [vmem:[%s15479_s3 + $0x158] sm:$0xf0]  ;;  %7272 = vmatpush.bf16.msrb.mxu0 %v10074_v43  ;;  %v5317_v59 = vunpack.c.l.b16 %v4037_v8  ;;  %v14188_v43 = vpack.c.b16 %v5126_v52, %v5125_v13  ;;  %v3396_v8 = vld [vmem:[#allocation2 + $0x3c2] ss:$2 sm:$0xff]  ;;  %v3524_v41 = vld [vmem:[#allocation2 + $0x3c3] ss:$2 sm:$0xff] }
 0x6e9   :  { %v10130_v56 = vor.u32 %v10689_v48, %v10127_v58  ;;  %15974 = vst [vmem:[#allocation146_spill] sm:$0xff] %v14186_v16  ;;  %v14193_v19 = vpack.c.b16 %v5510_v7, %v5509_v24  ;;  %v3908_v48 = vld [vmem:[#allocation2 + $0x3c5] ss:$2 sm:$0xff]  ;;  %v3208_v7 = vmax.f32 %v3014_v54, %v3142_v3  ;;  %v10685_v13 = vld [vmem:[%s15479_s3 + $0x134] sm:$0xf]  ;;  %v3592_v24 = vmax.f32 %v3398_v9, %v3526_v22 }
 0x6ea   :  { %15973 = vst [vmem:[#allocation145_spill] sm:$0xff] %v14168_v62  ;;  %v14190_v27 = vpack.c.b16 %v5318_v50, %v5317_v59  ;;  %v10055_v58 = vld [vmem:[%s15479_s3 + $0xc8] sm:$0xf0]  ;;  %v4166_v50 = vld [vmem:[#allocation2 + $0x3d6] ss:$2 sm:$0xff]  ;;  %v3591_v62 = vmax.f32 %v3396_v8, %v3524_v41 }
 0x6eb   :  { %v6537_v10 = vpop.f32.mrf.mxu3  ;;  %15975 = vst [vmem:[#allocation147_spill] sm:$0xff] %v14188_v43  ;;  %7442 = vmatpush.bf16.msrb.mxu2 %v10130_v56  ;;  %v10119_v33 = vld [vmem:[%s15479_s3 + $0x148] sm:$0xf0]  ;;  %v10111_v3 = vld [vmem:[%s15479_s3 + $0x138] sm:$0xf0]  ;;  %v3272_v22 = vpack.c.bf16 %v3208_v7, %v3208_v7 }
 0x6ec   :  { %v6538_v28 = vadd.f32 %v6537_v10, %v6369_v6  ;;  %v6371_v44 = vpop.f32.mrf.mxu1  ;;  %15976 = vst [vmem:[#allocation148_spill] sm:$0xff] %v14190_v27  ;;  %7273 = vmatpush.bf16.msrb.mxu0 %v10066_v34  ;;  %v10687_v6 = vld [vmem:[%s15479_s3 + $0x144] sm:$0xf] }
 0x6ed   :  { %v6875_v0 = vpop.f32.mrf.mxu2  ;;  %15977 = vst [vmem:[#allocation149_spill] sm:$0xff] %v14193_v19  ;;  %v4294_v34 = vld [vmem:[#allocation2 + $0x3d7] ss:$2 sm:$0xff]  ;;  %v10122_v56 = vor.u32 %v10687_v6, %v10119_v33  ;;  %v6372_v59 = vadd.f32 %v6371_v44, %v13632_v18  ;;  %v3207_v33 = vmax.f32 %v3012_v15, %v3140_v21  ;;  %v3975_v44 = vmax.f32 %v3780_v55, %v3908_v48  ;;  %v10039_v21 = vld [vmem:[%s15479_s3 + $0xa8] sm:$0xf0] }
 0x6ee   :  { %v6709_v26 = vpop.f32.mrf.mxu0  ;;  %v6707_v37 = vadd.f32 %v6706_v1, %v6538_v28  ;;  %v10671_v1 = vld [vmem:[%s15479_s3 + $0xc4] sm:$0xf]  ;;  %v10669_v28 = vld [vmem:[%s15479_s3 + $0xb4] sm:$0xf]  ;;  %v10031_v48 = vld [vmem:[%s15479_s3 + $0x98] sm:$0xf0] }
 0x6ef   :  { %6410 = vmatmul.bf16.gmra.mxu1 %v14186_v16  ;;  %v10058_v10 = vor.u32 %v10671_v1, %v10055_v58  ;;  %v4164_v1 = vld [vmem:[#allocation2 + $0x3c6] ss:$2 sm:$0xff]  ;;  %v4292_v58 = vld [vmem:[#allocation2 + $0x3c7] ss:$2 sm:$0xff]  ;;  %7443 = vmatpush.bf16.msrb.mxu2 %v10122_v56 }
 0x6f0   :  { %v14204_v52 = vadd.f32 %v6875_v0, %v6707_v37  ;;  %6579 = vmatmul.bf16.gmra.mxu3 %v14188_v43  ;;  %v10047_v0 = vld [vmem:[%s15479_s3 + $0xb8] sm:$0xf0]  ;;  %v3976_v37 = vmax.f32 %v3782_v49, %v3910_v45  ;;  %v4359_v49 = vmax.f32 %v4164_v1, %v4292_v58  ;;  %v10667_v15 = vld [vmem:[%s15479_s3 + $0xa4] sm:$0xf] }
 0x6f1   :  { %6748 = vmatmul.bf16.gmra.mxu0 %v14190_v27  ;;  %v10050_v54 = vor.u32 %v10669_v28, %v10047_v0  ;;  %v10114_v27 = vor.u32 %v10685_v13, %v10111_v3  ;;  %v3271_v0 = vpack.c.bf16 %v3207_v33, %v3207_v33  ;;  %v10683_v8 = vld [vmem:[%s15479_s3 + $0x124] sm:$0xf]  ;;  %v10042_v55 = vor.u32 %v10667_v15, %v10039_v21  ;;  %v3018_v21 = vld [vmem:[#allocation2 + $0x3f0] ss:$2 sm:$0xff] }
 0x6f2   :  { %15978 = vst [vmem:[#allocation150_spill] sm:$0xff] %v14204_v52  ;;  %6917 = vmatmul.bf16.gmra.mxu2 %v14193_v19  ;;  %7274 = vmatpush.bf16.msrb.mxu0 %v10058_v10  ;;  %v4360_v19 = vmax.f32 %v4166_v50, %v4294_v34  ;;  %v3656_v10 = vpack.c.bf16 %v3592_v24, %v3592_v24  ;;  %v4936_v50 = vunpack.c.l.b16 %v3272_v22 }
 0x6f3   :  { %v6540_v6 = vpop.f32.mrf.mxu3  ;;  %v4040_v28 = vpack.c.bf16 %v3976_v37, %v3976_v37  ;;  %7444 = vmatpush.bf16.msrb.mxu2 %v10114_v27  ;;  %v10103_v27 = vld [vmem:[%s15479_s3 + $0x128] sm:$0xf0]  ;;  %v4423_v34 = vpack.c.bf16 %v4359_v49, %v4359_v49  ;;  %v4935_v1 = vunpack.c.l.b16 %v3271_v0 }
 0x6f4   :  { %v6541_v43 = vadd.f32 %v6540_v6, %v6372_v59  ;;  %v6373_v52 = vpop.f32.mrf.mxu1  ;;  %v4424_v14 = vpack.c.bf16 %v4360_v19, %v4360_v19  ;;  %v10665_v19 = vld [vmem:[%s15479_s3 + $0x94] sm:$0xf]  ;;  %v10106_v7 = vor.u32 %v10683_v8, %v10103_v27  ;;  %v5128_v13 = vunpack.c.l.b16 %v3656_v10  ;;  %v3144_v0 = vld [vmem:[#allocation2 + $0x3e1] ss:$2 sm:$0xff] }
 0x6f5   :  { %v6878_v16 = vpop.f32.mrf.mxu2  ;;  %v6374_v56 = vadd.f32 %v6373_v52, %v13632_v18  ;;  %v5320_v59 = vunpack.c.l.b16 %v4040_v28  ;;  %v10034_v24 = vor.u32 %v10665_v19, %v10031_v48  ;;  %v5511_v15 = vunpack.c.l.b16 %v4423_v34  ;;  %v3146_v52 = vld [vmem:[#allocation2 + $0x3f1] ss:$2 sm:$0xff]  ;;  %v3402_v10 = vld [vmem:[#allocation2 + $0x3f2] ss:$2 sm:$0xff] }
 0x6f6   :  { %v6711_v9 = vpop.f32.mrf.mxu0  ;;  %v6710_v45 = vadd.f32 %v6709_v26, %v6541_v43  ;;  %7275 = vmatpush.bf16.msrb.mxu0 %v10050_v54  ;;  %v3655_v26 = vpack.c.bf16 %v3591_v62, %v3591_v62  ;;  %v4039_v43 = vpack.c.bf16 %v3975_v44, %v3975_v44  ;;  %v10681_v62 = vld [vmem:[%s15479_s3 + $0x114] sm:$0xf]  ;;  %v5512_v58 = vunpack.c.l.b16 %v4424_v14  ;;  %v3016_v14 = vld [vmem:[#allocation2 + $0x3e0] ss:$2 sm:$0xff] }
 0x6f7   :  { %7445 = vmatpush.bf16.msrb.mxu2 %v10106_v7  ;;  %v3530_v27 = vld [vmem:[#allocation2 + $0x3f3] ss:$2 sm:$0xff]  ;;  %v3786_v19 = vld [vmem:[#allocation2 + $0x3f4] ss:$2 sm:$0xff]  ;;  %v3784_v34 = vld [vmem:[#allocation2 + $0x3e4] ss:$2 sm:$0xff] }
 0x6f8   :  { %v14234_v41 = vadd.f32 %v6878_v16, %v6710_v45  ;;  %v10095_v16 = vld [vmem:[%s15479_s3 + $0x118] sm:$0xf0]  ;;  %v5127_v44 = vunpack.c.l.b16 %v3655_v26  ;;  %v5319_v22 = vunpack.c.l.b16 %v4039_v43  ;;  %v14252_v45 = vpack.c.b16 %v4936_v50, %v4935_v1  ;;  %v3400_v43 = vld [vmem:[#allocation2 + $0x3e2] ss:$2 sm:$0xff]  ;;  %v3528_v50 = vld [vmem:[#allocation2 + $0x3e3] ss:$2 sm:$0xff] }
 0x6f9   :  { %v10098_v54 = vor.u32 %v10681_v62, %v10095_v16  ;;  %v3914_v48 = vld [vmem:[#allocation2 + $0x3f5] ss:$2 sm:$0xff]  ;;  %v14259_v26 = vpack.c.b16 %v5512_v58, %v5511_v15  ;;  %v10023_v7 = vld [vmem:[%s15479_s3 + $0x88] sm:$0xf0]  ;;  %v10679_v62 = vld [vmem:[%s15479_s3 + $0x104] sm:$0xf] }
 0x6fa   :  { %15979 = vst [vmem:[#allocation151_spill] sm:$0xff] %v14234_v41  ;;  %7276 = vmatpush.bf16.msrb.mxu0 %v10042_v55  ;;  %v14254_v8 = vpack.c.b16 %v5128_v13, %v5127_v44  ;;  %v14256_v55 = vpack.c.b16 %v5320_v59, %v5319_v22  ;;  %v4298_v13 = vld [vmem:[#allocation2 + $0x3f7] ss:$2 sm:$0xff]  ;;  %v3594_v44 = vmax.f32 %v3402_v10, %v3530_v27  ;;  %v4168_v15 = vld [vmem:[#allocation2 + $0x3e6] ss:$2 sm:$0xff] }
 0x6fb   :  { %v6542_v37 = vpop.f32.mrf.mxu3  ;;  %15980 = vst [vmem:[#allocation152_spill] sm:$0xff] %v14252_v45  ;;  %7446 = vmatpush.bf16.msrb.mxu2 %v10098_v54  ;;  %v3912_v1 = vld [vmem:[#allocation2 + $0x3e5] ss:$2 sm:$0xff]  ;;  %v10725_v54 = vld [vmem:[%s15479_s3 + $0x274] sm:$0xf]  ;;  %v3978_v22 = vmax.f32 %v3786_v19, %v3914_v48 }
 0x6fc   :  { %v6543_v3 = vadd.f32 %v6542_v37, %v6374_v56  ;;  %v6376_v33 = vpop.f32.mrf.mxu1  ;;  %15981 = vst [vmem:[#allocation153_spill] sm:$0xff] %v14254_v8  ;;  %v4170_v56 = vld [vmem:[#allocation2 + $0x3f6] ss:$2 sm:$0xff]  ;;  %v3210_v37 = vmax.f32 %v3018_v21, %v3146_v52  ;;  %v3209_v21 = vmax.f32 %v3016_v14, %v3144_v0  ;;  %v3658_v10 = vpack.c.bf16 %v3594_v44, %v3594_v44 }
 0x6fd   :  { %v6880_v6 = vpop.f32.mrf.mxu2  ;;  %15982 = vst [vmem:[#allocation154_spill] sm:$0xff] %v14256_v55  ;;  %v4362_v52 = vmax.f32 %v4170_v56, %v4298_v13  ;;  %v4042_v27 = vpack.c.bf16 %v3978_v22, %v3978_v22  ;;  %v10709_v0 = vld [vmem:[%s15479_s3 + $0x1f4] sm:$0xf] }
 0x6fe   :  { %v6714_v49 = vpop.f32.mrf.mxu0  ;;  %v6712_v28 = vadd.f32 %v6711_v9, %v6543_v3  ;;  %7277 = vmatpush.bf16.msrb.mxu0 %v10034_v24  ;;  %15983 = vst [vmem:[#allocation155_spill] sm:$0xff] %v14259_v26  ;;  %v10663_v9 = vld [vmem:[%s15479_s3 + $0x84] sm:$0xf]  ;;  %v10087_v24 = vld [vmem:[%s15479_s3 + $0x108] sm:$0xf0]  ;;  %v3273_v19 = vpack.c.bf16 %v3209_v21, %v3209_v21  ;;  %v5130_v13 = vunpack.c.l.b16 %v3658_v10 }
 0x6ff   :  { %6415 = vmatmul.bf16.gmra.mxu1 %v14252_v45  ;;  %v10026_v59 = vor.u32 %v10663_v9, %v10023_v7  ;;  %v10090_v58 = vor.u32 %v10679_v62, %v10087_v24  ;;  %v10271_v3 = vld [vmem:[%s15479_s3 + $0x278] sm:$0xf0]  ;;  %v4426_v48 = vpack.c.bf16 %v4362_v52, %v4362_v52 }
 0x700   :  { %v14270_v16 = vadd.f32 %v6880_v6, %v6712_v28  ;;  %6584 = vmatmul.bf16.gmra.mxu3 %v14254_v8  ;;  %v6377_v6 = vadd.f32 %v6376_v33, %v13632_v18  ;;  %v4296_v28 = vld [vmem:[#allocation2 + $0x3e7] ss:$2 sm:$0xff]  ;;  %v10274_v9 = vor.u32 %v10725_v54, %v10271_v3  ;;  %v3977_v8 = vmax.f32 %v3784_v34, %v3912_v1 }
 0x701   :  { %6753 = vmatmul.bf16.gmra.mxu0 %v14256_v55  ;;  %7447 = vmatpush.bf16.msrb.mxu2 %v10090_v58  ;;  %v3593_v55 = vmax.f32 %v3400_v43, %v3528_v50  ;;  %v4361_v41 = vmax.f32 %v4168_v15, %v4296_v28  ;;  %v10207_v43 = vld [vmem:[%s15479_s3 + $0x1f8] sm:$0xf0]  ;;  %v4937_v58 = vunpack.c.l.b16 %v3273_v19  ;;  %v5514_v3 = vunpack.c.l.b16 %v4426_v48 }
 0x702   :  { %15984 = vst [vmem:[#allocation156_spill] sm:$0xff] %v14270_v16  ;;  %6922 = vmatmul.bf16.gmra.mxu2 %v14259_v26  ;;  %7278 = vmatpush.bf16.msrb.mxu0 %v10026_v59  ;;  %v3274_v16 = vpack.c.bf16 %v3210_v37, %v3210_v37  ;;  %v4041_v14 = vpack.c.bf16 %v3977_v8, %v3977_v8  ;;  %v5322_v37 = vunpack.c.l.b16 %v4042_v27  ;;  %v4558_v21 = vld [vmem:[#allocation2 + $0x19] ss:$2 sm:$0xff] }
 0x703   :  { %v6545_v7 = vpop.f32.mrf.mxu3  ;;  %7778 = vmatpush.bf16.msrb.mxu3 %v10274_v9  ;;  %v3657_v54 = vpack.c.bf16 %v3593_v55, %v3593_v55  ;;  %v4425_v34 = vpack.c.bf16 %v4361_v41, %v4361_v41  ;;  %v10210_v56 = vor.u32 %v10709_v0, %v10207_v43 }
 0x704   :  { %v6546_v62 = vadd.f32 %v6545_v7, %v6377_v6  ;;  %v6378_v26 = vpop.f32.mrf.mxu1  ;;  %v4938_v50 = vunpack.c.l.b16 %v3274_v16  ;;  %v5321_v22 = vunpack.c.l.b16 %v4041_v14 }
 0x705   :  { %v6883_v24 = vpop.f32.mrf.mxu2  ;;  %7609 = vmatpush.bf16.msrb.mxu1 %v10210_v56  ;;  %v5129_v44 = vunpack.c.l.b16 %v3657_v54  ;;  %v5513_v9 = vunpack.c.l.b16 %v4425_v34 }
 0x706   :  { %v6716_v45 = vpop.f32.mrf.mxu0  ;;  %v6715_v33 = vadd.f32 %v6714_v49, %v6546_v62  ;;  %v6379_v49 = vadd.f32 %v6378_v26, %v13632_v18  ;;  %v14294_v28 = vpack.c.b16 %v4938_v50, %v4937_v58  ;;  %v14298_v7 = vpack.c.b16 %v5322_v37, %v5321_v22  ;;  %v4430_v26 = vld [vmem:[#allocation2 + $0x18] ss:$2 sm:$0xff] }
 0x707   :  { %v14296_v41 = vpack.c.b16 %v5130_v13, %v5129_v44  ;;  %v14301_v52 = vpack.c.b16 %v5514_v3, %v5513_v9  ;;  %v4434_v22 = vld [vmem:[#allocation2 + $0x38] ss:$2 sm:$0xff]  ;;  %v4562_v9 = vld [vmem:[#allocation2 + $0x39] ss:$2 sm:$0xff] }
 0x708   :  { %v14285_v59 = vadd.f32 %v6883_v24, %v6715_v33  ;;  %v4428_v24 = vld [vmem:[#allocation2 + $0x8] ss:$2 sm:$0xff]  ;;  %v4556_v33 = vld [vmem:[#allocation2 + $0x9] ss:$2 sm:$0xff] }
 0x709   :  { %15985 = vst [vmem:[#allocation157_spill] sm:$0xff] %v14301_v52  ;;  %v4683_v19 = vmax.f32 %v4428_v24, %v4556_v33 }
 0x70b   :  { %v6547_v1 = vpop.f32.mrf.mxu3  ;;  %v4747_v34 = vpack.c.bf16 %v4683_v19, %v4683_v19 }
 0x70c   :  { %v6548_v8 = vadd.f32 %v6547_v1, %v6379_v49  ;;  %v6381_v6 = vpop.f32.mrf.mxu1 }
 0x70d   :  { %v6885_v55 = vpop.f32.mrf.mxu2  ;;  %v6382_v10 = vadd.f32 %v6381_v6, %v13632_v18  ;;  %v5643_v1 = vunpack.c.l.b16 %v4747_v34 }
 0x70e   :  { %v6719_v15 = vpop.f32.mrf.mxu0  ;;  %v6717_v16 = vadd.f32 %v6716_v45, %v6548_v8  ;;  %v4684_v45 = vmax.f32 %v4430_v26, %v4558_v21  ;;  %v4560_v26 = vld [vmem:[#allocation2 + $0x29] ss:$2 sm:$0xff]  ;;  %v4686_v21 = vmax.f32 %v4434_v22, %v4562_v9 }
 0x70f   :  { %6420 = vmatmul.bf16.gmra.mxu1 %v14294_v28  ;;  %v4564_v22 = vld [vmem:[#allocation2 + $0x49] ss:$2 sm:$0xff] }
 0x710   :  { %v14303_v62 = vadd.f32 %v6885_v55, %v6717_v16  ;;  %6589 = vmatmul.bf16.gmra.mxu3 %v14296_v41  ;;  %v4748_v43 = vpack.c.bf16 %v4684_v45, %v4684_v45  ;;  %v4432_v16 = vld [vmem:[#allocation2 + $0x28] ss:$2 sm:$0xff] }
 0x711   :  { %6758 = vmatmul.bf16.gmra.mxu0 %v14298_v7  ;;  %v4685_v45 = vmax.f32 %v4432_v16, %v4560_v26 }
 0x712   :  { %6927 = vmatmul.bf16.gmra.mxu2 %v14301_v52  ;;  %v5644_v49 = vunpack.c.l.b16 %v4748_v43 }
 0x713   :  { %v6550_v27 = vpop.f32.mrf.mxu3 }
 0x714   :  { %v6551_v48 = vadd.f32 %v6550_v27, %v6382_v10  ;;  %v6383_v14 = vpop.f32.mrf.mxu1  ;;  %v14312_v6 = vpack.c.b16 %v5644_v49, %v5643_v1 }
 0x715   :  { %v6888_v54 = vpop.f32.mrf.mxu2  ;;  %v6384_v13 = vadd.f32 %v6383_v14, %v13632_v18 }
 0x716   :  { %v6721_v0 = vpop.f32.mrf.mxu0  ;;  %v6720_v50 = vadd.f32 %v6719_v15, %v6551_v48 }
 0x718   :  { %v14309_v56 = vadd.f32 %v6888_v54, %v6720_v50  ;;  %v4750_v54 = vpack.c.bf16 %v4686_v21, %v4686_v21 }
 0x71b   :  { %v6552_v37 = vpop.f32.mrf.mxu3 }
 0x71c   :  { %v6553_v58 = vadd.f32 %v6552_v37, %v6384_v13  ;;  %v6386_v8 = vpop.f32.mrf.mxu1 }
 0x71d   :  { %v6890_v3 = vpop.f32.mrf.mxu2  ;;  %v6387_v24 = vadd.f32 %v6386_v8, %v13632_v18  ;;  %v4566_v8 = vld [vmem:[#allocation2 + $0x59] ss:$2 sm:$0xff] }
 0x71e   :  { %v6724_v55 = vpop.f32.mrf.mxu0  ;;  %v6722_v44 = vadd.f32 %v6721_v0, %v6553_v58  ;;  %v4749_v0 = vpack.c.bf16 %v4685_v45, %v4685_v45 }
 0x71f   :  { %6941 = vmatmul.bf16.vlgmr.msra.gmra.mxu1 %v14312_v6 }
 0x720   :  { %v14315_v15 = vadd.f32 %v6890_v3, %v6722_v44  ;;  %7110 = vmatmul.bf16.vlgmr.msra.gmra.mxu3 %v13421_v61  ;;  %v5646_v61 = vunpack.c.l.b16 %v4750_v54  ;;  %v5645_v34 = vunpack.c.l.b16 %v4749_v0  ;;  %v4438_v3 = vld [vmem:[#allocation2 + $0x58] ss:$2 sm:$0xff]  ;;  %v4436_v44 = vld [vmem:[#allocation2 + $0x48] ss:$2 sm:$0xff] }
 0x721   :  { %7279 = vmatmul.bf16.vlgmr.msrb.gmra.mxu0 %v13436_v40  ;;  %v4688_v9 = vmax.f32 %v4438_v3, %v4566_v8  ;;  %v4687_v21 = vmax.f32 %v4436_v44, %v4564_v22  ;;  %v4568_v3 = vld [vmem:[#allocation2 + $0x69] ss:$2 sm:$0xff]  ;;  %v10723_v44 = vld [vmem:[%s15479_s3 + $0x264] sm:$0xf] }
 0x722   :  { %7448 = vmatmul.bf16.vlgmr.msrb.gmra.mxu2 %v13456_v20  ;;  %v14324_v1 = vpack.c.b16 %v5646_v61, %v5645_v34  ;;  %v10263_v22 = vld [vmem:[%s15479_s3 + $0x268] sm:$0xf0] }
 0x723   :  { %v6555_v33 = vpop.f32.mrf.mxu3 }
 0x724   :  { %v6556_v10 = vadd.f32 %v6555_v33, %v6387_v24  ;;  %v6388_v19 = vpop.f32.mrf.mxu1 }
 0x725   :  { %v6893_v27 = vpop.f32.mrf.mxu2  ;;  %v6389_v40 = vadd.f32 %v6388_v19, %v13632_v18 }
 0x726   :  { %v6726_v48 = vpop.f32.mrf.mxu0  ;;  %v6725_v14 = vadd.f32 %v6724_v55, %v6556_v10 }
 0x728   :  { %v14321_v43 = vadd.f32 %v6893_v27, %v6725_v14  ;;  %v4752_v27 = vpack.c.bf16 %v4688_v9, %v4688_v9 }
 0x72b   :  { %v6557_v50 = vpop.f32.mrf.mxu3 }
 0x72c   :  { %v6558_v20 = vadd.f32 %v6557_v50, %v6389_v40  ;;  %v6391_v13 = vpop.f32.mrf.mxu1 }
 0x72d   :  { %v6895_v49 = vpop.f32.mrf.mxu2  ;;  %v6392_v16 = vadd.f32 %v6391_v13, %v13632_v18  ;;  %v4570_v13 = vld [vmem:[#allocation2 + $0x79] ss:$2 sm:$0xff] }
 0x72e   :  { %v6729_v37 = vpop.f32.mrf.mxu0  ;;  %v6727_v58 = vadd.f32 %v6726_v48, %v6558_v20  ;;  %v4751_v48 = vpack.c.bf16 %v4687_v21, %v4687_v21 }
 0x72f   :  { %6946 = vmatmul.bf16.gmra.mxu1 %v14324_v1 }
 0x730   :  { %v14327_v55 = vadd.f32 %v6895_v49, %v6727_v58  ;;  %7115 = vmatmul.bf16.gmra.mxu3 %v13473_v5  ;;  %v5648_v5 = vunpack.c.l.b16 %v4752_v27  ;;  %v5647_v0 = vunpack.c.l.b16 %v4751_v48  ;;  %v4442_v49 = vld [vmem:[#allocation2 + $0x78] ss:$2 sm:$0xff]  ;;  %v4440_v58 = vld [vmem:[#allocation2 + $0x68] ss:$2 sm:$0xff] }
 0x731   :  { %7284 = vmatmul.bf16.gmra.mxu0 %v13486_v42  ;;  %v4690_v8 = vmax.f32 %v4442_v49, %v4570_v13  ;;  %v10199_v48 = vld [vmem:[%s15479_s3 + $0x1e8] sm:$0xf0] }
 0x732   :  { %7453 = vmatmul.bf16.gmra.mxu2 %v13488_v47  ;;  %v14336_v34 = vpack.c.b16 %v5648_v5, %v5647_v0 }
 0x733   :  { %v6560_v26 = vpop.f32.mrf.mxu3 }
 0x734   :  { %v6561_v24 = vadd.f32 %v6560_v26, %v6392_v16  ;;  %v6393_v45 = vpop.f32.mrf.mxu1  ;;  %v10266_v16 = vor.u32 %v10723_v44, %v10263_v22  ;;  %v4444_v44 = vld [vmem:[#allocation2 + $0x88] ss:$2 sm:$0xff]  ;;  %v4572_v22 = vld [vmem:[#allocation2 + $0x89] ss:$2 sm:$0xff] }
 0x735   :  { %v6898_v33 = vpop.f32.mrf.mxu2  ;;  %v6394_v42 = vadd.f32 %v6393_v45, %v13632_v18 }
 0x736   :  { %v6731_v10 = vpop.f32.mrf.mxu0  ;;  %v6730_v19 = vadd.f32 %v6729_v37, %v6561_v24  ;;  %7779 = vmatpush.bf16.msrb.mxu3 %v10266_v16 }
 0x738   :  { %v14333_v54 = vadd.f32 %v6898_v33, %v6730_v19  ;;  %v10707_v19 = vld [vmem:[%s15479_s3 + $0x1e4] sm:$0xf] }
 0x73b   :  { %v6562_v14 = vpop.f32.mrf.mxu3 }
 0x73c   :  { %v6563_v47 = vadd.f32 %v6562_v14, %v6394_v42  ;;  %v6396_v40 = vpop.f32.mrf.mxu1  ;;  %v10202_v42 = vor.u32 %v10707_v19, %v10199_v48 }
 0x73d   :  { %v6900_v61 = vpop.f32.mrf.mxu2  ;;  %v6397_v9 = vadd.f32 %v6396_v40, %v13632_v18 }
 0x73e   :  { %v6734_v50 = vpop.f32.mrf.mxu0  ;;  %v6732_v20 = vadd.f32 %v6731_v10, %v6563_v47  ;;  %7610 = vmatpush.bf16.msrb.mxu1 %v10202_v42 }
 0x73f   :  { %6951 = vmatmul.bf16.gmra.mxu1 %v14336_v34 }
 0x740   :  { %v14339_v37 = vadd.f32 %v6900_v61, %v6732_v20  ;;  %7120 = vmatmul.bf16.gmra.mxu3 %v13532_v30  ;;  %v4689_v30 = vmax.f32 %v4440_v58, %v4568_v3  ;;  %v4446_v58 = vld [vmem:[#allocation2 + $0x98] ss:$2 sm:$0xff]  ;;  %v4574_v3 = vld [vmem:[#allocation2 + $0x99] ss:$2 sm:$0xff] }
 0x741   :  { %7289 = vmatmul.bf16.gmra.mxu0 %v13543_v57 }
 0x742   :  { %7458 = vmatmul.bf16.gmra.mxu2 %v13545_v4  ;;  %v4754_v4 = vpack.c.bf16 %v4690_v8, %v4690_v8  ;;  %v4753_v10 = vpack.c.bf16 %v4689_v30, %v4689_v30  ;;  %v4691_v30 = vmax.f32 %v4444_v44, %v4572_v22 }
 0x743   :  { %v6565_v26 = vpop.f32.mrf.mxu3 }
 0x744   :  { %v6566_v21 = vadd.f32 %v6565_v26, %v6397_v9  ;;  %v6398_v24 = vpop.f32.mrf.mxu1  ;;  %v5650_v5 = vunpack.c.l.b16 %v4754_v4  ;;  %v5649_v47 = vunpack.c.l.b16 %v4753_v10  ;;  %v4692_v9 = vmax.f32 %v4446_v58, %v4574_v3  ;;  %v4576_v58 = vld [vmem:[#allocation2 + $0xa9] ss:$2 sm:$0xff] }
 0x745   :  { %v6903_v57 = vpop.f32.mrf.mxu2  ;;  %v6399_v14 = vadd.f32 %v6398_v24, %v13632_v18  ;;  %v4755_v10 = vpack.c.bf16 %v4691_v30, %v4691_v30 }
 0x746   :  { %v6736_v33 = vpop.f32.mrf.mxu0  ;;  %v6735_v45 = vadd.f32 %v6734_v50, %v6566_v21  ;;  %v14360_v49 = vpack.c.b16 %v5650_v5, %v5649_v47  ;;  %v4756_v4 = vpack.c.bf16 %v4692_v9, %v4692_v9 }
 0x747   :  { %v5651_v5 = vunpack.c.l.b16 %v4755_v10 }
 0x748   :  { %v14351_v27 = vadd.f32 %v6903_v57, %v6735_v45 }
 0x74b   :  { %v6567_v0 = vpop.f32.mrf.mxu3 }
 0x74c   :  { %v6568_v61 = vadd.f32 %v6567_v0, %v6399_v14  ;;  %v6401_v50 = vpop.f32.mrf.mxu1 }
 0x74d   :  { %v6905_v40 = vpop.f32.mrf.mxu2  ;;  %v6402_v16 = vadd.f32 %v6401_v50, %v13632_v18  ;;  %v4578_v50 = vld [vmem:[#allocation2 + $0xb9] ss:$2 sm:$0xff] }
 0x74e   :  { %v6739_v20 = vpop.f32.mrf.mxu0  ;;  %v6737_v13 = vadd.f32 %v6736_v33, %v6568_v61 }
 0x74f   :  { %6956 = vmatmul.bf16.gmra.mxu1 %v14360_v49 }
 0x750   :  { %v14363_v8 = vadd.f32 %v6905_v40, %v6737_v13  ;;  %7125 = vmatmul.bf16.gmra.mxu3 %v13573_v17  ;;  %v5652_v17 = vunpack.c.l.b16 %v4756_v4  ;;  %v4450_v40 = vld [vmem:[#allocation2 + $0xb8] ss:$2 sm:$0xff]  ;;  %v4448_v13 = vld [vmem:[#allocation2 + $0xa8] ss:$2 sm:$0xff] }
 0x751   :  { %7294 = vmatmul.bf16.gmra.mxu0 %v13583_v32  ;;  %v4694_v3 = vmax.f32 %v4450_v40, %v4578_v50  ;;  %v4693_v9 = vmax.f32 %v4448_v13, %v4576_v58  ;;  %v4580_v40 = vld [vmem:[#allocation2 + $0xc9] ss:$2 sm:$0xff] }
 0x752   :  { %7463 = vmatmul.bf16.gmra.mxu2 %v13585_v53  ;;  %v14372_v47 = vpack.c.b16 %v5652_v17, %v5651_v5 }
 0x753   :  { %v6570_v26 = vpop.f32.mrf.mxu3 }
 0x754   :  { %v6571_v21 = vadd.f32 %v6570_v26, %v6402_v16  ;;  %v6403_v24 = vpop.f32.mrf.mxu1 }
 0x755   :  { %v6908_v57 = vpop.f32.mrf.mxu2  ;;  %v6404_v32 = vadd.f32 %v6403_v24, %v13632_v18 }
 0x756   :  { %v6741_v33 = vpop.f32.mrf.mxu0  ;;  %v6740_v45 = vadd.f32 %v6739_v20, %v6571_v21 }
 0x758   :  { %v14369_v19 = vadd.f32 %v6908_v57, %v6740_v45  ;;  %v4758_v57 = vpack.c.bf16 %v4694_v3, %v4694_v3 }
 0x75b   :  { %v6572_v48 = vpop.f32.mrf.mxu3 }
 0x75c   :  { %v6573_v53 = vadd.f32 %v6572_v48, %v6404_v32  ;;  %v6406_v14 = vpop.f32.mrf.mxu1 }
 0x75d   :  { %v6910_v42 = vpop.f32.mrf.mxu2  ;;  %v6407_v44 = vadd.f32 %v6406_v14, %v13632_v18  ;;  %v4582_v14 = vld [vmem:[#allocation2 + $0xd9] ss:$2 sm:$0xff] }
 0x75e   :  { %v6744_v0 = vpop.f32.mrf.mxu0  ;;  %v6742_v61 = vadd.f32 %v6741_v33, %v6573_v53  ;;  %v4757_v33 = vpack.c.bf16 %v4693_v9, %v4693_v9 }
 0x75f   :  { %6961 = vmatmul.bf16.gmra.mxu1 %v14372_v47 }
 0x760   :  { %v14375_v20 = vadd.f32 %v6910_v42, %v6742_v61  ;;  %7130 = vmatmul.bf16.gmra.mxu3 %v13623_v39  ;;  %v5654_v39 = vunpack.c.l.b16 %v4758_v57  ;;  %v5653_v10 = vunpack.c.l.b16 %v4757_v33  ;;  %v4454_v42 = vld [vmem:[#allocation2 + $0xd8] ss:$2 sm:$0xff]  ;;  %v4452_v61 = vld [vmem:[#allocation2 + $0xc8] ss:$2 sm:$0xff] }
 0x761   :  { %7299 = vmatmul.bf16.gmra.mxu0 %v13634_v63  ;;  %v4696_v50 = vmax.f32 %v4454_v42, %v4582_v14  ;;  %v4695_v3 = vmax.f32 %v4452_v61, %v4580_v40  ;;  %v4584_v42 = vld [vmem:[#allocation2 + $0xe9] ss:$2 sm:$0xff]  ;;  %v10255_v40 = vld [vmem:[%s15479_s3 + $0x258] sm:$0xf0] }
 0x762   :  { %7468 = vmatmul.bf16.gmra.mxu2 %v13636_v31  ;;  %v14384_v5 = vpack.c.b16 %v5654_v39, %v5653_v10  ;;  %v10721_v61 = vld [vmem:[%s15479_s3 + $0x254] sm:$0xf] }
 0x763   :  { %v6575_v22 = vpop.f32.mrf.mxu3 }
 0x764   :  { %v6576_v16 = vadd.f32 %v6575_v22, %v6407_v44  ;;  %v6408_v30 = vpop.f32.mrf.mxu1 }
 0x765   :  { %v6913_v26 = vpop.f32.mrf.mxu2  ;;  %v6409_v63 = vadd.f32 %v6408_v30, %v13632_v18 }
 0x766   :  { %v6746_v21 = vpop.f32.mrf.mxu0  ;;  %v6745_v24 = vadd.f32 %v6744_v0, %v6576_v16 }
 0x768   :  { %v14381_v4 = vadd.f32 %v6913_v26, %v6745_v24  ;;  %v4760_v26 = vpack.c.bf16 %v4696_v50, %v4696_v50 }
 0x76b   :  { %v6577_v45 = vpop.f32.mrf.mxu3 }
 0x76c   :  { %v6578_v31 = vadd.f32 %v6577_v45, %v6409_v63  ;;  %v6411_v32 = vpop.f32.mrf.mxu1 }
 0x76d   :  { %v6915_v17 = vpop.f32.mrf.mxu2  ;;  %v6412_v13 = vadd.f32 %v6411_v32, %v13632_v18  ;;  %v4586_v32 = vld [vmem:[#allocation2 + $0xf9] ss:$2 sm:$0xff] }
 0x76e   :  { %v6749_v48 = vpop.f32.mrf.mxu0  ;;  %v6747_v53 = vadd.f32 %v6746_v21, %v6578_v31  ;;  %v4759_v21 = vpack.c.bf16 %v4695_v3, %v4695_v3 }
 0x76f   :  { %6966 = vmatmul.bf16.gmra.mxu1 %v14384_v5 }
 0x770   :  { %v14387_v0 = vadd.f32 %v6915_v17, %v6747_v53  ;;  %7135 = vmatmul.bf16.gmra.mxu3 %v13649_v35  ;;  %v5656_v35 = vunpack.c.l.b16 %v4760_v26  ;;  %v5655_v33 = vunpack.c.l.b16 %v4759_v21  ;;  %v4458_v17 = vld [vmem:[#allocation2 + $0xf8] ss:$2 sm:$0xff]  ;;  %v4456_v53 = vld [vmem:[#allocation2 + $0xe8] ss:$2 sm:$0xff] }
 0x771   :  { %7304 = vmatmul.bf16.gmra.mxu0 %v13653_v46  ;;  %v4698_v14 = vmax.f32 %v4458_v17, %v4586_v32  ;;  %v10191_v21 = vld [vmem:[%s15479_s3 + $0x1d8] sm:$0xf0] }
 0x772   :  { %7473 = vmatmul.bf16.gmra.mxu2 %v13655_v23  ;;  %v14396_v10 = vpack.c.b16 %v5656_v35, %v5655_v33 }
 0x773   :  { %v6580_v58 = vpop.f32.mrf.mxu3 }
 0x774   :  { %v6581_v44 = vadd.f32 %v6580_v58, %v6412_v13  ;;  %v6413_v9 = vpop.f32.mrf.mxu1  ;;  %v10258_v13 = vor.u32 %v10721_v61, %v10255_v40  ;;  %v4460_v61 = vld [vmem:[#allocation2 + $0x108] ss:$2 sm:$0xff]  ;;  %v4588_v40 = vld [vmem:[#allocation2 + $0x109] ss:$2 sm:$0xff] }
 0x775   :  { %v6918_v22 = vpop.f32.mrf.mxu2  ;;  %v6414_v46 = vadd.f32 %v6413_v9, %v13632_v18 }
 0x776   :  { %v6751_v16 = vpop.f32.mrf.mxu0  ;;  %v6750_v30 = vadd.f32 %v6749_v48, %v6581_v44  ;;  %7780 = vmatpush.bf16.msrb.mxu3 %v10258_v13 }
 0x778   :  { %v14393_v57 = vadd.f32 %v6918_v22, %v6750_v30  ;;  %v10705_v30 = vld [vmem:[%s15479_s3 + $0x1d4] sm:$0xf] }
 0x77b   :  { %v6582_v24 = vpop.f32.mrf.mxu3 }
 0x77c   :  { %v6583_v23 = vadd.f32 %v6582_v24, %v6414_v46  ;;  %v6416_v63 = vpop.f32.mrf.mxu1  ;;  %v10194_v46 = vor.u32 %v10705_v30, %v10191_v21 }
 0x77d   :  { %v6920_v39 = vpop.f32.mrf.mxu2  ;;  %v6417_v50 = vadd.f32 %v6416_v63, %v13632_v18 }
 0x77e   :  { %v6754_v45 = vpop.f32.mrf.mxu0  ;;  %v6752_v31 = vadd.f32 %v6751_v16, %v6583_v23  ;;  %7611 = vmatpush.bf16.msrb.mxu1 %v10194_v46 }
 0x77f   :  { %6971 = vmatmul.bf16.gmra.mxu1 %v14396_v10 }
 0x780   :  { %v14399_v48 = vadd.f32 %v6920_v39, %v6752_v31  ;;  %7140 = vmatmul.bf16.gmra.mxu3 %v13670_v38  ;;  %v4697_v38 = vmax.f32 %v4456_v53, %v4584_v42  ;;  %v4462_v53 = vld [vmem:[#allocation2 + $0x118] ss:$2 sm:$0xff]  ;;  %v4590_v42 = vld [vmem:[#allocation2 + $0x119] ss:$2 sm:$0xff] }
 0x781   :  { %7309 = vmatmul.bf16.gmra.mxu0 %v13672_v36 }
 0x782   :  { %7478 = vmatmul.bf16.gmra.mxu2 %v13674_v12  ;;  %v4762_v12 = vpack.c.bf16 %v4698_v14, %v4698_v14  ;;  %v4761_v16 = vpack.c.bf16 %v4697_v38, %v4697_v38  ;;  %v4699_v38 = vmax.f32 %v4460_v61, %v4588_v40  ;;  %v4592_v61 = vld [vmem:[#allocation2 + $0x129] ss:$2 sm:$0xff] }
 0x783   :  { %v6585_v58 = vpop.f32.mrf.mxu3  ;;  %v15986_v40 = vld [vmem:[#allocation15_spill] sm:$0xff] }
 0x784   :  { %v6586_v3 = vadd.f32 %v6585_v58, %v6417_v50  ;;  %v6418_v44 = vpop.f32.mrf.mxu1  ;;  %v5658_v35 = vunpack.c.l.b16 %v4762_v12  ;;  %v5657_v23 = vunpack.c.l.b16 %v4761_v16  ;;  %v4700_v50 = vmax.f32 %v4462_v53, %v4590_v42  ;;  %v10791_v53 = vld [vmem:[%s15480_s4] sm:$0x3]  ;;  %v4464_v42 = vld [vmem:[#allocation2 + $0x128] ss:$2 sm:$0xff] }
 0x785   :  { %v6923_v36 = vpop.f32.mrf.mxu2  ;;  %v6419_v24 = vadd.f32 %v6418_v44, %v13632_v18  ;;  %v4763_v16 = vpack.c.bf16 %v4699_v38, %v4699_v38 }
 0x786   :  { %v6756_v22 = vpop.f32.mrf.mxu0  ;;  %v6755_v9 = vadd.f32 %v6754_v45, %v6586_v3  ;;  %v14420_v17 = vpack.c.b16 %v5658_v35, %v5657_v23  ;;  %v4764_v12 = vpack.c.bf16 %v4700_v50, %v4700_v50 }
 0x787   :  { %v5659_v35 = vunpack.c.l.b16 %v4763_v16 }
 0x788   :  { %v14411_v26 = vadd.f32 %v6923_v36, %v6755_v9 }
 0x78b   :  { %v6587_v33 = vpop.f32.mrf.mxu3 }
 0x78c   :  { %v6588_v39 = vadd.f32 %v6587_v33, %v6419_v24  ;;  %v6421_v45 = vpop.f32.mrf.mxu1 }
 0x78d   :  { %v6925_v63 = vpop.f32.mrf.mxu2  ;;  %v6422_v13 = vadd.f32 %v6421_v45, %v13632_v18  ;;  %v4466_v45 = vld [vmem:[#allocation2 + $0x138] ss:$2 sm:$0xff] }
 0x78e   :  { %v6759_v31 = vpop.f32.mrf.mxu0  ;;  %v6757_v32 = vadd.f32 %v6756_v22, %v6588_v39 }
 0x78f   :  { %6976 = vmatmul.bf16.gmra.mxu1 %v14420_v17 }
 0x790   :  { %v14423_v14 = vadd.f32 %v6925_v63, %v6757_v32  ;;  %7145 = vmatmul.bf16.gmra.mxu3 %v13696_v25  ;;  %v5660_v25 = vunpack.c.l.b16 %v4764_v12 }
 0x791   :  { %7314 = vmatmul.bf16.gmra.mxu0 %v13700_v29 }
 0x792   :  { %7483 = vmatmul.bf16.gmra.mxu2 %v13702_v2  ;;  %v14435_v39 = vpack.c.b16 %v5660_v25, %v5659_v35 }
 0x793   :  { %v6590_v58 = vpop.f32.mrf.mxu3 }
 0x794   :  { %v6591_v3 = vadd.f32 %v6590_v58, %v6422_v13  ;;  %v6423_v44 = vpop.f32.mrf.mxu1  ;;  %v4701_v58 = vmax.f32 %v4464_v42, %v4592_v61  ;;  %v15988_v42 = vld [vmem:[#allocation29_spill] sm:$0xff]  ;;  %v15989_v61 = vld [vmem:[#allocation19_spill] sm:$0xff] }
 0x795   :  { %v6928_v36 = vpop.f32.mrf.mxu2  ;;  %v6424_v29 = vadd.f32 %v6423_v44, %v13632_v18 }
 0x796   :  { %v6761_v22 = vpop.f32.mrf.mxu0  ;;  %v6760_v9 = vadd.f32 %v6759_v31, %v6591_v3  ;;  %v4594_v31 = vld [vmem:[#allocation2 + $0x139] ss:$2 sm:$0xff] }
 0x797   :  { %v4702_v50 = vmax.f32 %v4466_v45, %v4594_v31  ;;  %v4470_v31 = vld [vmem:[#allocation2 + $0x158] ss:$2 sm:$0xff] }
 0x798   :  { %v14429_v30 = vadd.f32 %v6928_v36, %v6760_v9 }
 0x79b   :  { %v6592_v21 = vpop.f32.mrf.mxu3 }
 0x79c   :  { %v6593_v2 = vadd.f32 %v6592_v21, %v6424_v29  ;;  %v6942_v24 = vpop.f32.mrf.mxu1 }
 0x79d   :  { %v6930_v46 = vpop.f32.mrf.mxu2  ;;  %v14433_v33 = vadd.f32 %v6942_v24, %v13647_v51  ;;  %v14445_v51 = vperm.slane %v10791_v53, 1  ;;  %v4598_v53 = vld [vmem:[#allocation2 + $0x159] ss:$2 sm:$0xff] }
 0x79e   :  { %v7280_v23 = vpop.f32.mrf.mxu0  ;;  %v6762_v63 = vadd.f32 %v6761_v22, %v6593_v2  ;;  %v4765_v22 = vpack.c.bf16 %v4701_v58, %v4701_v58  ;;  %v15987_v2 = vld [vmem:[#allocation14_spill] sm:$0xff]  ;;  %v4704_v58 = vmax.f32 %v4470_v31, %v4598_v53  ;;  %v15992_v53 = vld [vmem:[#allocation24_spill] sm:$0xff] }
 0x79f   :  { %6981 = vmatmul.bf16.gmra.mxu1 %v14435_v39 }
 0x7a0   :  { %v14438_v32 = vadd.f32 %v6930_v46, %v6762_v63  ;;  %7150 = vmatmul.bf16.gmra.mxu3 %v13717_v60  ;;  %v5661_v25 = vunpack.c.l.b16 %v4765_v22 }
 0x7a1   :  { %7319 = vmatmul.bf16.gmra.mxu0 %v13719_v11  ;;  %v4766_v11 = vpack.c.bf16 %v4702_v50, %v4702_v50  ;;  %v4596_v50 = vld [vmem:[#allocation2 + $0x149] ss:$2 sm:$0xff] }
 0x7a2   :  { %7488 = vmatmul.bf16.gmra.mxu2 %v15986_v40  ;;  %v4468_v40 = vld [vmem:[#allocation2 + $0x148] ss:$2 sm:$0xff] }
 0x7a3   :  { %v7111_v13 = vpop.f32.mrf.mxu3  ;;  %v5662_v9 = vunpack.c.l.b16 %v4766_v11 }
 0x7a4   :  { %v7112_v38 = vadd.f32 %v7111_v13, %v14445_v51  ;;  %v14449_v36 = vpop.f32.mrf.mxu1  ;;  %v15990_v13 = vld [vmem:[#allocation23_spill] sm:$0xff] }
 0x7a5   :  { %v7449_v3 = vpop.f32.mrf.mxu2  ;;  %v14457_v63 = vpack.c.b16 %v5662_v9, %v5661_v25  ;;  %v4768_v9 = vpack.c.bf16 %v4704_v58, %v4704_v58  ;;  %v4602_v58 = vld [vmem:[#allocation2 + $0x179] ss:$2 sm:$0xff] }
 0x7a6   :  { %v7282_v60 = vpop.f32.mrf.mxu0  ;;  %v7281_v44 = vadd.f32 %v7280_v23, %v7112_v38 }
 0x7a8   :  { %v14451_v12 = vadd.f32 %v7449_v3, %v7281_v44  ;;  %v4703_v3 = vmax.f32 %v4468_v40, %v4596_v50 }
 0x7aa   :  { %v4767_v25 = vpack.c.bf16 %v4703_v3, %v4703_v3  ;;  %v15996_v3 = vld [vmem:[#allocation21_spill] sm:$0xff] }
 0x7ab   :  { %v7113_v16 = vpop.f32.mrf.mxu3 }
 0x7ac   :  { %v7114_v29 = vadd.f32 %v7113_v16, %v14445_v51  ;;  %v6947_v35 = vpop.f32.mrf.mxu1 }
 0x7ad   :  { %v7451_v21 = vpop.f32.mrf.mxu2  ;;  %v14455_v46 = vadd.f32 %v6947_v35, %v15987_v2  ;;  %v5663_v2 = vunpack.c.l.b16 %v4767_v25 }
 0x7ae   :  { %v7285_v24 = vpop.f32.mrf.mxu0  ;;  %v7283_v45 = vadd.f32 %v7282_v60, %v7114_v29 }
 0x7af   :  { %6986 = vmatmul.bf16.gmra.mxu1 %v14457_v63 }
 0x7b0   :  { %v14460_v23 = vadd.f32 %v7451_v21, %v7283_v45  ;;  %7155 = vmatmul.bf16.gmra.mxu3 %v15988_v42  ;;  %v5664_v21 = vunpack.c.l.b16 %v4768_v9  ;;  %v4600_v9 = vld [vmem:[#allocation2 + $0x169] ss:$2 sm:$0xff] }
 0x7b1   :  { %7324 = vmatmul.bf16.gmra.mxu0 %v15989_v61 }
 0x7b2   :  { %7493 = vmatmul.bf16.gmra.mxu2 %v15990_v13  ;;  %v14474_v50 = vpack.c.b16 %v5664_v21, %v5663_v2  ;;  %v10719_v21 = vld [vmem:[%s15479_s3 + $0x244] sm:$0xf] }
 0x7b3   :  { %v7116_v38 = vpop.f32.mrf.mxu3 }
 0x7b4   :  { %v7117_v11 = vadd.f32 %v7116_v38, %v14445_v51  ;;  %v14466_v44 = vpop.f32.mrf.mxu1  ;;  %15994 = vst [vmem:[#allocation29_spill] sm:$0xff] %v14474_v50  ;;  %v4474_v38 = vld [vmem:[#allocation2 + $0x178] ss:$2 sm:$0xff] }
 0x7b5   :  { %v7454_v60 = vpop.f32.mrf.mxu2  ;;  %15991 = vst [vmem:[#allocation15_spill] sm:$0xff] %v14466_v44  ;;  %v4706_v25 = vmax.f32 %v4474_v38, %v4602_v58 }
 0x7b6   :  { %v7287_v22 = vpop.f32.mrf.mxu0  ;;  %v7286_v16 = vadd.f32 %v7285_v24, %v7117_v11  ;;  %v15997_v11 = vld [vmem:[#allocation76_spill] sm:$0xff] }
 0x7b8   :  { %v14468_v29 = vadd.f32 %v7454_v60, %v7286_v16  ;;  %v4472_v60 = vld [vmem:[#allocation2 + $0x168] ss:$2 sm:$0xff] }
 0x7b9   :  { %v15998_v16 = vld [vmem:[#allocation28_spill] sm:$0xff] }
 0x7bb   :  { %v7118_v35 = vpop.f32.mrf.mxu3 }
 0x7bc   :  { %v7119_v45 = vadd.f32 %v7118_v35, %v14445_v51  ;;  %v6952_v31 = vpop.f32.mrf.mxu1 }
 0x7bd   :  { %v7456_v42 = vpop.f32.mrf.mxu2  ;;  %v14472_v61 = vadd.f32 %v6952_v31, %v15992_v53 }
 0x7be   :  { %v7290_v40 = vpop.f32.mrf.mxu0  ;;  %v7288_v13 = vadd.f32 %v7287_v22, %v7119_v45  ;;  %v10247_v22 = vld [vmem:[%s15479_s3 + $0x248] sm:$0xf0]  ;;  %v4705_v45 = vmax.f32 %v4472_v60, %v4600_v9 }
 0x7bf   :  { %15993 = vst [vmem:[#allocation14_spill] sm:$0xff] %v14472_v61  ;;  %6991 = vmatmul.bf16.gmra.mxu1 %v14474_v50  ;;  %v10250_v35 = vor.u32 %v10719_v21, %v10247_v22  ;;  %v10183_v60 = vld [vmem:[%s15479_s3 + $0x1c8] sm:$0xf0]  ;;  %v4606_v61 = vld [vmem:[#allocation2 + $0x199] ss:$2 sm:$0xff] }
 0x7c0   :  { %v14477_v24 = vadd.f32 %v7456_v42, %v7288_v13  ;;  %7160 = vmatmul.bf16.gmra.mxu3 %v15996_v3  ;;  %v4770_v3 = vpack.c.bf16 %v4706_v25, %v4706_v25  ;;  %v4769_v58 = vpack.c.bf16 %v4705_v45, %v4705_v45  ;;  %v16001_v45 = vld [vmem:[#allocation31_spill] sm:$0xff] }
 0x7c1   :  { %7329 = vmatmul.bf16.gmra.mxu0 %v15997_v11  ;;  %7781 = vmatpush.bf16.msrb.mxu3 %v10250_v35 }
 0x7c2   :  { %15995 = vst [vmem:[#allocation19_spill] sm:$0xff] %v14477_v24  ;;  %7498 = vmatmul.bf16.gmra.mxu2 %v15998_v16  ;;  %v10703_v16 = vld [vmem:[%s15479_s3 + $0x1c4] sm:$0xf]  ;;  %v5666_v9 = vunpack.c.l.b16 %v4770_v3 }
 0x7c3   :  { %v7121_v2 = vpop.f32.mrf.mxu3  ;;  %v10186_v21 = vor.u32 %v10703_v16, %v10183_v60  ;;  %v16005_v16 = vld [vmem:[#allocation33_spill] sm:$0xff]  ;;  %v4476_v60 = vld [vmem:[#allocation2 + $0x188] ss:$2 sm:$0xff] }
 0x7c4   :  { %v7122_v42 = vadd.f32 %v7121_v2, %v14445_v51  ;;  %v14489_v53 = vpop.f32.mrf.mxu1  ;;  %v5665_v2 = vunpack.c.l.b16 %v4769_v58  ;;  %v16006_v58 = vld [vmem:[#allocation25_spill] sm:$0xff] }
 0x7c5   :  { %v7459_v31 = vpop.f32.mrf.mxu2  ;;  %15999 = vst [vmem:[#allocation23_spill] sm:$0xff] %v14489_v53  ;;  %7612 = vmatpush.bf16.msrb.mxu1 %v10186_v21  ;;  %v4478_v53 = vld [vmem:[#allocation2 + $0x198] ss:$2 sm:$0xff]  ;;  %v4604_v21 = vld [vmem:[#allocation2 + $0x189] ss:$2 sm:$0xff] }
 0x7c6   :  { %v7292_v13 = vpop.f32.mrf.mxu0  ;;  %v7291_v38 = vadd.f32 %v7290_v40, %v7122_v42  ;;  %v4482_v24 = vld [vmem:[#allocation2 + $0x1b8] ss:$2 sm:$0xff] }
 0x7c8   :  { %v14491_v11 = vadd.f32 %v7459_v31, %v7291_v38  ;;  %v14503_v38 = vpack.c.b16 %v5666_v9, %v5665_v2 }
 0x7ca   :  { %16000 = vst [vmem:[#allocation24_spill] sm:$0xff] %v14491_v11 }
 0x7cb   :  { %v7123_v22 = vpop.f32.mrf.mxu3  ;;  %16003 = vst [vmem:[#allocation76_spill] sm:$0xff] %v14503_v38 }
 0x7cc   :  { %v7124_v35 = vadd.f32 %v7123_v22, %v14445_v51  ;;  %v6957_v40 = vpop.f32.mrf.mxu1  ;;  %v16007_v22 = vld [vmem:[#allocation79_spill] sm:$0xff] }
 0x7cd   :  { %v7461_v25 = vpop.f32.mrf.mxu2  ;;  %v14501_v42 = vadd.f32 %v6957_v40, %v16001_v45  ;;  %v4708_v40 = vmax.f32 %v4478_v53, %v4606_v61  ;;  %v16010_v53 = vld [vmem:[#allocation40_spill] sm:$0xff] }
 0x7ce   :  { %v7295_v31 = vpop.f32.mrf.mxu0  ;;  %v7293_v52 = vadd.f32 %v7292_v13, %v7124_v35 }
 0x7cf   :  { %16002 = vst [vmem:[#allocation21_spill] sm:$0xff] %v14501_v42  ;;  %6996 = vmatmul.bf16.gmra.mxu1 %v14503_v38  ;;  %v4707_v42 = vmax.f32 %v4476_v60, %v4604_v21  ;;  %v4772_v38 = vpack.c.bf16 %v4708_v40, %v4708_v40  ;;  %v4610_v40 = vld [vmem:[#allocation2 + $0x1b9] ss:$2 sm:$0xff] }
 0x7d0   :  { %v14506_v3 = vadd.f32 %v7461_v25, %v7293_v52  ;;  %7165 = vmatmul.bf16.gmra.mxu3 %v16005_v16 }
 0x7d1   :  { %7334 = vmatmul.bf16.gmra.mxu0 %v16006_v58  ;;  %v4771_v25 = vpack.c.bf16 %v4707_v42, %v4707_v42  ;;  %v5668_v16 = vunpack.c.l.b16 %v4772_v38  ;;  %v16015_v38 = vld [vmem:[#allocation30_spill] sm:$0xff] }
 0x7d2   :  { %16004 = vst [vmem:[#allocation28_spill] sm:$0xff] %v14506_v3  ;;  %7503 = vmatmul.bf16.gmra.mxu2 %v16007_v22 }
 0x7d3   :  { %v7126_v45 = vpop.f32.mrf.mxu3  ;;  %v5667_v11 = vunpack.c.l.b16 %v4771_v25  ;;  %v4710_v25 = vmax.f32 %v4482_v24, %v4610_v40 }
 0x7d4   :  { %v7127_v9 = vadd.f32 %v7126_v45, %v14445_v51  ;;  %v14512_v2 = vpop.f32.mrf.mxu1 }
 0x7d5   :  { %v7464_v13 = vpop.f32.mrf.mxu2  ;;  %16008 = vst [vmem:[#allocation31_spill] sm:$0xff] %v14512_v2  ;;  %v14520_v45 = vpack.c.b16 %v5668_v16, %v5667_v11  ;;  %v16017_v16 = vld [vmem:[#allocation82_spill] sm:$0xff] }
 0x7d6   :  { %v7297_v35 = vpop.f32.mrf.mxu0  ;;  %v7296_v52 = vadd.f32 %v7295_v31, %v7127_v9  ;;  %v16014_v31 = vld [vmem:[#allocation39_spill] sm:$0xff] }
 0x7d7   :  { %16012 = vst [vmem:[#allocation79_spill] sm:$0xff] %v14520_v45  ;;  %v4480_v9 = vld [vmem:[#allocation2 + $0x1a8] ss:$2 sm:$0xff] }
 0x7d8   :  { %v14514_v3 = vadd.f32 %v7464_v13, %v7296_v52  ;;  %v4608_v13 = vld [vmem:[#allocation2 + $0x1a9] ss:$2 sm:$0xff]  ;;  %v16016_v52 = vld [vmem:[#allocation81_spill] sm:$0xff] }
 0x7da   :  { %16009 = vst [vmem:[#allocation33_spill] sm:$0xff] %v14514_v3 }
 0x7db   :  { %v7128_v58 = vpop.f32.mrf.mxu3 }
 0x7dc   :  { %v7129_v50 = vadd.f32 %v7128_v58, %v14445_v51  ;;  %v6962_v61 = vpop.f32.mrf.mxu1 }
 0x7dd   :  { %v7466_v22 = vpop.f32.mrf.mxu2  ;;  %v14518_v60 = vadd.f32 %v6962_v61, %v16010_v53  ;;  %v4709_v61 = vmax.f32 %v4480_v9, %v4608_v13  ;;  %v16020_v13 = vld [vmem:[#allocation44_spill] sm:$0xff] }
 0x7de   :  { %v7300_v21 = vpop.f32.mrf.mxu0  ;;  %v7298_v2 = vadd.f32 %v7297_v35, %v7129_v50 }
 0x7df   :  { %16011 = vst [vmem:[#allocation25_spill] sm:$0xff] %v14518_v60  ;;  %7001 = vmatmul.bf16.gmra.mxu1 %v14520_v45 }
 0x7e0   :  { %v14523_v42 = vadd.f32 %v7466_v22, %v7298_v2  ;;  %7170 = vmatmul.bf16.gmra.mxu3 %v16014_v31  ;;  %v4774_v22 = vpack.c.bf16 %v4710_v25, %v4710_v25  ;;  %v4773_v31 = vpack.c.bf16 %v4709_v61, %v4709_v61  ;;  %v4614_v25 = vld [vmem:[#allocation2 + $0x1d9] ss:$2 sm:$0xff]  ;;  %v16025_v61 = vld [vmem:[#allocation43_spill] sm:$0xff] }
 0x7e1   :  { %7339 = vmatmul.bf16.gmra.mxu0 %v16015_v38 }
 0x7e2   :  { %16013 = vst [vmem:[#allocation40_spill] sm:$0xff] %v14523_v42  ;;  %7508 = vmatmul.bf16.gmra.mxu2 %v16016_v52  ;;  %v5670_v38 = vunpack.c.l.b16 %v4774_v22  ;;  %v5669_v3 = vunpack.c.l.b16 %v4773_v31 }
 0x7e3   :  { %v7131_v58 = vpop.f32.mrf.mxu3 }
 0x7e4   :  { %v7132_v11 = vadd.f32 %v7131_v58, %v14445_v51  ;;  %v6964_v35 = vpop.f32.mrf.mxu1  ;;  %v14538_v44 = vpack.c.b16 %v5670_v38, %v5669_v3 }
 0x7e5   :  { %v7469_v50 = vpop.f32.mrf.mxu2  ;;  %v14530_v53 = vadd.f32 %v6964_v35, %v16017_v16  ;;  %v4486_v16 = vld [vmem:[#allocation2 + $0x1d8] ss:$2 sm:$0xff] }
 0x7e6   :  { %v7302_v2 = vpop.f32.mrf.mxu0  ;;  %v7301_v60 = vadd.f32 %v7300_v21, %v7132_v11  ;;  %16022 = vst [vmem:[#allocation82_spill] sm:$0xff] %v14538_v44  ;;  %v16024_v21 = vld [vmem:[#allocation42_spill] sm:$0xff]  ;;  %v4612_v11 = vld [vmem:[#allocation2 + $0x1c9] ss:$2 sm:$0xff]  ;;  %v4712_v22 = vmax.f32 %v4486_v16, %v4614_v25 }
 0x7e7   :  { %16018 = vst [vmem:[#allocation39_spill] sm:$0xff] %v14530_v53 }
 0x7e8   :  { %v14532_v45 = vadd.f32 %v7469_v50, %v7301_v60  ;;  %v16026_v50 = vld [vmem:[#allocation36_spill] sm:$0xff] }
 0x7ea   :  { %16019 = vst [vmem:[#allocation30_spill] sm:$0xff] %v14532_v45 }
 0x7eb   :  { %v7133_v42 = vpop.f32.mrf.mxu3 }
 0x7ec   :  { %v7134_v24 = vadd.f32 %v7133_v42, %v14445_v51  ;;  %v6967_v9 = vpop.f32.mrf.mxu1  ;;  %v4484_v42 = vld [vmem:[#allocation2 + $0x1c8] ss:$2 sm:$0xff] }
 0x7ed   :  { %v7471_v40 = vpop.f32.mrf.mxu2  ;;  %v14536_v52 = vadd.f32 %v6967_v9, %v16020_v13  ;;  %v4711_v9 = vmax.f32 %v4484_v42, %v4612_v11  ;;  %v16030_v11 = vld [vmem:[#allocation48_spill] sm:$0xff] }
 0x7ee   :  { %v7305_v58 = vpop.f32.mrf.mxu0  ;;  %v7303_v35 = vadd.f32 %v7302_v2, %v7134_v24  ;;  %v16027_v24 = vld [vmem:[#allocation85_spill] sm:$0xff] }
 0x7ef   :  { %16021 = vst [vmem:[#allocation81_spill] sm:$0xff] %v14536_v52  ;;  %7006 = vmatmul.bf16.gmra.mxu1 %v14538_v44 }
 0x7f0   :  { %v14541_v60 = vadd.f32 %v7471_v40, %v7303_v35  ;;  %7175 = vmatmul.bf16.gmra.mxu3 %v16024_v21  ;;  %v4776_v35 = vpack.c.bf16 %v4712_v22, %v4712_v22  ;;  %v4775_v21 = vpack.c.bf16 %v4711_v9, %v4711_v9  ;;  %v4618_v22 = vld [vmem:[#allocation2 + $0x1f9] ss:$2 sm:$0xff]  ;;  %v16035_v9 = vld [vmem:[#allocation84_spill] sm:$0xff] }
 0x7f1   :  { %7344 = vmatmul.bf16.gmra.mxu0 %v16025_v61 }
 0x7f2   :  { %16023 = vst [vmem:[#allocation44_spill] sm:$0xff] %v14541_v60  ;;  %7513 = vmatmul.bf16.gmra.mxu2 %v16026_v50  ;;  %v5672_v61 = vunpack.c.l.b16 %v4776_v35  ;;  %v5671_v60 = vunpack.c.l.b16 %v4775_v21 }
 0x7f3   :  { %v7136_v31 = vpop.f32.mrf.mxu3 }
 0x7f4   :  { %v7137_v3 = vadd.f32 %v7136_v31, %v14445_v51  ;;  %v6969_v38 = vpop.f32.mrf.mxu1  ;;  %v14556_v45 = vpack.c.b16 %v5672_v61, %v5671_v60  ;;  %v10717_v60 = vld [vmem:[%s15479_s3 + $0x234] sm:$0xf] }
 0x7f5   :  { %v7474_v2 = vpop.f32.mrf.mxu2  ;;  %v14548_v13 = vadd.f32 %v6969_v38, %v16027_v24  ;;  %v4490_v24 = vld [vmem:[#allocation2 + $0x1f8] ss:$2 sm:$0xff] }
 0x7f6   :  { %v7307_v40 = vpop.f32.mrf.mxu0  ;;  %v7306_v52 = vadd.f32 %v7305_v58, %v7137_v3  ;;  %16032 = vst [vmem:[#allocation85_spill] sm:$0xff] %v14556_v45  ;;  %v16034_v58 = vld [vmem:[#allocation45_spill] sm:$0xff]  ;;  %v4616_v3 = vld [vmem:[#allocation2 + $0x1e9] ss:$2 sm:$0xff]  ;;  %v4714_v35 = vmax.f32 %v4490_v24, %v4618_v22 }
 0x7f7   :  { %16028 = vst [vmem:[#allocation42_spill] sm:$0xff] %v14548_v13 }
 0x7f8   :  { %v14550_v44 = vadd.f32 %v7474_v2, %v7306_v52  ;;  %v16036_v2 = vld [vmem:[#allocation46_spill] sm:$0xff]  ;;  %v4778_v22 = vpack.c.bf16 %v4714_v35, %v4714_v35 }
 0x7fa   :  { %16029 = vst [vmem:[#allocation43_spill] sm:$0xff] %v14550_v44 }
 0x7fb   :  { %v7138_v53 = vpop.f32.mrf.mxu3 }
 0x7fc   :  { %v7139_v16 = vadd.f32 %v7138_v53, %v14445_v51  ;;  %v6972_v42 = vpop.f32.mrf.mxu1  ;;  %v4488_v53 = vld [vmem:[#allocation2 + $0x1e8] ss:$2 sm:$0xff] }
 0x7fd   :  { %v7476_v25 = vpop.f32.mrf.mxu2  ;;  %v14554_v50 = vadd.f32 %v6972_v42, %v16030_v11 }
 0x7fe   :  { %v7310_v31 = vpop.f32.mrf.mxu0  ;;  %v7308_v38 = vadd.f32 %v7307_v40, %v7139_v16  ;;  %v10239_v40 = vld [vmem:[%s15479_s3 + $0x238] sm:$0xf0]  ;;  %v4713_v16 = vmax.f32 %v4488_v53, %v4616_v3  ;;  %v5674_v3 = vunpack.c.l.b16 %v4778_v22 }
 0x7ff   :  { %16031 = vst [vmem:[#allocation36_spill] sm:$0xff] %v14554_v50  ;;  %7011 = vmatmul.bf16.gmra.mxu1 %v14556_v45  ;;  %v10242_v21 = vor.u32 %v10717_v60, %v10239_v40  ;;  %v10701_v60 = vld [vmem:[%s15479_s3 + $0x1b4] sm:$0xf]  ;;  %v10175_v53 = vld [vmem:[%s15479_s3 + $0x1b8] sm:$0xf0] }
 0x800   :  { %v14559_v52 = vadd.f32 %v7476_v25, %v7308_v38  ;;  %7180 = vmatmul.bf16.gmra.mxu3 %v16034_v58  ;;  %v16037_v38 = vld [vmem:[#allocation87_spill] sm:$0xff]  ;;  %v10178_v40 = vor.u32 %v10701_v60, %v10175_v53  ;;  %v16044_v60 = vld [vmem:[#allocation49_spill] sm:$0xff] }
 0x801   :  { %7349 = vmatmul.bf16.gmra.mxu0 %v16035_v9  ;;  %7782 = vmatpush.bf16.msrb.mxu3 %v10242_v21  ;;  %v4492_v53 = vld [vmem:[#allocation2 + $0x208] ss:$2 sm:$0xff] }
 0x802   :  { %16033 = vst [vmem:[#allocation48_spill] sm:$0xff] %v14559_v52  ;;  %7518 = vmatmul.bf16.gmra.mxu2 %v16036_v2  ;;  %v4777_v2 = vpack.c.bf16 %v4713_v16, %v4713_v16  ;;  %7613 = vmatpush.bf16.msrb.mxu1 %v10178_v40  ;;  %v16040_v16 = vld [vmem:[#allocation52_spill] sm:$0xff] }
 0x803   :  { %v7141_v61 = vpop.f32.mrf.mxu3  ;;  %v4620_v40 = vld [vmem:[#allocation2 + $0x209] ss:$2 sm:$0xff] }
 0x804   :  { %v7142_v25 = vadd.f32 %v7141_v61, %v14445_v51  ;;  %v6974_v11 = vpop.f32.mrf.mxu1  ;;  %v5673_v61 = vunpack.c.l.b16 %v4777_v2  ;;  %v16045_v2 = vld [vmem:[#allocation50_spill] sm:$0xff] }
 0x805   :  { %v7479_v42 = vpop.f32.mrf.mxu2  ;;  %v14572_v58 = vadd.f32 %v6974_v11, %v16037_v38 }
 0x806   :  { %v7312_v24 = vpop.f32.mrf.mxu0  ;;  %v7311_v9 = vadd.f32 %v7310_v31, %v7142_v25  ;;  %v14586_v38 = vpack.c.b16 %v5674_v3, %v5673_v61 }
 0x807   :  { %16038 = vst [vmem:[#allocation45_spill] sm:$0xff] %v14572_v58  ;;  %v4494_v58 = vld [vmem:[#allocation2 + $0x218] ss:$2 sm:$0xff] }
 0x808   :  { %v14574_v50 = vadd.f32 %v7479_v42, %v7311_v9  ;;  %16042 = vst [vmem:[#allocation87_spill] sm:$0xff] %v14586_v38 }
 0x80a   :  { %16039 = vst [vmem:[#allocation84_spill] sm:$0xff] %v14574_v50  ;;  %v4622_v50 = vld [vmem:[#allocation2 + $0x219] ss:$2 sm:$0xff] }
 0x80b   :  { %v7143_v21 = vpop.f32.mrf.mxu3 }
 0x80c   :  { %v7144_v11 = vadd.f32 %v7143_v21, %v14445_v51  ;;  %v6977_v31 = vpop.f32.mrf.mxu1  ;;  %v16046_v21 = vld [vmem:[#allocation86_spill] sm:$0xff] }
 0x80d   :  { %v7481_v35 = vpop.f32.mrf.mxu2  ;;  %v14584_v25 = vadd.f32 %v6977_v31, %v16040_v16  ;;  %v4716_v31 = vmax.f32 %v4494_v58, %v4622_v50 }
 0x80e   :  { %v7315_v42 = vpop.f32.mrf.mxu0  ;;  %v7313_v9 = vadd.f32 %v7312_v24, %v7144_v11  ;;  %v16047_v11 = vld [vmem:[#allocation89_spill] sm:$0xff] }
 0x80f   :  { %16041 = vst [vmem:[#allocation46_spill] sm:$0xff] %v14584_v25  ;;  %7016 = vmatmul.bf16.gmra.mxu1 %v14586_v38  ;;  %v4715_v25 = vmax.f32 %v4492_v53, %v4620_v40  ;;  %v16050_v40 = vld [vmem:[#allocation56_spill] sm:$0xff] }
 0x810   :  { %v14589_v22 = vadd.f32 %v7481_v35, %v7313_v9  ;;  %7185 = vmatmul.bf16.gmra.mxu3 %v16044_v60  ;;  %v4780_v9 = vpack.c.bf16 %v4716_v31, %v4716_v31  ;;  %v4626_v31 = vld [vmem:[#allocation2 + $0x239] ss:$2 sm:$0xff] }
 0x811   :  { %7354 = vmatmul.bf16.gmra.mxu0 %v16045_v2  ;;  %v4779_v60 = vpack.c.bf16 %v4715_v25, %v4715_v25 }
 0x812   :  { %16043 = vst [vmem:[#allocation52_spill] sm:$0xff] %v14589_v22  ;;  %7523 = vmatmul.bf16.gmra.mxu2 %v16046_v21  ;;  %v5676_v2 = vunpack.c.l.b16 %v4780_v9 }
 0x813   :  { %v7146_v16 = vpop.f32.mrf.mxu3  ;;  %v5675_v52 = vunpack.c.l.b16 %v4779_v60 }
 0x814   :  { %v7147_v3 = vadd.f32 %v7146_v16, %v14445_v51  ;;  %v6979_v61 = vpop.f32.mrf.mxu1 }
 0x815   :  { %v7484_v24 = vpop.f32.mrf.mxu2  ;;  %v14596_v45 = vadd.f32 %v6979_v61, %v16047_v11  ;;  %v14604_v44 = vpack.c.b16 %v5676_v2, %v5675_v52  ;;  %v4498_v11 = vld [vmem:[#allocation2 + $0x238] ss:$2 sm:$0xff] }
 0x816   :  { %v7317_v35 = vpop.f32.mrf.mxu0  ;;  %v7316_v38 = vadd.f32 %v7315_v42, %v7147_v3  ;;  %v16054_v42 = vld [vmem:[#allocation53_spill] sm:$0xff]  ;;  %v4624_v3 = vld [vmem:[#allocation2 + $0x229] ss:$2 sm:$0xff]  ;;  %v4718_v9 = vmax.f32 %v4498_v11, %v4626_v31 }
 0x817   :  { %16048 = vst [vmem:[#allocation49_spill] sm:$0xff] %v14596_v45 }
 0x818   :  { %v14598_v22 = vadd.f32 %v7484_v24, %v7316_v38  ;;  %16052 = vst [vmem:[#allocation89_spill] sm:$0xff] %v14604_v44  ;;  %v16055_v38 = vld [vmem:[#allocation88_spill] sm:$0xff]  ;;  %v16056_v24 = vld [vmem:[#allocation54_spill] sm:$0xff] }
 0x81a   :  { %16049 = vst [vmem:[#allocation50_spill] sm:$0xff] %v14598_v22 }
 0x81b   :  { %v7148_v13 = vpop.f32.mrf.mxu3 }
 0x81c   :  { %v7149_v50 = vadd.f32 %v7148_v13, %v14445_v51  ;;  %v6982_v53 = vpop.f32.mrf.mxu1  ;;  %v4496_v13 = vld [vmem:[#allocation2 + $0x228] ss:$2 sm:$0xff] }
 0x81d   :  { %v7486_v58 = vpop.f32.mrf.mxu2  ;;  %v14602_v21 = vadd.f32 %v6982_v53, %v16050_v40  ;;  %v4717_v53 = vmax.f32 %v4496_v13, %v4624_v3  ;;  %v16060_v3 = vld [vmem:[#allocation60_spill] sm:$0xff] }
 0x81e   :  { %v7320_v16 = vpop.f32.mrf.mxu0  ;;  %v7318_v61 = vadd.f32 %v7317_v35, %v7149_v50  ;;  %v16057_v50 = vld [vmem:[#allocation91_spill] sm:$0xff] }
 0x81f   :  { %16051 = vst [vmem:[#allocation86_spill] sm:$0xff] %v14602_v21  ;;  %7021 = vmatmul.bf16.gmra.mxu1 %v14604_v44 }
 0x820   :  { %v14607_v25 = vadd.f32 %v7486_v58, %v7318_v61  ;;  %7190 = vmatmul.bf16.gmra.mxu3 %v16054_v42  ;;  %v4782_v61 = vpack.c.bf16 %v4718_v9, %v4718_v9  ;;  %v4781_v42 = vpack.c.bf16 %v4717_v53, %v4717_v53  ;;  %v4630_v9 = vld [vmem:[#allocation2 + $0x259] ss:$2 sm:$0xff] }
 0x821   :  { %7359 = vmatmul.bf16.gmra.mxu0 %v16055_v38  ;;  %v16065_v53 = vld [vmem:[#allocation58_spill] sm:$0xff] }
 0x822   :  { %16053 = vst [vmem:[#allocation56_spill] sm:$0xff] %v14607_v25  ;;  %7528 = vmatmul.bf16.gmra.mxu2 %v16056_v24  ;;  %v5678_v38 = vunpack.c.l.b16 %v4782_v61  ;;  %v5677_v25 = vunpack.c.l.b16 %v4781_v42 }
 0x823   :  { %v7151_v60 = vpop.f32.mrf.mxu3 }
 0x824   :  { %v7152_v52 = vadd.f32 %v7151_v60, %v14445_v51  ;;  %v6984_v2 = vpop.f32.mrf.mxu1  ;;  %v14622_v22 = vpack.c.b16 %v5678_v38, %v5677_v25 }
 0x825   :  { %v7489_v35 = vpop.f32.mrf.mxu2  ;;  %v14614_v40 = vadd.f32 %v6984_v2, %v16057_v50  ;;  %v4502_v50 = vld [vmem:[#allocation2 + $0x258] ss:$2 sm:$0xff] }
 0x826   :  { %v7322_v58 = vpop.f32.mrf.mxu0  ;;  %v7321_v21 = vadd.f32 %v7320_v16, %v7152_v52  ;;  %16062 = vst [vmem:[#allocation91_spill] sm:$0xff] %v14622_v22  ;;  %v16064_v16 = vld [vmem:[#allocation57_spill] sm:$0xff]  ;;  %v4628_v52 = vld [vmem:[#allocation2 + $0x249] ss:$2 sm:$0xff]  ;;  %v4720_v61 = vmax.f32 %v4502_v50, %v4630_v9 }
 0x827   :  { %16058 = vst [vmem:[#allocation53_spill] sm:$0xff] %v14614_v40 }
 0x828   :  { %v14616_v44 = vadd.f32 %v7489_v35, %v7321_v21  ;;  %v16066_v35 = vld [vmem:[#allocation90_spill] sm:$0xff] }
 0x82a   :  { %16059 = vst [vmem:[#allocation88_spill] sm:$0xff] %v14616_v44 }
 0x82b   :  { %v7153_v45 = vpop.f32.mrf.mxu3 }
 0x82c   :  { %v7154_v11 = vadd.f32 %v7153_v45, %v14445_v51  ;;  %v6987_v13 = vpop.f32.mrf.mxu1  ;;  %v4500_v45 = vld [vmem:[#allocation2 + $0x248] ss:$2 sm:$0xff] }
 0x82d   :  { %v7491_v31 = vpop.f32.mrf.mxu2  ;;  %v14620_v24 = vadd.f32 %v6987_v13, %v16060_v3  ;;  %v4719_v13 = vmax.f32 %v4500_v45, %v4628_v52  ;;  %v16070_v52 = vld [vmem:[#allocation64_spill] sm:$0xff] }
 0x82e   :  { %v7325_v60 = vpop.f32.mrf.mxu0  ;;  %v7323_v2 = vadd.f32 %v7322_v58, %v7154_v11  ;;  %v16067_v11 = vld [vmem:[#allocation93_spill] sm:$0xff] }
 0x82f   :  { %16061 = vst [vmem:[#allocation54_spill] sm:$0xff] %v14620_v24  ;;  %7026 = vmatmul.bf16.gmra.mxu1 %v14622_v22 }
 0x830   :  { %v14625_v21 = vadd.f32 %v7491_v31, %v7323_v2  ;;  %7195 = vmatmul.bf16.gmra.mxu3 %v16064_v16  ;;  %v4784_v2 = vpack.c.bf16 %v4720_v61, %v4720_v61  ;;  %v4783_v16 = vpack.c.bf16 %v4719_v13, %v4719_v13  ;;  %v4634_v61 = vld [vmem:[#allocation2 + $0x279] ss:$2 sm:$0xff]  ;;  %v16075_v13 = vld [vmem:[#allocation92_spill] sm:$0xff] }
 0x831   :  { %7364 = vmatmul.bf16.gmra.mxu0 %v16065_v53 }
 0x832   :  { %16063 = vst [vmem:[#allocation60_spill] sm:$0xff] %v14625_v21  ;;  %7533 = vmatmul.bf16.gmra.mxu2 %v16066_v35  ;;  %v5680_v53 = vunpack.c.l.b16 %v4784_v2  ;;  %v5679_v21 = vunpack.c.l.b16 %v4783_v16 }
 0x833   :  { %v7156_v42 = vpop.f32.mrf.mxu3 }
 0x834   :  { %v7157_v25 = vadd.f32 %v7156_v42, %v14445_v51  ;;  %v6989_v38 = vpop.f32.mrf.mxu1  ;;  %v14640_v44 = vpack.c.b16 %v5680_v53, %v5679_v21  ;;  %v10715_v21 = vld [vmem:[%s15479_s3 + $0x224] sm:$0xf] }
 0x835   :  { %v7494_v58 = vpop.f32.mrf.mxu2  ;;  %v14632_v3 = vadd.f32 %v6989_v38, %v16067_v11  ;;  %v4506_v11 = vld [vmem:[#allocation2 + $0x278] ss:$2 sm:$0xff] }
 0x836   :  { %v7327_v31 = vpop.f32.mrf.mxu0  ;;  %v7326_v24 = vadd.f32 %v7325_v60, %v7157_v25  ;;  %16072 = vst [vmem:[#allocation93_spill] sm:$0xff] %v14640_v44  ;;  %v16074_v60 = vld [vmem:[#allocation61_spill] sm:$0xff]  ;;  %v4632_v25 = vld [vmem:[#allocation2 + $0x269] ss:$2 sm:$0xff]  ;;  %v4722_v2 = vmax.f32 %v4506_v11, %v4634_v61 }
 0x837   :  { %16068 = vst [vmem:[#allocation57_spill] sm:$0xff] %v14632_v3 }
 0x838   :  { %v14634_v22 = vadd.f32 %v7494_v58, %v7326_v24  ;;  %v16076_v58 = vld [vmem:[#allocation62_spill] sm:$0xff]  ;;  %v4786_v61 = vpack.c.bf16 %v4722_v2, %v4722_v2 }
 0x83a   :  { %16069 = vst [vmem:[#allocation58_spill] sm:$0xff] %v14634_v22 }
 0x83b   :  { %v7158_v40 = vpop.f32.mrf.mxu3 }
 0x83c   :  { %v7159_v50 = vadd.f32 %v7158_v40, %v14445_v51  ;;  %v6992_v45 = vpop.f32.mrf.mxu1  ;;  %v4504_v40 = vld [vmem:[#allocation2 + $0x268] ss:$2 sm:$0xff] }
 0x83d   :  { %v7496_v9 = vpop.f32.mrf.mxu2  ;;  %v14638_v35 = vadd.f32 %v6992_v45, %v16070_v52 }
 0x83e   :  { %v7330_v42 = vpop.f32.mrf.mxu0  ;;  %v7328_v38 = vadd.f32 %v7327_v31, %v7159_v50  ;;  %v10231_v31 = vld [vmem:[%s15479_s3 + $0x228] sm:$0xf0]  ;;  %v4721_v50 = vmax.f32 %v4504_v40, %v4632_v25  ;;  %v5682_v25 = vunpack.c.l.b16 %v4786_v61 }
 0x83f   :  { %16071 = vst [vmem:[#allocation90_spill] sm:$0xff] %v14638_v35  ;;  %7031 = vmatmul.bf16.gmra.mxu1 %v14640_v44  ;;  %v10234_v16 = vor.u32 %v10715_v21, %v10231_v31  ;;  %v10699_v21 = vld [vmem:[%s15479_s3 + $0x1a4] sm:$0xf]  ;;  %v10167_v40 = vld [vmem:[%s15479_s3 + $0x1a8] sm:$0xf0] }
 0x840   :  { %v14643_v24 = vadd.f32 %v7496_v9, %v7328_v38  ;;  %7200 = vmatmul.bf16.gmra.mxu3 %v16074_v60  ;;  %v16077_v38 = vld [vmem:[#allocation95_spill] sm:$0xff]  ;;  %v10170_v31 = vor.u32 %v10699_v21, %v10167_v40  ;;  %v16084_v21 = vld [vmem:[#allocation65_spill] sm:$0xff] }
 0x841   :  { %7369 = vmatmul.bf16.gmra.mxu0 %v16075_v13  ;;  %7783 = vmatpush.bf16.msrb.mxu3 %v10234_v16  ;;  %v4508_v40 = vld [vmem:[#allocation2 + $0x288] ss:$2 sm:$0xff] }
 0x842   :  { %16073 = vst [vmem:[#allocation64_spill] sm:$0xff] %v14643_v24  ;;  %7538 = vmatmul.bf16.gmra.mxu2 %v16076_v58  ;;  %v4785_v58 = vpack.c.bf16 %v4721_v50, %v4721_v50  ;;  %7614 = vmatpush.bf16.msrb.mxu1 %v10170_v31  ;;  %v16080_v50 = vld [vmem:[#allocation68_spill] sm:$0xff] }
 0x843   :  { %v7161_v53 = vpop.f32.mrf.mxu3  ;;  %v4636_v31 = vld [vmem:[#allocation2 + $0x289] ss:$2 sm:$0xff] }
 0x844   :  { %v7162_v9 = vadd.f32 %v7161_v53, %v14445_v51  ;;  %v6994_v52 = vpop.f32.mrf.mxu1  ;;  %v5681_v53 = vunpack.c.l.b16 %v4785_v58  ;;  %v16085_v58 = vld [vmem:[#allocation66_spill] sm:$0xff] }
 0x845   :  { %v7499_v45 = vpop.f32.mrf.mxu2  ;;  %v14656_v60 = vadd.f32 %v6994_v52, %v16077_v38 }
 0x846   :  { %v7332_v11 = vpop.f32.mrf.mxu0  ;;  %v7331_v13 = vadd.f32 %v7330_v42, %v7162_v9  ;;  %v14670_v38 = vpack.c.b16 %v5682_v25, %v5681_v53 }
 0x847   :  { %16078 = vst [vmem:[#allocation61_spill] sm:$0xff] %v14656_v60  ;;  %v4510_v60 = vld [vmem:[#allocation2 + $0x298] ss:$2 sm:$0xff] }
 0x848   :  { %v14658_v35 = vadd.f32 %v7499_v45, %v7331_v13  ;;  %16082 = vst [vmem:[#allocation95_spill] sm:$0xff] %v14670_v38 }
 0x84a   :  { %16079 = vst [vmem:[#allocation92_spill] sm:$0xff] %v14658_v35  ;;  %v4638_v35 = vld [vmem:[#allocation2 + $0x299] ss:$2 sm:$0xff] }
 0x84b   :  { %v7163_v16 = vpop.f32.mrf.mxu3 }
 0x84c   :  { %v7164_v52 = vadd.f32 %v7163_v16, %v14445_v51  ;;  %v6997_v42 = vpop.f32.mrf.mxu1  ;;  %v16086_v16 = vld [vmem:[#allocation94_spill] sm:$0xff] }
 0x84d   :  { %v7501_v2 = vpop.f32.mrf.mxu2  ;;  %v14668_v9 = vadd.f32 %v6997_v42, %v16080_v50  ;;  %v4724_v42 = vmax.f32 %v4510_v60, %v4638_v35 }
 0x84e   :  { %v7335_v45 = vpop.f32.mrf.mxu0  ;;  %v7333_v13 = vadd.f32 %v7332_v11, %v7164_v52  ;;  %v16087_v52 = vld [vmem:[#allocation97_spill] sm:$0xff] }
 0x84f   :  { %16081 = vst [vmem:[#allocation62_spill] sm:$0xff] %v14668_v9  ;;  %7036 = vmatmul.bf16.gmra.mxu1 %v14670_v38  ;;  %v4723_v9 = vmax.f32 %v4508_v40, %v4636_v31  ;;  %v16090_v31 = vld [vmem:[#allocation72_spill] sm:$0xff] }
 0x850   :  { %v14673_v61 = vadd.f32 %v7501_v2, %v7333_v13  ;;  %7205 = vmatmul.bf16.gmra.mxu3 %v16084_v21  ;;  %v4788_v13 = vpack.c.bf16 %v4724_v42, %v4724_v42  ;;  %v4642_v42 = vld [vmem:[#allocation2 + $0x2b9] ss:$2 sm:$0xff] }
 0x851   :  { %7374 = vmatmul.bf16.gmra.mxu0 %v16085_v58  ;;  %v4787_v21 = vpack.c.bf16 %v4723_v9, %v4723_v9 }
 0x852   :  { %16083 = vst [vmem:[#allocation68_spill] sm:$0xff] %v14673_v61  ;;  %7543 = vmatmul.bf16.gmra.mxu2 %v16086_v16  ;;  %v5684_v58 = vunpack.c.l.b16 %v4788_v13 }
 0x853   :  { %v7166_v50 = vpop.f32.mrf.mxu3  ;;  %v5683_v24 = vunpack.c.l.b16 %v4787_v21 }
 0x854   :  { %v7167_v25 = vadd.f32 %v7166_v50, %v14445_v51  ;;  %v6999_v53 = vpop.f32.mrf.mxu1 }
 0x855   :  { %v7504_v11 = vpop.f32.mrf.mxu2  ;;  %v14680_v44 = vadd.f32 %v6999_v53, %v16087_v52  ;;  %v14688_v22 = vpack.c.b16 %v5684_v58, %v5683_v24  ;;  %v4514_v52 = vld [vmem:[#allocation2 + $0x2b8] ss:$2 sm:$0xff] }
 0x856   :  { %v7337_v2 = vpop.f32.mrf.mxu0  ;;  %v7336_v38 = vadd.f32 %v7335_v45, %v7167_v25  ;;  %v16094_v45 = vld [vmem:[#allocation69_spill] sm:$0xff]  ;;  %v4640_v25 = vld [vmem:[#allocation2 + $0x2a9] ss:$2 sm:$0xff]  ;;  %v4726_v13 = vmax.f32 %v4514_v52, %v4642_v42 }
 0x857   :  { %16088 = vst [vmem:[#allocation65_spill] sm:$0xff] %v14680_v44 }
 0x858   :  { %v14682_v61 = vadd.f32 %v7504_v11, %v7336_v38  ;;  %16092 = vst [vmem:[#allocation97_spill] sm:$0xff] %v14688_v22  ;;  %v16095_v38 = vld [vmem:[#allocation96_spill] sm:$0xff]  ;;  %v16096_v11 = vld [vmem:[#allocation70_spill] sm:$0xff] }
 0x85a   :  { %16089 = vst [vmem:[#allocation66_spill] sm:$0xff] %v14682_v61 }
 0x85b   :  { %v7168_v3 = vpop.f32.mrf.mxu3 }
 0x85c   :  { %v7169_v35 = vadd.f32 %v7168_v3, %v14445_v51  ;;  %v7002_v40 = vpop.f32.mrf.mxu1  ;;  %v4512_v3 = vld [vmem:[#allocation2 + $0x2a8] ss:$2 sm:$0xff] }
 0x85d   :  { %v7506_v60 = vpop.f32.mrf.mxu2  ;;  %v14686_v16 = vadd.f32 %v7002_v40, %v16090_v31  ;;  %v4725_v40 = vmax.f32 %v4512_v3, %v4640_v25  ;;  %v16100_v25 = vld [vmem:[#allocation103_spill] sm:$0xff] }
 0x85e   :  { %v7340_v50 = vpop.f32.mrf.mxu0  ;;  %v7338_v53 = vadd.f32 %v7337_v2, %v7169_v35  ;;  %v16097_v35 = vld [vmem:[#allocation77_spill] sm:$0xff] }
 0x85f   :  { %16091 = vst [vmem:[#allocation94_spill] sm:$0xff] %v14686_v16  ;;  %7041 = vmatmul.bf16.gmra.mxu1 %v14688_v22 }
 0x860   :  { %v14691_v9 = vadd.f32 %v7506_v60, %v7338_v53  ;;  %7210 = vmatmul.bf16.gmra.mxu3 %v16094_v45  ;;  %v4790_v53 = vpack.c.bf16 %v4726_v13, %v4726_v13  ;;  %v4789_v45 = vpack.c.bf16 %v4725_v40, %v4725_v40  ;;  %v4646_v13 = vld [vmem:[#allocation2 + $0x2d9] ss:$2 sm:$0xff] }
 0x861   :  { %7379 = vmatmul.bf16.gmra.mxu0 %v16095_v38  ;;  %v16105_v40 = vld [vmem:[#allocation98_spill] sm:$0xff] }
 0x862   :  { %16093 = vst [vmem:[#allocation72_spill] sm:$0xff] %v14691_v9  ;;  %7548 = vmatmul.bf16.gmra.mxu2 %v16096_v11  ;;  %v5686_v38 = vunpack.c.l.b16 %v4790_v53  ;;  %v5685_v9 = vunpack.c.l.b16 %v4789_v45 }
 0x863   :  { %v7171_v21 = vpop.f32.mrf.mxu3 }
 0x864   :  { %v7172_v24 = vadd.f32 %v7171_v21, %v14445_v51  ;;  %v7004_v58 = vpop.f32.mrf.mxu1  ;;  %v14706_v61 = vpack.c.b16 %v5686_v38, %v5685_v9 }
 0x865   :  { %v7509_v2 = vpop.f32.mrf.mxu2  ;;  %v14698_v31 = vadd.f32 %v7004_v58, %v16097_v35  ;;  %v4518_v35 = vld [vmem:[#allocation2 + $0x2d8] ss:$2 sm:$0xff] }
 0x866   :  { %v7342_v60 = vpop.f32.mrf.mxu0  ;;  %v7341_v16 = vadd.f32 %v7340_v50, %v7172_v24  ;;  %16102 = vst [vmem:[#allocation77_spill] sm:$0xff] %v14706_v61  ;;  %v16104_v50 = vld [vmem:[#allocation73_spill] sm:$0xff]  ;;  %v4644_v24 = vld [vmem:[#allocation2 + $0x2c9] ss:$2 sm:$0xff]  ;;  %v4728_v53 = vmax.f32 %v4518_v35, %v4646_v13 }
 0x867   :  { %16098 = vst [vmem:[#allocation69_spill] sm:$0xff] %v14698_v31 }
 0x868   :  { %v14700_v22 = vadd.f32 %v7509_v2, %v7341_v16  ;;  %v16106_v2 = vld [vmem:[#allocation75_spill] sm:$0xff] }
 0x86a   :  { %16099 = vst [vmem:[#allocation96_spill] sm:$0xff] %v14700_v22 }
 0x86b   :  { %v7173_v44 = vpop.f32.mrf.mxu3 }
 0x86c   :  { %v7174_v52 = vadd.f32 %v7173_v44, %v14445_v51  ;;  %v7007_v3 = vpop.f32.mrf.mxu1  ;;  %v4516_v44 = vld [vmem:[#allocation2 + $0x2c8] ss:$2 sm:$0xff] }
 0x86d   :  { %v7511_v42 = vpop.f32.mrf.mxu2  ;;  %v14704_v11 = vadd.f32 %v7007_v3, %v16100_v25  ;;  %v4727_v3 = vmax.f32 %v4516_v44, %v4644_v24  ;;  %v16110_v24 = vld [vmem:[#allocation109_spill] sm:$0xff] }
 0x86e   :  { %v7345_v21 = vpop.f32.mrf.mxu0  ;;  %v7343_v58 = vadd.f32 %v7342_v60, %v7174_v52  ;;  %v16107_v52 = vld [vmem:[#allocation108_spill] sm:$0xff] }
 0x86f   :  { %16101 = vst [vmem:[#allocation70_spill] sm:$0xff] %v14704_v11  ;;  %7046 = vmatmul.bf16.gmra.mxu1 %v14706_v61 }
 0x870   :  { %v14709_v16 = vadd.f32 %v7511_v42, %v7343_v58  ;;  %7215 = vmatmul.bf16.gmra.mxu3 %v16104_v50  ;;  %v4792_v58 = vpack.c.bf16 %v4728_v53, %v4728_v53  ;;  %v4791_v50 = vpack.c.bf16 %v4727_v3, %v4727_v3  ;;  %v4650_v53 = vld [vmem:[#allocation2 + $0x2f9] ss:$2 sm:$0xff] }
 0x871   :  { %7384 = vmatmul.bf16.gmra.mxu0 %v16105_v40  ;;  %v16115_v3 = vld [vmem:[#allocation105_spill] sm:$0xff] }
 0x872   :  { %16103 = vst [vmem:[#allocation103_spill] sm:$0xff] %v14709_v16  ;;  %7553 = vmatmul.bf16.gmra.mxu2 %v16106_v2  ;;  %v5688_v40 = vunpack.c.l.b16 %v4792_v58  ;;  %v5687_v16 = vunpack.c.l.b16 %v4791_v50 }
 0x873   :  { %v7176_v45 = vpop.f32.mrf.mxu3 }
 0x874   :  { %v7177_v9 = vadd.f32 %v7176_v45, %v14445_v51  ;;  %v7009_v38 = vpop.f32.mrf.mxu1  ;;  %v14724_v22 = vpack.c.b16 %v5688_v40, %v5687_v16  ;;  %v10713_v16 = vld [vmem:[%s15479_s3 + $0x214] sm:$0xf] }
 0x875   :  { %v7514_v60 = vpop.f32.mrf.mxu2  ;;  %v14716_v25 = vadd.f32 %v7009_v38, %v16107_v52  ;;  %v4522_v52 = vld [vmem:[#allocation2 + $0x2f8] ss:$2 sm:$0xff] }
 0x876   :  { %v7347_v42 = vpop.f32.mrf.mxu0  ;;  %v7346_v11 = vadd.f32 %v7345_v21, %v7177_v9  ;;  %16112 = vst [vmem:[#allocation108_spill] sm:$0xff] %v14724_v22  ;;  %v16114_v21 = vld [vmem:[#allocation104_spill] sm:$0xff]  ;;  %v4730_v58 = vmax.f32 %v4522_v52, %v4650_v53 }
 0x877   :  { %16108 = vst [vmem:[#allocation73_spill] sm:$0xff] %v14716_v25  ;;  %v4648_v9 = vld [vmem:[#allocation2 + $0x2e9] ss:$2 sm:$0xff] }
 0x878   :  { %v14718_v61 = vadd.f32 %v7514_v60, %v7346_v11  ;;  %v16116_v60 = vld [vmem:[#allocation106_spill] sm:$0xff]  ;;  %v4794_v53 = vpack.c.bf16 %v4730_v58, %v4730_v58 }
 0x87a   :  { %16109 = vst [vmem:[#allocation98_spill] sm:$0xff] %v14718_v61 }
 0x87b   :  { %v7178_v31 = vpop.f32.mrf.mxu3 }
 0x87c   :  { %v7179_v35 = vadd.f32 %v7178_v31, %v14445_v51  ;;  %v7012_v44 = vpop.f32.mrf.mxu1  ;;  %v4520_v31 = vld [vmem:[#allocation2 + $0x2e8] ss:$2 sm:$0xff] }
 0x87d   :  { %v7516_v13 = vpop.f32.mrf.mxu2  ;;  %v14722_v2 = vadd.f32 %v7012_v44, %v16110_v24 }
 0x87e   :  { %v7350_v45 = vpop.f32.mrf.mxu0  ;;  %v7348_v38 = vadd.f32 %v7347_v42, %v7179_v35  ;;  %v10223_v42 = vld [vmem:[%s15479_s3 + $0x218] sm:$0xf0]  ;;  %v4729_v35 = vmax.f32 %v4520_v31, %v4648_v9  ;;  %v5690_v9 = vunpack.c.l.b16 %v4794_v53 }
 0x87f   :  { %16111 = vst [vmem:[#allocation75_spill] sm:$0xff] %v14722_v2  ;;  %7051 = vmatmul.bf16.gmra.mxu1 %v14724_v22  ;;  %v10226_v50 = vor.u32 %v10713_v16, %v10223_v42  ;;  %v10697_v16 = vld [vmem:[%s15479_s3 + $0x194] sm:$0xf]  ;;  %v10159_v31 = vld [vmem:[%s15479_s3 + $0x198] sm:$0xf0] }
 0x880   :  { %v14727_v11 = vadd.f32 %v7516_v13, %v7348_v38  ;;  %7220 = vmatmul.bf16.gmra.mxu3 %v16114_v21  ;;  %v16117_v38 = vld [vmem:[#allocation114_spill] sm:$0xff]  ;;  %v10162_v42 = vor.u32 %v10697_v16, %v10159_v31  ;;  %v4524_v31 = vld [vmem:[#allocation2 + $0x308] ss:$2 sm:$0xff] }
 0x881   :  { %7389 = vmatmul.bf16.gmra.mxu0 %v16115_v3  ;;  %7784 = vmatpush.bf16.msrb.mxu3 %v10226_v50  ;;  %v16124_v16 = vld [vmem:[#allocation110_spill] sm:$0xff] }
 0x882   :  { %16113 = vst [vmem:[#allocation109_spill] sm:$0xff] %v14727_v11  ;;  %7558 = vmatmul.bf16.gmra.mxu2 %v16116_v60  ;;  %v4793_v60 = vpack.c.bf16 %v4729_v35, %v4729_v35  ;;  %7615 = vmatpush.bf16.msrb.mxu1 %v10162_v42  ;;  %v16120_v35 = vld [vmem:[#allocation115_spill] sm:$0xff] }
 0x883   :  { %v7181_v40 = vpop.f32.mrf.mxu3  ;;  %v4652_v42 = vld [vmem:[#allocation2 + $0x309] ss:$2 sm:$0xff] }
 0x884   :  { %v7182_v13 = vadd.f32 %v7181_v40, %v14445_v51  ;;  %v7014_v24 = vpop.f32.mrf.mxu1  ;;  %v5689_v40 = vunpack.c.l.b16 %v4793_v60  ;;  %v16125_v60 = vld [vmem:[#allocation111_spill] sm:$0xff] }
 0x885   :  { %v7519_v44 = vpop.f32.mrf.mxu2  ;;  %v14740_v21 = vadd.f32 %v7014_v24, %v16117_v38 }
 0x886   :  { %v7352_v52 = vpop.f32.mrf.mxu0  ;;  %v7351_v3 = vadd.f32 %v7350_v45, %v7182_v13  ;;  %v14754_v38 = vpack.c.b16 %v5690_v9, %v5689_v40 }
 0x887   :  { %16118 = vst [vmem:[#allocation104_spill] sm:$0xff] %v14740_v21  ;;  %v4526_v21 = vld [vmem:[#allocation2 + $0x318] ss:$2 sm:$0xff] }
 0x888   :  { %v14742_v2 = vadd.f32 %v7519_v44, %v7351_v3  ;;  %16122 = vst [vmem:[#allocation114_spill] sm:$0xff] %v14754_v38 }
 0x88a   :  { %16119 = vst [vmem:[#allocation105_spill] sm:$0xff] %v14742_v2  ;;  %v4654_v2 = vld [vmem:[#allocation2 + $0x319] ss:$2 sm:$0xff] }
 0x88b   :  { %v7183_v50 = vpop.f32.mrf.mxu3 }
 0x88c   :  { %v7184_v24 = vadd.f32 %v7183_v50, %v14445_v51  ;;  %v7017_v45 = vpop.f32.mrf.mxu1  ;;  %v16126_v50 = vld [vmem:[#allocation112_spill] sm:$0xff] }
 0x88d   :  { %v7521_v58 = vpop.f32.mrf.mxu2  ;;  %v14752_v13 = vadd.f32 %v7017_v45, %v16120_v35  ;;  %v4732_v45 = vmax.f32 %v4526_v21, %v4654_v2 }
 0x88e   :  { %v7355_v44 = vpop.f32.mrf.mxu0  ;;  %v7353_v3 = vadd.f32 %v7352_v52, %v7184_v24  ;;  %v16127_v24 = vld [vmem:[#allocation120_spill] sm:$0xff] }
 0x88f   :  { %16121 = vst [vmem:[#allocation106_spill] sm:$0xff] %v14752_v13  ;;  %7056 = vmatmul.bf16.gmra.mxu1 %v14754_v38  ;;  %v4731_v13 = vmax.f32 %v4524_v31, %v4652_v42  ;;  %v16130_v42 = vld [vmem:[#allocation121_spill] sm:$0xff] }
 0x890   :  { %v14757_v53 = vadd.f32 %v7521_v58, %v7353_v3  ;;  %7225 = vmatmul.bf16.gmra.mxu3 %v16124_v16  ;;  %v4796_v3 = vpack.c.bf16 %v4732_v45, %v4732_v45  ;;  %v4658_v45 = vld [vmem:[#allocation2 + $0x339] ss:$2 sm:$0xff] }
 0x891   :  { %7394 = vmatmul.bf16.gmra.mxu0 %v16125_v60  ;;  %v4795_v16 = vpack.c.bf16 %v4731_v13, %v4731_v13 }
 0x892   :  { %16123 = vst [vmem:[#allocation115_spill] sm:$0xff] %v14757_v53  ;;  %7563 = vmatmul.bf16.gmra.mxu2 %v16126_v50  ;;  %v5692_v60 = vunpack.c.l.b16 %v4796_v3 }
 0x893   :  { %v7186_v35 = vpop.f32.mrf.mxu3  ;;  %v5691_v11 = vunpack.c.l.b16 %v4795_v16 }
 0x894   :  { %v7187_v9 = vadd.f32 %v7186_v35, %v14445_v51  ;;  %v7019_v40 = vpop.f32.mrf.mxu1 }
 0x895   :  { %v7524_v52 = vpop.f32.mrf.mxu2  ;;  %v14764_v22 = vadd.f32 %v7019_v40, %v16127_v24  ;;  %v14772_v61 = vpack.c.b16 %v5692_v60, %v5691_v11  ;;  %v4530_v24 = vld [vmem:[#allocation2 + $0x338] ss:$2 sm:$0xff] }
 0x896   :  { %v7357_v58 = vpop.f32.mrf.mxu0  ;;  %v7356_v38 = vadd.f32 %v7355_v44, %v7187_v9  ;;  %v16134_v44 = vld [vmem:[#allocation116_spill] sm:$0xff]  ;;  %v4734_v3 = vmax.f32 %v4530_v24, %v4658_v45 }
 0x897   :  { %16128 = vst [vmem:[#allocation110_spill] sm:$0xff] %v14764_v22  ;;  %v4656_v9 = vld [vmem:[#allocation2 + $0x329] ss:$2 sm:$0xff] }
 0x898   :  { %v14766_v53 = vadd.f32 %v7524_v52, %v7356_v38  ;;  %16132 = vst [vmem:[#allocation120_spill] sm:$0xff] %v14772_v61  ;;  %v16135_v38 = vld [vmem:[#allocation117_spill] sm:$0xff]  ;;  %v16136_v52 = vld [vmem:[#allocation118_spill] sm:$0xff] }
 0x89a   :  { %16129 = vst [vmem:[#allocation111_spill] sm:$0xff] %v14766_v53 }
 0x89b   :  { %v7188_v25 = vpop.f32.mrf.mxu3 }
 0x89c   :  { %v7189_v2 = vadd.f32 %v7188_v25, %v14445_v51  ;;  %v7022_v31 = vpop.f32.mrf.mxu1  ;;  %v4528_v25 = vld [vmem:[#allocation2 + $0x328] ss:$2 sm:$0xff] }
 0x89d   :  { %v7526_v21 = vpop.f32.mrf.mxu2  ;;  %v14770_v50 = vadd.f32 %v7022_v31, %v16130_v42  ;;  %v4733_v31 = vmax.f32 %v4528_v25, %v4656_v9  ;;  %v16139_v9 = vld [vmem:[#allocation127_spill] sm:$0xff] }
 0x89e   :  { %v7360_v35 = vpop.f32.mrf.mxu0  ;;  %v7358_v40 = vadd.f32 %v7357_v58, %v7189_v2  ;;  %v16137_v2 = vld [vmem:[#allocation126_spill] sm:$0xff] }
 0x89f   :  { %16131 = vst [vmem:[#allocation112_spill] sm:$0xff] %v14770_v50  ;;  %7061 = vmatmul.bf16.gmra.mxu1 %v14772_v61 }
 0x8a0   :  { %v14775_v13 = vadd.f32 %v7526_v21, %v7358_v40  ;;  %7230 = vmatmul.bf16.gmra.mxu3 %v16134_v44  ;;  %v4798_v40 = vpack.c.bf16 %v4734_v3, %v4734_v3  ;;  %v4797_v44 = vpack.c.bf16 %v4733_v31, %v4733_v31  ;;  %v4662_v3 = vld [vmem:[#allocation2 + $0x359] ss:$2 sm:$0xff]  ;;  %v16144_v31 = vld [vmem:[#allocation123_spill] sm:$0xff] }
 0x8a1   :  { %7399 = vmatmul.bf16.gmra.mxu0 %v16135_v38 }
 0x8a2   :  { %16133 = vst [vmem:[#allocation121_spill] sm:$0xff] %v14775_v13  ;;  %7568 = vmatmul.bf16.gmra.mxu2 %v16136_v52  ;;  %v5694_v38 = vunpack.c.l.b16 %v4798_v40  ;;  %v5693_v13 = vunpack.c.l.b16 %v4797_v44 }
 0x8a3   :  { %v7191_v16 = vpop.f32.mrf.mxu3 }
 0x8a4   :  { %v7192_v11 = vadd.f32 %v7191_v16, %v14445_v51  ;;  %v7024_v60 = vpop.f32.mrf.mxu1  ;;  %v14790_v53 = vpack.c.b16 %v5694_v38, %v5693_v13 }
 0x8a5   :  { %v7529_v58 = vpop.f32.mrf.mxu2  ;;  %v14782_v42 = vadd.f32 %v7024_v60, %v16137_v2  ;;  %v4534_v2 = vld [vmem:[#allocation2 + $0x358] ss:$2 sm:$0xff] }
 0x8a6   :  { %v7362_v21 = vpop.f32.mrf.mxu0  ;;  %v7361_v50 = vadd.f32 %v7360_v35, %v7192_v11  ;;  %16141 = vst [vmem:[#allocation118_spill] sm:$0xff] %v14790_v53  ;;  %v16143_v35 = vld [vmem:[#allocation122_spill] sm:$0xff]  ;;  %v4660_v11 = vld [vmem:[#allocation2 + $0x349] ss:$2 sm:$0xff]  ;;  %v4736_v40 = vmax.f32 %v4534_v2, %v4662_v3 }
 0x8a7   :  { %16138 = vst [vmem:[#allocation116_spill] sm:$0xff] %v14782_v42 }
 0x8a8   :  { %v14784_v61 = vadd.f32 %v7529_v58, %v7361_v50  ;;  %v16145_v58 = vld [vmem:[#allocation124_spill] sm:$0xff] }
 0x8ab   :  { %v7193_v22 = vpop.f32.mrf.mxu3 }
 0x8ac   :  { %v7194_v24 = vadd.f32 %v7193_v22, %v14445_v51  ;;  %v7027_v25 = vpop.f32.mrf.mxu1  ;;  %v4532_v22 = vld [vmem:[#allocation2 + $0x348] ss:$2 sm:$0xff] }
 0x8ad   :  { %v7531_v45 = vpop.f32.mrf.mxu2  ;;  %v14788_v52 = vadd.f32 %v7027_v25, %v16139_v9  ;;  %v4735_v25 = vmax.f32 %v4532_v22, %v4660_v11  ;;  %v16149_v11 = vld [vmem:[#allocation133_spill] sm:$0xff] }
 0x8ae   :  { %v7365_v16 = vpop.f32.mrf.mxu0  ;;  %v7363_v60 = vadd.f32 %v7362_v21, %v7194_v24  ;;  %v16146_v24 = vld [vmem:[#allocation132_spill] sm:$0xff] }
 0x8af   :  { %16140 = vst [vmem:[#allocation117_spill] sm:$0xff] %v14788_v52  ;;  %7066 = vmatmul.bf16.gmra.mxu1 %v14790_v53 }
 0x8b0   :  { %v14793_v50 = vadd.f32 %v7531_v45, %v7363_v60  ;;  %7235 = vmatmul.bf16.gmra.mxu3 %v16143_v35  ;;  %v4800_v60 = vpack.c.bf16 %v4736_v40, %v4736_v40  ;;  %v4799_v35 = vpack.c.bf16 %v4735_v25, %v4735_v25  ;;  %v16154_v25 = vld [vmem:[#allocation129_spill] sm:$0xff] }
 0x8b1   :  { %7404 = vmatmul.bf16.gmra.mxu0 %v16144_v31 }
 0x8b2   :  { %16142 = vst [vmem:[#allocation126_spill] sm:$0xff] %v14793_v50  ;;  %7573 = vmatmul.bf16.gmra.mxu2 %v16145_v58  ;;  %v5696_v31 = vunpack.c.l.b16 %v4800_v60  ;;  %v5695_v50 = vunpack.c.l.b16 %v4799_v35 }
 0x8b3   :  { %v7196_v44 = vpop.f32.mrf.mxu3 }
 0x8b4   :  { %v7197_v13 = vadd.f32 %v7196_v44, %v14445_v51  ;;  %v7029_v38 = vpop.f32.mrf.mxu1  ;;  %v14808_v44 = vpack.c.b16 %v5696_v31, %v5695_v50  ;;  %v10711_v50 = vld [vmem:[%s15479_s3 + $0x204] sm:$0xf] }
 0x8b5   :  { %v7534_v21 = vpop.f32.mrf.mxu2  ;;  %v14800_v9 = vadd.f32 %v7029_v38, %v16146_v24  ;;  %v4538_v24 = vld [vmem:[#allocation2 + $0x378] ss:$2 sm:$0xff] }
 0x8b6   :  { %v7367_v45 = vpop.f32.mrf.mxu0  ;;  %v7366_v52 = vadd.f32 %v7365_v16, %v7197_v13  ;;  %16151 = vst [vmem:[#allocation124_spill] sm:$0xff] %v14808_v44  ;;  %v16153_v16 = vld [vmem:[#allocation128_spill] sm:$0xff] }
 0x8b7   :  { %16147 = vst [vmem:[#allocation127_spill] sm:$0xff] %v14800_v9  ;;  %v4666_v9 = vld [vmem:[#allocation2 + $0x379] ss:$2 sm:$0xff]  ;;  %v4664_v13 = vld [vmem:[#allocation2 + $0x369] ss:$2 sm:$0xff] }
 0x8b8   :  { %v14802_v53 = vadd.f32 %v7534_v21, %v7366_v52  ;;  %v16155_v21 = vld [vmem:[#allocation130_spill] sm:$0xff]  ;;  %v4738_v60 = vmax.f32 %v4538_v24, %v4666_v9 }
 0x8ba   :  { %16148 = vst [vmem:[#allocation122_spill] sm:$0xff] %v14802_v53  ;;  %v4802_v9 = vpack.c.bf16 %v4738_v60, %v4738_v60 }
 0x8bb   :  { %v7198_v42 = vpop.f32.mrf.mxu3 }
 0x8bc   :  { %v7199_v2 = vadd.f32 %v7198_v42, %v14445_v51  ;;  %v7032_v22 = vpop.f32.mrf.mxu1  ;;  %v4536_v42 = vld [vmem:[#allocation2 + $0x368] ss:$2 sm:$0xff] }
 0x8bd   :  { %v7536_v3 = vpop.f32.mrf.mxu2  ;;  %v14806_v58 = vadd.f32 %v7032_v22, %v16149_v11 }
 0x8be   :  { %v7368_v38 = vadd.f32 %v7367_v45, %v7199_v2  ;;  %v7370_v40 = vpop.f32.mrf.mxu0  ;;  %v10215_v45 = vld [vmem:[%s15479_s3 + $0x208] sm:$0xf0]  ;;  %v4737_v2 = vmax.f32 %v4536_v42, %v4664_v13 }
 0x8bf   :  { %16150 = vst [vmem:[#allocation123_spill] sm:$0xff] %v14806_v58  ;;  %7071 = vmatmul.bf16.gmra.mxu1 %v14808_v44  ;;  %v10218_v35 = vor.u32 %v10711_v50, %v10215_v45  ;;  %v10695_v58 = vld [vmem:[%s15479_s3 + $0x184] sm:$0xf]  ;;  %v10151_v42 = vld [vmem:[%s15479_s3 + $0x188] sm:$0xf0]  ;;  %v5698_v50 = vunpack.c.l.b16 %v4802_v9 }
 0x8c0   :  { %v14811_v52 = vadd.f32 %v7536_v3, %v7368_v38  ;;  %7240 = vmatmul.bf16.gmra.mxu3 %v16153_v16  ;;  %v16156_v38 = vld [vmem:[#allocation138_spill] sm:$0xff]  ;;  %v10154_v45 = vor.u32 %v10695_v58, %v10151_v42  ;;  %v16164_v9 = vld [vmem:[#allocation135_spill] sm:$0xff] }
 0x8c1   :  { %7409 = vmatmul.bf16.gmra.mxu0 %v16154_v25  ;;  %7785 = vmatpush.bf16.msrb.mxu3 %v10218_v35  ;;  %v4801_v25 = vpack.c.bf16 %v4737_v2, %v4737_v2  ;;  %v16163_v58 = vld [vmem:[#allocation134_spill] sm:$0xff]  ;;  %v4668_v42 = vld [vmem:[#allocation2 + $0x389] ss:$2 sm:$0xff] }
 0x8c2   :  { %16152 = vst [vmem:[#allocation132_spill] sm:$0xff] %v14811_v52  ;;  %7578 = vmatmul.bf16.gmra.mxu2 %v16155_v21  ;;  %7616 = vmatpush.bf16.msrb.mxu1 %v10154_v45  ;;  %v16165_v45 = vld [vmem:[#allocation136_spill] sm:$0xff] }
 0x8c3   :  { %v7201_v31 = vpop.f32.mrf.mxu3 }
 0x8c4   :  { %v7202_v3 = vadd.f32 %v7201_v31, %v14445_v51  ;;  %v7034_v11 = vpop.f32.mrf.mxu1  ;;  %v5697_v31 = vunpack.c.l.b16 %v4801_v25  ;;  %v4540_v25 = vld [vmem:[#allocation2 + $0x388] ss:$2 sm:$0xff] }
 0x8c5   :  { %v7539_v22 = vpop.f32.mrf.mxu2  ;;  %v14824_v16 = vadd.f32 %v7034_v11, %v16156_v38 }
 0x8c6   :  { %v7371_v24 = vadd.f32 %v7370_v40, %v7202_v3  ;;  %v7372_v13 = vpop.f32.mrf.mxu0  ;;  %v16159_v3 = vld [vmem:[#allocation139_spill] sm:$0xff]  ;;  %v14838_v11 = vpack.c.b16 %v5698_v50, %v5697_v31  ;;  %v4739_v50 = vmax.f32 %v4540_v25, %v4668_v42  ;;  %v16168_v25 = vld [vmem:[#allocation145_spill] sm:$0xff] }
 0x8c7   :  { %16157 = vst [vmem:[#allocation133_spill] sm:$0xff] %v14824_v16  ;;  %v4670_v16 = vld [vmem:[#allocation2 + $0x399] ss:$2 sm:$0xff] }
 0x8c8   :  { %v14826_v21 = vadd.f32 %v7539_v22, %v7371_v24  ;;  %16161 = vst [vmem:[#allocation130_spill] sm:$0xff] %v14838_v11  ;;  %v4542_v24 = vld [vmem:[#allocation2 + $0x398] ss:$2 sm:$0xff] }
 0x8ca   :  { %16158 = vst [vmem:[#allocation128_spill] sm:$0xff] %v14826_v21 }
 0x8cb   :  { %v7203_v35 = vpop.f32.mrf.mxu3 }
 0x8cc   :  { %v7204_v60 = vadd.f32 %v7203_v35, %v14445_v51  ;;  %v7037_v2 = vpop.f32.mrf.mxu1  ;;  %v4740_v35 = vmax.f32 %v4542_v24, %v4670_v16 }
 0x8cd   :  { %v7541_v40 = vpop.f32.mrf.mxu2  ;;  %v14836_v22 = vadd.f32 %v7037_v2, %v16159_v3 }
 0x8ce   :  { %v7373_v38 = vadd.f32 %v7372_v13, %v7204_v60  ;;  %v7375_v2 = vpop.f32.mrf.mxu0 }
 0x8cf   :  { %16160 = vst [vmem:[#allocation129_spill] sm:$0xff] %v14836_v22  ;;  %7076 = vmatmul.bf16.gmra.mxu1 %v14838_v11  ;;  %v16166_v22 = vld [vmem:[#allocation144_spill] sm:$0xff] }
 0x8d0   :  { %v14841_v21 = vadd.f32 %v7541_v40, %v7373_v38  ;;  %7245 = vmatmul.bf16.gmra.mxu3 %v16163_v58  ;;  %v4804_v40 = vpack.c.bf16 %v4740_v35, %v4740_v35  ;;  %v4803_v58 = vpack.c.bf16 %v4739_v50, %v4739_v50  ;;  %v16171_v50 = vld [vmem:[#allocation140_spill] sm:$0xff] }
 0x8d1   :  { %7414 = vmatmul.bf16.gmra.mxu0 %v16164_v9 }
 0x8d2   :  { %16162 = vst [vmem:[#allocation138_spill] sm:$0xff] %v14841_v21  ;;  %7583 = vmatmul.bf16.gmra.mxu2 %v16165_v45  ;;  %v5700_v9 = vunpack.c.l.b16 %v4804_v40  ;;  %v5699_v52 = vunpack.c.l.b16 %v4803_v58  ;;  %v16173_v40 = vld [vmem:[#allocation142_spill] sm:$0xff] }
 0x8d3   :  { %v7206_v3 = vpop.f32.mrf.mxu3 }
 0x8d4   :  { %v7207_v13 = vadd.f32 %v7206_v3, %v14445_v51  ;;  %v7039_v31 = vpop.f32.mrf.mxu1  ;;  %v14856_v3 = vpack.c.b16 %v5700_v9, %v5699_v52 }
 0x8d5   :  { %v7544_v60 = vpop.f32.mrf.mxu2  ;;  %v14848_v11 = vadd.f32 %v7039_v31, %v16166_v22  ;;  %v4546_v22 = vld [vmem:[#allocation2 + $0x3b8] ss:$2 sm:$0xff]  ;;  %v4674_v31 = vld [vmem:[#allocation2 + $0x3b9] ss:$2 sm:$0xff] }
 0x8d6   :  { %v7376_v38 = vadd.f32 %v7375_v2, %v7207_v13  ;;  %v7377_v45 = vpop.f32.mrf.mxu0  ;;  %16170 = vst [vmem:[#allocation135_spill] sm:$0xff] %v14856_v3  ;;  %v16172_v13 = vld [vmem:[#allocation141_spill] sm:$0xff] }
 0x8d7   :  { %16167 = vst [vmem:[#allocation139_spill] sm:$0xff] %v14848_v11 }
 0x8d8   :  { %v14850_v21 = vadd.f32 %v7544_v60, %v7376_v38  ;;  %v4672_v60 = vld [vmem:[#allocation2 + $0x3a9] ss:$2 sm:$0xff]  ;;  %v4742_v38 = vmax.f32 %v4546_v22, %v4674_v31  ;;  %v4550_v22 = vld [vmem:[#allocation2 + $0x3d8] ss:$2 sm:$0xff]  ;;  %v4678_v31 = vld [vmem:[#allocation2 + $0x3d9] ss:$2 sm:$0xff] }
 0x8db   :  { %v7208_v44 = vpop.f32.mrf.mxu3 }
 0x8dc   :  { %v7209_v16 = vadd.f32 %v7208_v44, %v14445_v51  ;;  %v7042_v24 = vpop.f32.mrf.mxu1  ;;  %v4544_v44 = vld [vmem:[#allocation2 + $0x3a8] ss:$2 sm:$0xff] }
 0x8dd   :  { %v14854_v42 = vadd.f32 %v7042_v24, %v16168_v25  ;;  %v7546_v35 = vpop.f32.mrf.mxu2  ;;  %v4741_v52 = vmax.f32 %v4544_v44, %v4672_v60  ;;  %v16180_v44 = vld [vmem:[#allocation146_spill] sm:$0xff]  ;;  %v16181_v60 = vld [vmem:[#allocation147_spill] sm:$0xff] }
 0x8de   :  { %v7378_v53 = vadd.f32 %v7377_v45, %v7209_v16  ;;  %v16174_v16 = vld [vmem:[#allocation150_spill] sm:$0xff]  ;;  %v4806_v45 = vpack.c.bf16 %v4742_v38, %v4742_v38  ;;  %v4676_v38 = vld [vmem:[#allocation2 + $0x3c9] ss:$2 sm:$0xff] }
 0x8df   :  { %16169 = vst [vmem:[#allocation134_spill] sm:$0xff] %v14854_v42  ;;  %7081 = vmatmul.bf16.gmra.mxu1 %v14856_v3  ;;  %v4805_v25 = vpack.c.bf16 %v4741_v52, %v4741_v52  ;;  %v16182_v52 = vld [vmem:[#allocation148_spill] sm:$0xff] }
 0x8e0   :  { %v14859_v2 = vadd.f32 %v7546_v35, %v7378_v53  ;;  %7250 = vmatmul.bf16.gmra.mxu3 %v16171_v50  ;;  %v5702_v53 = vunpack.c.l.b16 %v4806_v45 }
 0x8e1   :  { %7419 = vmatmul.bf16.gmra.mxu0 %v16172_v13  ;;  %v5701_v50 = vunpack.c.l.b16 %v4805_v25  ;;  %v16177_v13 = vld [vmem:[#allocation151_spill] sm:$0xff]  ;;  %v16183_v25 = vld [vmem:[#allocation156_spill] sm:$0xff] }
 0x8e2   :  { %7588 = vmatmul.bf16.gmra.mxu2 %v16173_v40  ;;  %v4548_v40 = vld [vmem:[#allocation2 + $0x3c8] ss:$2 sm:$0xff] }
 0x8e3   :  { %v14864_v58 = vpop.f32.mrf.mxu3  ;;  %v14874_v11 = vpack.c.b16 %v5702_v53, %v5701_v50  ;;  %v4743_v45 = vmax.f32 %v4548_v40, %v4676_v38  ;;  %v16187_v40 = vld [vmem:[#allocation152_spill] sm:$0xff]  ;;  %v16188_v38 = vld [vmem:[#allocation153_spill] sm:$0xff] }
 0x8e4   :  { %v7044_v9 = vpop.f32.mrf.mxu1 }
 0x8e5   :  { %v14867_v24 = vadd.f32 %v7044_v9, %v16174_v16  ;;  %16179 = vst [vmem:[#allocation140_spill] sm:$0xff] %v14874_v11  ;;  %v4744_v9 = vmax.f32 %v4550_v22, %v4678_v31  ;;  %v4554_v22 = vld [vmem:[#allocation2 + $0x3f8] ss:$2 sm:$0xff]  ;;  %v4682_v31 = vld [vmem:[#allocation2 + $0x3f9] ss:$2 sm:$0xff] }
 0x8e7   :  { %16175 = vst [vmem:[#allocation136_spill] sm:$0xff] %v14867_v24  ;;  %v4808_v50 = vpack.c.bf16 %v4744_v9, %v4744_v9  ;;  %v4680_v9 = vld [vmem:[#allocation2 + $0x3e9] ss:$2 sm:$0xff] }
 0x8eb   :  { %v14869_v35 = vpop.f32.mrf.mxu3 }
 0x8ec   :  { %16176 = vst [vmem:[#allocation144_spill] sm:$0xff] %v14869_v35  ;;  %v7047_v42 = vpop.f32.mrf.mxu1 }
 0x8ed   :  { %v14872_v3 = vadd.f32 %v7047_v42, %v16177_v13  ;;  %v4807_v13 = vpack.c.bf16 %v4743_v45, %v4743_v45  ;;  %v16189_v45 = vld [vmem:[#allocation154_spill] sm:$0xff] }
 0x8ef   :  { %16178 = vst [vmem:[#allocation145_spill] sm:$0xff] %v14872_v3  ;;  %7086 = vmatmul.bf16.gmra.mxu1 %v14874_v11  ;;  %v5704_v3 = vunpack.c.l.b16 %v4808_v50 }
 0x8f0   :  { %7255 = vmatmul.bf16.gmra.mxu3 %v16180_v44  ;;  %v5703_v44 = vunpack.c.l.b16 %v4807_v13 }
 0x8f1   :  { %7424 = vmatmul.bf16.gmra.mxu0 %v16181_v60 }
 0x8f2   :  { %7593 = vmatmul.bf16.gmra.mxu2 %v16182_v52  ;;  %v14890_v35 = vpack.c.b16 %v5704_v3, %v5703_v44  ;;  %v4552_v52 = vld [vmem:[#allocation2 + $0x3e8] ss:$2 sm:$0xff] }
 0x8f3   :  { %v14880_v16 = vpop.f32.mrf.mxu3  ;;  %v4745_v50 = vmax.f32 %v4552_v52, %v4680_v9  ;;  %v16190_v9 = vld [vmem:[#allocation101_spill] sm:$0xff] }
 0x8f4   :  { %v7049_v42 = vpop.f32.mrf.mxu1  ;;  %16186 = vst [vmem:[#allocation150_spill] sm:$0xff] %v14890_v35 }
 0x8f5   :  { %v14883_v53 = vadd.f32 %v7049_v42, %v16183_v25  ;;  %v4746_v42 = vmax.f32 %v4554_v22, %v4682_v31  ;;  %v4809_v13 = vpack.c.bf16 %v4745_v50, %v4745_v50  ;;  %v16191_v50 = vld [vmem:[#allocation102_spill] sm:$0xff] }
 0x8f7   :  { %16184 = vst [vmem:[#allocation141_spill] sm:$0xff] %v14883_v53 }
 0x8fb   :  { %v14885_v11 = vpop.f32.mrf.mxu3 }
 0x8fc   :  { %v7052_v24 = vpop.f32.mrf.mxu1 }
 0x8fd   :  { %v14888_v60 = vadd.f32 %v7052_v24, %v14285_v59  ;;  %v4810_v24 = vpack.c.bf16 %v4746_v42, %v4746_v42 }
 0x8ff   :  { %16185 = vst [vmem:[#allocation142_spill] sm:$0xff] %v14888_v60  ;;  %7091 = vmatmul.bf16.gmra.mxu1 %v14890_v35  ;;  %v5706_v44 = vunpack.c.l.b16 %v4810_v24 }
 0x900   :  { %7260 = vmatmul.bf16.gmra.mxu3 %v16187_v40  ;;  %v5705_v40 = vunpack.c.l.b16 %v4809_v13 }
 0x901   :  { %7429 = vmatmul.bf16.gmra.mxu0 %v16188_v38 }
 0x902   :  { %7598 = vmatmul.bf16.gmra.mxu2 %v16189_v45  ;;  %v14906_v53 = vpack.c.b16 %v5706_v44, %v5705_v40  ;;  %v16192_v44 = vld [vmem:[#allocation100_spill] sm:$0xff] }
 0x903   :  { %v14896_v25 = vpop.f32.mrf.mxu3 }
 0x904   :  { %v7054_v59 = vpop.f32.mrf.mxu1 }
 0x905   :  { %v14899_v3 = vadd.f32 %v7054_v59, %v14303_v62 }
 0x90b   :  { %v14901_v60 = vpop.f32.mrf.mxu3 }
 0x90c   :  { %v7057_v35 = vpop.f32.mrf.mxu1 }
 0x90d   :  { %v14904_v38 = vadd.f32 %v7057_v35, %v14309_v56 }
 0x90f   :  { %7096 = vmatmul.bf16.gmra.mxu1 %v14906_v53 }
 0x910   :  { %7265 = vmatmul.bf16.gmra.mxu3 %v14294_v28 }
 0x911   :  { %7434 = vmatmul.bf16.gmra.mxu0 %v14296_v41 }
 0x912   :  { %7603 = vmatmul.bf16.gmra.mxu2 %v14298_v7 }
 0x913   :  { %v14912_v62 = vpop.f32.mrf.mxu3 }
 0x914   :  { %v7059_v22 = vpop.f32.mrf.mxu1 }
 0x915   :  { %v14915_v31 = vadd.f32 %v7059_v22, %v14315_v15 }
 0x91b   :  { %v14917_v52 = vpop.f32.mrf.mxu3 }
 0x91c   :  { %v7062_v56 = vpop.f32.mrf.mxu1 }
 0x91d   :  { %v14920_v35 = vadd.f32 %v7062_v56, %v14321_v43 }
 0x91f   :  { %7617 = vmatmul.bf16.vlgmr.msrb.gmra.mxu1 %v16190_v9  ;;  %v16194_v9 = vld [vmem:[#allocation4_spill] sm:$0xff] }
 0x920   :  { %7786 = vmatmul.bf16.vlgmr.msrb.gmra.mxu3 %v14312_v6 }
 0x923   :  { %v14924_v28 = vpop.f32.mrf.mxu3 }
 0x924   :  { %v7064_v41 = vpop.f32.mrf.mxu1 }
 0x925   :  { %v14927_v7 = vadd.f32 %v7064_v41, %v14327_v55 }
 0x92b   :  { %v14929_v45 = vpop.f32.mrf.mxu3 }
 0x92c   :  { %v7067_v15 = vpop.f32.mrf.mxu1 }
 0x92d   :  { %v14932_v42 = vadd.f32 %v7067_v15, %v14333_v54 }
 0x92f   :  { %7622 = vmatmul.bf16.gmra.mxu1 %v16191_v50 }
 0x930   :  { %7791 = vmatmul.bf16.gmra.mxu3 %v14324_v1 }
 0x933   :  { %v14936_v43 = vpop.f32.mrf.mxu3 }
 0x934   :  { %v7069_v59 = vpop.f32.mrf.mxu1 }
 0x935   :  { %v14939_v6 = vadd.f32 %v7069_v59, %v14339_v37  ;;  %v16197_v59 = vld [vmem:[#allocation6_spill] sm:$0xff] }
 0x93b   :  { %v14941_v24 = vpop.f32.mrf.mxu3 }
 0x93c   :  { %v7072_v55 = vpop.f32.mrf.mxu1 }
 0x93d   :  { %v14944_v13 = vadd.f32 %v7072_v55, %v14351_v27 }
 0x93f   :  { %7627 = vmatmul.bf16.gmra.mxu1 %v16192_v44 }
 0x940   :  { %7796 = vmatmul.bf16.gmra.mxu3 %v14336_v34 }
 0x943   :  { %v14948_v54 = vpop.f32.mrf.mxu3 }
 0x944   :  { %v7074_v40 = vpop.f32.mrf.mxu1 }
 0x945   :  { %v14951_v1 = vadd.f32 %v7074_v40, %v14363_v8 }
 0x94b   :  { %v14953_v22 = vpop.f32.mrf.mxu3 }
 0x94c   :  { %v7077_v37 = vpop.f32.mrf.mxu1 }
 0x94d   :  { %v14956_v56 = vadd.f32 %v7077_v37, %v14369_v19  ;;  %v16202_v37 = vld [vmem:[#allocation10_spill] sm:$0xff] }
 0x94f   :  { %16193 = vst [vmem:[#allocation151_spill] sm:$0xff] %v14956_v56  ;;  %7632 = vmatmul.bf16.gmra.mxu1 %v16194_v9 }
 0x950   :  { %7801 = vmatmul.bf16.gmra.mxu3 %v14360_v49 }
 0x953   :  { %v14960_v27 = vpop.f32.mrf.mxu3 }
 0x954   :  { %v7079_v41 = vpop.f32.mrf.mxu1 }
 0x955   :  { %v14963_v34 = vadd.f32 %v7079_v41, %v14375_v20 }
 0x957   :  { %16195 = vst [vmem:[#allocation146_spill] sm:$0xff] %v14963_v34 }
 0x95b   :  { %v14965_v15 = vpop.f32.mrf.mxu3 }
 0x95c   :  { %v7082_v8 = vpop.f32.mrf.mxu1 }
 0x95d   :  { %v14968_v50 = vadd.f32 %v7082_v8, %v14381_v4 }
 0x95f   :  { %16196 = vst [vmem:[#allocation147_spill] sm:$0xff] %v14968_v50  ;;  %7637 = vmatmul.bf16.gmra.mxu1 %v16197_v59  ;;  %v16207_v59 = vld [vmem:[#allocation9_spill] sm:$0xff] }
 0x960   :  { %7806 = vmatmul.bf16.gmra.mxu3 %v14372_v47 }
 0x963   :  { %v14972_v19 = vpop.f32.mrf.mxu3 }
 0x964   :  { %16198 = vst [vmem:[#allocation148_spill] sm:$0xff] %v14972_v19  ;;  %v7084_v55 = vpop.f32.mrf.mxu1 }
 0x965   :  { %v14975_v49 = vadd.f32 %v7084_v55, %v14387_v0 }
 0x967   :  { %16199 = vst [vmem:[#allocation156_spill] sm:$0xff] %v14975_v49 }
 0x96b   :  { %v14977_v44 = vpop.f32.mrf.mxu3 }
 0x96c   :  { %16200 = vst [vmem:[#allocation152_spill] sm:$0xff] %v14977_v44  ;;  %v7087_v20 = vpop.f32.mrf.mxu1 }
 0x96d   :  { %v14980_v40 = vadd.f32 %v7087_v20, %v14393_v57 }
 0x96f   :  { %16201 = vst [vmem:[#allocation153_spill] sm:$0xff] %v14980_v40  ;;  %7642 = vmatmul.bf16.gmra.mxu1 %v16202_v37 }
 0x970   :  { %7811 = vmatmul.bf16.gmra.mxu3 %v14384_v5  ;;  %v10734_v5 = vld [vmem:[%s15481_s5 + $0x38] sm:$0xff] }
 0x971   :  { %8946 = vmatpush.bf16.msra.mxu2 %v10734_v5 }
 0x973   :  { %v14984_v4 = vpop.f32.mrf.mxu3 }
 0x974   :  { %16203 = vst [vmem:[#allocation154_spill] sm:$0xff] %v14984_v4  ;;  %v7089_v9 = vpop.f32.mrf.mxu1 }
 0x975   :  { %v14987_v47 = vadd.f32 %v7089_v9, %v14399_v48  ;;  %v16212_v9 = vld [vmem:[#allocation11_spill] sm:$0xff] }
 0x977   :  { %16204 = vst [vmem:[#allocation101_spill] sm:$0xff] %v14987_v47 }
 0x97b   :  { %v14989_v41 = vpop.f32.mrf.mxu3 }
 0x97c   :  { %16205 = vst [vmem:[#allocation102_spill] sm:$0xff] %v14989_v41  ;;  %v7092_v0 = vpop.f32.mrf.mxu1  ;;  %v16318_v41 = vld [vmem:[#allocation121_spill] sm:$0xff] }
 0x97d   :  { %v14992_v8 = vadd.f32 %v7092_v0, %v14411_v26 }
 0x97f   :  { %16206 = vst [vmem:[#allocation100_spill] sm:$0xff] %v14992_v8  ;;  %7647 = vmatmul.bf16.gmra.mxu1 %v16207_v59 }
 0x980   :  { %7816 = vmatmul.bf16.gmra.mxu3 %v14396_v10 }
 0x983   :  { %v14999_v57 = vpop.f32.mrf.mxu3 }
 0x984   :  { %16208 = vst [vmem:[#allocation4_spill] sm:$0xff] %v14999_v57  ;;  %v7094_v55 = vpop.f32.mrf.mxu1 }
 0x985   :  { %v15002_v48 = vadd.f32 %v7094_v55, %v14423_v14  ;;  %v16216_v55 = vld [vmem:[#allocation17_spill] sm:$0xff] }
 0x987   :  { %16209 = vst [vmem:[#allocation6_spill] sm:$0xff] %v15002_v48  ;;  %v16217_v48 = vld [vmem:[#allocation8_spill] sm:$0xff] }
 0x988   :  { %v6269_v8 = vadd.f32 %v16217_v48, %v13632_v18 }
 0x98b   :  { %v15004_v20 = vpop.f32.mrf.mxu3 }
 0x98c   :  { %16210 = vst [vmem:[#allocation10_spill] sm:$0xff] %v15004_v20  ;;  %v7097_v37 = vpop.f32.mrf.mxu1 }
 0x98d   :  { %v15007_v26 = vadd.f32 %v7097_v37, %v14429_v30  ;;  %v16218_v30 = vld [vmem:[#allocation5_spill] sm:$0xff] }
 0x98e   :  { %v6438_v37 = vadd.f32 %v16218_v30, %v6269_v8 }
 0x98f   :  { %16211 = vst [vmem:[#allocation9_spill] sm:$0xff] %v15007_v26  ;;  %7652 = vmatmul.bf16.gmra.mxu1 %v16212_v9  ;;  %v16219_v26 = vld [vmem:[#allocation12_spill] sm:$0xff] }
 0x990   :  { %7821 = vmatmul.bf16.gmra.mxu3 %v14420_v17 }
 0x993   :  { %v15011_v10 = vpop.f32.mrf.mxu3 }
 0x994   :  { %16213 = vst [vmem:[#allocation11_spill] sm:$0xff] %v15011_v10  ;;  %v7099_v0 = vpop.f32.mrf.mxu1  ;;  %v6607_v10 = vadd.f32 %v16219_v26, %v6438_v37  ;;  %v16224_v37 = vld [vmem:[#allocation13_spill] sm:$0xff] }
 0x995   :  { %v15014_v59 = vadd.f32 %v7099_v0, %v14438_v32  ;;  %v7947_v0 = vmax.f32 %v14433_v33, 0.0 }
 0x997   :  { %16214 = vst [vmem:[#allocation158_spill] sm:$0xff] %v15014_v59 }
 0x99b   :  { %v15016_v5 = vpop.f32.mrf.mxu3 }
 0x99c   :  { %16215 = vst [vmem:[#allocation159_spill] sm:$0xff] %v15016_v5  ;;  %v7618_v14 = vpop.f32.mrf.mxu1  ;;  %v16220_v5 = vld [vmem:[#allocation7_spill] sm:$0xff] }
 0x99d   :  { %v7619_v17 = vadd.f32 %v7618_v14, %v14451_v12  ;;  %v6776_v47 = vadd.f32 %v16220_v5, %v6607_v10  ;;  %v10750_v12 = vld [vmem:[%s15481_s5 + $0xb8] sm:$0xff]  ;;  %v16221_v14 = vld [vmem:[#allocation16_spill] sm:$0xff]  ;;  %v16222_v10 = vld [vmem:[#allocation35_spill] sm:$0xff] }
 0x99e   :  { %8984 = vmatpush.bf16.msra.mxu0 %v10750_v12  ;;  %v6274_v33 = vadd.f32 %v16221_v14, %v13632_v18  ;;  %v16227_v14 = vld [vmem:[#allocation19_spill] sm:$0xff] }
 0x99f   :  { %7657 = vmatmul.bf16.gmra.mxu1 %v16216_v55  ;;  %v6945_v57 = vadd.f32 %v14449_v36, %v6776_v47 }
 0x9a0   :  { %7826 = vmatmul.bf16.gmra.mxu3 %v14435_v39 }
 0x9a3   :  { %v7787_v9 = vpop.f32.mrf.mxu3 }
 0x9a4   :  { %v7788_v20 = vadd.f32 %v7787_v9, %v7619_v17  ;;  %v7620_v32 = vpop.f32.mrf.mxu1 }
 0x9a5   :  { %v7621_v39 = vadd.f32 %v7620_v32, %v14460_v23 }
 0x9a6   :  { %v7948_v59 = vmax.f32 %v7788_v20, 0.0  ;;  %v7949_v20 = vmax.f32 %v6945_v57, 0.0  ;;  %v16225_v57 = vld [vmem:[#allocation20_spill] sm:$0xff] }
 0x9a8   :  { %v8075_v55 = vmax.f32 %v7947_v0, %v7948_v59  ;;  %v16223_v59 = vld [vmem:[#allocation18_spill] sm:$0xff]  ;;  %v7951_v0 = vmax.f32 %v14455_v46, 0.0 }
 0x9a9   :  { %v6443_v36 = vadd.f32 %v16223_v59, %v6274_v33  ;;  %v16230_v46 = vld [vmem:[#allocation74_spill] sm:$0xff] }
 0x9aa   :  { %8139 = vst [vmem:[#allocation3] sm:$0xff] %v8075_v55 }
 0x9ab   :  { %v7789_v8 = vpop.f32.mrf.mxu3  ;;  %v6612_v17 = vadd.f32 %v16224_v37, %v6443_v36  ;;  %v16229_v36 = vld [vmem:[#allocation78_spill] sm:$0xff]  ;;  %v16232_v37 = vld [vmem:[#allocation24_spill] sm:$0xff] }
 0x9ac   :  { %v7790_v48 = vadd.f32 %v7789_v8, %v7621_v39  ;;  %v7623_v26 = vpop.f32.mrf.mxu1  ;;  %v16226_v8 = vld [vmem:[#allocation15_spill] sm:$0xff] }
 0x9ad   :  { %v7624_v23 = vadd.f32 %v7623_v26, %v14468_v29  ;;  %v6781_v39 = vadd.f32 %v16225_v57, %v6612_v17  ;;  %v16228_v29 = vld [vmem:[#allocation22_spill] sm:$0xff] }
 0x9ae   :  { %v7950_v30 = vmax.f32 %v7790_v48, 0.0  ;;  %v6279_v26 = vadd.f32 %v16228_v29, %v13632_v18 }
 0x9af   :  { %7662 = vmatmul.bf16.gmra.mxu1 %v16222_v10  ;;  %v6950_v48 = vadd.f32 %v16226_v8, %v6781_v39 }
 0x9b0   :  { %v8076_v47 = vmax.f32 %v7949_v20, %v7950_v30  ;;  %7831 = vmatmul.bf16.gmra.mxu3 %v14457_v63 }
 0x9b1   :  { %v7953_v10 = vmax.f32 %v6950_v48, 0.0 }
 0x9b2   :  { %8140 = vst [vmem:[#allocation3 + $0x8] sm:$0xff] %v8076_v47  ;;  %v6448_v47 = vadd.f32 %v16230_v46, %v6279_v26  ;;  %v16238_v46 = vld [vmem:[#allocation32_spill] sm:$0xff] }
 0x9b3   :  { %v7792_v5 = vpop.f32.mrf.mxu3 }
 0x9b4   :  { %v7793_v9 = vadd.f32 %v7792_v5, %v7624_v23  ;;  %v7625_v32 = vpop.f32.mrf.mxu1  ;;  %v16231_v5 = vld [vmem:[#allocation29_spill] sm:$0xff] }
 0x9b5   :  { %v7626_v33 = vadd.f32 %v7625_v32, %v16227_v14  ;;  %v16235_v14 = vld [vmem:[#allocation27_spill] sm:$0xff] }
 0x9b6   :  { %v7952_v55 = vmax.f32 %v7793_v9, 0.0  ;;  %v10733_v9 = vld [vmem:[%s15481_s5 + $0x30] sm:$0xff] }
 0x9b7   :  { %8947 = vmatpush.bf16.msra.mxu2 %v10733_v9 }
 0x9b8   :  { %v8077_v12 = vmax.f32 %v7951_v0, %v7952_v55  ;;  %v16233_v0 = vld [vmem:[#allocation26_spill] sm:$0xff] }
 0x9b9   :  { %v6617_v55 = vadd.f32 %v16233_v0, %v6448_v47  ;;  %v6284_v47 = vadd.f32 %v16238_v46, %v13632_v18  ;;  %v16241_v0 = vld [vmem:[#allocation76_spill] sm:$0xff] }
 0x9ba   :  { %8141 = vst [vmem:[#allocation3 + $0x10] sm:$0xff] %v8077_v12  ;;  %v16234_v12 = vld [vmem:[#allocation14_spill] sm:$0xff] }
 0x9bb   :  { %v7794_v63 = vpop.f32.mrf.mxu3  ;;  %v7955_v8 = vmax.f32 %v16234_v12, 0.0 }
 0x9bc   :  { %v7795_v20 = vadd.f32 %v7794_v63, %v7626_v33  ;;  %v7628_v30 = vpop.f32.mrf.mxu1  ;;  %v6786_v33 = vadd.f32 %v16235_v14, %v6617_v55  ;;  %v16242_v55 = vld [vmem:[#allocation33_spill] sm:$0xff] }
 0x9bd   :  { %v7629_v17 = vadd.f32 %v7628_v30, %v16232_v37  ;;  %v16237_v30 = vld [vmem:[#allocation28_spill] sm:$0xff]  ;;  %v16239_v37 = vld [vmem:[#allocation34_spill] sm:$0xff] }
 0x9be   :  { %v7954_v59 = vmax.f32 %v7795_v20, 0.0  ;;  %v16236_v20 = vld [vmem:[#allocation23_spill] sm:$0xff] }
 0x9bf   :  { %7667 = vmatmul.bf16.gmra.mxu1 %v16229_v36  ;;  %v6955_v29 = vadd.f32 %v16236_v20, %v6786_v33  ;;  %v16244_v33 = vld [vmem:[#allocation21_spill] sm:$0xff]  ;;  %v16245_v20 = vld [vmem:[#allocation38_spill] sm:$0xff] }
 0x9c0   :  { %v8078_v23 = vmax.f32 %v7953_v10, %v7954_v59  ;;  %7836 = vmatmul.bf16.gmra.mxu3 %v16231_v5 }
 0x9c2   :  { %8142 = vst [vmem:[#allocation3 + $0x18] sm:$0xff] %v8078_v23  ;;  %v7957_v23 = vmax.f32 %v6955_v29, 0.0 }
 0x9c3   :  { %v7797_v32 = vpop.f32.mrf.mxu3 }
 0x9c4   :  { %v7798_v57 = vadd.f32 %v7797_v32, %v7629_v17  ;;  %v7630_v39 = vpop.f32.mrf.mxu1  ;;  %v16240_v17 = vld [vmem:[#allocation80_spill] sm:$0xff] }
 0x9c5   :  { %v7631_v26 = vadd.f32 %v7630_v39, %v16237_v30  ;;  %v6453_v9 = vadd.f32 %v16240_v17, %v6284_v47  ;;  %v16243_v39 = vld [vmem:[#allocation37_spill] sm:$0xff] }
 0x9c6   :  { %v7956_v48 = vmax.f32 %v7798_v57, 0.0  ;;  %v16248_v17 = vld [vmem:[#allocation41_spill] sm:$0xff] }
 0x9c8   :  { %v8079_v63 = vmax.f32 %v7955_v8, %v7956_v48  ;;  %v6622_v8 = vadd.f32 %v16243_v39, %v6453_v9 }
 0x9ca   :  { %8143 = vst [vmem:[#allocation3 + $0x20] sm:$0xff] %v8079_v63  ;;  %v7959_v63 = vmax.f32 %v16244_v33, 0.0  ;;  %v6791_v29 = vadd.f32 %v16245_v20, %v6622_v8  ;;  %v16251_v8 = vld [vmem:[#allocation25_spill] sm:$0xff]  ;;  %v10749_v20 = vld [vmem:[%s15481_s5 + $0xb0] sm:$0xff] }
 0x9cb   :  { %v7799_v10 = vpop.f32.mrf.mxu3  ;;  %8985 = vmatpush.bf16.msra.mxu0 %v10749_v20 }
 0x9cc   :  { %v7800_v59 = vadd.f32 %v7799_v10, %v7631_v26  ;;  %v7633_v36 = vpop.f32.mrf.mxu1  ;;  %v16246_v26 = vld [vmem:[#allocation31_spill] sm:$0xff] }
 0x9cd   :  { %v7634_v57 = vadd.f32 %v7633_v36, %v16242_v55  ;;  %v6960_v10 = vadd.f32 %v16246_v26, %v6791_v29 }
 0x9ce   :  { %v7958_v5 = vmax.f32 %v7800_v59, 0.0  ;;  %v16247_v59 = vld [vmem:[#allocation40_spill] sm:$0xff] }
 0x9cf   :  { %7672 = vmatmul.bf16.gmra.mxu1 %v16239_v37  ;;  %v7961_v36 = vmax.f32 %v6960_v10, 0.0  ;;  %v16253_v10 = vld [vmem:[#allocation39_spill] sm:$0xff] }
 0x9d0   :  { %v8080_v32 = vmax.f32 %v7957_v23, %v7958_v5  ;;  %7841 = vmatmul.bf16.gmra.mxu3 %v16241_v0  ;;  %v16250_v0 = vld [vmem:[#allocation30_spill] sm:$0xff] }
 0x9d2   :  { %8144 = vst [vmem:[#allocation3 + $0x28] sm:$0xff] %v8080_v32  ;;  %v16249_v32 = vld [vmem:[#allocation79_spill] sm:$0xff] }
 0x9d3   :  { %v7802_v12 = vpop.f32.mrf.mxu3 }
 0x9d4   :  { %v7803_v48 = vadd.f32 %v7802_v12, %v7634_v57  ;;  %v7635_v14 = vpop.f32.mrf.mxu1 }
 0x9d5   :  { %v7636_v46 = vadd.f32 %v7635_v14, %v16247_v59  ;;  %v7965_v59 = vmax.f32 %v16253_v10, 0.0  ;;  %v16262_v10 = vld [vmem:[#allocation84_spill] sm:$0xff] }
 0x9d6   :  { %v7960_v18 = vmax.f32 %v7803_v48, 0.0  ;;  %v7963_v48 = vmax.f32 %v16251_v8, 0.0 }
 0x9d8   :  { %v8081_v30 = vmax.f32 %v7959_v63, %v7960_v18  ;;  %v16252_v63 = vld [vmem:[#allocation44_spill] sm:$0xff] }
 0x9da   :  { %8145 = vst [vmem:[#allocation3 + $0x30] sm:$0xff] %v8081_v30 }
 0x9db   :  { %v7804_v47 = vpop.f32.mrf.mxu3 }
 0x9dc   :  { %v7805_v23 = vadd.f32 %v7804_v47, %v7636_v46  ;;  %v7638_v5 = vpop.f32.mrf.mxu1  ;;  %v16254_v47 = vld [vmem:[#allocation83_spill] sm:$0xff] }
 0x9dd   :  { %v7639_v55 = vadd.f32 %v7638_v5, %v16250_v0  ;;  %v16255_v5 = vld [vmem:[#allocation82_spill] sm:$0xff]  ;;  %v16257_v0 = vld [vmem:[#allocation81_spill] sm:$0xff] }
 0x9de   :  { %v7962_v37 = vmax.f32 %v7805_v23, 0.0 }
 0x9df   :  { %7677 = vmatmul.bf16.gmra.mxu1 %v16248_v17 }
 0x9e0   :  { %v8082_v9 = vmax.f32 %v7961_v36, %v7962_v37  ;;  %7846 = vmatmul.bf16.gmra.mxu3 %v16249_v32  ;;  %v16256_v36 = vld [vmem:[#allocation43_spill] sm:$0xff] }
 0x9e2   :  { %8146 = vst [vmem:[#allocation3 + $0x38] sm:$0xff] %v8082_v9 }
 0x9e3   :  { %v7807_v57 = vpop.f32.mrf.mxu3 }
 0x9e4   :  { %v7808_v12 = vadd.f32 %v7807_v57, %v7639_v55  ;;  %v7640_v39 = vpop.f32.mrf.mxu1  ;;  %v7967_v55 = vmax.f32 %v16257_v0, 0.0 }
 0x9e5   :  { %v7641_v18 = vadd.f32 %v7640_v39, %v16252_v63  ;;  %v16258_v39 = vld [vmem:[#allocation48_spill] sm:$0xff]  ;;  %v16259_v63 = vld [vmem:[#allocation42_spill] sm:$0xff] }
 0x9e6   :  { %v7964_v33 = vmax.f32 %v7808_v12, 0.0 }
 0x9e8   :  { %v8083_v14 = vmax.f32 %v7963_v48, %v7964_v33 }
 0x9ea   :  { %8147 = vst [vmem:[#allocation3 + $0x40] sm:$0xff] %v8083_v14 }
 0x9eb   :  { %v7809_v29 = vpop.f32.mrf.mxu3 }
 0x9ec   :  { %v7810_v30 = vadd.f32 %v7809_v29, %v7641_v18  ;;  %v7643_v26 = vpop.f32.mrf.mxu1  ;;  %v7969_v18 = vmax.f32 %v16259_v63, 0.0  ;;  %v16260_v29 = vld [vmem:[#allocation47_spill] sm:$0xff] }
 0x9ed   :  { %v7644_v37 = vadd.f32 %v7643_v26, %v16256_v36  ;;  %v16261_v26 = vld [vmem:[#allocation85_spill] sm:$0xff]  ;;  %v16263_v36 = vld [vmem:[#allocation36_spill] sm:$0xff]  ;;  %v16267_v63 = vld [vmem:[#allocation87_spill] sm:$0xff] }
 0x9ee   :  { %v7966_v46 = vmax.f32 %v7810_v30, 0.0 }
 0x9ef   :  { %7682 = vmatmul.bf16.gmra.mxu1 %v16254_v47 }
 0x9f0   :  { %v8084_v23 = vmax.f32 %v7965_v59, %v7966_v46  ;;  %7851 = vmatmul.bf16.gmra.mxu3 %v16255_v5  ;;  %v10732_v46 = vld [vmem:[%s15481_s5 + $0x28] sm:$0xff] }
 0x9f1   :  { %8948 = vmatpush.bf16.msra.mxu2 %v10732_v46 }
 0x9f2   :  { %8148 = vst [vmem:[#allocation3 + $0x48] sm:$0xff] %v8084_v23 }
 0x9f3   :  { %v7812_v17 = vpop.f32.mrf.mxu3 }
 0x9f4   :  { %v7813_v9 = vadd.f32 %v7812_v17, %v7644_v37  ;;  %v7645_v32 = vpop.f32.mrf.mxu1  ;;  %v7971_v37 = vmax.f32 %v16263_v36, 0.0 }
 0x9f5   :  { %v7646_v8 = vadd.f32 %v7645_v32, %v16258_v39  ;;  %v16264_v32 = vld [vmem:[#allocation52_spill] sm:$0xff]  ;;  %v16265_v39 = vld [vmem:[#allocation45_spill] sm:$0xff] }
 0x9f6   :  { %v7968_v57 = vmax.f32 %v7813_v9, 0.0 }
 0x9f8   :  { %v8085_v12 = vmax.f32 %v7967_v55, %v7968_v57 }
 0x9fa   :  { %8149 = vst [vmem:[#allocation3 + $0x50] sm:$0xff] %v8085_v12 }
 0x9fb   :  { %v7814_v48 = vpop.f32.mrf.mxu3 }
 0x9fc   :  { %v7815_v33 = vadd.f32 %v7814_v48, %v7646_v8  ;;  %v7648_v14 = vpop.f32.mrf.mxu1  ;;  %v7973_v8 = vmax.f32 %v16265_v39, 0.0  ;;  %v16274_v39 = vld [vmem:[#allocation88_spill] sm:$0xff] }
 0x9fd   :  { %v7649_v59 = vadd.f32 %v7648_v14, %v16262_v10  ;;  %v16269_v10 = vld [vmem:[#allocation46_spill] sm:$0xff] }
 0x9fe   :  { %v7970_v20 = vmax.f32 %v7815_v33, 0.0  ;;  %v16266_v33 = vld [vmem:[#allocation51_spill] sm:$0xff] }
 0x9ff   :  { %7687 = vmatmul.bf16.gmra.mxu1 %v16260_v29 }
 0xa00   :  { %v8086_v30 = vmax.f32 %v7969_v18, %v7970_v20  ;;  %7856 = vmatmul.bf16.gmra.mxu3 %v16261_v26  ;;  %v16268_v18 = vld [vmem:[#allocation50_spill] sm:$0xff] }
 0xa02   :  { %8150 = vst [vmem:[#allocation3 + $0x58] sm:$0xff] %v8086_v30 }
 0xa03   :  { %v7817_v47 = vpop.f32.mrf.mxu3 }
 0xa04   :  { %v7818_v23 = vadd.f32 %v7817_v47, %v7649_v59  ;;  %v7650_v5 = vpop.f32.mrf.mxu1  ;;  %v7975_v59 = vmax.f32 %v16269_v10, 0.0  ;;  %v10748_v10 = vld [vmem:[%s15481_s5 + $0xa8] sm:$0xff] }
 0xa05   :  { %v7651_v0 = vadd.f32 %v7650_v5, %v16264_v32  ;;  %8986 = vmatpush.bf16.msra.mxu0 %v10748_v10 }
 0xa06   :  { %v7972_v17 = vmax.f32 %v7818_v23, 0.0  ;;  %v16270_v23 = vld [vmem:[#allocation56_spill] sm:$0xff] }
 0xa08   :  { %v8087_v9 = vmax.f32 %v7971_v37, %v7972_v17 }
 0xa0a   :  { %8151 = vst [vmem:[#allocation3 + $0x60] sm:$0xff] %v8087_v9  ;;  %v16271_v9 = vld [vmem:[#allocation49_spill] sm:$0xff] }
 0xa0b   :  { %v7819_v55 = vpop.f32.mrf.mxu3  ;;  %v7977_v32 = vmax.f32 %v16271_v9, 0.0  ;;  %v16279_v9 = vld [vmem:[#allocation91_spill] sm:$0xff] }
 0xa0c   :  { %v7820_v57 = vadd.f32 %v7819_v55, %v7651_v0  ;;  %v7653_v12 = vpop.f32.mrf.mxu1  ;;  %v16272_v55 = vld [vmem:[#allocation55_spill] sm:$0xff] }
 0xa0d   :  { %v7654_v20 = vadd.f32 %v7653_v12, %v16268_v18  ;;  %v16273_v12 = vld [vmem:[#allocation89_spill] sm:$0xff] }
 0xa0e   :  { %v7974_v48 = vmax.f32 %v7820_v57, 0.0 }
 0xa0f   :  { %7692 = vmatmul.bf16.gmra.mxu1 %v16266_v33 }
 0xa10   :  { %v8088_v14 = vmax.f32 %v7973_v8, %v7974_v48  ;;  %7861 = vmatmul.bf16.gmra.mxu3 %v16267_v63  ;;  %v16275_v63 = vld [vmem:[#allocation86_spill] sm:$0xff] }
 0xa11   :  { %v7979_v18 = vmax.f32 %v16275_v63, 0.0 }
 0xa12   :  { %8152 = vst [vmem:[#allocation3 + $0x68] sm:$0xff] %v8088_v14 }
 0xa13   :  { %v7822_v29 = vpop.f32.mrf.mxu3 }
 0xa14   :  { %v7823_v30 = vadd.f32 %v7822_v29, %v7654_v20  ;;  %v7655_v26 = vpop.f32.mrf.mxu1 }
 0xa15   :  { %v7656_v5 = vadd.f32 %v7655_v26, %v16270_v23  ;;  %v16277_v23 = vld [vmem:[#allocation53_spill] sm:$0xff] }
 0xa16   :  { %v7976_v46 = vmax.f32 %v7823_v30, 0.0  ;;  %v16276_v30 = vld [vmem:[#allocation60_spill] sm:$0xff] }
 0xa18   :  { %v8089_v47 = vmax.f32 %v7975_v59, %v7976_v46 }
 0xa1a   :  { %8153 = vst [vmem:[#allocation3 + $0x70] sm:$0xff] %v8089_v47 }
 0xa1b   :  { %v7824_v36 = vpop.f32.mrf.mxu3 }
 0xa1c   :  { %v7825_v37 = vadd.f32 %v7824_v36, %v7656_v5  ;;  %v7658_v17 = vpop.f32.mrf.mxu1  ;;  %v7981_v5 = vmax.f32 %v16277_v23, 0.0  ;;  %v16286_v23 = vld [vmem:[#allocation92_spill] sm:$0xff] }
 0xa1d   :  { %v7659_v8 = vadd.f32 %v7658_v17, %v16274_v39  ;;  %v16281_v39 = vld [vmem:[#allocation54_spill] sm:$0xff] }
 0xa1e   :  { %v7978_v0 = vmax.f32 %v7825_v37, 0.0  ;;  %v16278_v37 = vld [vmem:[#allocation59_spill] sm:$0xff] }
 0xa1f   :  { %7697 = vmatmul.bf16.gmra.mxu1 %v16272_v55 }
 0xa20   :  { %v8090_v57 = vmax.f32 %v7977_v32, %v7978_v0  ;;  %7866 = vmatmul.bf16.gmra.mxu3 %v16273_v12  ;;  %v16280_v32 = vld [vmem:[#allocation58_spill] sm:$0xff] }
 0xa22   :  { %8154 = vst [vmem:[#allocation3 + $0x78] sm:$0xff] %v8090_v57 }
 0xa23   :  { %v7827_v48 = vpop.f32.mrf.mxu3 }
 0xa24   :  { %v7828_v33 = vadd.f32 %v7827_v48, %v7659_v8  ;;  %v7660_v14 = vpop.f32.mrf.mxu1  ;;  %v7983_v8 = vmax.f32 %v16281_v39, 0.0 }
 0xa25   :  { %v7661_v26 = vadd.f32 %v7660_v14, %v16276_v30  ;;  %v16282_v14 = vld [vmem:[#allocation64_spill] sm:$0xff]  ;;  %v16283_v30 = vld [vmem:[#allocation57_spill] sm:$0xff] }
 0xa26   :  { %v7980_v20 = vmax.f32 %v7828_v33, 0.0 }
 0xa28   :  { %v8091_v29 = vmax.f32 %v7979_v18, %v7980_v20 }
 0xa2a   :  { %8155 = vst [vmem:[#allocation3 + $0x80] sm:$0xff] %v8091_v29 }
 0xa2b   :  { %v7829_v59 = vpop.f32.mrf.mxu3 }
 0xa2c   :  { %v7830_v46 = vadd.f32 %v7829_v59, %v7661_v26  ;;  %v7663_v47 = vpop.f32.mrf.mxu1  ;;  %v7985_v26 = vmax.f32 %v16283_v30, 0.0  ;;  %v16284_v59 = vld [vmem:[#allocation63_spill] sm:$0xff] }
 0xa2d   :  { %v7664_v0 = vadd.f32 %v7663_v47, %v16280_v32  ;;  %v16285_v47 = vld [vmem:[#allocation93_spill] sm:$0xff]  ;;  %v16287_v32 = vld [vmem:[#allocation90_spill] sm:$0xff]  ;;  %v16291_v30 = vld [vmem:[#allocation95_spill] sm:$0xff] }
 0xa2e   :  { %v7982_v36 = vmax.f32 %v7830_v46, 0.0 }
 0xa2f   :  { %7702 = vmatmul.bf16.gmra.mxu1 %v16278_v37 }
 0xa30   :  { %v8092_v17 = vmax.f32 %v7981_v5, %v7982_v36  ;;  %7871 = vmatmul.bf16.gmra.mxu3 %v16279_v9  ;;  %v10731_v36 = vld [vmem:[%s15481_s5 + $0x20] sm:$0xff] }
 0xa31   :  { %8949 = vmatpush.bf16.msra.mxu2 %v10731_v36 }
 0xa32   :  { %8156 = vst [vmem:[#allocation3 + $0x88] sm:$0xff] %v8092_v17 }
 0xa33   :  { %v7832_v55 = vpop.f32.mrf.mxu3 }
 0xa34   :  { %v7833_v57 = vadd.f32 %v7832_v55, %v7664_v0  ;;  %v7665_v12 = vpop.f32.mrf.mxu1  ;;  %v7987_v0 = vmax.f32 %v16287_v32, 0.0 }
 0xa35   :  { %v7666_v63 = vadd.f32 %v7665_v12, %v16282_v14  ;;  %v16288_v12 = vld [vmem:[#allocation68_spill] sm:$0xff]  ;;  %v16289_v14 = vld [vmem:[#allocation61_spill] sm:$0xff] }
 0xa36   :  { %v7984_v48 = vmax.f32 %v7833_v57, 0.0 }
 0xa38   :  { %v8093_v33 = vmax.f32 %v7983_v8, %v7984_v48 }
 0xa3a   :  { %8157 = vst [vmem:[#allocation3 + $0x90] sm:$0xff] %v8093_v33 }
 0xa3b   :  { %v7834_v18 = vpop.f32.mrf.mxu3 }
 0xa3c   :  { %v7835_v20 = vadd.f32 %v7834_v18, %v7666_v63  ;;  %v7668_v29 = vpop.f32.mrf.mxu1  ;;  %v7989_v63 = vmax.f32 %v16289_v14, 0.0  ;;  %v16298_v14 = vld [vmem:[#allocation96_spill] sm:$0xff] }
 0xa3d   :  { %v7669_v5 = vadd.f32 %v7668_v29, %v16286_v23  ;;  %v16293_v23 = vld [vmem:[#allocation62_spill] sm:$0xff] }
 0xa3e   :  { %v7986_v10 = vmax.f32 %v7835_v20, 0.0  ;;  %v16290_v20 = vld [vmem:[#allocation67_spill] sm:$0xff] }
 0xa3f   :  { %7707 = vmatmul.bf16.gmra.mxu1 %v16284_v59 }
 0xa40   :  { %v8094_v46 = vmax.f32 %v7985_v26, %v7986_v10  ;;  %7876 = vmatmul.bf16.gmra.mxu3 %v16285_v47  ;;  %v16292_v26 = vld [vmem:[#allocation66_spill] sm:$0xff] }
 0xa41   :  { %v8211_v50 = vld [vmem:[#allocation3 + $0x80] ss:$16 sm:$0x3] }
 0xa42   :  { %8158 = vst [vmem:[#allocation3 + $0x98] sm:$0xff] %v8094_v46 }
 0xa43   :  { %v7837_v37 = vpop.f32.mrf.mxu3 }
 0xa44   :  { %v7838_v17 = vadd.f32 %v7837_v37, %v7669_v5  ;;  %v7670_v9 = vpop.f32.mrf.mxu1  ;;  %v7991_v5 = vmax.f32 %v16293_v23, 0.0  ;;  %v10747_v23 = vld [vmem:[%s15481_s5 + $0xa0] sm:$0xff] }
 0xa45   :  { %v7671_v39 = vadd.f32 %v7670_v9, %v16288_v12  ;;  %8987 = vmatpush.bf16.msra.mxu0 %v10747_v23 }
 0xa46   :  { %v7988_v55 = vmax.f32 %v7838_v17, 0.0  ;;  %v16294_v17 = vld [vmem:[#allocation72_spill] sm:$0xff] }
 0xa48   :  { %v8095_v57 = vmax.f32 %v7987_v0, %v7988_v55 }
 0xa4a   :  { %8159 = vst [vmem:[#allocation3 + $0xa0] sm:$0xff] %v8095_v57  ;;  %v16295_v57 = vld [vmem:[#allocation65_spill] sm:$0xff] }
 0xa4b   :  { %v7839_v8 = vpop.f32.mrf.mxu3  ;;  %v7993_v12 = vmax.f32 %v16295_v57, 0.0  ;;  %v16303_v57 = vld [vmem:[#allocation77_spill] sm:$0xff] }
 0xa4c   :  { %v7840_v48 = vadd.f32 %v7839_v8, %v7671_v39  ;;  %v7673_v33 = vpop.f32.mrf.mxu1  ;;  %v16296_v8 = vld [vmem:[#allocation71_spill] sm:$0xff] }
 0xa4d   :  { %v7674_v10 = vadd.f32 %v7673_v33, %v16292_v26  ;;  %v16297_v33 = vld [vmem:[#allocation97_spill] sm:$0xff] }
 0xa4e   :  { %v7990_v18 = vmax.f32 %v7840_v48, 0.0 }
 0xa4f   :  { %7712 = vmatmul.bf16.gmra.mxu1 %v16290_v20 }
 0xa50   :  { %v8096_v29 = vmax.f32 %v7989_v63, %v7990_v18  ;;  %7881 = vmatmul.bf16.gmra.mxu3 %v16291_v30  ;;  %v16299_v30 = vld [vmem:[#allocation94_spill] sm:$0xff] }
 0xa51   :  { %v7995_v26 = vmax.f32 %v16299_v30, 0.0 }
 0xa52   :  { %8160 = vst [vmem:[#allocation3 + $0xa8] sm:$0xff] %v8096_v29 }
 0xa53   :  { %v7842_v59 = vpop.f32.mrf.mxu3 }
 0xa54   :  { %v7843_v46 = vadd.f32 %v7842_v59, %v7674_v10  ;;  %v7675_v47 = vpop.f32.mrf.mxu1 }
 0xa55   :  { %v7676_v9 = vadd.f32 %v7675_v47, %v16294_v17  ;;  %v16301_v17 = vld [vmem:[#allocation69_spill] sm:$0xff] }
 0xa56   :  { %v7992_v36 = vmax.f32 %v7843_v46, 0.0  ;;  %v16300_v46 = vld [vmem:[#allocation103_spill] sm:$0xff] }
 0xa58   :  { %v8097_v37 = vmax.f32 %v7991_v5, %v7992_v36 }
 0xa5a   :  { %8161 = vst [vmem:[#allocation3 + $0xb0] sm:$0xff] %v8097_v37 }
 0xa5b   :  { %v7844_v32 = vpop.f32.mrf.mxu3 }
 0xa5c   :  { %v7845_v0 = vadd.f32 %v7844_v32, %v7676_v9  ;;  %v7678_v55 = vpop.f32.mrf.mxu1  ;;  %v7997_v9 = vmax.f32 %v16301_v17, 0.0  ;;  %v16310_v17 = vld [vmem:[#allocation105_spill] sm:$0xff] }
 0xa5d   :  { %v7679_v63 = vadd.f32 %v7678_v55, %v16298_v14  ;;  %v16305_v14 = vld [vmem:[#allocation70_spill] sm:$0xff] }
 0xa5e   :  { %v7994_v39 = vmax.f32 %v7845_v0, 0.0  ;;  %v16302_v0 = vld [vmem:[#allocation99_spill] sm:$0xff] }
 0xa5f   :  { %7717 = vmatmul.bf16.gmra.mxu1 %v16296_v8 }
 0xa60   :  { %v8098_v48 = vmax.f32 %v7993_v12, %v7994_v39  ;;  %7886 = vmatmul.bf16.gmra.mxu3 %v16297_v33  ;;  %v16304_v12 = vld [vmem:[#allocation98_spill] sm:$0xff] }
 0xa61   :  { %v8212_v44 = vld [vmem:[#allocation3 + $0x80] ss:$16 sm:$0xc] }
 0xa62   :  { %8162 = vst [vmem:[#allocation3 + $0xb8] sm:$0xff] %v8098_v48 }
 0xa63   :  { %v7847_v18 = vpop.f32.mrf.mxu3 }
 0xa64   :  { %v7848_v20 = vadd.f32 %v7847_v18, %v7679_v63  ;;  %v7680_v29 = vpop.f32.mrf.mxu1  ;;  %v7999_v63 = vmax.f32 %v16305_v14, 0.0 }
 0xa65   :  { %v7681_v47 = vadd.f32 %v7680_v29, %v16300_v46  ;;  %v16306_v29 = vld [vmem:[#allocation109_spill] sm:$0xff] }
 0xa66   :  { %v7996_v10 = vmax.f32 %v7848_v20, 0.0  ;;  %v16307_v46 = vld [vmem:[#allocation73_spill] sm:$0xff] }
 0xa68   :  { %v8099_v59 = vmax.f32 %v7995_v26, %v7996_v10 }
 0xa6a   :  { %8163 = vst [vmem:[#allocation3 + $0xc0] sm:$0xff] %v8099_v59 }
 0xa6b   :  { %v7849_v5 = vpop.f32.mrf.mxu3 }
 0xa6c   :  { %v7850_v36 = vadd.f32 %v7849_v5, %v7681_v47  ;;  %v7683_v37 = vpop.f32.mrf.mxu1  ;;  %v8001_v47 = vmax.f32 %v16307_v46, 0.0  ;;  %v16308_v5 = vld [vmem:[#allocation107_spill] sm:$0xff]  ;;  %v10727_v46 = vld [vmem:[%s15481_s5] sm:$0xff] }
 0xa6d   :  { %v7684_v39 = vadd.f32 %v7683_v37, %v16304_v12  ;;  %v16309_v37 = vld [vmem:[#allocation108_spill] sm:$0xff] }
 0xa6e   :  { %v7998_v32 = vmax.f32 %v7850_v36, 0.0 }
 0xa6f   :  { %7722 = vmatmul.bf16.gmra.mxu1 %v16302_v0  ;;  %v10746_v0 = vld [vmem:[%s15481_s5 + $0x98] sm:$0xff] }
 0xa70   :  { %v8100_v55 = vmax.f32 %v7997_v9, %v7998_v32  ;;  %7891 = vmatmul.bf16.gmra.mxu3 %v16303_v57  ;;  %v10730_v32 = vld [vmem:[%s15481_s5 + $0x18] sm:$0xff]  ;;  %8988 = vmatpush.bf16.msra.mxu0 %v10746_v0 }
 0xa71   :  { %8950 = vmatpush.bf16.msra.mxu2 %v10730_v32  ;;  %v16316_v32 = vld [vmem:[#allocation111_spill] sm:$0xff] }
 0xa72   :  { %8164 = vst [vmem:[#allocation3 + $0xc8] sm:$0xff] %v8100_v55 }
 0xa73   :  { %v7852_v8 = vpop.f32.mrf.mxu3 }
 0xa74   :  { %v7853_v48 = vadd.f32 %v7852_v8, %v7684_v39  ;;  %v7685_v33 = vpop.f32.mrf.mxu1  ;;  %v10729_v39 = vld [vmem:[%s15481_s5 + $0x10] sm:$0xff] }
 0xa75   :  { %v7686_v30 = vadd.f32 %v7685_v33, %v16306_v29  ;;  %v10745_v8 = vld [vmem:[%s15481_s5 + $0x90] sm:$0xff]  ;;  %8951 = vmatpush.bf16.msra.mxu2 %v10729_v39  ;;  %v10728_v29 = vld [vmem:[%s15481_s5 + $0x8] sm:$0xff] }
 0xa76   :  { %v8000_v18 = vmax.f32 %v7853_v48, 0.0  ;;  %v16311_v48 = vld [vmem:[#allocation75_spill] sm:$0xff]  ;;  %8989 = vmatpush.bf16.msra.mxu0 %v10745_v8  ;;  %v8203_v8 = vld [vmem:[#allocation3] ss:$16 sm:$0x3] }
 0xa77   :  { %v8003_v33 = vmax.f32 %v16311_v48, 0.0  ;;  %v8235_v48 = vld [vmem:[#allocation3 + $0x1] ss:$16 sm:$0x3] }
 0xa78   :  { %v8101_v20 = vmax.f32 %v7999_v63, %v8000_v18  ;;  %v16312_v18 = vld [vmem:[#allocation115_spill] sm:$0xff] }
 0xa79   :  { %8952 = vmatpush.bf16.msra.mxu2 %v10728_v29 }
 0xa7a   :  { %8165 = vst [vmem:[#allocation3 + $0xd0] sm:$0xff] %v8101_v20 }
 0xa7b   :  { %v7854_v26 = vpop.f32.mrf.mxu3 }
 0xa7c   :  { %v7855_v10 = vadd.f32 %v7854_v26, %v7686_v30  ;;  %v7688_v59 = vpop.f32.mrf.mxu1  ;;  %v10744_v30 = vld [vmem:[%s15481_s5 + $0x88] sm:$0xff] }
 0xa7d   :  { %v7689_v9 = vadd.f32 %v7688_v59, %v16310_v17  ;;  %8990 = vmatpush.bf16.msra.mxu0 %v10744_v30  ;;  %8953 = vmatpush.bf16.msra.mxu2 %v10727_v46  ;;  %v8379_v46 = vld [vmem:[#allocation3 + $0x5] ss:$16 sm:$0x3] }
 0xa7e   :  { %v8002_v23 = vmax.f32 %v7855_v10, 0.0 }
 0xa7f   :  { %7727 = vmatmul.bf16.gmra.mxu1 %v16308_v5 }
 0xa80   :  { %v8102_v36 = vmax.f32 %v8001_v47, %v8002_v23  ;;  %7896 = vmatmul.bf16.gmra.mxu3 %v16309_v37  ;;  %v10743_v47 = vld [vmem:[%s15481_s5 + $0x80] sm:$0xff]  ;;  %v16313_v23 = vld [vmem:[#allocation104_spill] sm:$0xff]  ;;  %v16314_v37 = vld [vmem:[#allocation113_spill] sm:$0xff] }
 0xa81   :  { %v8005_v5 = vmax.f32 %v16313_v23, 0.0  ;;  %8991 = vmatpush.bf16.msra.mxu0 %v10743_v47 }
 0xa82   :  { %8166 = vst [vmem:[#allocation3 + $0xd8] sm:$0xff] %v8102_v36 }
 0xa83   :  { %v7857_v55 = vpop.f32.mrf.mxu3 }
 0xa84   :  { %v7858_v57 = vadd.f32 %v7857_v55, %v7689_v9  ;;  %v7690_v12 = vpop.f32.mrf.mxu1  ;;  %v16315_v9 = vld [vmem:[#allocation114_spill] sm:$0xff] }
 0xa85   :  { %v7691_v20 = vadd.f32 %v7690_v12, %v16312_v18  ;;  %v8380_v18 = vld [vmem:[#allocation3 + $0x5] ss:$16 sm:$0xc] }
 0xa86   :  { %v8004_v14 = vmax.f32 %v7858_v57, 0.0  ;;  %v8204_v57 = vld [vmem:[#allocation3] ss:$16 sm:$0xc]  ;;  %v8381_v40 = vor.u32 %v8380_v18, %v8379_v46 }
 0xa87   :  { %v8205_v47 = vor.u32 %v8204_v57, %v8203_v8  ;;  %v8243_v8 = vld [vmem:[#allocation3 + $0x81] ss:$16 sm:$0x3] }
 0xa88   :  { %v8103_v63 = vmax.f32 %v8003_v33, %v8004_v14  ;;  %v8236_v33 = vld [vmem:[#allocation3 + $0x1] ss:$16 sm:$0xc]  ;;  %v8348_v14 = vld [vmem:[#allocation3 + $0x4] ss:$16 sm:$0xc] }
 0xa89   :  { %v8237_v23 = vor.u32 %v8236_v33, %v8235_v48  ;;  %v8244_v48 = vld [vmem:[#allocation3 + $0x81] ss:$16 sm:$0xc] }
 0xa8a   :  { %8167 = vst [vmem:[#allocation3 + $0xe0] sm:$0xff] %v8103_v63  ;;  %v8206_v63 = vld [vmem:[#allocation3] ss:$16 sm:$0x30] }
 0xa8b   :  { %v7859_v26 = vpop.f32.mrf.mxu3  ;;  %v8246_v18 = vld [vmem:[#allocation3 + $0x81] ss:$16 sm:$0x30] }
 0xa8c   :  { %v7860_v10 = vadd.f32 %v7859_v26, %v7691_v20  ;;  %v7693_v59 = vpop.f32.mrf.mxu1  ;;  %v16317_v20 = vld [vmem:[#allocation106_spill] sm:$0xff] }
 0xa8d   :  { %v7694_v0 = vadd.f32 %v7693_v59, %v16316_v32  ;;  %v8007_v29 = vmax.f32 %v16317_v20, 0.0  ;;  %v8238_v26 = vld [vmem:[#allocation3 + $0x1] ss:$16 sm:$0x30] }
 0xa8e   :  { %v8006_v36 = vmax.f32 %v7860_v10, 0.0  ;;  %v8347_v10 = vld [vmem:[#allocation3 + $0x4] ss:$16 sm:$0x3]  ;;  %v8239_v32 = vor.u32 %v8238_v26, %v8237_v23 }
 0xa8f   :  { %7732 = vmatmul.bf16.gmra.mxu1 %v16314_v37  ;;  %v8382_v59 = vld [vmem:[#allocation3 + $0x5] ss:$16 sm:$0x30]  ;;  %v8208_v37 = vld [vmem:[#allocation3] ss:$16 sm:$0xc0] }
 0xa90   :  { %v8104_v17 = vmax.f32 %v8005_v5, %v8006_v36  ;;  %7901 = vmatmul.bf16.gmra.mxu3 %v16315_v9  ;;  %v8350_v5 = vld [vmem:[#allocation3 + $0x4] ss:$16 sm:$0x30]  ;;  %v8207_v9 = vor.u32 %v8206_v63, %v8205_v47  ;;  %v8384_v20 = vld [vmem:[#allocation3 + $0x5] ss:$16 sm:$0xc0] }
 0xa91   :  { %v8355_v63 = vld [vmem:[#allocation3 + $0x84] ss:$16 sm:$0x3] }
 0xa92   :  { %8168 = vst [vmem:[#allocation3 + $0xe8] sm:$0xff] %v8104_v17  ;;  %v8240_v17 = vld [vmem:[#allocation3 + $0x1] ss:$16 sm:$0xc0]  ;;  %v8209_v4 = vor.u32 %v8208_v37, %v8207_v9  ;;  %v8245_v37 = vor.u32 %v8244_v48, %v8243_v8 }
 0xa93   :  { %v7862_v55 = vpop.f32.mrf.mxu3  ;;  %v8241_v57 = vor.u32 %v8240_v17, %v8239_v32  ;;  %v8356_v26 = vld [vmem:[#allocation3 + $0x84] ss:$16 sm:$0xc]  ;;  %v16320_v17 = vld [vmem:[#allocation119_spill] sm:$0xff] }
 0xa94   :  { %v7863_v12 = vadd.f32 %v7862_v55, %v7694_v0  ;;  %v7695_v39 = vpop.f32.mrf.mxu1  ;;  %v8349_v0 = vor.u32 %v8348_v14, %v8347_v10  ;;  %v8352_v55 = vld [vmem:[#allocation3 + $0x4] ss:$16 sm:$0xc0]  ;;  %v8388_v14 = vld [vmem:[#allocation3 + $0x85] ss:$16 sm:$0xc]  ;;  %v8247_v19 = vor.u32 %v8246_v18, %v8245_v37 }
 0xa95   :  { %v7696_v49 = vadd.f32 %v7695_v39, %v16318_v41  ;;  %v8214_v10 = vld [vmem:[#allocation3 + $0x80] ss:$16 sm:$0x30]  ;;  %v8358_v9 = vld [vmem:[#allocation3 + $0x84] ss:$16 sm:$0x30]  ;;  %v8266_v32 = vmax.f32 %v8209_v4, %v8241_v57 }
 0xa96   :  { %v8008_v30 = vmax.f32 %v7863_v12, 0.0  ;;  %v8351_v33 = vor.u32 %v8350_v5, %v8349_v0  ;;  %v16319_v41 = vld [vmem:[#allocation110_spill] sm:$0xff]  ;;  %v8357_v5 = vor.u32 %v8356_v26, %v8355_v63  ;;  %v16321_v0 = vld [vmem:[#allocation120_spill] sm:$0xff] }
 0xa97   :  { %v8009_v39 = vmax.f32 %v16319_v41, 0.0  ;;  %v15184_v41 = vpop.f32.mrf.mxu0 }
 0xa98   :  { %v8105_v36 = vmax.f32 %v8007_v29, %v8008_v30  ;;  %v8383_v29 = vor.u32 %v8382_v59, %v8381_v40  ;;  %v8353_v46 = vor.u32 %v8352_v55, %v8351_v33  ;;  %v8387_v40 = vld [vmem:[#allocation3 + $0x85] ss:$16 sm:$0x3]  ;;  %v8359_v33 = vor.u32 %v8358_v9, %v8357_v5 }
 0xa99   :  { %v8389_v56 = vor.u32 %v8388_v14, %v8387_v40  ;;  %v16323_v5 = vld [vmem:[#allocation126_spill] sm:$0xff] }
 0xa9a   :  { %8169 = vst [vmem:[#allocation3 + $0xf0] sm:$0xff] %v8105_v36  ;;  %v8385_v47 = vor.u32 %v8384_v20, %v8383_v29  ;;  %v8213_v36 = vor.u32 %v8212_v44, %v8211_v50 }
 0xa9b   :  { %v7864_v12 = vpop.f32.mrf.mxu3 }
 0xa9c   :  { %v7865_v30 = vadd.f32 %v7864_v12, %v7696_v49  ;;  %v7698_v34 = vpop.f32.mrf.mxu1  ;;  %v8390_v49 = vld [vmem:[#allocation3 + $0x85] ss:$16 sm:$0x30]  ;;  %v8215_v12 = vor.u32 %v8214_v10, %v8213_v36  ;;  %v8410_v29 = vmax.f32 %v8353_v46, %v8385_v47 }
 0xa9d   :  { %v7699_v50 = vadd.f32 %v7698_v34, %v14784_v61  ;;  %v8391_v8 = vor.u32 %v8390_v49, %v8389_v56  ;;  %v16322_v46 = vld [vmem:[#allocation112_spill] sm:$0xff] }
 0xa9e   :  { %v8010_v23 = vmax.f32 %v7865_v30, 0.0  ;;  %v15181_v30 = vpop.f32.mrf.mxu2  ;;  %v8011_v47 = vmax.f32 %v16322_v46, 0.0  ;;  %v8414_v61 = vpack.c.bf16 %v8410_v29, %v8410_v29 }
 0xa9f   :  { %7737 = vmatmul.bf16.gmra.mxu1 %v16320_v17  ;;  %v15191_v29 = vpop.f32.mrf.mxu0 }
 0xaa0   :  { %v8106_v59 = vmax.f32 %v8009_v39, %v8010_v23  ;;  %7906 = vmatmul.bf16.gmra.mxu3 %v16321_v0  ;;  %v8270_v39 = vpack.c.bf16 %v8266_v32, %v8266_v32 }
 0xaa1   :  { %v8216_v55 = vld [vmem:[#allocation3 + $0x80] ss:$16 sm:$0xc0]  ;;  %v8248_v20 = vld [vmem:[#allocation3 + $0x81] ss:$16 sm:$0xc0] }
 0xaa2   :  { %8170 = vst [vmem:[#allocation3 + $0xf8] sm:$0xff] %v8106_v59  ;;  %v8217_v44 = vor.u32 %v8216_v55, %v8215_v12  ;;  %v8249_v4 = vor.u32 %v8248_v20, %v8247_v19  ;;  %v8360_v57 = vld [vmem:[#allocation3 + $0x84] ss:$16 sm:$0xc0]  ;;  %v8566_v19 = vunpack.c.l.b16 %v8270_v39  ;;  %v8590_v59 = vunpack.c.l.b16 %v8414_v61  ;;  %v16328_v39 = vld [vmem:[#allocation117_spill] sm:$0xff] }
 0xaa3   :  { %v7867_v48 = vpop.f32.mrf.mxu3  ;;  %v8361_v63 = vor.u32 %v8360_v57, %v8359_v33  ;;  %v8392_v26 = vld [vmem:[#allocation3 + $0x85] ss:$16 sm:$0xc0]  ;;  %v16325_v57 = vld [vmem:[#allocation125_spill] sm:$0xff] }
 0xaa4   :  { %v7868_v10 = vadd.f32 %v7867_v48, %v7699_v50  ;;  %v7700_v14 = vpop.f32.mrf.mxu1  ;;  %v8267_v18 = vmax.f32 %v8217_v44, %v8249_v4  ;;  %v8393_v23 = vor.u32 %v8392_v26, %v8391_v8  ;;  %v16324_v50 = vld [vmem:[#allocation116_spill] sm:$0xff]  ;;  %v16326_v48 = vld [vmem:[#allocation118_spill] sm:$0xff] }
 0xaa5   :  { %v7701_v40 = vadd.f32 %v7700_v14, %v16323_v5  ;;  %v8013_v44 = vmax.f32 %v16324_v50, 0.0  ;;  %v16331_v5 = vld [vmem:[#allocation131_spill] sm:$0xff] }
 0xaa6   :  { %v8012_v36 = vmax.f32 %v7868_v10, 0.0  ;;  %v8271_v37 = vpack.c.bf16 %v8267_v18, %v8267_v18  ;;  %v8411_v9 = vmax.f32 %v8361_v63, %v8393_v23  ;;  %v15188_v55 = vpop.f32.mrf.mxu2  ;;  %v16327_v63 = vld [vmem:[#allocation122_spill] sm:$0xff]  ;;  %v8015_v23 = vmax.f32 %v16328_v39, 0.0  ;;  %v16336_v39 = vld [vmem:[#allocation133_spill] sm:$0xff] }
 0xaa8   :  { %v8107_v34 = vmax.f32 %v8011_v47, %v8012_v36  ;;  %v8567_v17 = vunpack.c.l.b16 %v8271_v37  ;;  %v8415_v56 = vpack.c.bf16 %v8411_v9, %v8411_v9  ;;  %v16329_v36 = vld [vmem:[#allocation132_spill] sm:$0xff] }
 0xaaa   :  { %8171 = vst [vmem:[#allocation3 + $0x100] sm:$0xff] %v8107_v34  ;;  %v8570_v49 = vpack.c.b16 %v8567_v17, %v8566_v19  ;;  %v8591_v0 = vunpack.c.l.b16 %v8415_v56  ;;  %v16330_v19 = vld [vmem:[#allocation127_spill] sm:$0xff] }
 0xaab   :  { %v7869_v12 = vpop.f32.mrf.mxu3  ;;  %v8017_v17 = vmax.f32 %v16330_v19, 0.0 }
 0xaac   :  { %v7870_v32 = vadd.f32 %v7869_v12, %v7701_v40  ;;  %8954 = vmatmul.bf16.vlgmr.msra.gmra.mxu2 %v8570_v49  ;;  %v8594_v20 = vpack.c.b16 %v8591_v0, %v8590_v59  ;;  %v7703_v33 = vpop.f32.mrf.mxu1  ;;  %v16332_v49 = vld [vmem:[#allocation124_spill] sm:$0xff]  ;;  %v15201_v59 = vpop.f32.mrf.mxu0 }
 0xaad   :  { %v7704_v26 = vadd.f32 %v7703_v33, %v16327_v63  ;;  %v16333_v0 = vld [vmem:[#allocation128_spill] sm:$0xff] }
 0xaae   :  { %v8014_v4 = vmax.f32 %v7870_v32, 0.0  ;;  %8992 = vmatmul.bf16.vlgmr.msra.gmra.mxu0 %v8594_v20  ;;  %v15204_v50 = vpop.f32.mrf.mxu2 }
 0xaaf   :  { %7742 = vmatmul.bf16.gmra.mxu1 %v16325_v57 }
 0xab0   :  { %v8108_v8 = vmax.f32 %v8013_v44, %v8014_v4  ;;  %7911 = vmatmul.bf16.gmra.mxu3 %v16326_v48  ;;  %v16334_v44 = vld [vmem:[#allocation123_spill] sm:$0xff]  ;;  %v16335_v48 = vld [vmem:[#allocation138_spill] sm:$0xff] }
 0xab1   :  { %v8019_v4 = vmax.f32 %v16334_v44, 0.0 }
 0xab2   :  { %8172 = vst [vmem:[#allocation3 + $0x108] sm:$0xff] %v8108_v8 }
 0xab3   :  { %v7872_v10 = vpop.f32.mrf.mxu3 }
 0xab4   :  { %v7873_v14 = vadd.f32 %v7872_v10, %v7704_v26  ;;  %v7705_v18 = vpop.f32.mrf.mxu1  ;;  %v15208_v26 = vpop.f32.mrf.mxu0 }
 0xab5   :  { %v7706_v37 = vadd.f32 %v7705_v18, %v16329_v36  ;;  %v16337_v36 = vld [vmem:[#allocation137_spill] sm:$0xff] }
 0xab6   :  { %v8016_v46 = vmax.f32 %v7873_v14, 0.0 }
 0xab8   :  { %v8109_v47 = vmax.f32 %v8015_v23, %v8016_v46  ;;  %v8021_v23 = vmax.f32 %v16336_v39, 0.0 }
 0xaba   :  { %8173 = vst [vmem:[#allocation3 + $0x110] sm:$0xff] %v8109_v47  ;;  %v15211_v47 = vpop.f32.mrf.mxu2 }
 0xabb   :  { %v7874_v9 = vpop.f32.mrf.mxu3 }
 0xabc   :  { %v7875_v61 = vadd.f32 %v7874_v9, %v7706_v37  ;;  %v7708_v34 = vpop.f32.mrf.mxu1  ;;  %v16338_v9 = vld [vmem:[#allocation130_spill] sm:$0xff] }
 0xabd   :  { %v7709_v12 = vadd.f32 %v7708_v34, %v16333_v0  ;;  %v7212_v0 = vadd.f32 %v14864_v58, %v14445_v51 }
 0xabe   :  { %v8018_v56 = vmax.f32 %v7875_v61, 0.0 }
 0xabf   :  { %7747 = vmatmul.bf16.gmra.mxu1 %v16331_v5  ;;  %v16339_v5 = vld [vmem:[#allocation129_spill] sm:$0xff] }
 0xac0   :  { %v8110_v40 = vmax.f32 %v8017_v17, %v8018_v56  ;;  %7916 = vmatmul.bf16.gmra.mxu3 %v16332_v49  ;;  %v15216_v56 = vpop.f32.mrf.mxu0 }
 0xac2   :  { %8174 = vst [vmem:[#allocation3 + $0x118] sm:$0xff] %v8110_v40  ;;  %v8023_v40 = vmax.f32 %v16339_v5, 0.0 }
 0xac3   :  { %v7877_v32 = vpop.f32.mrf.mxu3 }
 0xac4   :  { %v7878_v20 = vadd.f32 %v7877_v32, %v7709_v12  ;;  %v7710_v33 = vpop.f32.mrf.mxu1  ;;  %v15221_v32 = vpop.f32.mrf.mxu2 }
 0xac5   :  { %v7711_v63 = vadd.f32 %v7710_v33, %v16335_v48 }
 0xac6   :  { %v8020_v57 = vmax.f32 %v7878_v20, 0.0 }
 0xac8   :  { %v8111_v8 = vmax.f32 %v8019_v4, %v8020_v57  ;;  %v16340_v57 = vld [vmem:[#allocation139_spill] sm:$0xff] }
 0xaca   :  { %8175 = vst [vmem:[#allocation3 + $0x120] sm:$0xff] %v8111_v8  ;;  %v8025_v8 = vmax.f32 %v16340_v57, 0.0  ;;  %v16346_v57 = vld [vmem:[#allocation149_spill] sm:$0xff] }
 0xacb   :  { %v7879_v10 = vpop.f32.mrf.mxu3 }
 0xacc   :  { %v7880_v14 = vadd.f32 %v7879_v10, %v7711_v63  ;;  %v7713_v18 = vpop.f32.mrf.mxu1  ;;  %v15226_v63 = vpop.f32.mrf.mxu0  ;;  %v16341_v10 = vld [vmem:[#allocation143_spill] sm:$0xff] }
 0xacd   :  { %v7714_v61 = vadd.f32 %v7713_v18, %v14850_v21  ;;  %v7381_v21 = vadd.f32 %v15184_v41, %v7212_v0  ;;  %v7561_v41 = vpop.f32.mrf.mxu2 }
 0xace   :  { %v8022_v46 = vmax.f32 %v7880_v14, 0.0  ;;  %v16342_v14 = vld [vmem:[#allocation144_spill] sm:$0xff] }
 0xacf   :  { %7752 = vmatmul.bf16.gmra.mxu1 %v16337_v36  ;;  %v7550_v58 = vadd.f32 %v15181_v30, %v7381_v21  ;;  %v7214_v18 = vadd.f32 %v16342_v14, %v14445_v51  ;;  %v7217_v30 = vadd.f32 %v14880_v16, %v14445_v51  ;;  %v16345_v21 = vld [vmem:[#allocation136_spill] sm:$0xff]  ;;  %v7219_v16 = vadd.f32 %v14885_v11, %v14445_v51 }
 0xad0   :  { %v8112_v37 = vmax.f32 %v8021_v23, %v8022_v46  ;;  %7921 = vmatmul.bf16.gmra.mxu3 %v16338_v9  ;;  %v16343_v23 = vld [vmem:[#allocation135_spill] sm:$0xff]  ;;  %v7222_v11 = vadd.f32 %v14896_v25, %v14445_v51 }
 0xad1   :  { %v7383_v36 = vadd.f32 %v15191_v29, %v7214_v18  ;;  %v7388_v14 = vadd.f32 %v15208_v26, %v7219_v16 }
 0xad2   :  { %8176 = vst [vmem:[#allocation3 + $0x128] sm:$0xff] %v8112_v37 }
 0xad3   :  { %v7882_v34 = vpop.f32.mrf.mxu3 }
 0xad4   :  { %v7883_v19 = vadd.f32 %v7882_v34, %v7714_v61  ;;  %v7715_v17 = vpop.f32.mrf.mxu1  ;;  %v16344_v61 = vld [vmem:[#allocation134_spill] sm:$0xff] }
 0xad5   :  { %v7716_v20 = vadd.f32 %v7715_v17, %v14859_v2  ;;  %v8027_v34 = vmax.f32 %v16344_v61, 0.0  ;;  %v7552_v17 = vadd.f32 %v15188_v55, %v7383_v36  ;;  %v7564_v29 = vpop.f32.mrf.mxu2 }
 0xad6   :  { %v8024_v49 = vmax.f32 %v7883_v19, 0.0 }
 0xad8   :  { %v8113_v12 = vmax.f32 %v8023_v40, %v8024_v49  ;;  %v7395_v40 = vpop.f32.mrf.mxu0 }
 0xada   :  { %8177 = vst [vmem:[#allocation3 + $0x130] sm:$0xff] %v8113_v12  ;;  %v7386_v12 = vadd.f32 %v15201_v59, %v7217_v30  ;;  %v16349_v30 = vld [vmem:[#allocation141_spill] sm:$0xff] }
 0xadb   :  { %v7884_v33 = vpop.f32.mrf.mxu3 }
 0xadc   :  { %v7885_v44 = vadd.f32 %v7884_v33, %v7716_v20  ;;  %v7718_v4 = vpop.f32.mrf.mxu1  ;;  %v7555_v55 = vadd.f32 %v15204_v50, %v7386_v12  ;;  %v7557_v50 = vadd.f32 %v15211_v47, %v7388_v14  ;;  %v7224_v47 = vadd.f32 %v14901_v60, %v14445_v51 }
 0xadd   :  { %v7719_v2 = vadd.f32 %v7718_v4, %v7550_v58  ;;  %v7566_v36 = vpop.f32.mrf.mxu2 }
 0xade   :  { %v8026_v48 = vmax.f32 %v7885_v44, 0.0  ;;  %v8029_v44 = vmax.f32 %v16345_v21, 0.0 }
 0xadf   :  { %7757 = vmatmul.bf16.gmra.mxu1 %v16341_v10 }
 0xae0   :  { %v8114_v39 = vmax.f32 %v8025_v8, %v8026_v48  ;;  %7926 = vmatmul.bf16.gmra.mxu3 %v16343_v23  ;;  %v16347_v48 = vld [vmem:[#allocation140_spill] sm:$0xff]  ;;  %v7397_v58 = vpop.f32.mrf.mxu0  ;;  %v16348_v23 = vld [vmem:[#allocation145_spill] sm:$0xff] }
 0xae2   :  { %8178 = vst [vmem:[#allocation3 + $0x138] sm:$0xff] %v8114_v39 }
 0xae3   :  { %v7887_v46 = vpop.f32.mrf.mxu3 }
 0xae4   :  { %v7888_v37 = vadd.f32 %v7887_v46, %v7719_v2  ;;  %v7720_v9 = vpop.f32.mrf.mxu1  ;;  %v8031_v2 = vmax.f32 %v16348_v23, 0.0 }
 0xae5   :  { %v7721_v49 = vadd.f32 %v7720_v9, %v7552_v17 }
 0xae6   :  { %v8028_v19 = vmax.f32 %v7888_v37, 0.0 }
 0xae8   :  { %v8115_v5 = vmax.f32 %v8027_v34, %v8028_v19  ;;  %v7391_v34 = vadd.f32 %v15216_v56, %v7222_v11  ;;  %v7400_v26 = vpop.f32.mrf.mxu0 }
 0xaea   :  { %8179 = vst [vmem:[#allocation3 + $0x140] sm:$0xff] %v8115_v5  ;;  %v8033_v5 = vmax.f32 %v16349_v30, 0.0  ;;  %v7560_v12 = vadd.f32 %v15221_v32, %v7391_v34  ;;  %v7227_v32 = vadd.f32 %v14912_v62, %v14445_v51 }
 0xaeb   :  { %v7889_v0 = vpop.f32.mrf.mxu3 }
 0xaec   :  { %v7890_v20 = vadd.f32 %v7889_v0, %v7721_v49  ;;  %v7723_v33 = vpop.f32.mrf.mxu1  ;;  %v16350_v0 = vld [vmem:[#allocation155_spill] sm:$0xff] }
 0xaed   :  { %v7724_v10 = vadd.f32 %v7723_v33, %v7555_v55  ;;  %v7569_v33 = vpop.f32.mrf.mxu2  ;;  %v16352_v55 = vld [vmem:[#allocation142_spill] sm:$0xff] }
 0xaee   :  { %v8030_v4 = vmax.f32 %v7890_v20, 0.0  ;;  %v16351_v20 = vld [vmem:[#allocation150_spill] sm:$0xff]  ;;  %v8035_v16 = vmax.f32 %v16352_v55, 0.0 }
 0xaef   :  { %7762 = vmatmul.bf16.gmra.mxu1 %v16346_v57 }
 0xaf0   :  { %v8116_v8 = vmax.f32 %v8029_v44, %v8030_v4  ;;  %7931 = vmatmul.bf16.gmra.mxu3 %v16347_v48  ;;  %v7393_v44 = vadd.f32 %v15226_v63, %v7224_v47  ;;  %v7402_v48 = vpop.f32.mrf.mxu0  ;;  %v8037_v63 = vmax.f32 %v14899_v3, 0.0  ;;  %v8039_v3 = vmax.f32 %v14904_v38, 0.0 }
 0xaf1   :  { %v7234_v38 = vadd.f32 %v14929_v45, %v14445_v51 }
 0xaf2   :  { %8180 = vst [vmem:[#allocation3 + $0x148] sm:$0xff] %v8116_v8 }
 0xaf3   :  { %v7892_v59 = vpop.f32.mrf.mxu3 }
 0xaf4   :  { %v7893_v18 = vadd.f32 %v7892_v59, %v7724_v10  ;;  %v7725_v39 = vpop.f32.mrf.mxu1  ;;  %v7562_v10 = vadd.f32 %v7561_v41, %v7393_v44  ;;  %v7229_v41 = vadd.f32 %v14917_v52, %v14445_v51 }
 0xaf5   :  { %v7726_v9 = vadd.f32 %v7725_v39, %v7557_v50  ;;  %v7571_v14 = vpop.f32.mrf.mxu2  ;;  %v7396_v39 = vadd.f32 %v7395_v40, %v7227_v32  ;;  %v16353_v50 = vld [vmem:[#allocation157_spill] sm:$0xff] }
 0xaf6   :  { %v8032_v46 = vmax.f32 %v7893_v18, 0.0  ;;  %v7398_v34 = vadd.f32 %v7397_v58, %v7229_v41  ;;  %v8041_v58 = vmax.f32 %v14915_v31, 0.0  ;;  %v7237_v31 = vadd.f32 %v14936_v43, %v14445_v51 }
 0xaf7   :  { %v7565_v11 = vadd.f32 %v7564_v29, %v7396_v39  ;;  %v7232_v29 = vadd.f32 %v14924_v28, %v14445_v51 }
 0xaf8   :  { %v8117_v37 = vmax.f32 %v8031_v2, %v8032_v46  ;;  %v7405_v62 = vpop.f32.mrf.mxu0 }
 0xafa   :  { %8181 = vst [vmem:[#allocation3 + $0x150] sm:$0xff] %v8117_v37 }
 0xafb   :  { %v7894_v61 = vpop.f32.mrf.mxu3 }
 0xafc   :  { %v7895_v19 = vadd.f32 %v7894_v61, %v7726_v9  ;;  %v7728_v17 = vpop.f32.mrf.mxu1 }
 0xafd   :  { %v7729_v21 = vadd.f32 %v7728_v17, %v7560_v12  ;;  %v7574_v17 = vpop.f32.mrf.mxu2  ;;  %v7401_v12 = vadd.f32 %v7400_v26, %v7232_v29  ;;  %v8043_v26 = vmax.f32 %v14920_v35, 0.0  ;;  %v7239_v35 = vadd.f32 %v14941_v24, %v14445_v51 }
 0xafe   :  { %v8034_v49 = vmax.f32 %v7895_v19, 0.0  ;;  %v8049_v29 = vmax.f32 %v14939_v6, 0.0  ;;  %v7247_v6 = vadd.f32 %v14960_v27, %v14445_v51 }
 0xaff   :  { %7767 = vmatmul.bf16.gmra.mxu1 %v16350_v0 }
 0xb00   :  { %v8118_v25 = vmax.f32 %v8033_v5, %v8034_v49  ;;  %7936 = vmatmul.bf16.gmra.mxu3 %v16351_v20  ;;  %v7567_v5 = vadd.f32 %v7566_v36, %v7398_v34  ;;  %v7407_v0 = vpop.f32.mrf.mxu0 }
 0xb02   :  { %8182 = vst [vmem:[#allocation3 + $0x158] sm:$0xff] %v8118_v25 }
 0xb03   :  { %v7897_v56 = vpop.f32.mrf.mxu3 }
 0xb04   :  { %v7898_v4 = vadd.f32 %v7897_v56, %v7729_v21  ;;  %v7730_v57 = vpop.f32.mrf.mxu1  ;;  %v7570_v56 = vadd.f32 %v7569_v33, %v7401_v12 }
 0xb05   :  { %v7731_v59 = vadd.f32 %v7730_v57, %v7562_v10  ;;  %v7576_v21 = vpop.f32.mrf.mxu2 }
 0xb06   :  { %v8036_v8 = vmax.f32 %v7898_v4, 0.0  ;;  %v7403_v4 = vadd.f32 %v7402_v48, %v7234_v38  ;;  %v8045_v48 = vmax.f32 %v14927_v7, 0.0  ;;  %v7242_v7 = vadd.f32 %v14948_v54, %v14445_v51 }
 0xb08   :  { %v8119_v60 = vmax.f32 %v8035_v16, %v8036_v8  ;;  %v7410_v16 = vpop.f32.mrf.mxu0  ;;  %v7572_v10 = vadd.f32 %v7571_v14, %v7403_v4 }
 0xb0a   :  { %8183 = vst [vmem:[#allocation3 + $0x160] sm:$0xff] %v8119_v60 }
 0xb0b   :  { %v7899_v18 = vpop.f32.mrf.mxu3 }
 0xb0c   :  { %v7900_v23 = vadd.f32 %v7899_v18, %v7731_v59  ;;  %v7733_v2 = vpop.f32.mrf.mxu1  ;;  %v7406_v59 = vadd.f32 %v7405_v62, %v7237_v31  ;;  %v8047_v62 = vmax.f32 %v14932_v42, 0.0  ;;  %v7244_v42 = vadd.f32 %v14953_v22, %v14445_v51 }
 0xb0d   :  { %v7734_v9 = vadd.f32 %v7733_v2, %v7565_v11  ;;  %v7579_v33 = vpop.f32.mrf.mxu2  ;;  %v7408_v11 = vadd.f32 %v7407_v0, %v7239_v35 }
 0xb0e   :  { %v8038_v46 = vmax.f32 %v7900_v23, 0.0 }
 0xb0f   :  { %7772 = vmatmul.bf16.gmra.mxu1 %v16353_v50 }
 0xb10   :  { %v8120_v37 = vmax.f32 %v8037_v63, %v8038_v46  ;;  %7941 = vmatmul.bf16.gmra.mxu3 %v14906_v53  ;;  %v7412_v2 = vpop.f32.mrf.mxu0  ;;  %v7575_v63 = vadd.f32 %v7574_v17, %v7406_v59  ;;  %v7411_v17 = vadd.f32 %v7410_v16, %v7242_v7  ;;  %v8053_v16 = vmax.f32 %v14951_v1, 0.0  ;;  %v16354_v59 = vld [vmem:[#allocation151_spill] sm:$0xff]  ;;  %v16355_v1 = vld [vmem:[#allocation148_spill] sm:$0xff] }
 0xb12   :  { %8184 = vst [vmem:[#allocation3 + $0x168] sm:$0xff] %v8120_v37 }
 0xb13   :  { %v7902_v61 = vpop.f32.mrf.mxu3 }
 0xb14   :  { %v7903_v40 = vadd.f32 %v7902_v61, %v7734_v9  ;;  %v7735_v19 = vpop.f32.mrf.mxu1  ;;  %v7577_v61 = vadd.f32 %v7576_v21, %v7408_v11  ;;  %v16356_v11 = vld [vmem:[#allocation146_spill] sm:$0xff] }
 0xb15   :  { %v7736_v52 = vadd.f32 %v7735_v19, %v7567_v5  ;;  %v7581_v43 = vpop.f32.mrf.mxu2 }
 0xb16   :  { %v8040_v30 = vmax.f32 %v7903_v40, 0.0 }
 0xb18   :  { %v8121_v49 = vmax.f32 %v8039_v3, %v8040_v30  ;;  %v7415_v40 = vpop.f32.mrf.mxu0 }
 0xb1a   :  { %8185 = vst [vmem:[#allocation3 + $0x170] sm:$0xff] %v8121_v49 }
 0xb1b   :  { %v7904_v53 = vpop.f32.mrf.mxu3 }
 0xb1c   :  { %v7905_v47 = vadd.f32 %v7904_v53, %v7736_v52  ;;  %v7738_v25 = vpop.f32.mrf.mxu1  ;;  %v7580_v52 = vadd.f32 %v7579_v33, %v7411_v17 }
 0xb1d   :  { %v7739_v44 = vadd.f32 %v7738_v25, %v7570_v56  ;;  %v7584_v5 = vpop.f32.mrf.mxu2 }
 0xb1e   :  { %v8042_v20 = vmax.f32 %v7905_v47, 0.0  ;;  %v7413_v47 = vadd.f32 %v7412_v2, %v7244_v42  ;;  %v7252_v2 = vadd.f32 %v16355_v1, %v14445_v51  ;;  %v16359_v42 = vld [vmem:[#allocation154_spill] sm:$0xff]  ;;  %v16364_v1 = vld [vmem:[#allocation101_spill] sm:$0xff] }
 0xb20   :  { %v8122_v36 = vmax.f32 %v8041_v58, %v8042_v20  ;;  %v7417_v54 = vpop.f32.mrf.mxu0  ;;  %v8051_v20 = vmax.f32 %v14944_v13, 0.0  ;;  %v7582_v38 = vadd.f32 %v7581_v43, %v7413_v47  ;;  %v7249_v13 = vadd.f32 %v14965_v15, %v14445_v51 }
 0xb22   :  { %8186 = vst [vmem:[#allocation3 + $0x178] sm:$0xff] %v8122_v36  ;;  %v7418_v33 = vadd.f32 %v7417_v54, %v7249_v13  ;;  %v16362_v13 = vld [vmem:[#allocation153_spill] sm:$0xff] }
 0xb23   :  { %v7907_v28 = vpop.f32.mrf.mxu3 }
 0xb24   :  { %v7908_v57 = vadd.f32 %v7907_v28, %v7739_v44  ;;  %v7740_v55 = vpop.f32.mrf.mxu1  ;;  %v7416_v28 = vadd.f32 %v7415_v40, %v7247_v6 }
 0xb25   :  { %v7741_v60 = vadd.f32 %v7740_v55, %v7572_v10  ;;  %v7586_v56 = vpop.f32.mrf.mxu2 }
 0xb26   :  { %v8044_v8 = vmax.f32 %v7908_v57, 0.0 }
 0xb28   :  { %v8123_v32 = vmax.f32 %v8043_v26, %v8044_v8  ;;  %v7420_v55 = vpop.f32.mrf.mxu0  ;;  %v7585_v8 = vadd.f32 %v7584_v5, %v7416_v28  ;;  %v16358_v5 = vld [vmem:[#allocation147_spill] sm:$0xff] }
 0xb2a   :  { %8187 = vst [vmem:[#allocation3 + $0x180] sm:$0xff] %v8123_v32 }
 0xb2b   :  { %v7909_v45 = vpop.f32.mrf.mxu3 }
 0xb2c   :  { %v7910_v18 = vadd.f32 %v7909_v45, %v7741_v60  ;;  %v7743_v39 = vpop.f32.mrf.mxu1 }
 0xb2d   :  { %v7744_v46 = vadd.f32 %v7743_v39, %v7575_v63  ;;  %v7589_v31 = vpop.f32.mrf.mxu2 }
 0xb2e   :  { %v8046_v23 = vmax.f32 %v7910_v18, 0.0  ;;  %v8055_v18 = vmax.f32 %v16354_v59, 0.0 }
 0xb30   :  { %v8124_v14 = vmax.f32 %v8045_v48, %v8046_v23  ;;  %v7422_v48 = vpop.f32.mrf.mxu0  ;;  %v7587_v23 = vadd.f32 %v7586_v56, %v7418_v33 }
 0xb32   :  { %8188 = vst [vmem:[#allocation3 + $0x188] sm:$0xff] %v8124_v14 }
 0xb33   :  { %v7912_v50 = vpop.f32.mrf.mxu3 }
 0xb34   :  { %v7913_v41 = vadd.f32 %v7912_v50, %v7744_v46  ;;  %v7745_v37 = vpop.f32.mrf.mxu1  ;;  %v7421_v46 = vadd.f32 %v7420_v55, %v7252_v2  ;;  %v8065_v2 = vmax.f32 %v16364_v1, 0.0  ;;  %v8366_v1 = vld [vmem:[#allocation3 + $0x104] ss:$16 sm:$0x30] }
 0xb35   :  { %v7746_v19 = vadd.f32 %v7745_v37, %v7577_v61  ;;  %v7591_v15 = vpop.f32.mrf.mxu2 }
 0xb36   :  { %v8048_v9 = vmax.f32 %v7913_v41, 0.0  ;;  %v8057_v41 = vmax.f32 %v16356_v11, 0.0  ;;  %v10742_v11 = vld [vmem:[%s15481_s5 + $0x78] sm:$0xff] }
 0xb37   :  { %8965 = vmatpush.bf16.msrb.mxu2 %v10742_v11 }
 0xb38   :  { %v8125_v34 = vmax.f32 %v8047_v62, %v8048_v9  ;;  %v7590_v62 = vadd.f32 %v7589_v31, %v7421_v46  ;;  %v16357_v9 = vld [vmem:[#allocation152_spill] sm:$0xff] }
 0xb39   :  { %v7254_v61 = vadd.f32 %v16357_v9, %v14445_v51 }
 0xb3a   :  { %8189 = vst [vmem:[#allocation3 + $0x190] sm:$0xff] %v8125_v34  ;;  %v7425_v34 = vpop.f32.mrf.mxu0 }
 0xb3b   :  { %v7914_v24 = vpop.f32.mrf.mxu3 }
 0xb3c   :  { %v7915_v3 = vadd.f32 %v7914_v24, %v7746_v19  ;;  %v7748_v30 = vpop.f32.mrf.mxu1  ;;  %v7423_v24 = vadd.f32 %v7422_v48, %v7254_v61 }
 0xb3d   :  { %v7749_v53 = vadd.f32 %v7748_v30, %v7580_v52  ;;  %v7594_v30 = vpop.f32.mrf.mxu2 }
 0xb3e   :  { %v8050_v49 = vmax.f32 %v7915_v3, 0.0  ;;  %v7592_v52 = vadd.f32 %v7591_v15, %v7423_v24 }
 0xb40   :  { %v8126_v0 = vmax.f32 %v8049_v29, %v8050_v49  ;;  %v8059_v29 = vmax.f32 %v16358_v5, 0.0 }
 0xb42   :  { %8190 = vst [vmem:[#allocation3 + $0x198] sm:$0xff] %v8126_v0  ;;  %v7257_v0 = vadd.f32 %v16359_v42, %v14445_v51 }
 0xb43   :  { %v7917_v12 = vpop.f32.mrf.mxu3 }
 0xb44   :  { %v7918_v25 = vadd.f32 %v7917_v12, %v7749_v53  ;;  %v7750_v58 = vpop.f32.mrf.mxu1  ;;  %v7427_v12 = vpop.f32.mrf.mxu0 }
 0xb45   :  { %v7751_v44 = vadd.f32 %v7750_v58, %v7582_v38  ;;  %v7596_v6 = vpop.f32.mrf.mxu2 }
 0xb46   :  { %v8052_v21 = vmax.f32 %v7918_v25, 0.0  ;;  %v7426_v25 = vadd.f32 %v7425_v34, %v7257_v0  ;;  %v10741_v34 = vld [vmem:[%s15481_s5 + $0x70] sm:$0xff] }
 0xb47   :  { %8966 = vmatpush.bf16.msrb.mxu2 %v10741_v34 }
 0xb48   :  { %v8127_v36 = vmax.f32 %v8051_v20, %v8052_v21  ;;  %v16360_v21 = vld [vmem:[#allocation156_spill] sm:$0xff] }
 0xb49   :  { %v8061_v56 = vmax.f32 %v16360_v21, 0.0  ;;  %v16368_v21 = vld [vmem:[#allocation6_spill] sm:$0xff] }
 0xb4a   :  { %8191 = vst [vmem:[#allocation3 + $0x1a0] sm:$0xff] %v8127_v36  ;;  %v7595_v36 = vadd.f32 %v7594_v30, %v7426_v25  ;;  %v16367_v30 = vld [vmem:[#allocation11_spill] sm:$0xff]  ;;  %v10763_v25 = vld [vmem:[%s15481_s5 + $0x120] sm:$0xff] }
 0xb4b   :  { %v7919_v22 = vpop.f32.mrf.mxu3  ;;  %v7267_v5 = vadd.f32 %v16367_v30, %v14445_v51 }
 0xb4c   :  { %v7920_v4 = vadd.f32 %v7919_v22, %v7751_v44  ;;  %v7753_v57 = vpop.f32.mrf.mxu1  ;;  %v16361_v44 = vld [vmem:[#allocation102_spill] sm:$0xff] }
 0xb4d   :  { %v7754_v32 = vadd.f32 %v7753_v57, %v7585_v8  ;;  %v7259_v22 = vadd.f32 %v16361_v44, %v14445_v51  ;;  %v7430_v8 = vpop.f32.mrf.mxu0 }
 0xb4e   :  { %v8054_v26 = vmax.f32 %v7920_v4, 0.0 }
 0xb4f   :  { %v7428_v55 = vadd.f32 %v7427_v12, %v7259_v22 }
 0xb50   :  { %v8128_v10 = vmax.f32 %v8053_v16, %v8054_v26 }
 0xb52   :  { %8192 = vst [vmem:[#allocation3 + $0x1a8] sm:$0xff] %v8128_v10  ;;  %v8063_v10 = vmax.f32 %v16362_v13, 0.0 }
 0xb53   :  { %v7922_v27 = vpop.f32.mrf.mxu3 }
 0xb54   :  { %v7923_v60 = vadd.f32 %v7922_v27, %v7754_v32  ;;  %v7755_v45 = vpop.f32.mrf.mxu1  ;;  %v7597_v32 = vadd.f32 %v7596_v6, %v7428_v55  ;;  %v16363_v27 = vld [vmem:[#allocation4_spill] sm:$0xff] }
 0xb55   :  { %v7756_v35 = vadd.f32 %v7755_v45, %v7587_v23  ;;  %v7262_v33 = vadd.f32 %v16363_v27, %v14445_v51  ;;  %v7599_v45 = vpop.f32.mrf.mxu2  ;;  %v10737_v27 = vld [vmem:[%s15481_s5 + $0x50] sm:$0xff] }
 0xb56   :  { %v8056_v39 = vmax.f32 %v7923_v60, 0.0 }
 0xb58   :  { %v8129_v63 = vmax.f32 %v8055_v18, %v8056_v39  ;;  %v7431_v39 = vadd.f32 %v7430_v8, %v7262_v33  ;;  %v8252_v8 = vld [vmem:[#allocation3 + $0x101] ss:$16 sm:$0xc] }
 0xb59   :  { %v10761_v33 = vld [vmem:[%s15481_s5 + $0x110] sm:$0xff] }
 0xb5a   :  { %8193 = vst [vmem:[#allocation3 + $0x1b0] sm:$0xff] %v8129_v63  ;;  %v7600_v15 = vadd.f32 %v7599_v45, %v7431_v39  ;;  %v8254_v45 = vld [vmem:[#allocation3 + $0x101] ss:$16 sm:$0x30] }
 0xb5b   :  { %v7924_v14 = vpop.f32.mrf.mxu3 }
 0xb5c   :  { %v7925_v43 = vadd.f32 %v7924_v14, %v7756_v35  ;;  %v7758_v50 = vpop.f32.mrf.mxu1  ;;  %v7432_v35 = vpop.f32.mrf.mxu0  ;;  %v16365_v14 = vld [vmem:[#allocation10_spill] sm:$0xff] }
 0xb5d   :  { %v7759_v40 = vadd.f32 %v7758_v50, %v7590_v62  ;;  %v7264_v46 = vadd.f32 %v16365_v14, %v14445_v51 }
 0xb5e   :  { %v8058_v37 = vmax.f32 %v7925_v43, 0.0 }
 0xb5f   :  { %v7433_v9 = vadd.f32 %v7432_v35, %v7264_v46  ;;  %v8256_v46 = vld [vmem:[#allocation3 + $0x101] ss:$16 sm:$0xc0] }
 0xb60   :  { %v8130_v7 = vmax.f32 %v8057_v41, %v8058_v37  ;;  %v10766_v41 = vld [vmem:[%s15481_s5 + $0x138] sm:$0xff]  ;;  %v7601_v37 = vpop.f32.mrf.mxu2 }
 0xb61   :  { %9022 = vmatpush.bf16.msrb.mxu0 %v10766_v41 }
 0xb62   :  { %8194 = vst [vmem:[#allocation3 + $0x1b8] sm:$0xff] %v8130_v7 }
 0xb63   :  { %v7927_v19 = vpop.f32.mrf.mxu3 }
 0xb64   :  { %v7928_v17 = vadd.f32 %v7927_v19, %v7759_v40  ;;  %v7760_v3 = vpop.f32.mrf.mxu1  ;;  %v10765_v40 = vld [vmem:[%s15481_s5 + $0x130] sm:$0xff]  ;;  %v7435_v42 = vpop.f32.mrf.mxu0 }
 0xb65   :  { %v7761_v54 = vadd.f32 %v7760_v3, %v7592_v52  ;;  %v16366_v19 = vld [vmem:[#allocation100_spill] sm:$0xff]  ;;  %v7602_v3 = vadd.f32 %v7601_v37, %v7433_v9  ;;  %9023 = vmatpush.bf16.msrb.mxu0 %v10765_v40  ;;  %v10764_v52 = vld [vmem:[%s15481_s5 + $0x128] sm:$0xff] }
 0xb66   :  { %v8060_v49 = vmax.f32 %v7928_v17, 0.0  ;;  %v8067_v24 = vmax.f32 %v16366_v19, 0.0  ;;  %v15351_v37 = vld [vmem:[#allocation3 + $0x104] ss:$16 sm:$0xc0]  ;;  %v10760_v9 = vld [vmem:[%s15481_s5 + $0x108] sm:$0xff] }
 0xb67   :  { %v15359_v19 = vld [vmem:[#allocation3 + $0x105] ss:$16 sm:$0xc0] }
 0xb68   :  { %v8131_v53 = vmax.f32 %v8059_v29, %v8060_v49  ;;  %v10740_v49 = vld [vmem:[%s15481_s5 + $0x68] sm:$0xff] }
 0xb69   :  { %8967 = vmatpush.bf16.msrb.mxu2 %v10740_v49  ;;  %9024 = vmatpush.bf16.msrb.mxu0 %v10764_v52  ;;  %v8259_v52 = vld [vmem:[#allocation3 + $0x181] ss:$16 sm:$0x3] }
 0xb6a   :  { %8195 = vst [vmem:[#allocation3 + $0x1c0] sm:$0xff] %v8131_v53 }
 0xb6b   :  { %v7929_v47 = vpop.f32.mrf.mxu3 }
 0xb6c   :  { %v7930_v58 = vadd.f32 %v7929_v47, %v7761_v54  ;;  %v7763_v20 = vpop.f32.mrf.mxu1  ;;  %v7436_v54 = vadd.f32 %v7435_v42, %v7267_v5  ;;  %v10739_v47 = vld [vmem:[%s15481_s5 + $0x60] sm:$0xff]  ;;  %v7437_v55 = vpop.f32.mrf.mxu0 }
 0xb6d   :  { %v7764_v4 = vadd.f32 %v7763_v20, %v7595_v36  ;;  %v16369_v36 = vld [vmem:[#allocation159_spill] sm:$0xff]  ;;  %8968 = vmatpush.bf16.msrb.mxu2 %v10739_v47  ;;  %9025 = vmatpush.bf16.msrb.mxu0 %v10763_v25  ;;  %v8371_v47 = vld [vmem:[#allocation3 + $0x184] ss:$16 sm:$0x3] }
 0xb6e   :  { %v8062_v38 = vmax.f32 %v7930_v58, 0.0  ;;  %v7604_v58 = vpop.f32.mrf.mxu2  ;;  %v7269_v44 = vadd.f32 %v16369_v36, %v14445_v51  ;;  %v8219_v51 = vld [vmem:[#allocation3 + $0x100] ss:$16 sm:$0x3] }
 0xb6f   :  { %v7605_v6 = vadd.f32 %v7604_v58, %v7436_v54  ;;  %v8403_v58 = vld [vmem:[#allocation3 + $0x185] ss:$16 sm:$0x3] }
 0xb70   :  { %v8132_v28 = vmax.f32 %v8061_v56, %v8062_v38  ;;  %v8069_v56 = vmax.f32 %v16368_v21, 0.0  ;;  %v7438_v13 = vadd.f32 %v7437_v55, %v7269_v44  ;;  %v10759_v21 = vld [vmem:[%s15481_s5 + $0x100] sm:$0xff] }
 0xb71   :  { %v16371_v36 = vld [vmem:[#allocation158_spill] sm:$0xff] }
 0xb72   :  { %8196 = vst [vmem:[#allocation3 + $0x1c8] sm:$0xff] %v8132_v28  ;;  %v10738_v28 = vld [vmem:[%s15481_s5 + $0x58] sm:$0xff]  ;;  %v8073_v44 = vmax.f32 %v16371_v36, 0.0 }
 0xb73   :  { %v7932_v57 = vpop.f32.mrf.mxu3  ;;  %8969 = vmatpush.bf16.msrb.mxu2 %v10738_v28 }
 0xb74   :  { %v7933_v16 = vadd.f32 %v7932_v57, %v7764_v4  ;;  %v7765_v26 = vpop.f32.mrf.mxu1  ;;  %v10762_v4 = vld [vmem:[%s15481_s5 + $0x118] sm:$0xff] }
 0xb75   :  { %v7766_v59 = vadd.f32 %v7765_v26, %v7597_v32  ;;  %v8220_v26 = vld [vmem:[#allocation3 + $0x100] ss:$16 sm:$0xc]  ;;  %v8364_v32 = vld [vmem:[#allocation3 + $0x104] ss:$16 sm:$0xc]  ;;  %9026 = vmatpush.bf16.msrb.mxu0 %v10762_v4 }
 0xb76   :  { %v8064_v31 = vmax.f32 %v7933_v16, 0.0  ;;  %v8221_v35 = vor.u32 %v8220_v26, %v8219_v51  ;;  %v10758_v4 = vld [vmem:[%s15481_s5 + $0xf8] sm:$0xff]  ;;  %v8307_v51 = vld [vmem:[#allocation3 + $0x3] ss:$16 sm:$0x3] }
 0xb77   :  { %8970 = vmatpush.bf16.msrb.mxu2 %v10737_v27 }
 0xb78   :  { %v8133_v60 = vmax.f32 %v8063_v10, %v8064_v31  ;;  %v8251_v31 = vld [vmem:[#allocation3 + $0x101] ss:$16 sm:$0x3] }
 0xb79   :  { %v8253_v14 = vor.u32 %v8252_v8, %v8251_v31  ;;  %9027 = vmatpush.bf16.msrb.mxu0 %v10761_v33  ;;  %v8491_v31 = vld [vmem:[#allocation3 + $0x8] ss:$16 sm:$0x3] }
 0xb7a   :  { %8197 = vst [vmem:[#allocation3 + $0x1d0] sm:$0xff] %v8133_v60  ;;  %v8222_v60 = vld [vmem:[#allocation3 + $0x100] ss:$16 sm:$0x30] }
 0xb7b   :  { %v7934_v18 = vpop.f32.mrf.mxu3  ;;  %v8255_v34 = vor.u32 %v8254_v45, %v8253_v14  ;;  %v8494_v14 = vld [vmem:[#allocation3 + $0x8] ss:$16 sm:$0x30] }
 0xb7c   :  { %v7935_v48 = vadd.f32 %v7934_v18, %v7766_v59  ;;  %v7768_v23 = vpop.f32.mrf.mxu1  ;;  %v8396_v59 = vld [vmem:[#allocation3 + $0x105] ss:$16 sm:$0xc]  ;;  %v16370_v18 = vld [vmem:[#allocation9_spill] sm:$0xff] }
 0xb7d   :  { %v7769_v50 = vadd.f32 %v7768_v23, %v7600_v15  ;;  %v8071_v39 = vmax.f32 %v16370_v18, 0.0  ;;  %v8363_v23 = vld [vmem:[#allocation3 + $0x104] ss:$16 sm:$0x3]  ;;  %v8257_v49 = vor.u32 %v8256_v46, %v8255_v34  ;;  %9028 = vmatpush.bf16.msrb.mxu0 %v10760_v9 }
 0xb7e   :  { %v8066_v63 = vmax.f32 %v7935_v48, 0.0  ;;  %v8224_v15 = vld [vmem:[#allocation3 + $0x100] ss:$16 sm:$0xc0]  ;;  %v8365_v40 = vor.u32 %v8364_v32, %v8363_v23 }
 0xb7f   :  { %v15377_v32 = vld [vmem:[#allocation3 + $0x9] ss:$16 sm:$0xc]  ;;  %v8316_v18 = vld [vmem:[#allocation3 + $0x83] ss:$16 sm:$0xc] }
 0xb80   :  { %v8134_v43 = vmax.f32 %v8065_v2, %v8066_v63  ;;  %v7606_v2 = vpop.f32.mrf.mxu2  ;;  %v8367_v42 = vor.u32 %v8366_v1, %v8365_v40  ;;  %v8283_v1 = vld [vmem:[#allocation3 + $0x82] ss:$16 sm:$0x3]  ;;  %v8523_v46 = vld [vmem:[#allocation3 + $0x9] ss:$16 sm:$0x3] }
 0xb81   :  { %v7607_v11 = vadd.f32 %v7606_v2, %v7438_v13  ;;  %v8374_v26 = vld [vmem:[#allocation3 + $0x184] ss:$16 sm:$0x30]  ;;  %v8275_v13 = vld [vmem:[#allocation3 + $0x2] ss:$16 sm:$0x3]  ;;  %9029 = vmatpush.bf16.msrb.mxu0 %v10759_v21 }
 0xb82   :  { %8198 = vst [vmem:[#allocation3 + $0x1d8] sm:$0xff] %v8134_v43  ;;  %v8395_v43 = vld [vmem:[#allocation3 + $0x105] ss:$16 sm:$0x3]  ;;  %v8369_v28 = vor.u32 %v15351_v37, %v8367_v42 }
 0xb83   :  { %v7937_v62 = vpop.f32.mrf.mxu3  ;;  %v8406_v45 = vld [vmem:[#allocation3 + $0x185] ss:$16 sm:$0x30]  ;;  %v8286_v2 = vld [vmem:[#allocation3 + $0x82] ss:$16 sm:$0x30] }
 0xb84   :  { %v7938_v61 = vadd.f32 %v7937_v62, %v7769_v50  ;;  %v7770_v7 = vpop.f32.mrf.mxu1  ;;  %v8398_v50 = vld [vmem:[#allocation3 + $0x105] ss:$16 sm:$0x30]  ;;  %v10736_v62 = vld [vmem:[%s15481_s5 + $0x48] sm:$0xff] }
 0xb85   :  { %v7771_v0 = vadd.f32 %v7770_v7, %v7602_v3  ;;  %v8228_v7 = vld [vmem:[#allocation3 + $0x180] ss:$16 sm:$0xc]  ;;  %v8397_v3 = vor.u32 %v8396_v59, %v8395_v43  ;;  %8971 = vmatpush.bf16.msrb.mxu2 %v10736_v62  ;;  %v8278_v59 = vld [vmem:[#allocation3 + $0x2] ss:$16 sm:$0x30] }
 0xb86   :  { %v8068_v17 = vmax.f32 %v7938_v61, 0.0  ;;  %v8223_v61 = vor.u32 %v8222_v60, %v8221_v35  ;;  %v8315_v35 = vld [vmem:[#allocation3 + $0x83] ss:$16 sm:$0x3] }
 0xb87   :  { %v8399_v25 = vor.u32 %v8398_v50, %v8397_v3  ;;  %v10757_v43 = vld [vmem:[%s15481_s5 + $0xf0] sm:$0xff]  ;;  %v8532_v42 = vld [vmem:[#allocation3 + $0x89] ss:$16 sm:$0xc] }
 0xb88   :  { %v8135_v29 = vmax.f32 %v8067_v24, %v8068_v17  ;;  %v8260_v17 = vld [vmem:[#allocation3 + $0x181] ss:$16 sm:$0xc]  ;;  %v8225_v5 = vor.u32 %v8224_v15, %v8223_v61  ;;  %v8318_v15 = vld [vmem:[#allocation3 + $0x83] ss:$16 sm:$0x30] }
 0xb89   :  { %v8401_v8 = vor.u32 %v15359_v19, %v8399_v25  ;;  %v8526_v61 = vld [vmem:[#allocation3 + $0x9] ss:$16 sm:$0x30]  ;;  %v8312_v25 = vld [vmem:[#allocation3 + $0x3] ss:$16 sm:$0xc0] }
 0xb8a   :  { %8199 = vst [vmem:[#allocation3 + $0x1e0] sm:$0xff] %v8135_v29  ;;  %v8227_v29 = vld [vmem:[#allocation3 + $0x180] ss:$16 sm:$0x3]  ;;  %v15379_v27 = vmax.f32 %v8225_v5, %v8257_v49  ;;  %v8317_v49 = vor.u32 %v8316_v18, %v8315_v35 }
 0xb8b   :  { %v7939_v53 = vpop.f32.mrf.mxu3  ;;  %v8229_v55 = vor.u32 %v8228_v7, %v8227_v29  ;;  %v8280_v5 = vld [vmem:[#allocation3 + $0x2] ss:$16 sm:$0xc0]  ;;  %v8499_v21 = vld [vmem:[#allocation3 + $0x88] ss:$16 sm:$0x3] }
 0xb8c   :  { %v7940_v12 = vadd.f32 %v7939_v53, %v7771_v0  ;;  %v7773_v20 = vpop.f32.mrf.mxu1  ;;  %v8372_v0 = vld [vmem:[#allocation3 + $0x184] ss:$16 sm:$0xc]  ;;  %v8404_v53 = vld [vmem:[#allocation3 + $0x185] ss:$16 sm:$0xc] }
 0xb8d   :  { %v7774_v57 = vadd.f32 %v7773_v20, %v7605_v6  ;;  %v10735_v20 = vld [vmem:[%s15481_s5 + $0x40] sm:$0xff]  ;;  %v15369_v6 = vld [vmem:[#allocation3 + $0x8] ss:$16 sm:$0xc]  ;;  %v8373_v33 = vor.u32 %v8372_v0, %v8371_v47  ;;  %v8405_v60 = vor.u32 %v8404_v53, %v8403_v58  ;;  %v8272_v53 = vpack.c.bf16 %v15379_v27, %v15379_v27 }
 0xb8e   :  { %v8070_v38 = vmax.f32 %v7940_v12, 0.0  ;;  %v8230_v12 = vld [vmem:[#allocation3 + $0x180] ss:$16 sm:$0x30]  ;;  %8972 = vmatpush.bf16.msrb.mxu2 %v10735_v20  ;;  %v8493_v9 = vor.u32 %v15369_v6, %v8491_v31  ;;  %v8319_v6 = vor.u32 %v8318_v15, %v8317_v49 }
 0xb8f   :  { %v8407_v19 = vor.u32 %v8406_v45, %v8405_v60  ;;  %v8288_v47 = vld [vmem:[#allocation3 + $0x82] ss:$16 sm:$0xc0]  ;;  %v8320_v58 = vld [vmem:[#allocation3 + $0x83] ss:$16 sm:$0xc0] }
 0xb90   :  { %v8136_v22 = vmax.f32 %v8069_v56, %v8070_v38  ;;  %v8276_v56 = vld [vmem:[#allocation3 + $0x2] ss:$16 sm:$0xc]  ;;  %v15367_v38 = vld [vmem:[#allocation3 + $0x3] ss:$16 sm:$0xc]  ;;  %v8495_v36 = vor.u32 %v8494_v14, %v8493_v9 }
 0xb91   :  { %v8277_v37 = vor.u32 %v8276_v56, %v8275_v13  ;;  %v8309_v62 = vor.u32 %v15367_v38, %v8307_v51  ;;  %v8496_v20 = vld [vmem:[#allocation3 + $0x8] ss:$16 sm:$0xc0]  ;;  %v8321_v13 = vor.u32 %v8320_v58, %v8319_v6  ;;  %v8528_v51 = vld [vmem:[#allocation3 + $0x9] ss:$16 sm:$0xc0] }
 0xb92   :  { %8200 = vst [vmem:[#allocation3 + $0x1e8] sm:$0xff] %v8136_v22  ;;  %v8262_v22 = vld [vmem:[#allocation3 + $0x181] ss:$16 sm:$0x30]  ;;  %9003 = vmatpush.bf16.msra.mxu2 %v10758_v4 }
 0xb93   :  { %v7942_v16 = vpop.f32.mrf.mxu3  ;;  %v8504_v45 = vld [vmem:[#allocation3 + $0x88] ss:$16 sm:$0xc0] }
 0xb94   :  { %v7943_v10 = vadd.f32 %v7942_v16, %v7774_v57  ;;  %v7775_v63 = vpop.f32.mrf.mxu1  ;;  %v8261_v16 = vor.u32 %v8260_v17, %v8259_v52  ;;  %v8500_v17 = vld [vmem:[#allocation3 + $0x88] ss:$16 sm:$0xc]  ;;  %v8525_v52 = vor.u32 %v15377_v32, %v8523_v46  ;;  %v8568_v32 = vunpack.c.l.b16 %v8272_v53  ;;  %v8323_v53 = vld [vmem:[#allocation3 + $0x103] ss:$16 sm:$0x3] }
 0xb95   :  { %v7776_v24 = vadd.f32 %v7775_v63, %v7607_v11  ;;  %v8310_v63 = vld [vmem:[#allocation3 + $0x3] ss:$16 sm:$0x30]  ;;  %v8516_v49 = vld [vmem:[#allocation3 + $0x188] ss:$16 sm:$0xc] }
 0xb96   :  { %v8072_v48 = vmax.f32 %v7943_v10, 0.0  ;;  %v8284_v10 = vld [vmem:[#allocation3 + $0x82] ss:$16 sm:$0xc]  ;;  %v8263_v23 = vor.u32 %v8262_v22, %v8261_v16  ;;  %v8311_v38 = vor.u32 %v8310_v63, %v8309_v62  ;;  %9004 = vmatpush.bf16.msra.mxu2 %v10757_v43  ;;  %v10756_v22 = vld [vmem:[%s15481_s5 + $0xe8] sm:$0xff]  ;;  %v8527_v16 = vor.u32 %v8526_v61, %v8525_v52 }
 0xb97   :  { %v8285_v29 = vor.u32 %v8284_v10, %v8283_v1  ;;  %v8501_v10 = vor.u32 %v8500_v17, %v8499_v21  ;;  %v10755_v1 = vld [vmem:[%s15481_s5 + $0xe0] sm:$0xff]  ;;  %v8515_v21 = vld [vmem:[#allocation3 + $0x188] ss:$16 sm:$0x3] }
 0xb98   :  { %v8137_v41 = vmax.f32 %v8071_v39, %v8072_v48  ;;  %v8231_v48 = vor.u32 %v8230_v12, %v8229_v55  ;;  %v8279_v12 = vor.u32 %v8278_v59, %v8277_v37  ;;  %v8502_v55 = vld [vmem:[#allocation3 + $0x88] ss:$16 sm:$0x30]  ;;  %v8536_v59 = vld [vmem:[#allocation3 + $0x89] ss:$16 sm:$0xc0]  ;;  %v8313_v18 = vor.u32 %v8312_v25, %v8311_v38 }
 0xb99   :  { %v8287_v56 = vor.u32 %v8286_v2, %v8285_v29  ;;  %v8529_v15 = vor.u32 %v8528_v51, %v8527_v16  ;;  %v8332_v29 = vld [vmem:[#allocation3 + $0x183] ss:$16 sm:$0xc]  ;;  %v8291_v52 = vld [vmem:[#allocation3 + $0x102] ss:$16 sm:$0x3] }
 0xb9a   :  { %8201 = vst [vmem:[#allocation3 + $0x1f0] sm:$0xff] %v8137_v41  ;;  %v8375_v41 = vor.u32 %v8374_v26, %v8373_v33  ;;  %v8534_v26 = vld [vmem:[#allocation3 + $0x89] ss:$16 sm:$0x30]  ;;  %v8281_v60 = vor.u32 %v8280_v5, %v8279_v12  ;;  %9005 = vmatpush.bf16.msra.mxu2 %v10756_v22 }
 0xb9b   :  { %v7944_v30 = vpop.f32.mrf.mxu3  ;;  %v8331_v5 = vld [vmem:[#allocation3 + $0x183] ss:$16 sm:$0x3]  ;;  %v8508_v12 = vld [vmem:[#allocation3 + $0x108] ss:$16 sm:$0xc] }
 0xb9c   :  { %v7945_v54 = vadd.f32 %v7944_v30, %v7776_v24  ;;  %v8412_v24 = vmax.f32 %v8369_v28, %v8401_v8  ;;  %v8289_v8 = vor.u32 %v8288_v47, %v8287_v56  ;;  %v8540_v47 = vld [vmem:[#allocation3 + $0x109] ss:$16 sm:$0xc]  ;;  %v8507_v22 = vld [vmem:[#allocation3 + $0x108] ss:$16 sm:$0x3] }
 0xb9d   :  { %v8548_v25 = vld [vmem:[#allocation3 + $0x189] ss:$16 sm:$0xc] }
 0xb9e   :  { %v8074_v57 = vmax.f32 %v7945_v54, 0.0  ;;  %v8339_v14 = vmax.f32 %v8289_v8, %v8321_v13  ;;  %9006 = vmatpush.bf16.msra.mxu2 %v10755_v1  ;;  %v8547_v56 = vld [vmem:[#allocation3 + $0x189] ss:$16 sm:$0x3] }
 0xb9f   :  { %v10752_v38 = vld [vmem:[%s15481_s5 + $0xc8] sm:$0xff] }
 0xba0   :  { %v8138_v39 = vmax.f32 %v8073_v44, %v8074_v57  ;;  %v8531_v44 = vld [vmem:[#allocation3 + $0x89] ss:$16 sm:$0x3]  ;;  %v8416_v57 = vpack.c.bf16 %v8412_v24, %v8412_v24  ;;  %v8343_v62 = vpack.c.bf16 %v8339_v14, %v8339_v14  ;;  %v8324_v24 = vld [vmem:[#allocation3 + $0x103] ss:$16 sm:$0xc] }
 0xba1   :  { %v8232_v50 = vld [vmem:[#allocation3 + $0x180] ss:$16 sm:$0xc0]  ;;  %v8264_v11 = vld [vmem:[#allocation3 + $0x181] ss:$16 sm:$0xc0]  ;;  %v8533_v31 = vor.u32 %v8532_v42, %v8531_v44  ;;  %v8333_v44 = vor.u32 %v8332_v29, %v8331_v5 }
 0xba2   :  { %8202 = vst [vmem:[#allocation3 + $0x1f8] sm:$0xff] %v8138_v39  ;;  %v8233_v7 = vor.u32 %v8232_v50, %v8231_v48  ;;  %v8265_v34 = vor.u32 %v8264_v11, %v8263_v23  ;;  %v8376_v40 = vld [vmem:[#allocation3 + $0x184] ss:$16 sm:$0xc0]  ;;  %v8497_v39 = vor.u32 %v8496_v20, %v8495_v36  ;;  %v8503_v48 = vor.u32 %v8502_v55, %v8501_v10 }
 0xba3   :  { %v8377_v3 = vor.u32 %v8376_v40, %v8375_v41  ;;  %v8408_v30 = vld [vmem:[#allocation3 + $0x185] ss:$16 sm:$0xc0]  ;;  %v8535_v23 = vor.u32 %v8534_v26, %v8533_v31  ;;  %v8592_v63 = vunpack.c.l.b16 %v8416_v57  ;;  %v8338_v11 = vmax.f32 %v8281_v60, %v8313_v18  ;;  %v10754_v41 = vld [vmem:[%s15481_s5 + $0xd8] sm:$0xff] }
 0xba4   :  { %v8269_v0 = vmax.f32 %v8233_v7, %v8265_v34  ;;  %v8409_v54 = vor.u32 %v8408_v30, %v8407_v19  ;;  %v8505_v46 = vor.u32 %v8504_v45, %v8503_v48  ;;  %v8554_v37 = vmax.f32 %v8497_v39, %v8529_v15  ;;  %9007 = vmatpush.bf16.msra.mxu2 %v10754_v41  ;;  %v10753_v7 = vld [vmem:[%s15481_s5 + $0xd0] sm:$0xff]  ;;  %v8539_v57 = vld [vmem:[#allocation3 + $0x109] ss:$16 sm:$0x3] }
 0xba5   :  { %v8537_v43 = vor.u32 %v8536_v59, %v8535_v23  ;;  %v8342_v61 = vpack.c.bf16 %v8338_v11, %v8338_v11  ;;  %v8292_v40 = vld [vmem:[#allocation3 + $0x102] ss:$16 sm:$0xc]  ;;  %v8579_v17 = vunpack.c.l.b16 %v8343_v62  ;;  %v8334_v20 = vld [vmem:[#allocation3 + $0x183] ss:$16 sm:$0x30]  ;;  %v8325_v31 = vor.u32 %v8324_v24, %v8323_v53 }
 0xba6   :  { %v8273_v28 = vpack.c.bf16 %v8269_v0, %v8269_v0  ;;  %v8413_v4 = vmax.f32 %v8377_v3, %v8409_v54  ;;  %v8558_v34 = vpack.c.bf16 %v8554_v37, %v8554_v37  ;;  %v8300_v19 = vld [vmem:[#allocation3 + $0x182] ss:$16 sm:$0xc]  ;;  %v8326_v54 = vld [vmem:[#allocation3 + $0x103] ss:$16 sm:$0x30]  ;;  %v8293_v13 = vor.u32 %v8292_v40, %v8291_v52 }
 0xba7   :  { %v8555_v9 = vmax.f32 %v8505_v46, %v8537_v43  ;;  %v8299_v30 = vld [vmem:[#allocation3 + $0x182] ss:$16 sm:$0x3]  ;;  %v8578_v58 = vunpack.c.l.b16 %v8342_v61  ;;  %v8542_v55 = vld [vmem:[#allocation3 + $0x109] ss:$16 sm:$0x30]  ;;  %v8335_v60 = vor.u32 %v8334_v20, %v8333_v44  ;;  %v8517_v45 = vor.u32 %v8516_v49, %v8515_v21 }
 0xba8   :  { %v8569_v27 = vunpack.c.l.b16 %v8273_v28  ;;  %v8417_v33 = vpack.c.bf16 %v8413_v4, %v8413_v4  ;;  %v8294_v42 = vld [vmem:[#allocation3 + $0x102] ss:$16 sm:$0x30]  ;;  %9008 = vmatpush.bf16.msra.mxu2 %v10753_v7  ;;  %v8614_v6 = vunpack.c.l.b16 %v8558_v34  ;;  %v8301_v36 = vor.u32 %v8300_v19, %v8299_v30  ;;  %v8510_v28 = vld [vmem:[#allocation3 + $0x108] ss:$16 sm:$0x30] }
 0xba9   :  { %v8559_v3 = vpack.c.bf16 %v8555_v9, %v8555_v9  ;;  %v8302_v0 = vld [vmem:[#allocation3 + $0x182] ss:$16 sm:$0x30]  ;;  %v8518_v4 = vld [vmem:[#allocation3 + $0x188] ss:$16 sm:$0x30]  ;;  %v8582_v26 = vpack.c.b16 %v8579_v17, %v8578_v58  ;;  %v8549_v18 = vor.u32 %v8548_v25, %v8547_v56  ;;  %v8295_v39 = vor.u32 %v8294_v42, %v8293_v13 }
 0xbaa   :  { %v8571_v2 = vpack.c.b16 %v8569_v27, %v8568_v32  ;;  %v8593_v35 = vunpack.c.l.b16 %v8417_v33  ;;  %v8550_v16 = vld [vmem:[#allocation3 + $0x189] ss:$16 sm:$0x30]  ;;  %v8296_v10 = vld [vmem:[#allocation3 + $0x102] ss:$16 sm:$0xc0]  ;;  %v8303_v27 = vor.u32 %v8302_v0, %v8301_v36  ;;  %v8327_v48 = vor.u32 %v8326_v54, %v8325_v31 }
 0xbab   :  { %v8615_v8 = vunpack.c.l.b16 %v8559_v3  ;;  %v8304_v51 = vld [vmem:[#allocation3 + $0x182] ss:$16 sm:$0xc0]  ;;  %v8336_v32 = vld [vmem:[#allocation3 + $0x183] ss:$16 sm:$0xc0]  ;;  %v8509_v23 = vor.u32 %v8508_v12, %v8507_v22  ;;  %v8541_v1 = vor.u32 %v8540_v47, %v8539_v57  ;;  %v8519_v14 = vor.u32 %v8518_v4, %v8517_v45 }
 0xbac   :  { %8959 = vmatmul.bf16.gmra.mxu2 %v8571_v2  ;;  %v8595_v50 = vpack.c.b16 %v8593_v35, %v8592_v63  ;;  %v8328_v33 = vld [vmem:[#allocation3 + $0x103] ss:$16 sm:$0xc0]  ;;  %v8520_v59 = vld [vmem:[#allocation3 + $0x188] ss:$16 sm:$0xc0]  ;;  %v8305_v35 = vor.u32 %v8304_v51, %v8303_v27  ;;  %v8337_v15 = vor.u32 %v8336_v32, %v8335_v60  ;;  %v8551_v46 = vor.u32 %v8550_v16, %v8549_v18 }
 0xbad   :  { %v8552_v2 = vld [vmem:[#allocation3 + $0x189] ss:$16 sm:$0xc0]  ;;  %9009 = vmatpush.bf16.msra.mxu2 %v10752_v38  ;;  %v10751_v63 = vld [vmem:[%s15481_s5 + $0xc0] sm:$0xff]  ;;  %v8618_v43 = vpack.c.b16 %v8615_v8, %v8614_v6  ;;  %v8543_v41 = vor.u32 %v8542_v55, %v8541_v1  ;;  %v8297_v62 = vor.u32 %v8296_v10, %v8295_v39  ;;  %v8329_v9 = vor.u32 %v8328_v33, %v8327_v48 }
 0xbae   :  { %8997 = vmatmul.bf16.gmra.mxu0 %v8595_v50  ;;  %v8511_v50 = vor.u32 %v8510_v28, %v8509_v23  ;;  %v8512_v11 = vld [vmem:[#allocation3 + $0x108] ss:$16 sm:$0xc0]  ;;  %v8544_v37 = vld [vmem:[#allocation3 + $0x109] ss:$16 sm:$0xc0]  ;;  %v8521_v61 = vor.u32 %v8520_v59, %v8519_v14  ;;  %v8553_v7 = vor.u32 %v8552_v2, %v8551_v46  ;;  %v8341_v34 = vmax.f32 %v8305_v35, %v8337_v15 }
 0xbaf   :  { %v8545_v19 = vor.u32 %v8544_v37, %v8543_v41  ;;  %v8340_v24 = vmax.f32 %v8297_v62, %v8329_v9  ;;  %v8420_v5 = vld [vmem:[#allocation3 + $0x6] ss:$16 sm:$0xc]  ;;  %v8452_v49 = vld [vmem:[#allocation3 + $0x7] ss:$16 sm:$0xc] }
 0xbb0   :  { %v8513_v40 = vor.u32 %v8512_v11, %v8511_v50  ;;  %v8557_v17 = vmax.f32 %v8521_v61, %v8553_v7  ;;  %v8345_v3 = vpack.c.bf16 %v8341_v34, %v8341_v34  ;;  %v8428_v29 = vld [vmem:[#allocation3 + $0x86] ss:$16 sm:$0xc]  ;;  %v8460_v52 = vld [vmem:[#allocation3 + $0x87] ss:$16 sm:$0xc] }
 0xbb1   :  { %9010 = vmatpush.bf16.msra.mxu2 %v10751_v63  ;;  %v8427_v42 = vld [vmem:[#allocation3 + $0x86] ss:$16 sm:$0x3]  ;;  %v8459_v0 = vld [vmem:[#allocation3 + $0x87] ss:$16 sm:$0x3]  ;;  %v8344_v53 = vpack.c.bf16 %v8340_v24, %v8340_v24 }
 0xbb2   :  { %v8556_v30 = vmax.f32 %v8513_v40, %v8545_v19  ;;  %v8561_v54 = vpack.c.bf16 %v8557_v17, %v8557_v17  ;;  %v8419_v12 = vld [vmem:[#allocation3 + $0x6] ss:$16 sm:$0x3]  ;;  %v8451_v25 = vld [vmem:[#allocation3 + $0x7] ss:$16 sm:$0x3]  ;;  %v8429_v21 = vor.u32 %v8428_v29, %v8427_v42  ;;  %v8461_v38 = vor.u32 %v8460_v52, %v8459_v0 }
 0xbb3   :  { %v8430_v47 = vld [vmem:[#allocation3 + $0x86] ss:$16 sm:$0x30]  ;;  %v8462_v58 = vld [vmem:[#allocation3 + $0x87] ss:$16 sm:$0x30]  ;;  %v8581_v6 = vunpack.c.l.b16 %v8345_v3  ;;  %v8421_v28 = vor.u32 %v8420_v5, %v8419_v12  ;;  %v8453_v57 = vor.u32 %v8452_v49, %v8451_v25  ;;  %v8580_v16 = vunpack.c.l.b16 %v8344_v53 }
 0xbb4   :  { %v8422_v20 = vld [vmem:[#allocation3 + $0x6] ss:$16 sm:$0x30]  ;;  %v8454_v56 = vld [vmem:[#allocation3 + $0x7] ss:$16 sm:$0x30]  ;;  %v8560_v36 = vpack.c.bf16 %v8556_v30, %v8556_v30  ;;  %v8431_v4 = vor.u32 %v8430_v47, %v8429_v21  ;;  %v8463_v55 = vor.u32 %v8462_v58, %v8461_v38  ;;  %v8955_v38 = vpop.f32.mrf.mxu2 }
 0xbb5   :  { %v8432_v44 = vld [vmem:[#allocation3 + $0x86] ss:$16 sm:$0xc0]  ;;  %v8464_v22 = vld [vmem:[#allocation3 + $0x87] ss:$16 sm:$0xc0]  ;;  %v8423_v10 = vor.u32 %v8422_v20, %v8421_v28  ;;  %v8455_v31 = vor.u32 %v8454_v56, %v8453_v57  ;;  %v8583_v27 = vpack.c.b16 %v8581_v6, %v8580_v16  ;;  %v8993_v28 = vpop.f32.mrf.mxu0 }
 0xbb6   :  { %v8424_v8 = vld [vmem:[#allocation3 + $0x6] ss:$16 sm:$0xc0]  ;;  %v8456_v13 = vld [vmem:[#allocation3 + $0x7] ss:$16 sm:$0xc0]  ;;  %v8433_v51 = vor.u32 %v8432_v44, %v8431_v4  ;;  %v8465_v32 = vor.u32 %v8464_v22, %v8463_v55  ;;  %v8616_v33 = vunpack.c.l.b16 %v8560_v36 }
 0xbb7   :  { %v8425_v60 = vor.u32 %v8424_v8, %v8423_v10  ;;  %v8457_v45 = vor.u32 %v8456_v13, %v8455_v31  ;;  %v8436_v1 = vld [vmem:[#allocation3 + $0x106] ss:$16 sm:$0xc]  ;;  %v8468_v63 = vld [vmem:[#allocation3 + $0x107] ss:$16 sm:$0xc] }
 0xbb8   :  { %v8483_v18 = vmax.f32 %v8433_v51, %v8465_v32  ;;  %v8444_v2 = vld [vmem:[#allocation3 + $0x186] ss:$16 sm:$0xc]  ;;  %v8476_v35 = vld [vmem:[#allocation3 + $0x187] ss:$16 sm:$0xc] }
 0xbb9   :  { %v8482_v39 = vmax.f32 %v8425_v60, %v8457_v45  ;;  %v8443_v15 = vld [vmem:[#allocation3 + $0x186] ss:$16 sm:$0x3]  ;;  %v8475_v14 = vld [vmem:[#allocation3 + $0x187] ss:$16 sm:$0x3] }
 0xbba   :  { %v8487_v48 = vpack.c.bf16 %v8483_v18, %v8483_v18  ;;  %v8446_v50 = vld [vmem:[#allocation3 + $0x186] ss:$16 sm:$0x30]  ;;  %v8467_v11 = vld [vmem:[#allocation3 + $0x107] ss:$16 sm:$0x3]  ;;  %v8445_v62 = vor.u32 %v8444_v2, %v8443_v15  ;;  %v8477_v61 = vor.u32 %v8476_v35, %v8475_v14 }
 0xbbb   :  { %v8486_v23 = vpack.c.bf16 %v8482_v39, %v8482_v39  ;;  %v8478_v41 = vld [vmem:[#allocation3 + $0x187] ss:$16 sm:$0x30]  ;;  %v8438_v37 = vld [vmem:[#allocation3 + $0x106] ss:$16 sm:$0x30]  ;;  %v8469_v17 = vor.u32 %v8468_v63, %v8467_v11 }
 0xbbc   :  { %8973 = vmatmul.bf16.vlgmr.msrb.gmra.mxu2 %v8582_v26  ;;  %v8617_v26 = vunpack.c.l.b16 %v8561_v54  ;;  %v8603_v46 = vunpack.c.l.b16 %v8487_v48  ;;  %v8470_v9 = vld [vmem:[#allocation3 + $0x107] ss:$16 sm:$0x30]  ;;  %v8448_v34 = vld [vmem:[#allocation3 + $0x186] ss:$16 sm:$0xc0]  ;;  %v8447_v24 = vor.u32 %v8446_v50, %v8445_v62  ;;  %v8479_v3 = vor.u32 %v8478_v41, %v8477_v61  ;;  %v8957_v6 = vpop.f32.mrf.mxu2 }
 0xbbd   :  { %v8602_v7 = vunpack.c.l.b16 %v8486_v23  ;;  %v8480_v40 = vld [vmem:[#allocation3 + $0x187] ss:$16 sm:$0xc0]  ;;  %v8440_v5 = vld [vmem:[#allocation3 + $0x106] ss:$16 sm:$0xc0]  ;;  %v8471_v42 = vor.u32 %v8470_v9, %v8469_v17  ;;  %v8995_v16 = vpop.f32.mrf.mxu0 }
 0xbbe   :  { %9030 = vmatmul.bf16.vlgmr.msrb.gmra.mxu0 %v8618_v43  ;;  %v8619_v59 = vpack.c.b16 %v8617_v26, %v8616_v33  ;;  %v8435_v43 = vld [vmem:[#allocation3 + $0x106] ss:$16 sm:$0x3]  ;;  %v8472_v29 = vld [vmem:[#allocation3 + $0x107] ss:$16 sm:$0xc0]  ;;  %v8449_v52 = vor.u32 %v8448_v34, %v8447_v24  ;;  %v8481_v0 = vor.u32 %v8480_v40, %v8479_v3 }
 0xbbf   :  { %v8437_v19 = vor.u32 %v8436_v1, %v8435_v43  ;;  %v8606_v30 = vpack.c.b16 %v8603_v46, %v8602_v7  ;;  %v8473_v54 = vor.u32 %v8472_v29, %v8471_v42  ;;  %v10774_v44 = vld [vmem:[%s15484_s7 + $0x38] sm:$0xff]  ;;  %v10773_v22 = vld [vmem:[%s15484_s7 + $0x30] sm:$0xff]  ;;  %v10772_v57 = vld [vmem:[%s15484_s7 + $0x28] sm:$0xff] }
 0xbc0   :  { %v8485_v12 = vmax.f32 %v8449_v52, %v8481_v0  ;;  %9115 = vmatpush.bf16.msrb.mxu2 %v10774_v44  ;;  %v10771_v55 = vld [vmem:[%s15484_s7 + $0x20] sm:$0xff]  ;;  %v10770_v8 = vld [vmem:[%s15484_s7 + $0x18] sm:$0xff]  ;;  %v10769_v13 = vld [vmem:[%s15484_s7 + $0x10] sm:$0xff] }
 0xbc1   :  { %v8439_v49 = vor.u32 %v8438_v37, %v8437_v19  ;;  %v10768_v31 = vld [vmem:[%s15484_s7 + $0x8] sm:$0xff]  ;;  %v10788_v45 = vld [vmem:[%s15482_s6] ss:$0 sm:$0xff]  ;;  %v10782_v1 = vld [vmem:[%s15485_s9 + $0x38] sm:$0xff] }
 0xbc2   :  { %v8489_v25 = vpack.c.bf16 %v8485_v12, %v8485_v12  ;;  %v8956_v18 = vadd.f32 %v10788_v45, %v8955_v38  ;;  %v8958_v23 = vadd.f32 %v10788_v45, %v8957_v6  ;;  %9208 = vmatpush.bf16.msra.mxu0 %v10782_v1  ;;  %v10781_v35 = vld [vmem:[%s15485_s9 + $0x30] sm:$0xff]  ;;  %v10780_v43 = vld [vmem:[%s15485_s9 + $0x28] sm:$0xff]  ;;  %v10779_v62 = vld [vmem:[%s15485_s9 + $0x20] sm:$0xff] }
 0xbc3   :  { %v8441_v53 = vor.u32 %v8440_v5, %v8439_v49  ;;  %v10778_v19 = vld [vmem:[%s15485_s9 + $0x18] sm:$0xff]  ;;  %v10789_v38 = vld [vmem:[%s15483_s8] ss:$0 sm:$0xff] }
 0xbc4   :  { %v8605_v20 = vunpack.c.l.b16 %v8489_v25  ;;  %9116 = vmatpush.bf16.msrb.mxu2 %v10773_v22 }
 0xbc5   :  { %v8484_v47 = vmax.f32 %v8441_v53, %v8473_v54 }
 0xbc6   :  { %9209 = vmatpush.bf16.msra.mxu0 %v10781_v35 }
 0xbc7   :  { %v8488_v58 = vpack.c.bf16 %v8484_v47, %v8484_v47 }
 0xbc8   :  { %9117 = vmatpush.bf16.msrb.mxu2 %v10772_v57 }
 0xbc9   :  { %v8604_v21 = vunpack.c.l.b16 %v8488_v58  ;;  %v10777_v58 = vld [vmem:[%s15485_s9 + $0x10] sm:$0xff] }
 0xbca   :  { %9210 = vmatpush.bf16.msra.mxu0 %v10780_v43 }
 0xbcb   :  { %v8607_v56 = vpack.c.b16 %v8605_v20, %v8604_v21  ;;  %v10776_v20 = vld [vmem:[%s15485_s9 + $0x8] sm:$0xff]  ;;  %v10775_v21 = vld [vmem:[%s15485_s9] sm:$0xff] }
 0xbcc   :  { %8978 = vmatmul.bf16.gmra.mxu2 %v8583_v27  ;;  %v10767_v27 = vld [vmem:[%s15484_s7] sm:$0xff] }
 0xbcd   :  { %9118 = vmatpush.bf16.msrb.mxu2 %v10771_v55 }
 0xbce   :  { %9035 = vmatmul.bf16.gmra.mxu0 %v8619_v59 }
 0xbcf   :  { %9211 = vmatpush.bf16.msra.mxu0 %v10779_v62 }
 0xbd1   :  { %9119 = vmatpush.bf16.msrb.mxu2 %v10770_v8 }
 0xbd3   :  { %9212 = vmatpush.bf16.msra.mxu0 %v10778_v19 }
 0xbd5   :  { %9120 = vmatpush.bf16.msrb.mxu2 %v10769_v13 }
 0xbd7   :  { %9213 = vmatpush.bf16.msra.mxu0 %v10777_v58 }
 0xbd9   :  { %9121 = vmatpush.bf16.msrb.mxu2 %v10768_v31 }
 0xbdb   :  { %9214 = vmatpush.bf16.msra.mxu0 %v10776_v20 }
 0xbdc   :  { %9011 = vmatmul.bf16.vlgmr.msra.gmra.mxu2 %v8606_v30 }
 0xbdd   :  { %9122 = vmatpush.bf16.msrb.mxu2 %v10767_v27 }
 0xbdf   :  { %9215 = vmatpush.bf16.msra.mxu0 %v10775_v21 }
 0xbec   :  { %9016 = vmatmul.bf16.gmra.mxu2 %v8607_v56 }
 0xc2b   :  { %v8998_v10 = vpop.f32.mrf.mxu0 }
 0xc2f   :  { %v8960_v36 = vpop.f32.mrf.mxu2 }
 0xc30   :  { %v8961_v9 = vadd.f32 %v10788_v45, %v8960_v36 }
 0xc33   :  { %v9000_v33 = vpop.f32.mrf.mxu0 }
 0xc37   :  { %v8962_v4 = vpop.f32.mrf.mxu2 }
 0xc38   :  { %v8963_v3 = vadd.f32 %v10788_v45, %v8962_v4 }
 0xc3b   :  { %v9031_v59 = vpop.f32.mrf.mxu0 }
 0xc3f   :  { %v8974_v26 = vpop.f32.mrf.mxu2 }
 0xc40   :  { %v8975_v39 = vadd.f32 %v8974_v26, %v8956_v18 }
 0xc42   :  { %v8994_v63 = vadd.f32 %v8993_v28, %v8975_v39 }
 0xc43   :  { %v9033_v14 = vpop.f32.mrf.mxu0 }
 0xc47   :  { %v8976_v51 = vpop.f32.mrf.mxu2 }
 0xc48   :  { %v8977_v2 = vadd.f32 %v8976_v51, %v8958_v23  ;;  %v10790_v51 = vld [vmem:[%s15486_s10] ss:$0 sm:$0xff] }
 0xc4a   :  { %v8996_v46 = vadd.f32 %v8995_v16, %v8977_v2 }
 0xc4b   :  { %v9036_v24 = vpop.f32.mrf.mxu0 }
 0xc4f   :  { %v8979_v32 = vpop.f32.mrf.mxu2 }
 0xc50   :  { %v8980_v34 = vadd.f32 %v8979_v32, %v8961_v9 }
 0xc52   :  { %v8999_v5 = vadd.f32 %v8998_v10, %v8980_v34 }
 0xc53   :  { %v9038_v53 = vpop.f32.mrf.mxu0 }
 0xc57   :  { %v8981_v60 = vpop.f32.mrf.mxu2 }
 0xc58   :  { %v8982_v30 = vadd.f32 %v8981_v60, %v8963_v3 }
 0xc5a   :  { %v9001_v49 = vadd.f32 %v9000_v33, %v8982_v30 }
 0xc5f   :  { %v9012_v48 = vpop.f32.mrf.mxu2 }
 0xc60   :  { %v9013_v15 = vadd.f32 %v9012_v48, %v8994_v63 }
 0xc62   :  { %v9032_v11 = vadd.f32 %v9031_v59, %v9013_v15 }
 0xc64   :  { %v9041_v61 = vmax.f32 %v9032_v11, 0.0 }
 0xc67   :  { %v9014_v50 = vpop.f32.mrf.mxu2 }
 0xc68   :  { %v9015_v41 = vadd.f32 %v9014_v50, %v8996_v46 }
 0xc6a   :  { %v9034_v37 = vadd.f32 %v9033_v14, %v9015_v41 }
 0xc6c   :  { %v9042_v7 = vmax.f32 %v9034_v37, 0.0 }
 0xc6e   :  { %v9045_v40 = vpack.c.bf16 %v9042_v7, %v9041_v61 }
 0xc6f   :  { %v9017_v17 = vpop.f32.mrf.mxu2 }
 0xc70   :  { %9123 = vmatmul.bf16.vlgmr.msrb.gmra.mxu2 %v9045_v40  ;;  %v9018_v29 = vadd.f32 %v9017_v17, %v8999_v5 }
 0xc72   :  { %v9037_v42 = vadd.f32 %v9036_v24, %v9018_v29 }
 0xc74   :  { %v9043_v12 = vmax.f32 %v9037_v42, 0.0 }
 0xc77   :  { %v9019_v52 = vpop.f32.mrf.mxu2 }
 0xc78   :  { %v9020_v0 = vadd.f32 %v9019_v52, %v9001_v49 }
 0xc7a   :  { %v9039_v54 = vadd.f32 %v9038_v53, %v9020_v0 }
 0xc7c   :  { %v9044_v47 = vmax.f32 %v9039_v54, 0.0 }
 0xc7e   :  { %v9046_v25 = vpack.c.bf16 %v9044_v47, %v9043_v12 }
 0xc80   :  { %9128 = vmatmul.bf16.gmra.mxu2 %v9046_v25 }
 0xcf3   :  { %v9124_v56 = vpop.f32.mrf.mxu2 }
 0xcf4   :  { %v9125_v6 = vadd.f32 %v10789_v38, %v9124_v56 }
 0xcf6   :  { %v9134_v22 = vmax.f32 %v9125_v6, 0.0 }
 0xcfb   :  { %v9126_v36 = vpop.f32.mrf.mxu2 }
 0xcfc   :  { %v9127_v44 = vadd.f32 %v10789_v38, %v9126_v36 }
 0xcfe   :  { %v9135_v28 = vmax.f32 %v9127_v44, 0.0 }
 0xd00   :  { %v9138_v4 = vpack.c.bf16 %v9135_v28, %v9134_v22 }
 0xd02   :  { %9216 = vmatmul.bf16.vlgmr.msra.gmra.mxu0 %v9138_v4 }
 0xd03   :  { %v9129_v57 = vpop.f32.mrf.mxu2 }
 0xd04   :  { %v9130_v55 = vadd.f32 %v10789_v38, %v9129_v57 }
 0xd06   :  { %v9136_v8 = vmax.f32 %v9130_v55, 0.0 }
 0xd0b   :  { %v9131_v16 = vpop.f32.mrf.mxu2 }
 0xd0c   :  { %v9132_v26 = vadd.f32 %v10789_v38, %v9131_v16 }
 0xd0e   :  { %v9137_v13 = vmax.f32 %v9132_v26, 0.0 }
 0xd10   :  { %v9139_v10 = vpack.c.bf16 %v9137_v13, %v9136_v8 }
 0xd12   :  { %9221 = vmatmul.bf16.gmra.mxu0 %v9139_v10 }
 0xd7f   :  { %v9217_v31 = vpop.f32.mrf.mxu0 }
 0xd80   :  { %v9218_v32 = vadd.f32 %v10790_v51, %v9217_v31 }
 0xd82   :  { %9227 = vst [vmem:[%s15487_s11] sm:$0xff] %v9218_v32 }
 0xd87   :  { %v9219_v27 = vpop.f32.mrf.mxu0 }
 0xd88   :  { %v9220_v33 = vadd.f32 %v10790_v51, %v9219_v27 }
 0xd8a   :  { %9228 = vst [vmem:[%s15487_s11 + $0x8] sm:$0xff] %v9220_v33 }
 0xd8f   :  { %v9222_v60 = vpop.f32.mrf.mxu0 }
 0xd90   :  { %v9223_v45 = vadd.f32 %v10790_v51, %v9222_v60 }
 0xd92   :  { %9229 = vst [vmem:[%s15487_s11 + $0x10] sm:$0xff] %v9223_v45 }
 0xd97   :  { %v9224_v59 = vpop.f32.mrf.mxu0 }
 0xd98   :  { %v9225_v18 = vadd.f32 %v10790_v51, %v9224_v59 }
 0xd9a   :  { %9230 = vst [vmem:[%s15487_s11 + $0x18] sm:$0xff] %v9225_v18 }

</bundles_post_ra>
